<compile_context>
chip_gen: v6e
topology: v6e:2x2x1
jax: 0.10.0
libtpu: 0.0.40
codegen_flags: <defaults>
</compile_context>

<pallas_src>
import numpy as np

import jax
import jax.numpy as jnp
from jax.experimental import pallas as pl
from jax.experimental.pallas import tpu as pltpu


def _round_up(a, m):
    return (a + m - 1) // m * m


def _apply_dropout(out, rand, dropout_p):
    # Inverted dropout: keep with prob (1 - p), scale survivors by 1/(1-p).
    keep = rand >= dropout_p
    return jnp.where(keep, out * (1.0 / (1.0 - dropout_p)), 0.0)


# ---------------------------------------------------------------------------
# Kernels
# ---------------------------------------------------------------------------

def _make_resident_kernel(dropout_p):
    """Whole (padded) weight matrices resident in VMEM; grid = (row_tiles,)."""

    def compute(x_ref, w1_ref, b1_ref, w2_ref, b2_ref):
        h = jnp.dot(x_ref[...], w1_ref[...], preferred_element_type=jnp.float32)
        h = jnp.maximum(h + b1_ref[...], 0.0)
        out = jnp.dot(h.astype(w2_ref.dtype), w2_ref[...],
                      preferred_element_type=jnp.float32)
        return out + b2_ref[...]

    if dropout_p > 0.0:
        def kernel(x_ref, w1_ref, b1_ref, w2_ref, b2_ref, rand_ref, o_ref):
            out = compute(x_ref, w1_ref, b1_ref, w2_ref, b2_ref)
            out = _apply_dropout(out, rand_ref[...], dropout_p)
            o_ref[...] = out.astype(o_ref.dtype)
    else:
        def kernel(x_ref, w1_ref, b1_ref, w2_ref, b2_ref, o_ref):
            out = compute(x_ref, w1_ref, b1_ref, w2_ref, b2_ref)
            o_ref[...] = out.astype(o_ref.dtype)
    return kernel


def _make_streamed_kernel(dropout_p):
    """Hidden dim streamed in slices; grid = (row_tiles, hidden_tiles)."""

    def body(x_ref, w1_ref, b1_ref, w2_ref, b2_ref, rand_ref, o_ref, acc_ref):
        k = pl.program_id(1)
        h = jnp.dot(x_ref[...], w1_ref[...], preferred_element_type=jnp.float32)
        h = jnp.maximum(h + b1_ref[...], 0.0)
        contrib = jnp.dot(h.astype(w2_ref.dtype), w2_ref[...],
                          preferred_element_type=jnp.float32)

        @pl.when(k == 0)               # fused init: no separate zeroing pass
        def _init():
            acc_ref[...] = contrib

        @pl.when(k > 0)
        def _accum():
            acc_ref[...] += contrib

        @pl.when(k == pl.num_programs(1) - 1)
        def _finalize():
            out = acc_ref[...] + b2_ref[...]
            if rand_ref is not None:
                out = _apply_dropout(out, rand_ref[...], dropout_p)
            o_ref[...] = out.astype(o_ref.dtype)

    if dropout_p > 0.0:
        def kernel(x_ref, w1_ref, b1_ref, w2_ref, b2_ref, rand_ref, o_ref, acc_ref):
            body(x_ref, w1_ref, b1_ref, w2_ref, b2_ref, rand_ref, o_ref, acc_ref)
    else:
        def kernel(x_ref, w1_ref, b1_ref, w2_ref, b2_ref, o_ref, acc_ref):
            body(x_ref, w1_ref, b1_ref, w2_ref, b2_ref, None, o_ref, acc_ref)
    return kernel


# ---------------------------------------------------------------------------
# Wrapper
# ---------------------------------------------------------------------------

def _default_vmem_limit_bytes():
    # Generation-aware: ~3/4 of physical VMEM (v7x 64 MiB -> 48 MiB,
    # v5e/v6e 128 MiB -> 96 MiB).  Conservative fallback if the query fails.
    try:
        cap = pltpu.get_tpu_info().vmem_capacity_bytes
        return int(min(cap * 3 // 4, 100 * 1024 * 1024))
    except Exception:
        return 48 * 1024 * 1024


def ffn_forward(x, w1, b1, w2, b2, *, dropout_p=0.0, seed=0,
                tile_rows=None, tile_hidden=None,
                compute_dtype=jnp.bfloat16, vmem_limit_bytes=None):
    """x: [N, d_model]; w1: [d_model, hidden]; b1: [hidden];
       w2: [hidden, d_model]; b2: [d_model]  ->  [N, d_model]."""
    n, d_model = x.shape
    hidden = w1.shape[1]
    assert w1.shape == (d_model, hidden) and w2.shape == (hidden, d_model)
    assert b1.shape == (hidden,) and b2.shape == (d_model,)
    assert 0.0 <= float(dropout_p) < 1.0
    dropout_p = float(dropout_p)
    use_dropout = dropout_p > 0.0

    out_dtype = x.dtype
    c_itemsize = np.dtype(compute_dtype).itemsize
    out_itemsize = np.dtype(out_dtype).itemsize

    if vmem_limit_bytes is None:
        vmem_limit_bytes = _default_vmem_limit_bytes()
    vmem_limit_bytes = int(vmem_limit_bytes)

    # ---- Lane padding: d_model -> multiple of 128 (lane-dense stores, aligned
    # MXU).  Pad columns are zero, so results are exact.
    d_pad = _round_up(d_model, 128)

    # ---- Weight residency decision.
    resident_weight_bytes = 2 * d_pad * _round_up(hidden, 128) * c_itemsize
    if tile_hidden is not None:
        tile_hidden = _round_up(min(int(tile_hidden), hidden), 128)
        streamed = tile_hidden < hidden
    else:
        streamed = resident_weight_bytes > (2 * vmem_limit_bytes) // 5
        if streamed:
            # Smaller slices on tight-VMEM parts (v7x) keep pipelining alive.
            tile_hidden = 256 if vmem_limit_bytes <= 64 * 1024 * 1024 else 512
            tile_hidden = min(tile_hidden, _round_up(hidden, 128))

    if streamed:
        h_pad = _round_up(hidden, tile_hidden)
        num_h = h_pad // tile_hidden
        # Double-buffered streamed weight slices + biases.
        weight_vmem = (2 * 2 * d_pad * tile_hidden * c_itemsize
                       + 2 * tile_hidden * 4 + d_pad * 4)
    else:
        h_pad = _round_up(hidden, 128)
        num_h = 1
        tile_hidden = h_pad
        # Fully resident, single-buffered weights + biases.
        weight_vmem = 2 * d_pad * h_pad * c_itemsize + (h_pad + d_pad) * 4

    # ---- Row tiling: biggest tile that fits the VMEM budget, but >= 2 grid
    # steps (when enough rows exist) so both v7x TensorCores get work.
    row_align = 16 if min(c_itemsize, out_itemsize) < 4 else 8
    if tile_rows is None:
        per_row = d_pad * 2 * (c_itemsize + out_itemsize)      # 2x-buffered x & out
        if use_dropout:
            per_row += d_pad * 2 * 4                            # 2x-buffered rand tile
        if streamed:
            per_row += d_pad * 4                                # f32 accumulator
        avail = max(vmem_limit_bytes - weight_vmem - 2 * 1024 * 1024,
                    per_row * row_align)
        tile_rows = min(1024, int(avail // per_row))
        if n > row_align:
            tile_rows = min(tile_rows, _round_up((n + 1) // 2, row_align))
        tile_rows = max(row_align, (tile_rows // row_align) * row_align)
    else:
        tile_rows = max(row_align, _round_up(int(tile_rows), row_align))
    tile_rows = min(tile_rows, _round_up(n, row_align))
    n_pad = _round_up(n, tile_rows)
    num_rows = n_pad // tile_rows

    # ---- Operand prep: pad + cast once in the wrapper (no per-tile casts in
    # the kernel; x DMA carries compute-dtype bytes).  Biases stay f32.
    xp = jnp.pad(x.astype(compute_dtype), ((0, n_pad - n), (0, d_pad - d_model)))
    w1p = jnp.pad(w1.astype(compute_dtype),
                  ((0, d_pad - d_model), (0, h_pad - hidden)))
    w2p = jnp.pad(w2.astype(compute_dtype),
                  ((0, h_pad - hidden), (0, d_pad - d_model)))
    b1p = jnp.pad(b1.astype(jnp.float32), (0, h_pad - hidden)).reshape(1, h_pad)
    b2p = jnp.pad(b2.astype(jnp.float32), (0, d_pad - d_model)).reshape(1, d_pad)

    args = [xp, w1p, b1p, w2p, b2p]
    if use_dropout:
        # Host-side uniform keep-mask: portable and reproducible across tilings.
        rand = jax.random.uniform(jax.random.PRNGKey(seed), (n_pad, d_pad),
                                  dtype=jnp.float32)
        args.append(rand)

    resident_mode = dict(pipeline_mode=pl.Buffered(1))

    if not streamed:
        kernel = _make_resident_kernel(dropout_p)
        grid = (num_rows,)
        in_specs = [
            pl.BlockSpec((tile_rows, d_pad), lambda i: (i, 0)),
            pl.BlockSpec((d_pad, h_pad), lambda i: (0, 0), **resident_mode),
            pl.BlockSpec((1, h_pad), lambda i: (0, 0), **resident_mode),
            pl.BlockSpec((h_pad, d_pad), lambda i: (0, 0), **resident_mode),
            pl.BlockSpec((1, d_pad), lambda i: (0, 0), **resident_mode),
        ]
        if use_dropout:
            in_specs.append(pl.BlockSpec((tile_rows, d_pad), lambda i: (i, 0)))
        out_specs = pl.BlockSpec((tile_rows, d_pad), lambda i: (i, 0))
        scratch_shapes = []
        dim_sem = ("parallel",)
        weight_hbm_reads = 1
    else:
        kernel = _make_streamed_kernel(dropout_p)
        grid = (num_rows, num_h)
        in_specs = [
            pl.BlockSpec((tile_rows, d_pad), lambda i, k: (i, 0)),
            pl.BlockSpec((d_pad, tile_hidden), lambda i, k: (0, k)),
            pl.BlockSpec((1, tile_hidden), lambda i, k: (0, k)),
            pl.BlockSpec((tile_hidden, d_pad), lambda i, k: (k, 0)),
            pl.BlockSpec((1, d_pad), lambda i, k: (0, 0), **resident_mode),
        ]
        if use_dropout:
            in_specs.append(pl.BlockSpec((tile_rows, d_pad), lambda i, k: (i, 0)))
        out_specs = pl.BlockSpec((tile_rows, d_pad), lambda i, k: (i, 0))
        scratch_shapes = [pltpu.VMEM((tile_rows, d_pad), jnp.float32)]
        dim_sem = ("parallel", "arbitrary")
        weight_hbm_reads = num_rows      # weights are re-fetched per row tile

    cost = pl.CostEstimate(
        flops=int(4 * n_pad * d_pad * h_pad),
        transcendentals=0,
        bytes_accessed=int(
            n_pad * d_pad * (c_itemsize + out_itemsize + (4 if use_dropout else 0))
            + weight_hbm_reads * 2 * d_pad * h_pad * c_itemsize
            + 4 * (h_pad + d_pad)),
    )

    out = pl.pallas_call(
        kernel,
        out_shape=jax.ShapeDtypeStruct((n_pad, d_pad), out_dtype),
        grid_spec=pltpu.PrefetchScalarGridSpec(
            num_scalar_prefetch=0,
            grid=grid,
            in_specs=in_specs,
            out_specs=out_specs,
            scratch_shapes=scratch_shapes,
        ),
        compiler_params=pltpu.CompilerParams(
            dimension_semantics=dim_sem,
            vmem_limit_bytes=vmem_limit_bytes),
        cost_estimate=cost,
    )(*args)

    if n_pad != n or d_pad != d_model:
        out = out[:n, :d_model]
    return out


# ---------------------------------------------------------------------------
# Helpers: params + plain-JAX reference
# ---------------------------------------------------------------------------

def init_ffn_params(key, d_model, hidden_dim, dtype=jnp.float32):
    """PyTorch nn.Linear-style init; weights stored transposed [in, out]."""
    k1, k2, k3, k4 = jax.random.split(key, 4)
    bound1 = 1.0 / (d_model ** 0.5)
    bound2 = 1.0 / (hidden_dim ** 0.5)
    w1 = jax.random.uniform(k1, (d_model, hidden_dim), dtype, -bound1, bound1)
    b1 = jax.random.uniform(k2, (hidden_dim,), dtype, -bound1, bound1)
    w2 = jax.random.uniform(k3, (hidden_dim, d_model), dtype, -bound2, bound2)
    b2 = jax.random.uniform(k4, (d_model,), dtype, -bound2, bound2)
    return w1, b1, w2, b2


def ffn_reference(x, w1, b1, w2, b2, compute_dtype):
    """Plain-JAX reference with the same compute-dtype casts (eval mode)."""
    xc = x.astype(compute_dtype)
    h = jnp.dot(xc, w1.astype(compute_dtype),
                preferred_element_type=jnp.float32) + b1.astype(jnp.float32)
    h = jnp.maximum(h, 0.0)
    out = jnp.dot(h.astype(compute_dtype), w2.astype(compute_dtype),
                  preferred_element_type=jnp.float32) + b2.astype(jnp.float32)
    return out.astype(x.dtype)


if __name__ == "__main__":
    # Module constants from the PyTorch spec: d_model=350, hidden_dim=1024.
    batch, seq = 4, 128
    d_model, hidden_dim = 350, 1024

    key = jax.random.PRNGKey(0)
    kx, kp = jax.random.split(key)
    x = jax.random.normal(kx, (batch, seq, d_model), dtype=jnp.float32)
    w1, b1, w2, b2 = init_ffn_params(kp, d_model, hidden_dim)
    x2d = x.reshape(batch * seq, d_model)

    # 1) Eval mode, bf16 MXU path, auto tiling: weights stay resident and the
    #    grid is just a couple of pipelined row tiles (no hidden streaming).
    out_bf16 = ffn_forward(x2d, w1, b1, w2, b2)
    jax.block_until_ready(out_bf16)
    ref_bf16 = ffn_reference(x2d, w1, b1, w2, b2, jnp.bfloat16)
    assert out_bf16.shape == (batch * seq, d_model)
    assert jnp.allclose(out_bf16, ref_bf16, atol=2e-3, rtol=2e-3), "bf16 mismatch"

    # 2) Eval mode, f32 path (resident weights).
    out_f32 = ffn_forward(x2d, w1, b1, w2, b2, compute_dtype=jnp.float32)
    ref_f32 = ffn_reference(x2d, w1, b1, w2, b2, jnp.float32)
    assert jnp.allclose(out_f32, ref_f32, atol=1e-3, rtol=1e-3), "f32 mismatch"

    # 3) Streamed-hidden reduction path (forced, for coverage of large-weight mode).
    out_stream = ffn_forward(x2d, w1, b1, w2, b2, tile_hidden=512)
    assert jnp.allclose(out_stream, ref_bf16, atol=2e-3, rtol=2e-3), "streamed mismatch"

    # 4) Training-mode dropout (p=0.6): ~60% zeros, survivors scaled by 1/(1-p).
    p = 0.6
    out_train = ffn_forward(x2d, w1, b1, w2, b2, dropout_p=p, seed=123)
    jax.block_until_ready(out_train)
    zero_frac = float(jnp.mean(out_train == 0.0))
    assert 0.52 < zero_frac < 0.68, f"unexpected dropout zero fraction {zero_frac}"
    kept = out_train != 0.0
    scale = 1.0 / (1.0 - p)
    assert jnp.allclose(jnp.where(kept, out_train, 0.0),
                        jnp.where(kept, out_bf16 * scale, 0.0),
                        atol=1e-4, rtol=1e-4), "dropout survivors not scaled"

    out = out_bf16.reshape(batch, seq, d_model)
    jax.block_until_ready(out)
    print("KERNEL_OK")
</pallas_src>

<mosaic_0001>
module attributes {stable_mosaic.version = 11 : i64} {
  func.func @kernel(%arg0: i32, %arg1: memref<256x384xbf16, #tpu.memory_space<vmem>>, %arg2: memref<384x1024xbf16, #tpu.memory_space<vmem>>, %arg3: memref<1x1024xf32, #tpu.memory_space<vmem>>, %arg4: memref<1024x384xbf16, #tpu.memory_space<vmem>>, %arg5: memref<1x384xf32, #tpu.memory_space<vmem>>, %arg6: memref<256x384xf32, #tpu.memory_space<vmem>>) attributes {dimension_semantics = [#tpu.dimension_semantics<parallel>], iteration_bounds = array<i64: 2>, scalar_prefetch = 0 : i64, scratch_operands = 0 : i64, tpu.core_type = #tpu.core_type<tc>, window_params = [{transform_indices = @transform_0, window_bounds = array<i64: 256, 384>}, {pipeline_mode = #tpu.pipeline_mode<synchronous>, transform_indices = @transform_1, window_bounds = array<i64: 384, 1024>}, {pipeline_mode = #tpu.pipeline_mode<synchronous>, transform_indices = @transform_2, window_bounds = array<i64: 1, 1024>}, {pipeline_mode = #tpu.pipeline_mode<synchronous>, transform_indices = @transform_3, window_bounds = array<i64: 1024, 384>}, {pipeline_mode = #tpu.pipeline_mode<synchronous>, transform_indices = @transform_4, window_bounds = array<i64: 1, 384>}, {transform_indices = @transform_5, window_bounds = array<i64: 256, 384>}]} {
    %c0 = arith.constant 0 : index
    %c0_0 = arith.constant 0 : index
    %0 = vector.load %arg1[%c0, %c0_0] : memref<256x384xbf16, #tpu.memory_space<vmem>>, vector<256x384xbf16>
    %c0_1 = arith.constant 0 : index
    %c0_2 = arith.constant 0 : index
    %1 = vector.load %arg2[%c0_1, %c0_2] : memref<384x1024xbf16, #tpu.memory_space<vmem>>, vector<384x1024xbf16>
    %cst = arith.constant dense<0.000000e+00> : vector<256x1024xf32>
    %2 = tpu.matmul %0, %1, %cst {dimension_numbers = #tpu.dot_dimension_numbers<[1], [0], [0], [1], [0, 0, 1, 1], [], []>} : vector<256x384xbf16>, vector<384x1024xbf16>, vector<256x1024xf32> -> vector<256x1024xf32>
    %c0_3 = arith.constant 0 : index
    %c0_4 = arith.constant 0 : index
    %3 = vector.load %arg3[%c0_3, %c0_4] : memref<1x1024xf32, #tpu.memory_space<vmem>>, vector<1x1024xf32>
    %4 = vector.broadcast %3 : vector<1x1024xf32> to vector<256x1024xf32>
    %5 = arith.addf %2, %4 : vector<256x1024xf32>
    %cst_5 = arith.constant 0.000000e+00 : f32
    %6 = vector.broadcast %cst_5 : f32 to vector<256x1024xf32>
    %7 = arith.maximumf %5, %6 : vector<256x1024xf32>
    %8 = arith.truncf %7 : vector<256x1024xf32> to vector<256x1024xbf16>
    %c0_6 = arith.constant 0 : index
    %c0_7 = arith.constant 0 : index
    %9 = vector.load %arg4[%c0_6, %c0_7] : memref<1024x384xbf16, #tpu.memory_space<vmem>>, vector<1024x384xbf16>
    %cst_8 = arith.constant dense<0.000000e+00> : vector<256x384xf32>
    %10 = tpu.matmul %8, %9, %cst_8 {dimension_numbers = #tpu.dot_dimension_numbers<[1], [0], [0], [1], [0, 0, 1, 1], [], []>} : vector<256x1024xbf16>, vector<1024x384xbf16>, vector<256x384xf32> -> vector<256x384xf32>
    %c0_9 = arith.constant 0 : index
    %c0_10 = arith.constant 0 : index
    %11 = vector.load %arg5[%c0_9, %c0_10] : memref<1x384xf32, #tpu.memory_space<vmem>>, vector<1x384xf32>
    %12 = vector.broadcast %11 : vector<1x384xf32> to vector<256x384xf32>
    %13 = arith.addf %10, %12 : vector<256x384xf32>
    %c0_11 = arith.constant 0 : index
    %c0_12 = arith.constant 0 : index
    %14 = vector.load %arg6[%c0_11, %c0_12] : memref<256x384xf32, #tpu.memory_space<vmem>>, vector<256x384xf32>
    tpu.vector_store %arg6[%c0_11, %c0_12], %13 {strides = array<i32>} : memref<256x384xf32, #tpu.memory_space<vmem>>, vector<256x384xf32>,
    return
  }
  func.func @transform_0(%arg0: i32) -> (i32, i32) {
    %c0_i32 = arith.constant 0 : i32
    %c0_i32_0 = arith.constant 0 : i32
    return %arg0, %c0_i32 : i32, i32
  }
  func.func @transform_1(%arg0: i32) -> (i32, i32) {
    %c0_i32 = arith.constant 0 : i32
    %c0_i32_0 = arith.constant 0 : i32
    %c0_i32_1 = arith.constant 0 : i32
    return %c0_i32, %c0_i32_0 : i32, i32
  }
  func.func @transform_2(%arg0: i32) -> (i32, i32) {
    %c0_i32 = arith.constant 0 : i32
    %c0_i32_0 = arith.constant 0 : i32
    %c0_i32_1 = arith.constant 0 : i32
    return %c0_i32, %c0_i32_0 : i32, i32
  }
  func.func @transform_3(%arg0: i32) -> (i32, i32) {
    %c0_i32 = arith.constant 0 : i32
    %c0_i32_0 = arith.constant 0 : i32
    %c0_i32_1 = arith.constant 0 : i32
    return %c0_i32, %c0_i32_0 : i32, i32
  }
  func.func @transform_4(%arg0: i32) -> (i32, i32) {
    %c0_i32 = arith.constant 0 : i32
    %c0_i32_0 = arith.constant 0 : i32
    %c0_i32_1 = arith.constant 0 : i32
    return %c0_i32, %c0_i32_0 : i32, i32
  }
  func.func @transform_5(%arg0: i32) -> (i32, i32) {
    %c0_i32 = arith.constant 0 : i32
    %c0_i32_0 = arith.constant 0 : i32
    return %arg0, %c0_i32 : i32, i32
  }
}

</mosaic_0001>

<bundles_post_ra>
// kernel: tpu_custom_call.1
= control target key start
LH: loop header
LB: loop body
LE: loop exit
PB: predicated region body
PF: predicated region fallthrough
CT: control target
= control target key end

     0   :  { %10 = vsyncpa [#allocation3], 0  ;;  %s11627_s0 = inlined_call_operand.hbm [shape: bf16[512,384], index: 0, kind: input, shape index: {}]   ;;  %s11628_s1 = inlined_call_operand.hbm [shape: bf16[384,1024], index: 1, kind: input, shape index: {}]   ;;  %s11629_s2 = inlined_call_operand.hbm [shape: f32[1,1024], index: 2, kind: input, shape index: {}]   ;;  %s11630_s3 = inlined_call_operand.hbm [shape: bf16[1024,384], index: 3, kind: input, shape index: {}]   ;;  %s11631_s4 = inlined_call_operand.vmem [shape: f32[1,384], index: 4, kind: input, shape index: {}]   ;;  %s11632_s5 = inlined_call_operand.hbm [shape: f32[512,384], index: 5, kind: output, shape index: {}]  }
   0x1   :  { %12 = vsyncpa [#allocation3 + $0x1], 0 }
   0x2   :  { %13 = vsyncpa [#allocation6], 0 }
   0x3   :  { %14 = vsyncpa [#allocation9], 0 }
   0x4   :  { %15 = vsyncpa [#allocation4], 0 }
   0x5   :  { %17 = vsyncpa [#allocation4 + $0x1], 0  ;;  %s8304_s18 = smov 0   ;;  %s8306_s19 = smov 0  }
   0x6   :  { %s8308_s20 = smov 0   ;;  %s8310_s21 = smov 0  }
   0x7 LB: > { %s8325_s22 = sadd.s32 4294967295, %s8260_s21   ;;  %s6657_s23 = sadd.s32 4294967294, %s8260_s21   ;;  %s8260_s21 = sphi %s8310_s21, %s12204_s21   ;;  %s8256_s20 = sphi %s8308_s20, %s12203_s20   ;;  %s8252_s19 = sphi %s8306_s19, %s12202_s19   ;;  %s8248_s18 = sphi %s8304_s18, %s12201_s18  }
   0x8   : > { %p43_p0 = scmp.ne.s32.totalorder %s8252_s19, %s8248_s18  ;;  %p11633_p1 = scmp.eq.s32.totalorder %s8325_s22, 0 }
   0x9   : > { %p157_p3 = scmp.eq.s32.totalorder %s6657_s23, 1  ;;  %p6658_p5 = scmp.ge.s32.totalorder %s8260_s21, 1 }
   0xa   : > { %p8334_p4 = por %p11633_p1, %p43_p0  ;;  %p164_p7 = scmp.lt.s32.totalorder %s8260_s21, 3 }
   0xb   : > { %p8339_p6 = por %p157_p3, %p43_p0  ;;  %s8262_s27 = smov [#allocation5]  }
   0xc   : > { %s11780_s24 = scalar_select %p8334_p4, 1, 0 }
   0xd   : > { %s11781_s25 = scalar_select %p8339_p6, 1, 0 }
   0xe   : > { %p8344_p8 = pnand %p6658_p5, %p164_p7  ;;  %s176_s28 = sshll.u32 %s8262_s27, 4  ;;  %s177_s28 = int_to_ptr.vmem [resolvable:$true] %s176_s28 }
   0xf   : > { %s8263_s30 = smov [#allocation7]   ;;  %s8264_s7 = smov [#allocation8]  }
  0x10   : > { %s11782_s26 = scalar_select %p8344_p8, 1, 0 }
  0x11   : > { %p7592_p9 = pneg %p8344_p8  ;;  %s190_s6 = sshll.u32 %s8263_s30, 4  ;;  %s191_s6 = int_to_ptr.vmem [resolvable:$true] %s190_s6 }
  0x12   : > { %s200_s8 = sshll.u32 %s8264_s7, 4  ;;  %s8093_s9 = scalar_lea.vmem %s177_s28, 24576  ;;  %s201_s8 = int_to_ptr.vmem [resolvable:$true] %s200_s8 }
  0x13   : > { %p8353_p11 = pnand %p7592_p9, %p11633_p1  ;;  %p8094_p13 = scmp.ne.s32.totalorder %s177_s28, %s8093_s9 }
  0x14   : > { %p8101_p5 = scmp.lt.s32.totalorder %s177_s28, %s177_s28  ;;  %p8102_p7 = scmp.lt.s32.totalorder %s8093_s9, %s8093_s9 }
  0x15   : > { %p8084_p12 = pneg %p8353_p11 }
  0x16   : > { %p8103_p9 = por %p8102_p7, %p8101_p5 }
  0x17   : > { %p8096_p0 = pnand %p8094_p13, %p8084_p12 }
  0x19   : > { %p8097_p3 = pneg %p8096_p0 }
  0x1b   : > { %p8104_p10 = pnand %p8103_p9, %p8097_p3 }
  0x1d   : > { %8107 = shalt.err (!%p8104_p10)
}
  0x1e   : > { %s8265_s10 = smov 512   ;;  %s8266_s11 = smov 32  }
  0x1f   : > { %7595 = dma.hbm_to_vmem [thread:$0]  (!%p8353_p11), %s11628_s1, 24576, %s177_s28, [#allocation6], %s8265_s10, %s8265_s10, %s8266_s11  }
  0x20   : > { %s8119_s14 = scalar_lea.vmem %s191_s6, 128  ;;  %p8127_p2 = scmp.lt.s32.totalorder %s191_s6, %s191_s6 }
  0x21   : > { %p8120_p1 = scmp.ne.s32.totalorder %s191_s6, %s8119_s14  ;;  %p8128_p6 = scmp.lt.s32.totalorder %s8119_s14, %s8119_s14 }
  0x23   : > { %p8122_p13 = pnand %p8120_p1, %p8084_p12  ;;  %p8129_p5 = por %p8128_p6, %p8127_p2 }
  0x25   : > { %p8123_p0 = pneg %p8122_p13 }
  0x27   : > { %p8130_p3 = pnand %p8129_p5, %p8123_p0 }
  0x29   : > { %8133 = shalt.err (!%p8130_p3)
}
  0x2a   : > { %7598 = dma.hbm_to_vmem [thread:$0]  (!%p8353_p11), %s11629_s2, 128, %s191_s6, [#allocation6]  }
  0x2b   : > { %s8145_s17 = scalar_lea.vmem %s201_s8, 24576  ;;  %p8153_p9 = scmp.lt.s32.totalorder %s201_s8, %s201_s8 }
  0x2c   : > { %p8146_p10 = scmp.ne.s32.totalorder %s201_s8, %s8145_s17  ;;  %p8154_p13 = scmp.lt.s32.totalorder %s8145_s17, %s8145_s17 }
  0x2e   : > { %p8148_p7 = pnand %p8146_p10, %p8084_p12  ;;  %p8155_p4 = por %p8154_p13, %p8153_p9 }
  0x30   : > { %p8149_p1 = pneg %p8148_p7 }
  0x32   : > { %p8156_p2 = pnand %p8155_p4, %p8149_p1 }
  0x34   : > { %8159 = shalt.err (!%p8156_p2)
}
  0x35   : > { %s11635_s23 = smov 192   ;;  %s8268_s27 = smov 12  }
  0x36   : > { %7601 = dma.hbm_to_vmem [thread:$0]  (!%p8353_p11), %s11630_s3, 24576, %s201_s8, [#allocation9], %s11635_s23, %s11635_s23, %s8268_s27  }
  0x37   : > { %s8387_s6 = sadd.s32 1, %s8260_s21   ;;  %s30_s9 = sadd.s32 1, %s8256_s20 }
  0x38   : > { %s27_s7 = ssub.s32 %s8260_s21, %s8387_s6  ;;  %p37_p6 = scmp.ne.s32.totalorder %s8256_s20, %s8252_s19 }
  0x39   : > { %p28_p4 = scmp.eq.s32.totalorder %s27_s7, 0  ;;  %p38_p12 = scmp.eq.s32.totalorder %s8260_s21, 0 }
  0x3a   : > { %p7613_p0 = scmp.lt.s32.totalorder %s8260_s21, 2  ;;  %p11784_p3 = scmp.eq.s32.totalorder %s8325_s22, 1 }
  0x3b   : > { %s8397_s10 = scalar_select %p28_p4, %s8256_s20, %s30_s9  }
  0x3c   : > { %p39_p5 = por %p38_p12, %p37_p6  ;;  %p8401_p10 = por %p11784_p3, %p37_p6 }
  0x3d   : > { %s217_s11 = sand.u32 1, %s8256_s20   ;;  %s7572_s12 = smul.u32 6144, %s8260_s21 }
  0x3e   : > { %s11785_s29 = scalar_select %p8401_p10, 1, 0 }
  0x3f   : > { %s7571_s8 = smul.u32 384, %s217_s11  ;;  %p8407_p11 = pnand %p7613_p0, %p39_p5 }
  0x40   : > { %s8414_s16 = scalar_lea.hbm %s11627_s0, %s7572_s12  ;;  %s8418_s30 = scalar_lea.sflag [#allocation3], %s217_s11 }
  0x41   : > { %s221_s17 = scalar_lea.vmem [#allocation2], %s7571_s8  ;;  %s8160_s7 = scalar_lea.hbm %s8414_s16, 6144 }
  0x42   : > { %s229_s28 = sshll.u32 %s221_s17, 4  ;;  %p8161_p7 = scmp.ne.s32.totalorder %s8414_s16, %s8160_s7  ;;  %s8416_s28 = int_to_ptr.vmem [resolvable:$true] %s229_s28 }
  0x43   : > { %p8162_p1 = pneg %p8407_p11  ;;  %s8165_s12 = scalar_lea.hbm %s11627_s0, 12288 }
  0x44   : > { %p8166_p2 = scmp.lt.s32.totalorder %s8414_s16, %s11627_s0  ;;  %p8167_p4 = scmp.lt.s32.totalorder %s8165_s12, %s8160_s7 }
  0x45   : > { %p8163_p9 = pnand %p8162_p1, %p8161_p7 }
  0x46   : > { %p8168_p6 = por %p8167_p4, %p8166_p2 }
  0x47   : > { %p8164_p13 = pneg %p8163_p9 }
  0x49   : > { %p8169_p12 = pnand %p8168_p6, %p8164_p13 }
  0x4b   : > { %8172 = shalt.err (!%p8169_p12)
}
  0x4c   : > { %s8173_s11 = scalar_lea.vmem %s8416_s28, 6144  ;;  %s8269_s8 = smov [#allocation2]  }
  0x4d   : > { %p8174_p0 = scmp.ne.s32.totalorder %s8416_s28, %s8173_s11  ;;  %s8178_s17 = sshll.u32 %s8269_s8, 4  ;;  %s8179_s17 = int_to_ptr.vmem [resolvable:$false] %s8178_s17 }
  0x4e   : > { %s8180_s9 = scalar_lea.vmem %s8179_s17, 12288  ;;  %p8181_p7 = scmp.lt.s32.totalorder %s8416_s28, %s8179_s17 }
  0x4f   : > { %p8176_p5 = pnand %p8174_p0, %p8162_p1  ;;  %p8182_p9 = scmp.lt.s32.totalorder %s8180_s9, %s8173_s11 }
  0x51   : > { %p8177_p3 = pneg %p8176_p5  ;;  %p8183_p10 = por %p8182_p9, %p8181_p7 }
  0x53   : > { %p8184_p8 = pnand %p8183_p10, %p8177_p3 }
  0x55   : > { %8187 = shalt.err (!%p8184_p8)
}
  0x56   : > { %s11787_s23 = smov 192   ;;  %p11788_p1 = scmp.ne.s32.totalorder %s11782_s26, 0 }
  0x57   : > { %7605 = dma.hbm_to_vmem [thread:$0]  (!%p8407_p11), %s8414_s16, 6144, %s8416_s28, %s8418_s30, %s11787_s23, %s11787_s23, %s8268_s27  }
  0x58   : > { %241 = sbr.rel (%p11788_p1) target bundleno = 1391 (0x56f), region = 40 }
  0x5d   : > { %s8445_s7 = sand.u32 1, %s8252_s19   ;;  %p11789_p8 = scmp.ne.s32.totalorder %s11780_s24, 0 }
  0x5e   : > { %s7573_s14 = smul.u32 384, %s8445_s7  ;;  %s244_s12 = scalar_lea.sflag [#allocation3], %s8445_s7 }
  0x60   : > { %s8449_s15 = scalar_lea.vmem [#allocation2], %s7573_s14 }
  0x61   : > { %8231 = dma.done.wait (%p11789_p8), %s244_s12, 6144  }
  0x62   : > { %8233 = vsyncadd (%p11789_p8), %s244_s12, 4294961152  ;;  %p11790_p10 = scmp.eq.s32.totalorder %s8325_s22, 0 }
  0x64   : > { %8235 = dma.done.wait (%p11790_p10), [#allocation6], 24704   ;;  %p11791_p11 = pmov %p11790_p10 }
  0x65   : > { %p11792_p13 = pmov %p11790_p10 }
  0x66   : > { %8237 = vsyncadd (%p11791_p11), [#allocation6], 4294942592 }
  0x67   : > { %8239 = dma.done.wait (%p11792_p13), [#allocation9], 24576   ;;  %p11793_p2 = pmov %p11790_p10 }
  0x68   : > { %v11640_v0 = vmov 0   ;;  %v409_v1 = vld [vmem:[#allocation5 + $0x1c0] sm:$0xff]  ;;  %s7574_s27 = smul.u32 768, %s8445_s7  ;;  %s6541_s9 = scalar_lea.sflag [#allocation4], %s8445_s7 }
  0x69   : > { %8241 = vsyncadd (%p11793_p2), [#allocation9], 4294942720  ;;  %2028 = vmatprep.mubr.bf16.mxu1 %v11640_v0  ;;  %v413_v2 = vld [vmem:[#allocation5 + $0x1e0] sm:$0xff]  ;;  %s7575_s30 = smul.u32 12288, %s8325_s22  ;;  %p12198_p6 = scmp.ne.s32.totalorder %s11785_s29, 0 }
  0x6a   : > { %v537_v3 = vld [vmem:[#allocation5 + $0x5c0] sm:$0xff]  ;;  %v6775_v4 = vcombine.high %v409_v1, %v413_v2  ;;  %v6774_v6 = vcombine.low %v409_v1, %v413_v2  ;;  %s10908_s13 = scalar_lea.vmem [#allocation10], %s7574_s27  ;;  %s8271_s14 = smov [#allocation10]  }
  0x6b   : > { %v541_v5 = vld [vmem:[#allocation5 + $0x5e0] sm:$0xff]  ;;  %s6555_s11 = sshll.u32 %s10908_s13, 4  ;;  %s11580_s22 = scalar_lea.hbm %s11632_s5, %s7575_s30  ;;  %s11582_s11 = int_to_ptr.vmem [resolvable:$true] %s6555_s11 }
  0x6c   : > { %v401_v7 = vld [vmem:[#allocation5 + $0x180] sm:$0xff]  ;;  %v6903_v9 = vcombine.high %v537_v3, %v541_v5  ;;  %v6902_v10 = vcombine.low %v537_v3, %v541_v5  ;;  %1803 = vmatprep.subr.bf16.mxu0 %v6775_v4  ;;  %v410_v3 = vld [vmem:[#allocation5 + $0x1c8] sm:$0xff]  ;;  %s8188_s23 = scalar_lea.vmem %s11582_s11, 12288  ;;  %s8192_s12 = sshll.u32 %s8271_s14, 4  ;;  %s8193_s12 = int_to_ptr.vmem [resolvable:$false] %s8192_s12 }
  0x6d   : > { %v405_v8 = vld [vmem:[#allocation5 + $0x1a0] sm:$0xff]  ;;  %1804 = vmatpush1.bf16.msra.mxu0 %v6774_v6  ;;  %v414_v4 = vld [vmem:[#allocation5 + $0x1e8] sm:$0xff]  ;;  %p8189_p4 = scmp.ne.s32.totalorder %s11582_s11, %s8188_s23  ;;  %p8195_p5 = scmp.lt.s32.totalorder %s11582_s11, %s8193_s12 }
  0x6e   : > { %v6767_v11 = vcombine.high %v401_v7, %v405_v8  ;;  %v529_v12 = vld [vmem:[#allocation5 + $0x580] sm:$0xff]  ;;  %1996 = vmatprep.subr.bf16.mxu1 %v6903_v9  ;;  %v6766_v19 = vcombine.low %v401_v7, %v405_v8  ;;  %v6777_v8 = vcombine.high %v410_v3, %v414_v4 }
  0x6f   : > { %v533_v13 = vld [vmem:[#allocation5 + $0x5a0] sm:$0xff]  ;;  %1997 = vmatpush1.bf16.msra.mxu1 %v6902_v10  ;;  %p8190_p12 = pnand %p8189_p4, %p12198_p6 }
  0x70   : > { %v393_v14 = vld [vmem:[#allocation5 + $0x140] sm:$0xff]  ;;  %v6895_v15 = vcombine.high %v529_v12, %v533_v13  ;;  %1805 = vmatprep.subr.bf16.mxu0 %v6767_v11  ;;  %v6894_v20 = vcombine.low %v529_v12, %v533_v13  ;;  %v402_v11 = vld [vmem:[#allocation5 + $0x188] sm:$0xff] }
  0x71   : > { %v397_v16 = vld [vmem:[#allocation5 + $0x160] sm:$0xff]  ;;  %1806 = vmatpush1.bf16.msra.mxu0 %v6766_v19  ;;  %v406_v12 = vld [vmem:[#allocation5 + $0x1a8] sm:$0xff]  ;;  %p8191_p0 = pneg %p8190_p12 }
  0x72   : > { %v521_v17 = vld [vmem:[#allocation5 + $0x540] sm:$0xff]  ;;  %v6759_v21 = vcombine.high %v393_v14, %v397_v16  ;;  %1998 = vmatprep.subr.bf16.mxu1 %v6895_v15  ;;  %v6758_v27 = vcombine.low %v393_v14, %v397_v16  ;;  %v7660_v13 = vld [vmem:[%s8449_s15 + $0x8] ss:$12 sps:$4 sm:$0xff]   ;;  %v6776_v15 = vcombine.low %v410_v3, %v414_v4  ;;  %v6769_v19 = vcombine.high %v402_v11, %v406_v12 }
  0x73   : > { %v525_v18 = vld [vmem:[#allocation5 + $0x560] sm:$0xff]  ;;  %1999 = vmatpush1.bf16.msra.mxu1 %v6894_v20  ;;  %v394_v20 = vld [vmem:[#allocation5 + $0x148] sm:$0xff] }
  0x74   : > { %v6887_v22 = vcombine.high %v521_v17, %v525_v18  ;;  %v385_v23 = vld [vmem:[#allocation5 + $0x100] sm:$0xff]  ;;  %1807 = vmatprep.subr.bf16.mxu0 %v6759_v21  ;;  %v6886_v28 = vcombine.low %v521_v17, %v525_v18  ;;  %v398_v21 = vld [vmem:[#allocation5 + $0x168] sm:$0xff] }
  0x75   : > { %v389_v24 = vld [vmem:[#allocation5 + $0x120] sm:$0xff]  ;;  %1808 = vmatpush1.bf16.msra.mxu0 %v6758_v27  ;;  %v6761_v27 = vcombine.high %v394_v20, %v398_v21  ;;  %v538_v4 = vld [vmem:[#allocation5 + $0x5c8] sm:$0xff] }
  0x76   : > { %v513_v25 = vld [vmem:[#allocation5 + $0x500] sm:$0xff]  ;;  %v6751_v29 = vcombine.high %v385_v23, %v389_v24  ;;  %2000 = vmatprep.subr.bf16.mxu1 %v6887_v22  ;;  %v6750_v35 = vcombine.low %v385_v23, %v389_v24  ;;  %v6768_v24 = vcombine.low %v402_v11, %v406_v12 }
  0x77   : > { %v517_v26 = vld [vmem:[#allocation5 + $0x520] sm:$0xff]  ;;  %2001 = vmatpush1.bf16.msra.mxu1 %v6886_v28 }
  0x78   : > { %v6879_v30 = vcombine.high %v513_v25, %v517_v26  ;;  %v377_v31 = vld [vmem:[#allocation5 + $0xc0] sm:$0xff]  ;;  %1809 = vmatprep.subr.bf16.mxu0 %v6751_v29  ;;  %v6878_v36 = vcombine.low %v513_v25, %v517_v26 }
  0x79   : > { %v381_v32 = vld [vmem:[#allocation5 + $0xe0] sm:$0xff]  ;;  %1810 = vmatpush1.bf16.msra.mxu0 %v6750_v35  ;;  %v6760_v35 = vcombine.low %v394_v20, %v398_v21  ;;  %v466_v20 = vld [vmem:[#allocation5 + $0x388] sm:$0xff] }
  0x7a   : > { %v505_v33 = vld [vmem:[#allocation5 + $0x4c0] sm:$0xff]  ;;  %v6743_v37 = vcombine.high %v377_v31, %v381_v32  ;;  %2002 = vmatprep.subr.bf16.mxu1 %v6879_v30  ;;  %v6742_v43 = vcombine.low %v377_v31, %v381_v32  ;;  %v386_v30 = vld [vmem:[#allocation5 + $0x108] sm:$0xff] }
  0x7b   : > { %v509_v34 = vld [vmem:[#allocation5 + $0x4e0] sm:$0xff]  ;;  %2003 = vmatpush1.bf16.msra.mxu1 %v6878_v36  ;;  %v390_v31 = vld [vmem:[#allocation5 + $0x128] sm:$0xff] }
  0x7c   : > { %v369_v38 = vld [vmem:[#allocation5 + $0x80] sm:$0xff]  ;;  %v6871_v39 = vcombine.high %v505_v33, %v509_v34  ;;  %1811 = vmatprep.subr.bf16.mxu0 %v6743_v37  ;;  %v6870_v44 = vcombine.low %v505_v33, %v509_v34  ;;  %v6753_v36 = vcombine.high %v386_v30, %v390_v31  ;;  %v378_v37 = vld [vmem:[#allocation5 + $0xc8] sm:$0xff] }
  0x7d   : > { %v373_v40 = vld [vmem:[#allocation5 + $0xa0] sm:$0xff]  ;;  %1812 = vmatpush1.bf16.msra.mxu0 %v6742_v43  ;;  %v6752_v43 = vcombine.low %v386_v30, %v390_v31  ;;  %v470_v21 = vld [vmem:[#allocation5 + $0x3a8] sm:$0xff] }
  0x7e   : > { %v497_v41 = vld [vmem:[#allocation5 + $0x480] sm:$0xff]  ;;  %v6735_v45 = vcombine.high %v369_v38, %v373_v40  ;;  %2004 = vmatprep.subr.bf16.mxu1 %v6871_v39  ;;  %v6734_v51 = vcombine.low %v369_v38, %v373_v40  ;;  %v382_v39 = vld [vmem:[#allocation5 + $0xe8] sm:$0xff] }
  0x7f   : > { %v501_v42 = vld [vmem:[#allocation5 + $0x4a0] sm:$0xff]  ;;  %2005 = vmatpush1.bf16.msra.mxu1 %v6870_v44  ;;  %v458_v31 = vld [vmem:[#allocation5 + $0x348] sm:$0xff] }
  0x80   : > { %v6863_v46 = vcombine.high %v497_v41, %v501_v42  ;;  %v361_v47 = vld [vmem:[#allocation5 + $0x40] sm:$0xff]  ;;  %1813 = vmatprep.subr.bf16.mxu0 %v6735_v45  ;;  %v6862_v52 = vcombine.low %v497_v41, %v501_v42  ;;  %v6745_v45 = vcombine.high %v378_v37, %v382_v39 }
  0x81   : > { %v365_v48 = vld [vmem:[#allocation5 + $0x60] sm:$0xff]  ;;  %1814 = vmatpush1.bf16.msra.mxu0 %v6734_v51 }
  0x82   : > { %v489_v49 = vld [vmem:[#allocation5 + $0x440] sm:$0xff]  ;;  %v6727_v53 = vcombine.high %v361_v47, %v365_v48  ;;  %2006 = vmatprep.subr.bf16.mxu1 %v6863_v46  ;;  %v6726_v60 = vcombine.low %v361_v47, %v365_v48  ;;  %v370_v47 = vld [vmem:[#allocation5 + $0x88] sm:$0xff] }
  0x83   : > { %v493_v50 = vld [vmem:[#allocation5 + $0x460] sm:$0xff]  ;;  %2007 = vmatpush1.bf16.msra.mxu1 %v6862_v52  ;;  %v374_v48 = vld [vmem:[#allocation5 + $0xa8] sm:$0xff]  ;;  %v6744_v52 = vcombine.low %v378_v37, %v382_v39 }
  0x84   : > { %v353_v54 = vld [vmem:[#allocation5] sm:$0xff]  ;;  %v6855_v55 = vcombine.high %v489_v49, %v493_v50  ;;  %1815 = vmatprep.subr.bf16.mxu0 %v6727_v53  ;;  %v6854_v61 = vcombine.low %v489_v49, %v493_v50  ;;  %v6737_v53 = vcombine.high %v370_v47, %v374_v48  ;;  %v514_v39 = vld [vmem:[#allocation5 + $0x508] sm:$0xff] }
  0x85   : > { %v357_v56 = vld [vmem:[#allocation5 + $0x20] sm:$0xff]  ;;  %1816 = vmatpush1.bf16.msra.mxu0 %v6726_v60  ;;  %v6736_v60 = vcombine.low %v370_v47, %v374_v48  ;;  %v8498_v47 = vld [vmem:[#allocation5 + $0x5f0] sm:$0xff] }
  0x86   : > { %v481_v57 = vld [vmem:[#allocation5 + $0x400] sm:$0xff]  ;;  %v6719_v62 = vcombine.high %v353_v54, %v357_v56  ;;  %2008 = vmatprep.subr.bf16.mxu1 %v6855_v55  ;;  %v6718_v5 = vcombine.low %v353_v54, %v357_v56  ;;  %v362_v55 = vld [vmem:[#allocation5 + $0x48] sm:$0xff] }
  0x87   : > { %v485_v58 = vld [vmem:[#allocation5 + $0x420] sm:$0xff]  ;;  %2009 = vmatpush1.bf16.msra.mxu1 %v6854_v61  ;;  %v366_v56 = vld [vmem:[#allocation5 + $0x68] sm:$0xff]  ;;  %v7663_v61 = vld [vmem:[%s8449_s15 + $0x50] ss:$12 sps:$4 sm:$0xff]  }
  0x88   : > { %v7664_v59 = vld [vmem:[%s8449_s15 + $0x4] ss:$12 sps:$4 sm:$0xff]   ;;  %v6847_v1 = vcombine.high %v481_v57, %v485_v58  ;;  %1817 = vmatprep.subr.bf16.mxu0 %v6719_v62  ;;  %v6846_v6 = vcombine.low %v481_v57, %v485_v58  ;;  %v7661_v28 = vld [vmem:[%s8449_s15 + $0x20] ss:$12 sps:$4 sm:$0xff]   ;;  %v6729_v62 = vcombine.high %v362_v55, %v366_v56 }
  0x89   : > { %v473_v63 = vld [vmem:[#allocation5 + $0x3c0] sm:$0xff]  ;;  %1835 = vmatprep.mubr.bf16.mxu0 %v7664_v59  ;;  %1818 = vmatpush1.bf16.msra.mxu0 %v6718_v5  ;;  %v542_v5 = vld [vmem:[#allocation5 + $0x5e8] sm:$0xff] }
  0x8a   : > { %v477_v2 = vld [vmem:[#allocation5 + $0x3e0] sm:$0xff]  ;;  %2010 = vmatprep.subr.bf16.mxu1 %v6847_v1  ;;  %v6905_v11 = vcombine.high %v538_v4, %v542_v5 }
  0x8b   : > { %v6839_v7 = vcombine.high %v473_v63, %v477_v2  ;;  %v465_v9 = vld [vmem:[#allocation5 + $0x380] sm:$0xff]  ;;  %v6838_v14 = vcombine.low %v473_v63, %v477_v2  ;;  %2011 = vmatpush1.bf16.msra.mxu1 %v6846_v6  ;;  %v354_v63 = vld [vmem:[#allocation5 + $0x8] sm:$0xff]  ;;  %v6728_v6 = vcombine.low %v362_v55, %v366_v56 }
  0x8c   : > { %v469_v10 = vld [vmem:[#allocation5 + $0x3a0] sm:$0xff]  ;;  %2189 = vmatprep.subr.bf16.mxu1 %v6777_v8  ;;  %v358_v2 = vld [vmem:[#allocation5 + $0x28] sm:$0xff] }
  0x8d   : > { %1819 = vmatprep.subr.bf16.mxu0 %v6839_v7  ;;  %v6831_v16 = vcombine.high %v465_v9, %v469_v10  ;;  %v457_v17 = vld [vmem:[#allocation5 + $0x340] sm:$0xff]  ;;  %v6830_v22 = vcombine.low %v465_v9, %v469_v10  ;;  %v6721_v7 = vcombine.high %v354_v63, %v358_v2  ;;  %v474_v9 = vld [vmem:[#allocation5 + $0x3c8] sm:$0xff] }
  0x8e   : > { %v461_v18 = vld [vmem:[#allocation5 + $0x360] sm:$0xff]  ;;  %2029 = vmatmul.mubr.bf16.vlgmr.msra.gmra.mxu1 %v7660_v13  ;;  %1820 = vmatpush2.bf16.msra.mxu0 %v6838_v14  ;;  %v478_v10 = vld [vmem:[#allocation5 + $0x3e8] sm:$0xff]  ;;  %v6720_v14 = vcombine.low %v354_v63, %v358_v2 }
  0x8f   : > { %2190 = vmatpush1.bf16.msra.mxu1 %v6776_v15  ;;  %1821 = vmatprep.subr.bf16.mxu0 %v6831_v16  ;;  %v6823_v23 = vcombine.high %v457_v17, %v461_v18  ;;  %v449_v25 = vld [vmem:[#allocation5 + $0x300] sm:$0xff]  ;;  %v6822_v29 = vcombine.low %v457_v17, %v461_v18  ;;  %v7667_v13 = vld [vmem:[%s8449_s15 + $0x68] ss:$12 sps:$4 sm:$0xff]   ;;  %v6841_v18 = vcombine.high %v474_v9, %v478_v10 }
  0x90   : > { %2038 = vmatprep.mubr.bf16.mxu1 %v11640_v0  ;;  %2191 = vmatprep.subr.bf16.mxu1 %v6769_v19  ;;  %v453_v26 = vld [vmem:[#allocation5 + $0x320] sm:$0xff]  ;;  %v8478_v15 = vld [vmem:[%s8449_s15 + $0x1c] ss:$12 sps:$4 sm:$0xff]   ;;  %v6904_v19 = vcombine.low %v538_v4, %v542_v5 }
  0x91   : > { %v6815_v32 = vcombine.high %v449_v25, %v453_v26  ;;  %v441_v33 = vld [vmem:[#allocation5 + $0x2c0] sm:$0xff]  ;;  %v6814_v38 = vcombine.low %v449_v25, %v453_v26  ;;  %v530_v16 = vld [vmem:[#allocation5 + $0x588] sm:$0xff]  ;;  %v6840_v25 = vcombine.low %v474_v9, %v478_v10 }
  0x92   : > { %1822 = vmatpush2.bf16.msra.mxu0 %v6830_v22  ;;  %v445_v34 = vld [vmem:[#allocation5 + $0x2e0] sm:$0xff]  ;;  %v534_v17 = vld [vmem:[#allocation5 + $0x5a8] sm:$0xff]  ;;  %v8480_v22 = vld [vmem:[#allocation5 + $0x1d0] sm:$0xff] }
  0x93   : > { %1823 = vmatprep.subr.bf16.mxu0 %v6823_v23  ;;  %2192 = vmatpush1.bf16.msra.mxu1 %v6768_v24  ;;  %v6807_v40 = vcombine.high %v441_v33, %v445_v34  ;;  %v433_v41 = vld [vmem:[#allocation5 + $0x280] sm:$0xff]  ;;  %v6806_v46 = vcombine.low %v441_v33, %v445_v34  ;;  %v8482_v23 = vld [vmem:[#allocation5 + $0x1f0] sm:$0xff]  ;;  %v6897_v24 = vcombine.high %v530_v16, %v534_v17  ;;  %v522_v26 = vld [vmem:[#allocation5 + $0x548] sm:$0xff] }
  0x94   : > { %2193 = vmatprep.subr.bf16.mxu1 %v6761_v27  ;;  %v437_v42 = vld [vmem:[#allocation5 + $0x2a0] sm:$0xff]  ;;  %v526_v27 = vld [vmem:[#allocation5 + $0x568] sm:$0xff]  ;;  %v6896_v30 = vcombine.low %v530_v16, %v534_v17  ;;  %v7679_v16 = vld [vmem:[%s8449_s15 + $0xb0] ss:$12 sps:$4 sm:$0xff]  }
  0x95   : > { %v7662_v44 = vld [vmem:[%s8449_s15 + $0x38] ss:$12 sps:$4 sm:$0xff]   ;;  %v6799_v49 = vcombine.high %v433_v41, %v437_v42  ;;  %v6798_v54 = vcombine.low %v433_v41, %v437_v42  ;;  %v8474_v12 = vld [vmem:[%s8449_s15] ss:$12 sps:$4 sm:$0xff]   ;;  %v6889_v34 = vcombine.high %v522_v26, %v526_v27  ;;  %v8516_v10 = vld [vmem:[%s8449_s15 + $0x48] ss:$12 sps:$4 sm:$0xff]  }
  0x96   : > { %2039 = vmatmul.mubr.bf16.gmra.mxu1 %v7661_v28  ;;  %1824 = vmatpush2.bf16.msra.mxu0 %v6822_v29  ;;  %v425_v50 = vld [vmem:[#allocation5 + $0x240] sm:$0xff]  ;;  %v6778_v28 = vcombine.low %v8480_v22, %v8482_v23  ;;  %v6833_v29 = vcombine.high %v466_v20, %v470_v21  ;;  %v450_v41 = vld [vmem:[#allocation5 + $0x308] sm:$0xff] }
  0x97   : > { %1825 = vmatprep.subr.bf16.mxu0 %v6815_v32  ;;  %2048 = vmatprep.mubr.bf16.mxu1 %v11640_v0  ;;  %v429_v51 = vld [vmem:[#allocation5 + $0x260] sm:$0xff]  ;;  %v462_v32 = vld [vmem:[#allocation5 + $0x368] sm:$0xff] }
  0x98   : > { %2194 = vmatpush1.bf16.msra.mxu1 %v6760_v35  ;;  %v6791_v57 = vcombine.high %v425_v50, %v429_v51  ;;  %v417_v58 = vld [vmem:[#allocation5 + $0x200] sm:$0xff]  ;;  %v6790_v1 = vcombine.low %v425_v50, %v429_v51  ;;  %v454_v42 = vld [vmem:[#allocation5 + $0x328] sm:$0xff]  ;;  %v6824_v48 = vcombine.low %v458_v31, %v462_v32 }
  0x99   : > { %2195 = vmatprep.subr.bf16.mxu1 %v6753_v36  ;;  %v421_v59 = vld [vmem:[#allocation5 + $0x220] sm:$0xff]  ;;  %v6832_v36 = vcombine.low %v466_v20, %v470_v21  ;;  %v6817_v51 = vcombine.high %v450_v41, %v454_v42  ;;  %v498_v56 = vld [vmem:[#allocation5 + $0x488] sm:$0xff] }
  0x9a   : > { %1826 = vmatpush2.bf16.msra.mxu0 %v6814_v38  ;;  %v6783_v3 = vcombine.high %v417_v58, %v421_v59  ;;  %v6782_v8 = vcombine.low %v417_v58, %v421_v59  ;;  %v8490_v33 = vld [vmem:[%s8449_s15 + $0x18] ss:$12 sps:$4 sm:$0xff]   ;;  %v7671_v35 = vld [vmem:[%s8449_s15 + $0x80] ss:$12 sps:$4 sm:$0xff]   ;;  %v6825_v38 = vcombine.high %v458_v31, %v462_v32  ;;  %v8529_v32 = vld [vmem:[%s8449_s15 + $0xc8] ss:$12 sps:$4 sm:$0xff]  }
  0x9b   : > { %1827 = vmatprep.subr.bf16.mxu0 %v6807_v40  ;;  %v8494_v37 = vld [vmem:[%s8449_s15 + $0x34] ss:$12 sps:$4 sm:$0xff]   ;;  %v518_v40 = vld [vmem:[#allocation5 + $0x528] sm:$0xff]  ;;  %v7675_v58 = vld [vmem:[%s8449_s15 + $0x98] ss:$12 sps:$4 sm:$0xff]  }
  0x9c   : > { %2196 = vmatpush1.bf16.msra.mxu1 %v6752_v43  ;;  %v8496_v43 = vld [vmem:[#allocation5 + $0x5d0] sm:$0xff]  ;;  %v6880_v55 = vcombine.low %v514_v39, %v518_v40  ;;  %v8510_v59 = vld [vmem:[%s8449_s15 + $0x4c] ss:$12 sps:$4 sm:$0xff]  }
  0x9d   : > { %2197 = vmatprep.subr.bf16.mxu1 %v6745_v45  ;;  %v506_v45 = vld [vmem:[#allocation5 + $0x4c8] sm:$0xff]  ;;  %v6906_v50 = vcombine.low %v8496_v43, %v8498_v47  ;;  %v8520_v17 = vld [vmem:[%s8449_s15 + $0x64] ss:$12 sps:$4 sm:$0xff]  }
  0x9e   : > { %2049 = vmatmul.mubr.bf16.gmra.mxu1 %v7662_v44  ;;  %1828 = vmatpush2.bf16.msra.mxu0 %v6806_v46  ;;  %v6888_v44 = vcombine.low %v522_v26, %v526_v27  ;;  %v510_v46 = vld [vmem:[#allocation5 + $0x4e8] sm:$0xff] }
  0x9f   : > { %1829 = vmatprep.subr.bf16.mxu0 %v6799_v49  ;;  %2058 = vmatprep.mubr.bf16.mxu1 %v11640_v0  ;;  %v6881_v49 = vcombine.high %v514_v39, %v518_v40  ;;  %v438_v63 = vld [vmem:[#allocation5 + $0x2a8] sm:$0xff]  ;;  %v6872_v2 = vcombine.low %v506_v45, %v510_v46  ;;  %v8543_v39 = vld [vmem:[%s8449_s15 + $0x78] ss:$12 sps:$4 sm:$0xff]  }
  0xa0   : > { %2198 = vmatpush1.bf16.msra.mxu1 %v6744_v52  ;;  %v442_v52 = vld [vmem:[#allocation5 + $0x2c8] sm:$0xff] }
  0xa1   : > { %2199 = vmatprep.subr.bf16.mxu1 %v6737_v53  ;;  %v446_v53 = vld [vmem:[#allocation5 + $0x2e8] sm:$0xff] }
  0xa2   : > { %1830 = vmatpush2.bf16.msra.mxu0 %v6798_v54  ;;  %v8506_v54 = vld [vmem:[%s8449_s15 + $0x30] ss:$12 sps:$4 sm:$0xff]   ;;  %v494_v4 = vld [vmem:[#allocation5 + $0x468] sm:$0xff]  ;;  %v6808_v5 = vcombine.low %v442_v52, %v446_v53 }
  0xa3   : > { %1831 = vmatprep.subr.bf16.mxu0 %v6791_v57  ;;  %v502_v57 = vld [vmem:[#allocation5 + $0x4a8] sm:$0xff] }
  0xa4   : > { %2200 = vmatpush1.bf16.msra.mxu1 %v6736_v60  ;;  %v6816_v60 = vcombine.low %v450_v41, %v454_v42  ;;  %v430_v9 = vld [vmem:[#allocation5 + $0x268] sm:$0xff]  ;;  %v8549_v41 = vld [vmem:[%s8449_s15 + $0x94] ss:$12 sps:$4 sm:$0xff]   ;;  %v8556_v42 = vld [vmem:[%s8449_s15 + $0x90] ss:$12 sps:$4 sm:$0xff]  }
  0xa5   : > { %2201 = vmatprep.subr.bf16.mxu1 %v6729_v62  ;;  %v434_v62 = vld [vmem:[#allocation5 + $0x288] sm:$0xff] }
  0xa6   : > { %2059 = vmatmul.mubr.bf16.gmra.mxu1 %v7663_v61  ;;  %1832 = vmatpush2.bf16.msra.mxu0 %v6790_v1  ;;  %v6873_v61 = vcombine.high %v506_v45, %v510_v46  ;;  %v6809_v1 = vcombine.high %v442_v52, %v446_v53  ;;  %v422_v20 = vld [vmem:[#allocation5 + $0x228] sm:$0xff] }
  0xa7   : > { %1833 = vmatprep.subr.bf16.mxu0 %v6783_v3  ;;  %2068 = vmatprep.mubr.bf16.mxu1 %v11640_v0  ;;  %v490_v3 = vld [vmem:[#allocation5 + $0x448] sm:$0xff] }
  0xa8   : > { %2202 = vmatpush1.bf16.msra.mxu1 %v6728_v6  ;;  %v6865_v6 = vcombine.high %v498_v56, %v502_v57  ;;  %v6857_v21 = vcombine.high %v490_v3, %v494_v4  ;;  %v8546_v40 = vld [vmem:[%s8449_s15 + $0xe0] ss:$12 sps:$4 sm:$0xff]   ;;  %v8569_v46 = vld [vmem:[%s8449_s15 + $0xa8] ss:$12 sps:$4 sm:$0xff]  }
  0xa9   : > { %2203 = vmatprep.subr.bf16.mxu1 %v6721_v7  ;;  %v6801_v7 = vcombine.high %v434_v62, %v438_v63  ;;  %v8562_v45 = vld [vmem:[%s8449_s15 + $0xac] ss:$12 sps:$4 sm:$0xff]   ;;  %v8585_v52 = vld [vmem:[%s8449_s15 + $0x128] ss:$12 sps:$4 sm:$0xff]  }
  0xaa   : > { %1834 = vmatpush2.bf16.msra.mxu0 %v6782_v8  ;;  %v426_v8 = vld [vmem:[#allocation5 + $0x248] sm:$0xff] }
  0xab   : > { %2382 = vmatprep.subr.bf16.mxu0 %v6905_v11  ;;  %v6864_v11 = vcombine.low %v498_v56, %v502_v57  ;;  %v6792_v26 = vcombine.low %v426_v8, %v430_v9  ;;  %v8588_v53 = vld [vmem:[%s8449_s15 + $0xdc] ss:$12 sps:$4 sm:$0xff]   ;;  %v8598_v56 = vld [vmem:[%s8449_s15 + $0x140] ss:$12 sps:$4 sm:$0xff]  }
  0xac   : > { %2204 = vmatpush1.bf16.msra.mxu1 %v6720_v14  ;;  %v486_v14 = vld [vmem:[#allocation5 + $0x428] sm:$0xff]  ;;  %v8601_v57 = vld [vmem:[%s8449_s15 + $0xf4] ss:$12 sps:$4 sm:$0xff]  }
  0xad   : > { %1836 = vmatmul.mubr.bf16.vlgmr.msra.gmra.mxu0 %v8474_v12  ;;  %2205 = vmatprep.subr.bf16.mxu1 %v6841_v18  ;;  %v6800_v18 = vcombine.low %v434_v62, %v438_v63  ;;  %v8621_v62 = vld [vmem:[%s8449_s15 + $0x108] ss:$12 sps:$4 sm:$0xff]   ;;  %v8624_v63 = vld [vmem:[%s8449_s15 + $0x170] ss:$12 sps:$4 sm:$0xff]  }
  0xae   : > { %2069 = vmatmul.mubr.bf16.gmra.mxu1 %v7667_v13  ;;  %2383 = vmatpush1.bf16.msra.mxu0 %v6904_v19  ;;  %v482_v13 = vld [vmem:[#allocation5 + $0x408] sm:$0xff] }
  0xaf   : > { %1845 = vmatprep.mubr.bf16.mxu0 %v8478_v15  ;;  %2078 = vmatprep.mubr.bf16.mxu1 %v11640_v0  ;;  %v418_v19 = vld [vmem:[#allocation5 + $0x208] sm:$0xff]  ;;  %v6849_v27 = vcombine.high %v482_v13, %v486_v14  ;;  %v6848_v31 = vcombine.low %v482_v13, %v486_v14  ;;  %v387_v14 = vld [vmem:[#allocation5 + $0x110] sm:$0xff] }
  0xb0   : > { %2384 = vmatprep.subr.bf16.mxu0 %v6897_v24  ;;  %2206 = vmatpush2.bf16.msra.mxu1 %v6840_v25  ;;  %v6793_v24 = vcombine.high %v426_v8, %v430_v9  ;;  %v6856_v25 = vcombine.low %v490_v3, %v494_v4  ;;  %v8637_v3 = vld [vmem:[%s8449_s15 + $0x120] ss:$12 sps:$4 sm:$0xff]   ;;  %v403_v4 = vld [vmem:[#allocation5 + $0x190] sm:$0xff] }
  0xb1   : > { %2207 = vmatprep.subr.bf16.mxu1 %v6833_v29  ;;  %v6785_v29 = vcombine.high %v418_v19, %v422_v20  ;;  %v399_v8 = vld [vmem:[#allocation5 + $0x170] sm:$0xff] }
  0xb2   : > { %2385 = vmatpush1.bf16.msra.mxu0 %v6896_v30  ;;  %v8526_v30 = vld [vmem:[%s8449_s15 + $0x60] ss:$12 sps:$4 sm:$0xff]  }
  0xb3   : > { %2386 = vmatprep.subr.bf16.mxu0 %v6889_v34  ;;  %v8532_v34 = vld [vmem:[%s8449_s15 + $0x7c] ss:$12 sps:$4 sm:$0xff]  }
  0xb4   : > { %2208 = vmatpush2.bf16.msra.mxu1 %v6832_v36  ;;  %v6907_v36 = vcombine.high %v8496_v43, %v8498_v47  ;;  %v455_v43 = vld [vmem:[#allocation5 + $0x330] sm:$0xff]  ;;  %v8692_v47 = vld [vmem:[#allocation5 + $0x5d8] sm:$0xff] }
  0xb5   : > { %1846 = vmatmul.mubr.bf16.gmra.mxu0 %v8490_v33  ;;  %2209 = vmatprep.subr.bf16.mxu1 %v6825_v38  ;;  %v6779_v38 = vcombine.high %v8480_v22, %v8482_v23  ;;  %v8657_v22 = vld [vmem:[#allocation5 + $0x1f8] sm:$0xff] }
  0xb6   : > { %2079 = vmatmul.mubr.bf16.gmra.mxu1 %v7671_v35  ;;  %1855 = vmatprep.mubr.bf16.mxu0 %v8494_v37  ;;  %v6784_v35 = vcombine.low %v418_v19, %v422_v20  ;;  %v8653_v19 = vld [vmem:[%s8449_s15 + $0x154] ss:$12 sps:$4 sm:$0xff]   ;;  %v8655_v20 = vld [vmem:[#allocation5 + $0x1d8] sm:$0xff] }
  0xb7   : > { %2088 = vmatprep.mubr.bf16.mxu1 %v11640_v0  ;;  %2387 = vmatpush1.bf16.msra.mxu0 %v6888_v44  ;;  %v8559_v44 = vld [vmem:[%s8449_s15 + $0xf8] ss:$12 sps:$4 sm:$0xff]   ;;  %v6780_v23 = vcombine.low %v8655_v20, %v8657_v22 }
  0xb8   : > { %2388 = vmatprep.subr.bf16.mxu0 %v6881_v49  ;;  %2210 = vmatpush2.bf16.msra.mxu1 %v6824_v48  ;;  %v8572_v48 = vld [vmem:[%s8449_s15 + $0x110] ss:$12 sps:$4 sm:$0xff]  }
  0xb9   : > { %2211 = vmatprep.subr.bf16.mxu1 %v6817_v51  ;;  %v8575_v49 = vld [vmem:[%s8449_s15 + $0xc4] ss:$12 sps:$4 sm:$0xff]   ;;  %v8582_v51 = vld [vmem:[%s8449_s15 + $0xc0] ss:$12 sps:$4 sm:$0xff]  }
  0xbb   : > { %2389 = vmatpush1.bf16.msra.mxu0 %v6880_v55  ;;  %v8595_v55 = vld [vmem:[%s8449_s15 + $0xd8] ss:$12 sps:$4 sm:$0xff]  }
  0xbc   : > { %2212 = vmatpush2.bf16.msra.mxu1 %v6816_v60  ;;  %2390 = vmatprep.subr.bf16.mxu0 %v6873_v61  ;;  %v8611_v60 = vld [vmem:[%s8449_s15 + $0x158] ss:$12 sps:$4 sm:$0xff]  }
  0xbd   : > { %1856 = vmatmul.mubr.bf16.gmra.mxu0 %v8506_v54  ;;  %2213 = vmatprep.subr.bf16.mxu1 %v6809_v1  ;;  %v8614_v61 = vld [vmem:[%s8449_s15 + $0x10c] ss:$12 sps:$4 sm:$0xff]   ;;  %v8627_v1 = vld [vmem:[%s8449_s15 + $0x124] ss:$12 sps:$4 sm:$0xff]  }
  0xbe   : > { %2089 = vmatmul.mubr.bf16.gmra.mxu1 %v7675_v58  ;;  %1865 = vmatprep.mubr.bf16.mxu0 %v8510_v59  ;;  %v8608_v58 = vld [vmem:[%s8449_s15 + $0xf0] ss:$12 sps:$4 sm:$0xff]  }
  0xbf   : > { %2098 = vmatprep.mubr.bf16.mxu1 %v11640_v0  ;;  %2391 = vmatpush1.bf16.msra.mxu0 %v6872_v2  ;;  %v8633_v2 = vld [vmem:[%s8449_s15 + $0x4] ss:$12 sps:$4 sm:$0xff]  }
  0xc0   : > { %2214 = vmatpush2.bf16.msra.mxu1 %v6808_v5  ;;  %2392 = vmatprep.subr.bf16.mxu0 %v6865_v6  ;;  %v407_v5 = vld [vmem:[#allocation5 + $0x1b0] sm:$0xff]  ;;  %v8640_v6 = vld [vmem:[%s8449_s15 + $0x13c] ss:$12 sps:$4 sm:$0xff]  }
  0xc1   : > { %2215 = vmatprep.subr.bf16.mxu1 %v6801_v7  ;;  %v395_v7 = vld [vmem:[#allocation5 + $0x150] sm:$0xff]  ;;  %v6771_v9 = vcombine.high %v403_v4, %v407_v5  ;;  %v6770_v13 = vcombine.low %v403_v4, %v407_v5 }
  0xc2   : > { %v8676_v5 = vld [vmem:[%s8449_s15 + $0x168] ss:$12 sps:$4 sm:$0xff]  }
  0xc3   : > { %2393 = vmatpush1.bf16.msra.mxu0 %v6864_v11  ;;  %v8650_v11 = vld [vmem:[%s8449_s15 + $0x138] ss:$12 sps:$4 sm:$0xff]  }
  0xc4   : > { %2216 = vmatpush2.bf16.msra.mxu1 %v6800_v18  ;;  %2394 = vmatprep.subr.bf16.mxu0 %v6857_v21  ;;  %v6763_v18 = vcombine.high %v395_v7, %v399_v8  ;;  %v379_v21 = vld [vmem:[#allocation5 + $0xd0] sm:$0xff] }
  0xc5   : > { %1866 = vmatmul.mubr.bf16.gmra.mxu0 %v8516_v10  ;;  %2217 = vmatprep.subr.bf16.mxu1 %v6793_v24  ;;  %v383_v24 = vld [vmem:[#allocation5 + $0xf0] sm:$0xff] }
  0xc6   : > { %2099 = vmatmul.mubr.bf16.gmra.mxu1 %v7679_v16  ;;  %1875 = vmatprep.mubr.bf16.mxu0 %v8520_v17  ;;  %v391_v16 = vld [vmem:[#allocation5 + $0x130] sm:$0xff] }
  0xc7   : > { %2108 = vmatprep.mubr.bf16.mxu1 %v11640_v0  ;;  %2395 = vmatpush1.bf16.msra.mxu0 %v6856_v25  ;;  %v6747_v25 = vcombine.high %v379_v21, %v383_v24 }
  0xc8   : > { %2218 = vmatpush2.bf16.msra.mxu1 %v6792_v26  ;;  %2396 = vmatprep.subr.bf16.mxu0 %v6849_v27  ;;  %v8666_v26 = vld [vmem:[%s8449_s15 + $0x150] ss:$12 sps:$4 sm:$0xff]  }
  0xc9   : > { %2219 = vmatprep.subr.bf16.mxu1 %v6785_v29  ;;  %v371_v27 = vld [vmem:[#allocation5 + $0x90] sm:$0xff] }
  0xca   : > { %v375_v29 = vld [vmem:[#allocation5 + $0xb0] sm:$0xff] }
  0xcb   : > { %2397 = vmatpush1.bf16.msra.mxu0 %v6848_v31  ;;  %v8669_v31 = vld [vmem:[%s8449_s15 + $0x16c] ss:$12 sps:$4 sm:$0xff]  }
  0xcc   : > { %2220 = vmatpush2.bf16.msra.mxu1 %v6784_v35  ;;  %2768 = vmatprep.subr.bf16.mxu0 %v6907_v36  ;;  %v6746_v35 = vcombine.low %v379_v21, %v383_v24  ;;  %v6739_v36 = vcombine.high %v371_v27, %v375_v29  ;;  %v467_v21 = vld [vmem:[#allocation5 + $0x390] sm:$0xff] }
  0xcd   : > { %1876 = vmatmul.mubr.bf16.gmra.mxu0 %v8526_v30  ;;  %2575 = vmatprep.subr.bf16.mxu1 %v6779_v38  ;;  %v367_v38 = vld [vmem:[#allocation5 + $0x70] sm:$0xff] }
  0xce   : > { %2109 = vmatmul.mubr.bf16.gmra.mxu1 %v8529_v32  ;;  %1885 = vmatprep.mubr.bf16.mxu0 %v8532_v34  ;;  %v471_v24 = vld [vmem:[#allocation5 + $0x3b0] sm:$0xff] }
  0xcf   : > { %2118 = vmatprep.mubr.bf16.mxu1 %v11640_v0 }
  0xd5   : > { %1886 = vmatmul.mubr.bf16.gmra.mxu0 %v8543_v39 }
  0xd6   : > { %2119 = vmatmul.mubr.bf16.gmra.mxu1 %v8546_v40  ;;  %1895 = vmatprep.mubr.bf16.mxu0 %v8549_v41 }
  0xd7   : > { %2128 = vmatprep.mubr.bf16.mxu1 %v11640_v0 }
  0xdd   : > { %1896 = vmatmul.mubr.bf16.gmra.mxu0 %v8556_v42 }
  0xde   : > { %2129 = vmatmul.mubr.bf16.gmra.mxu1 %v8559_v44  ;;  %1905 = vmatprep.mubr.bf16.mxu0 %v8562_v45 }
  0xdf   : > { %2138 = vmatprep.mubr.bf16.mxu1 %v11640_v0 }
  0xe5   : > { %1906 = vmatmul.mubr.bf16.gmra.mxu0 %v8569_v46 }
  0xe6   : > { %2139 = vmatmul.mubr.bf16.gmra.mxu1 %v8572_v48  ;;  %1915 = vmatprep.mubr.bf16.mxu0 %v8575_v49 }
  0xe7   : > { %2148 = vmatprep.mubr.bf16.mxu1 %v11640_v0 }
  0xed   : > { %1916 = vmatmul.mubr.bf16.gmra.mxu0 %v8582_v51 }
  0xee   : > { %2149 = vmatmul.mubr.bf16.gmra.mxu1 %v8585_v52  ;;  %1925 = vmatprep.mubr.bf16.mxu0 %v8588_v53 }
  0xef   : > { %2158 = vmatprep.mubr.bf16.mxu1 %v11640_v0 }
  0xf5   : > { %1926 = vmatmul.mubr.bf16.gmra.mxu0 %v8595_v55 }
  0xf6   : > { %2159 = vmatmul.mubr.bf16.gmra.mxu1 %v8598_v56  ;;  %1935 = vmatprep.mubr.bf16.mxu0 %v8601_v57 }
  0xf7   : > { %2168 = vmatprep.mubr.bf16.mxu1 %v11640_v0 }
  0xfd   : > { %1936 = vmatmul.mubr.bf16.gmra.mxu0 %v8608_v58 }
  0xfe   : > { %2169 = vmatmul.mubr.bf16.gmra.mxu1 %v8611_v60  ;;  %1945 = vmatprep.mubr.bf16.mxu0 %v8614_v61 }
  0xff   : > { %2178 = vmatprep.mubr.bf16.mxu1 %v11640_v0 }
 0x105   : > { %1946 = vmatmul.mubr.bf16.gmra.mxu0 %v8621_v62 }
 0x106   : > { %2179 = vmatmul.mubr.bf16.gmra.mxu1 %v8624_v63  ;;  %1955 = vmatprep.mubr.bf16.mxu0 %v8627_v1 }
 0x107   : > { %2221 = vmatprep.mubr.bf16.mxu1 %v8633_v2 }
 0x10d   : > { %1956 = vmatmul.mubr.bf16.gmra.mxu0 %v8637_v3 }
 0x10e   : > { %2222 = vmatmul.mubr.bf16.vlgmr.msra.gmra.mxu1 %v8474_v12  ;;  %1965 = vmatprep.mubr.bf16.mxu0 %v8640_v6  ;;  %v6762_v12 = vcombine.low %v395_v7, %v399_v8  ;;  %v355_v7 = vld [vmem:[#allocation5 + $0x10] sm:$0xff] }
 0x10f   : > { %2576 = vmatpush1.bf16.msra.mxu1 %v6778_v28  ;;  %2231 = vmatprep.mubr.bf16.mxu1 %v8478_v15  ;;  %v6755_v15 = vcombine.high %v387_v14, %v391_v16  ;;  %v6754_v28 = vcombine.low %v387_v14, %v391_v16  ;;  %v359_v8 = vld [vmem:[#allocation5 + $0x30] sm:$0xff] }
 0x110   : > { %2577 = vmatprep.subr.bf16.mxu1 %v6771_v9  ;;  %v475_v14 = vld [vmem:[#allocation5 + $0x3d0] sm:$0xff] }
 0x113   : > { %2578 = vmatpush1.bf16.msra.mxu1 %v6770_v13  ;;  %v6723_v13 = vcombine.high %v355_v7, %v359_v8 }
 0x114   : > { %2579 = vmatprep.subr.bf16.mxu1 %v6763_v18  ;;  %v531_v18 = vld [vmem:[#allocation5 + $0x590] sm:$0xff] }
 0x115   : > { %1966 = vmatmul.mubr.bf16.gmra.mxu0 %v8650_v11 }
 0x116   : > { %2232 = vmatmul.mubr.bf16.gmra.mxu1 %v8490_v33  ;;  %1975 = vmatprep.mubr.bf16.mxu0 %v8653_v19  ;;  %v363_v33 = vld [vmem:[#allocation5 + $0x50] sm:$0xff] }
 0x117   : > { %2241 = vmatprep.mubr.bf16.mxu1 %v8494_v37  ;;  %2580 = vmatpush1.bf16.msra.mxu1 %v6762_v12  ;;  %v6738_v37 = vcombine.low %v371_v27, %v375_v29  ;;  %v6731_v4 = vcombine.high %v363_v33, %v367_v38  ;;  %v6730_v9 = vcombine.low %v363_v33, %v367_v38  ;;  %v535_v12 = vld [vmem:[#allocation5 + $0x5b0] sm:$0xff] }
 0x118   : > { %2581 = vmatprep.subr.bf16.mxu1 %v6755_v15  ;;  %v6899_v15 = vcombine.high %v531_v18, %v535_v12  ;;  %v527_v27 = vld [vmem:[#allocation5 + $0x570] sm:$0xff]  ;;  %v6835_v29 = vcombine.high %v467_v21, %v471_v24  ;;  %v6834_v38 = vcombine.low %v467_v21, %v471_v24 }
 0x11b   : > { %2582 = vmatpush1.bf16.msra.mxu1 %v6754_v28 }
 0x11c   : > { %2583 = vmatprep.subr.bf16.mxu1 %v6747_v25  ;;  %v523_v25 = vld [vmem:[#allocation5 + $0x550] sm:$0xff] }
 0x11d   : > { %1976 = vmatmul.mubr.bf16.gmra.mxu0 %v8666_v26  ;;  %v6891_v33 = vcombine.high %v523_v25, %v527_v27 }
 0x11e   : > { %2242 = vmatmul.mubr.bf16.gmra.mxu1 %v8506_v54  ;;  %1985 = vmatprep.mubr.bf16.mxu0 %v8669_v31  ;;  %v479_v54 = vld [vmem:[#allocation5 + $0x3f0] sm:$0xff] }
 0x11f   : > { %2251 = vmatprep.mubr.bf16.mxu1 %v8510_v59  ;;  %2584 = vmatpush1.bf16.msra.mxu1 %v6746_v35  ;;  %v6722_v59 = vcombine.low %v355_v7, %v359_v8  ;;  %v6843_v16 = vcombine.high %v475_v14, %v479_v54  ;;  %v6842_v28 = vcombine.low %v475_v14, %v479_v54  ;;  %v459_v35 = vld [vmem:[#allocation5 + $0x350] sm:$0xff]  ;;  %v8694_v8 = vld [vmem:[#allocation5 + $0x5f8] sm:$0xff]  ;;  %v8699_v14 = vld [vmem:[%s8449_s15 + $0x20] ss:$12 sps:$4 sm:$0xff]  }
 0x120   : > { %2585 = vmatprep.subr.bf16.mxu1 %v6739_v36  ;;  %v463_v36 = vld [vmem:[#allocation5 + $0x370] sm:$0xff] }
 0x121   : > { %v451_v7 = vld [vmem:[#allocation5 + $0x310] sm:$0xff] }
 0x122   : > { %v6819_v54 = vcombine.high %v451_v7, %v455_v43  ;;  %v6818_v24 = vcombine.low %v451_v7, %v455_v43 }
 0x123   : > { %2586 = vmatpush1.bf16.msra.mxu1 %v6738_v37  ;;  %v6827_v37 = vcombine.high %v459_v35, %v463_v36 }
 0x124   : > { %2587 = vmatprep.subr.bf16.mxu1 %v6731_v4  ;;  %v515_v4 = vld [vmem:[#allocation5 + $0x510] sm:$0xff] }
 0x125   : > { %1986 = vmatmul.mubr.bf16.gmra.mxu0 %v8676_v5 }
 0x126   : > { %2252 = vmatmul.mubr.bf16.gmra.mxu1 %v8516_v10  ;;  %2414 = vmatprep.mubr.bf16.mxu0 %v11640_v0  ;;  %v8683_v10 = vld [vmem:[%s8449_s15 + $0x8] ss:$12 sps:$4 sm:$0xff]  }
 0x127   : > { %2261 = vmatprep.mubr.bf16.mxu1 %v8520_v17  ;;  %2588 = vmatpush1.bf16.msra.mxu1 %v6730_v9  ;;  %v6898_v17 = vcombine.low %v531_v18, %v535_v12  ;;  %v443_v18 = vld [vmem:[#allocation5 + $0x2d0] sm:$0xff] }
 0x128   : > { %2589 = vmatprep.subr.bf16.mxu1 %v6723_v13  ;;  %v447_v12 = vld [vmem:[#allocation5 + $0x2f0] sm:$0xff]  ;;  %v360_v13 = vld [vmem:[#allocation5 + $0x38] sm:$0xff] }
 0x12b   : > { %2590 = vmatpush1.bf16.msra.mxu1 %v6722_v59  ;;  %v507_v59 = vld [vmem:[#allocation5 + $0x4d0] sm:$0xff] }
 0x12c   : > { %2591 = vmatprep.subr.bf16.mxu1 %v6843_v16  ;;  %v511_v16 = vld [vmem:[#allocation5 + $0x4f0] sm:$0xff] }
 0x12d   : > { %2415 = vmatmul.mubr.bf16.vlgmr.msra.gmra.mxu0 %v8683_v10 }
 0x12e   : > { %2262 = vmatmul.mubr.bf16.gmra.mxu1 %v8526_v30  ;;  %2769 = vmatpush1.bf16.msra.mxu0 %v6906_v50  ;;  %v519_v30 = vld [vmem:[#allocation5 + $0x530] sm:$0xff]  ;;  %v6890_v50 = vcombine.low %v523_v25, %v527_v27 }
 0x12f   : > { %2271 = vmatprep.mubr.bf16.mxu1 %v8532_v34  ;;  %2424 = vmatprep.mubr.bf16.mxu0 %v11640_v0  ;;  %v6826_v34 = vcombine.low %v459_v35, %v463_v36  ;;  %v6883_v9 = vcombine.high %v515_v4, %v519_v30  ;;  %v6882_v21 = vcombine.low %v515_v4, %v519_v30  ;;  %v499_v25 = vld [vmem:[#allocation5 + $0x490] sm:$0xff] }
 0x130   : > { %2770 = vmatprep.subr.bf16.mxu0 %v6899_v15  ;;  %2592 = vmatpush2.bf16.msra.mxu1 %v6842_v28  ;;  %v6875_v15 = vcombine.high %v507_v59, %v511_v16  ;;  %v6811_v28 = vcombine.high %v443_v18, %v447_v12  ;;  %v503_v27 = vld [vmem:[#allocation5 + $0x4b0] sm:$0xff]  ;;  %v6810_v35 = vcombine.low %v443_v18, %v447_v12 }
 0x131   : > { %2593 = vmatprep.subr.bf16.mxu1 %v6835_v29  ;;  %v435_v29 = vld [vmem:[#allocation5 + $0x290] sm:$0xff]  ;;  %v6867_v36 = vcombine.high %v499_v25, %v503_v27  ;;  %v6866_v7 = vcombine.low %v499_v25, %v503_v27  ;;  %v6781_v25 = vcombine.high %v8655_v20, %v8657_v22 }
 0x132   : > { %2771 = vmatpush1.bf16.msra.mxu0 %v6898_v17  ;;  %v439_v17 = vld [vmem:[#allocation5 + $0x2b0] sm:$0xff] }
 0x133   : > { %2772 = vmatprep.subr.bf16.mxu0 %v6891_v33  ;;  %v6803_v33 = vcombine.high %v435_v29, %v439_v17  ;;  %v427_v4 = vld [vmem:[#allocation5 + $0x250] sm:$0xff]  ;;  %v6802_v43 = vcombine.low %v435_v29, %v439_v17 }
 0x134   : > { %2594 = vmatpush2.bf16.msra.mxu1 %v6834_v38  ;;  %v491_v38 = vld [vmem:[#allocation5 + $0x450] sm:$0xff] }
 0x135   : > { %2425 = vmatmul.mubr.bf16.gmra.mxu0 %v8699_v14  ;;  %2595 = vmatprep.subr.bf16.mxu1 %v6827_v37  ;;  %v495_v37 = vld [vmem:[#allocation5 + $0x470] sm:$0xff] }
 0x136   : > { %2272 = vmatmul.mubr.bf16.gmra.mxu1 %v8543_v39  ;;  %2434 = vmatprep.mubr.bf16.mxu0 %v11640_v0  ;;  %v6874_v39 = vcombine.low %v507_v59, %v511_v16  ;;  %v431_v30 = vld [vmem:[#allocation5 + $0x270] sm:$0xff] }
 0x137   : > { %2281 = vmatprep.mubr.bf16.mxu1 %v8549_v41  ;;  %2773 = vmatpush1.bf16.msra.mxu0 %v6890_v50  ;;  %v8706_v41 = vld [vmem:[%s8449_s15 + $0x38] ss:$12 sps:$4 sm:$0xff]   ;;  %v6859_v50 = vcombine.high %v491_v38, %v495_v37  ;;  %v419_v59 = vld [vmem:[#allocation5 + $0x210] sm:$0xff]  ;;  %v6794_v18 = vcombine.low %v427_v4, %v431_v30 }
 0x138   : > { %2774 = vmatprep.subr.bf16.mxu0 %v6883_v9  ;;  %2596 = vmatpush2.bf16.msra.mxu1 %v6826_v34  ;;  %v6795_v34 = vcombine.high %v427_v4, %v431_v30  ;;  %v483_v9 = vld [vmem:[#allocation5 + $0x410] sm:$0xff] }
 0x139   : > { %2597 = vmatprep.subr.bf16.mxu1 %v6819_v54  ;;  %v487_v54 = vld [vmem:[#allocation5 + $0x430] sm:$0xff] }
 0x13a   : > { %v423_v16 = vld [vmem:[#allocation5 + $0x230] sm:$0xff]  ;;  %v6851_v12 = vcombine.high %v483_v9, %v487_v54 }
 0x13b   : > { %2775 = vmatpush1.bf16.msra.mxu0 %v6882_v21  ;;  %v6787_v21 = vcombine.high %v419_v59, %v423_v16 }
 0x13c   : > { %2598 = vmatpush2.bf16.msra.mxu1 %v6818_v24  ;;  %2776 = vmatprep.subr.bf16.mxu0 %v6875_v15  ;;  %v6850_v24 = vcombine.low %v483_v9, %v487_v54  ;;  %v6786_v15 = vcombine.low %v419_v59, %v423_v16 }
 0x13d   : > { %2435 = vmatmul.mubr.bf16.gmra.mxu0 %v8706_v41  ;;  %2599 = vmatprep.subr.bf16.mxu1 %v6811_v28  ;;  %v6909_v28 = vcombine.high %v8692_v47, %v8694_v8 }
 0x13e   : > { %2282 = vmatmul.mubr.bf16.gmra.mxu1 %v8556_v42  ;;  %2444 = vmatprep.mubr.bf16.mxu0 %v11640_v0  ;;  %v6858_v42 = vcombine.low %v491_v38, %v495_v37 }
 0x13f   : > { %2291 = vmatprep.mubr.bf16.mxu1 %v8562_v45  ;;  %2777 = vmatpush1.bf16.msra.mxu0 %v6874_v39  ;;  %v8713_v45 = vld [vmem:[%s8449_s15 + $0x50] ss:$12 sps:$4 sm:$0xff]   ;;  %v8731_v39 = vld [vmem:[%s8449_s15 + $0x80] ss:$12 sps:$4 sm:$0xff]  }
 0x140   : > { %2600 = vmatpush2.bf16.msra.mxu1 %v6810_v35  ;;  %2778 = vmatprep.subr.bf16.mxu0 %v6867_v36 }
 0x141   : > { %2601 = vmatprep.subr.bf16.mxu1 %v6803_v33  ;;  %v7987_v33 = vld [vmem:[%s8449_s15 + $0x98] ss:$12 sps:$4 sm:$0xff]  }
 0x143   : > { %2779 = vmatpush1.bf16.msra.mxu0 %v6866_v7  ;;  %v7988_v7 = vld [vmem:[%s8449_s15 + $0xb0] ss:$12 sps:$4 sm:$0xff]  }
 0x144   : > { %2602 = vmatpush2.bf16.msra.mxu1 %v6802_v43  ;;  %2780 = vmatprep.subr.bf16.mxu0 %v6859_v50 }
 0x145   : > { %2445 = vmatmul.mubr.bf16.gmra.mxu0 %v8713_v45  ;;  %2603 = vmatprep.subr.bf16.mxu1 %v6795_v34 }
 0x146   : > { %2292 = vmatmul.mubr.bf16.gmra.mxu1 %v8569_v46  ;;  %2454 = vmatprep.mubr.bf16.mxu0 %v11640_v0  ;;  %v8724_v46 = vld [vmem:[%s8449_s15 + $0x68] ss:$12 sps:$4 sm:$0xff]  }
 0x147   : > { %2301 = vmatprep.mubr.bf16.mxu1 %v8575_v49  ;;  %2781 = vmatpush1.bf16.msra.mxu0 %v6858_v42 }
 0x148   : > { %2604 = vmatpush2.bf16.msra.mxu1 %v6794_v18  ;;  %2782 = vmatprep.subr.bf16.mxu0 %v6851_v12 }
 0x149   : > { %2605 = vmatprep.subr.bf16.mxu1 %v6787_v21 }
 0x14b   : > { %2783 = vmatpush1.bf16.msra.mxu0 %v6850_v24 }
 0x14c   : > { %2606 = vmatpush2.bf16.msra.mxu1 %v6786_v15  ;;  %3154 = vmatprep.subr.bf16.mxu0 %v6909_v28 }
 0x14d   : > { %2455 = vmatmul.mubr.bf16.gmra.mxu0 %v8724_v46  ;;  %2961 = vmatprep.subr.bf16.mxu1 %v6781_v25 }
 0x14e   : > { %v2030_v49 = vpop.f32.mrf.mxu1  ;;  %2302 = vmatmul.mubr.bf16.gmra.mxu1 %v8582_v51  ;;  %2464 = vmatprep.mubr.bf16.mxu0 %v11640_v0 }
 0x14f   : > { %2311 = vmatprep.mubr.bf16.mxu1 %v8588_v53 }
 0x150   : > { %v2032_v27 = vpop.f32.mrf.mxu1 }
 0x152   : > { %v2034_v29 = vpop.f32.mrf.mxu1 }
 0x154   : > { %v2036_v17 = vpop.f32.mrf.mxu1 }
 0x155   : > { %2465 = vmatmul.mubr.bf16.gmra.mxu0 %v8731_v39 }
 0x156   : > { %v8734_v35 = vpop.f32.mrf.mxu1  ;;  %2312 = vmatmul.mubr.bf16.gmra.mxu1 %v8595_v55  ;;  %2474 = vmatprep.mubr.bf16.mxu0 %v11640_v0  ;;  %v547_v55 = vlaneseq }
 0x157   : > { %2321 = vmatprep.mubr.bf16.mxu1 %v8601_v57 }
 0x158   : > { %v8739_v51 = vpop.f32.mrf.mxu1  ;;  %v8755_v4 = vshrl.u32 %v547_v55, 7 }
 0x15a   : > { %v8741_v36 = vpop.f32.mrf.mxu1  ;;  %11794 = vst [vmem:[#allocation15_spill] sm:$0xff] %v8755_v4  ;;  %v11638_v34 = vsub.s32 1, %v8755_v4 }
 0x15c   : > { %v8743_v53 = vpop.f32.mrf.mxu1 }
 0x15d   : > { %2475 = vmatmul.mubr.bf16.gmra.mxu0 %v7987_v33 }
 0x15e   : > { %v8746_v38 = vpop.f32.mrf.mxu1  ;;  %2322 = vmatmul.mubr.bf16.gmra.mxu1 %v8608_v58  ;;  %2484 = vmatprep.mubr.bf16.mxu0 %v11640_v0  ;;  %v11639_v58 = vsub.s32 0, %v8755_v4 }
 0x15f   : > { %2331 = vmatprep.mubr.bf16.mxu1 %v8614_v61  ;;  %v545_v61 = vld [vmem:[#allocation7] sm:$0xff] }
 0x160   : > { %v8751_v37 = vpop.f32.mrf.mxu1  ;;  %v8773_v54 = vrot.slane %v545_v61, %v11639_v58  ;;  %v392_v58 = vld [vmem:[#allocation5 + $0x138] sm:$0xff] }
 0x162   : > { %v8753_v57 = vpop.f32.mrf.mxu1 }
 0x164   : > { %v8757_v30 = vpop.f32.mrf.mxu1 }
 0x165   : > { %2485 = vmatmul.mubr.bf16.gmra.mxu0 %v7988_v7 }
 0x166   : > { %v8760_v43 = vpop.f32.mrf.mxu1  ;;  %2332 = vmatmul.mubr.bf16.gmra.mxu1 %v8621_v62  ;;  %2494 = vmatprep.mubr.bf16.mxu0 %v11640_v0  ;;  %v8779_v62 = vrot.slane %v545_v61, %v11638_v34  ;;  %v388_v34 = vld [vmem:[#allocation5 + $0x118] sm:$0xff] }
 0x167   : > { %2341 = vmatprep.mubr.bf16.mxu1 %v8627_v1 }
 0x168   : > { %v8766_v50 = vpop.f32.mrf.mxu1 }
 0x16a   : > { %v8769_v9 = vpop.f32.mrf.mxu1 }
 0x16c   : > { %v8775_v59 = vpop.f32.mrf.mxu1 }
 0x16d   : > { %v1837_v16 = vpop.f32.mrf.mxu0  ;;  %2495 = vmatmul.mubr.bf16.gmra.mxu0 %v8529_v32 }
 0x16e   : > { %v1838_v1 = vadd.f32 %v1837_v16, %v8773_v54  ;;  %v8783_v42 = vpop.f32.mrf.mxu1  ;;  %2342 = vmatmul.mubr.bf16.gmra.mxu1 %v8637_v3  ;;  %2504 = vmatprep.mubr.bf16.mxu0 %v11640_v0 }
 0x16f   : > { %v1839_v18 = vpop.f32.mrf.mxu0  ;;  %2351 = vmatprep.mubr.bf16.mxu1 %v8640_v6 }
 0x170   : > { %v2031_v12 = vadd.f32 %v2030_v49, %v1838_v1  ;;  %v1840_v21 = vadd.f32 %v1839_v18, %v8779_v62  ;;  %v8789_v24 = vpop.f32.mrf.mxu1 }
 0x171   : > { %v1841_v15 = vpop.f32.mrf.mxu0 }
 0x172   : > { %v2033_v28 = vadd.f32 %v2032_v27, %v1840_v21  ;;  %v1842_v32 = vadd.f32 %v1841_v15, %v8773_v54  ;;  %v8792_v25 = vpop.f32.mrf.mxu1  ;;  %v3347_v6 = vmax.f32 %v2031_v12, 0.0 }
 0x173   : > { %v1843_v33 = vpop.f32.mrf.mxu0 }
 0x174   : > { %v2035_v55 = vadd.f32 %v2034_v29, %v1842_v32  ;;  %v1844_v3 = vadd.f32 %v1843_v33, %v8779_v62  ;;  %v8795_v7 = vpop.f32.mrf.mxu1  ;;  %v3348_v27 = vmax.f32 %v2033_v28, 0.0 }
 0x175   : > { %v1847_v61 = vpop.f32.mrf.mxu0  ;;  %2505 = vmatmul.mubr.bf16.gmra.mxu0 %v8546_v40 }
 0x176   : > { %v3355_v49 = vmax.f32 %v2035_v55, 0.0  ;;  %v2037_v16 = vadd.f32 %v2036_v17, %v1844_v3  ;;  %v1848_v1 = vadd.f32 %v1847_v61, %v8773_v54  ;;  %v8799_v18 = vpop.f32.mrf.mxu1  ;;  %2352 = vmatmul.mubr.bf16.gmra.mxu1 %v8650_v11  ;;  %2514 = vmatprep.mubr.bf16.mxu0 %v11640_v0 }
 0x177   : > { %v1849_v29 = vpop.f32.mrf.mxu0  ;;  %2361 = vmatprep.mubr.bf16.mxu1 %v8653_v19 }
 0x178   : > { %v8804_v21 = vpack.c.bf16 %v3355_v49, %v3347_v6  ;;  %v3356_v15 = vmax.f32 %v2037_v16, 0.0  ;;  %v2041_v40 = vadd.f32 %v8734_v35, %v1848_v1  ;;  %v1850_v12 = vadd.f32 %v1849_v29, %v8779_v62  ;;  %v8808_v17 = vpop.f32.mrf.mxu1 }
 0x179   : > { %v1851_v32 = vpop.f32.mrf.mxu0 }
 0x17a   : > { %11795 = vst [vmem:[#allocation16_spill] sm:$0xff] %v8804_v21  ;;  %v2043_v33 = vadd.f32 %v8739_v51, %v1850_v12  ;;  %v1852_v11 = vadd.f32 %v1851_v32, %v8773_v54  ;;  %v8812_v55 = vpop.f32.mrf.mxu1  ;;  %v8814_v28 = vpack.c.bf16 %v3356_v15, %v3348_v27  ;;  %v3363_v49 = vmax.f32 %v2041_v40, 0.0 }
 0x17b   : > { %v1853_v3 = vpop.f32.mrf.mxu0 }
 0x17c   : > { %11796 = vst [vmem:[#allocation17_spill] sm:$0xff] %v8814_v28  ;;  %v2045_v19 = vadd.f32 %v8741_v36, %v1852_v11  ;;  %v1854_v61 = vadd.f32 %v1853_v3, %v8779_v62  ;;  %v8818_v6 = vpop.f32.mrf.mxu1 }
 0x17d   : > { %v1857_v35 = vpop.f32.mrf.mxu0  ;;  %2515 = vmatmul.mubr.bf16.gmra.mxu0 %v8559_v44 }
 0x17e   : > { %v3371_v16 = vmax.f32 %v2045_v19, 0.0  ;;  %v2047_v51 = vadd.f32 %v8743_v53, %v1854_v61  ;;  %v1858_v1 = vadd.f32 %v1857_v35, %v8773_v54  ;;  %v8823_v29 = vpop.f32.mrf.mxu1  ;;  %2362 = vmatmul.mubr.bf16.gmra.mxu1 %v8666_v26  ;;  %2524 = vmatprep.mubr.bf16.mxu0 %v11640_v0  ;;  %v3364_v53 = vmax.f32 %v2043_v33, 0.0 }
 0x17f   : > { %v1859_v36 = vpop.f32.mrf.mxu0  ;;  %2371 = vmatprep.mubr.bf16.mxu1 %v8669_v31 }
 0x180   : > { %v8828_v27 = vpack.c.bf16 %v3371_v16, %v3363_v49  ;;  %v3372_v15 = vmax.f32 %v2047_v51, 0.0  ;;  %v2051_v44 = vadd.f32 %v8746_v38, %v1858_v1  ;;  %v1860_v40 = vadd.f32 %v1859_v36, %v8779_v62  ;;  %v8832_v12 = vpop.f32.mrf.mxu1 }
 0x181   : > { %v1861_v32 = vpop.f32.mrf.mxu0 }
 0x182   : > { %11797 = vst [vmem:[#allocation18_spill] sm:$0xff] %v8828_v27  ;;  %v2053_v11 = vadd.f32 %v8751_v37, %v1860_v40  ;;  %v1862_v26 = vadd.f32 %v1861_v32, %v8773_v54  ;;  %v8836_v3 = vpop.f32.mrf.mxu1  ;;  %v8838_v61 = vpack.c.bf16 %v3372_v15, %v3364_v53  ;;  %v3379_v33 = vmax.f32 %v2051_v44, 0.0  ;;  %v404_v32 = vld [vmem:[#allocation5 + $0x198] sm:$0xff] }
 0x183   : > { %v1863_v19 = vpop.f32.mrf.mxu0 }
 0x184   : > { %11798 = vst [vmem:[#allocation19_spill] sm:$0xff] %v8838_v61  ;;  %v2055_v31 = vadd.f32 %v8753_v57, %v1862_v26  ;;  %v1864_v35 = vadd.f32 %v1863_v19, %v8779_v62  ;;  %v8842_v38 = vpop.f32.mrf.mxu1  ;;  %v3380_v57 = vmax.f32 %v2053_v11, 0.0  ;;  %v408_v26 = vld [vmem:[#allocation5 + $0x1b8] sm:$0xff] }
 0x185   : > { %v1867_v49 = vpop.f32.mrf.mxu0  ;;  %2525 = vmatmul.mubr.bf16.gmra.mxu0 %v8572_v48 }
 0x186   : > { %v3387_v16 = vmax.f32 %v2055_v31, 0.0  ;;  %v2057_v37 = vadd.f32 %v8757_v30, %v1864_v35  ;;  %v1868_v51 = vadd.f32 %v1867_v49, %v8773_v54  ;;  %v8847_v1 = vpop.f32.mrf.mxu1  ;;  %2372 = vmatmul.mubr.bf16.gmra.mxu1 %v8676_v5  ;;  %2534 = vmatprep.mubr.bf16.mxu0 %v11640_v0 }
 0x187   : > { %v1869_v36 = vpop.f32.mrf.mxu0  ;;  %2607 = vmatprep.mubr.bf16.mxu1 %v8633_v2 }
 0x188   : > { %v8852_v15 = vpack.c.bf16 %v3387_v16, %v3379_v33  ;;  %v3388_v40 = vmax.f32 %v2057_v37, 0.0  ;;  %v2061_v48 = vadd.f32 %v8760_v43, %v1868_v51  ;;  %v1870_v44 = vadd.f32 %v1869_v36, %v8779_v62  ;;  %v8856_v30 = vpop.f32.mrf.mxu1  ;;  %v396_v16 = vld [vmem:[#allocation5 + $0x158] sm:$0xff] }
 0x189   : > { %v1871_v53 = vpop.f32.mrf.mxu0  ;;  %v6773_v33 = vcombine.high %v404_v32, %v408_v26  ;;  %v400_v37 = vld [vmem:[#allocation5 + $0x178] sm:$0xff] }
 0x18a   : > { %11799 = vst [vmem:[#allocation20_spill] sm:$0xff] %v8852_v15  ;;  %v2063_v5 = vadd.f32 %v8766_v50, %v1870_v44  ;;  %v1872_v19 = vadd.f32 %v1871_v53, %v8773_v54  ;;  %v8860_v11 = vpop.f32.mrf.mxu1  ;;  %v8862_v2 = vpack.c.bf16 %v3388_v40, %v3380_v57  ;;  %v3395_v50 = vmax.f32 %v2061_v48, 0.0 }
 0x18b   : > { %v1873_v31 = vpop.f32.mrf.mxu0  ;;  %v6765_v48 = vcombine.high %v396_v16, %v400_v37 }
 0x18c   : > { %11800 = vst [vmem:[#allocation21_spill] sm:$0xff] %v8862_v2  ;;  %v2065_v35 = vadd.f32 %v8769_v9, %v1872_v19  ;;  %v1874_v43 = vadd.f32 %v1873_v31, %v8779_v62  ;;  %v8866_v49 = vpop.f32.mrf.mxu1  ;;  %v7989_v9 = vld [vmem:[%s8449_s15] ss:$12 sps:$4 sm:$0xff]   ;;  %v3396_v53 = vmax.f32 %v2063_v5, 0.0  ;;  %v7990_v31 = vld [vmem:[%s8449_s15 + $0x1c] ss:$12 sps:$4 sm:$0xff]  }
 0x18d   : > { %v1877_v51 = vpop.f32.mrf.mxu0  ;;  %2535 = vmatmul.mubr.bf16.gmra.mxu0 %v8585_v52  ;;  %v6772_v52 = vcombine.low %v404_v32, %v408_v26 }
 0x18e   : > { %v3403_v36 = vmax.f32 %v2065_v35, 0.0  ;;  %v2067_v44 = vadd.f32 %v8775_v59, %v1874_v43  ;;  %v1878_v57 = vadd.f32 %v1877_v51, %v8773_v54  ;;  %v8871_v40 = vpop.f32.mrf.mxu1  ;;  %2608 = vmatmul.mubr.bf16.vlgmr.msra.gmra.mxu1 %v7989_v9  ;;  %2544 = vmatprep.mubr.bf16.mxu0 %v11640_v0 }
 0x18f   : > { %2962 = vmatpush1.bf16.msra.mxu1 %v6780_v23  ;;  %v1879_v19 = vpop.f32.mrf.mxu0  ;;  %2617 = vmatprep.mubr.bf16.mxu1 %v7990_v31 }
 0x190   : > { %v8879_v35 = vpack.c.bf16 %v3403_v36, %v3395_v50  ;;  %v3404_v59 = vmax.f32 %v2067_v44, 0.0  ;;  %v2071_v43 = vadd.f32 %v8783_v42, %v1878_v57  ;;  %v1880_v51 = vadd.f32 %v1879_v19, %v8779_v62  ;;  %v8883_v9 = vpop.f32.mrf.mxu1  ;;  %2963 = vmatprep.subr.bf16.mxu1 %v6773_v33  ;;  %v384_v57 = vld [vmem:[#allocation5 + $0xf8] sm:$0xff] }
 0x191   : > { %v1881_v5 = vpop.f32.mrf.mxu0  ;;  %v6764_v42 = vcombine.low %v396_v16, %v400_v37  ;;  %v6757_v44 = vcombine.high %v388_v34, %v392_v58 }
 0x192   : > { %11801 = vst [vmem:[#allocation22_spill] sm:$0xff] %v8879_v35  ;;  %v2073_v20 = vadd.f32 %v8789_v24, %v1880_v51  ;;  %v1882_v22 = vadd.f32 %v1881_v5, %v8773_v54  ;;  %v8887_v23 = vpop.f32.mrf.mxu1  ;;  %v8889_v32 = vpack.c.bf16 %v3404_v59, %v3396_v53  ;;  %v380_v24 = vld [vmem:[#allocation5 + $0xd8] sm:$0xff]  ;;  %v3411_v53 = vmax.f32 %v2071_v43, 0.0  ;;  %v7992_v51 = vld [vmem:[%s8449_s15 + $0x34] ss:$12 sps:$4 sm:$0xff]  }
 0x193   : > { %v1883_v26 = vpop.f32.mrf.mxu0  ;;  %2964 = vmatpush1.bf16.msra.mxu1 %v6772_v52  ;;  %v6756_v5 = vcombine.low %v388_v34, %v392_v58 }
 0x194   : > { %11802 = vst [vmem:[#allocation23_spill] sm:$0xff] %v8889_v32  ;;  %v2075_v50 = vadd.f32 %v8792_v25, %v1882_v22  ;;  %v1884_v36 = vadd.f32 %v1883_v26, %v8779_v62  ;;  %v8893_v33 = vpop.f32.mrf.mxu1  ;;  %2965 = vmatprep.subr.bf16.mxu1 %v6765_v48  ;;  %v7991_v25 = vld [vmem:[%s8449_s15 + $0x18] ss:$12 sps:$4 sm:$0xff]   ;;  %v3412_v48 = vmax.f32 %v2073_v20, 0.0  ;;  %v6749_v22 = vcombine.high %v380_v24, %v384_v57 }
 0x195   : > { %v1887_v19 = vpop.f32.mrf.mxu0  ;;  %2545 = vmatmul.mubr.bf16.gmra.mxu0 %v8598_v56 }
 0x196   : > { %v3419_v31 = vmax.f32 %v2075_v50, 0.0  ;;  %v2077_v52 = vadd.f32 %v8795_v7, %v1884_v36  ;;  %v1888_v16 = vadd.f32 %v1887_v19, %v8773_v54  ;;  %v8898_v37 = vpop.f32.mrf.mxu1  ;;  %2618 = vmatmul.mubr.bf16.gmra.mxu1 %v7991_v25  ;;  %2554 = vmatprep.mubr.bf16.mxu0 %v11640_v0  ;;  %v372_v19 = vld [vmem:[#allocation5 + $0x98] sm:$0xff] }
 0x197   : > { %v1889_v59 = vpop.f32.mrf.mxu0  ;;  %2627 = vmatprep.mubr.bf16.mxu1 %v7992_v51  ;;  %2966 = vmatpush1.bf16.msra.mxu1 %v6764_v42  ;;  %v376_v25 = vld [vmem:[#allocation5 + $0xb8] sm:$0xff] }
 0x198   : > { %v8903_v56 = vpack.c.bf16 %v3419_v31, %v3411_v53  ;;  %v3420_v43 = vmax.f32 %v2077_v52, 0.0  ;;  %v2081_v7 = vadd.f32 %v8799_v18, %v1888_v16  ;;  %v1890_v26 = vadd.f32 %v1889_v59, %v8779_v62  ;;  %v8907_v50 = vpop.f32.mrf.mxu1  ;;  %2967 = vmatprep.subr.bf16.mxu1 %v6757_v44  ;;  %v368_v16 = vld [vmem:[#allocation5 + $0x78] sm:$0xff] }
 0x199   : > { %v1891_v36 = vpop.f32.mrf.mxu0  ;;  %v6748_v18 = vcombine.low %v380_v24, %v384_v57  ;;  %v6741_v52 = vcombine.high %v372_v19, %v376_v25 }
 0x19a   : > { %11803 = vst [vmem:[#allocation24_spill] sm:$0xff] %v8903_v56  ;;  %v2083_v20 = vadd.f32 %v8808_v17, %v1890_v26  ;;  %v1892_v51 = vadd.f32 %v1891_v36, %v8773_v54  ;;  %v8911_v42 = vpop.f32.mrf.mxu1  ;;  %v8913_v58 = vpack.c.bf16 %v3420_v43, %v3412_v48  ;;  %v364_v17 = vld [vmem:[#allocation5 + $0x58] sm:$0xff]  ;;  %v3427_v48 = vmax.f32 %v2081_v7, 0.0 }
 0x19b   : > { %v1893_v34 = vpop.f32.mrf.mxu0  ;;  %2968 = vmatpush1.bf16.msra.mxu1 %v6756_v5  ;;  %v7994_v36 = vld [vmem:[%s8449_s15 + $0x4c] ss:$12 sps:$4 sm:$0xff]  }
 0x19c   : > { %11804 = vst [vmem:[#allocation25_spill] sm:$0xff] %v8913_v58  ;;  %v2085_v53 = vadd.f32 %v8812_v55, %v1892_v51  ;;  %v1894_v31 = vadd.f32 %v1893_v34, %v8779_v62  ;;  %v8917_v44 = vpop.f32.mrf.mxu1  ;;  %2969 = vmatprep.subr.bf16.mxu1 %v6749_v22  ;;  %v7993_v55 = vld [vmem:[%s8449_s15 + $0x30] ss:$12 sps:$4 sm:$0xff]   ;;  %v3428_v22 = vmax.f32 %v2083_v20, 0.0  ;;  %v6740_v51 = vcombine.low %v372_v19, %v376_v25 }
 0x19d   : > { %v1897_v59 = vpop.f32.mrf.mxu0  ;;  %2555 = vmatmul.mubr.bf16.gmra.mxu0 %v8611_v60  ;;  %v6733_v34 = vcombine.high %v364_v17, %v368_v16 }
 0x19e   : > { %v3435_v43 = vmax.f32 %v2085_v53, 0.0  ;;  %v2087_v5 = vadd.f32 %v8818_v6, %v1894_v31  ;;  %v1898_v24 = vadd.f32 %v1897_v59, %v8773_v54  ;;  %v8922_v57 = vpop.f32.mrf.mxu1  ;;  %2628 = vmatmul.mubr.bf16.gmra.mxu1 %v7993_v55  ;;  %2564 = vmatprep.mubr.bf16.mxu0 %v11640_v0  ;;  %v356_v55 = vld [vmem:[#allocation5 + $0x18] sm:$0xff] }
 0x19f   : > { %v1899_v26 = vpop.f32.mrf.mxu0  ;;  %2637 = vmatprep.mubr.bf16.mxu1 %v7994_v36  ;;  %2970 = vmatpush1.bf16.msra.mxu1 %v6748_v18 }
 0x1a0   : > { %v8927_v60 = vpack.c.bf16 %v3435_v43, %v3427_v48  ;;  %v3436_v7 = vmax.f32 %v2087_v5, 0.0  ;;  %v2091_v6 = vadd.f32 %v8823_v29, %v1898_v24  ;;  %v1900_v53 = vadd.f32 %v1899_v26, %v8779_v62  ;;  %v8931_v31 = vpop.f32.mrf.mxu1  ;;  %2971 = vmatprep.subr.bf16.mxu1 %v6741_v52  ;;  %v8945_v24 = vld [vmem:[#allocation5 + $0x3f8] sm:$0xff] }
 0x1a1   : > { %v1901_v59 = vpop.f32.mrf.mxu0  ;;  %v6732_v29 = vcombine.low %v364_v17, %v368_v16  ;;  %v6725_v5 = vcombine.high %v356_v55, %v360_v13 }
 0x1a2   : > { %11805 = vst [vmem:[#allocation26_spill] sm:$0xff] %v8927_v60  ;;  %v2093_v20 = vadd.f32 %v8832_v12, %v1900_v53  ;;  %v1902_v36 = vadd.f32 %v1901_v59, %v8773_v54  ;;  %v8935_v18 = vpop.f32.mrf.mxu1  ;;  %v8937_v19 = vpack.c.bf16 %v3436_v7, %v3428_v22  ;;  %v8943_v12 = vld [vmem:[#allocation5 + $0x3d8] sm:$0xff]  ;;  %v3443_v22 = vmax.f32 %v2091_v6, 0.0  ;;  %v7995_v7 = vld [vmem:[%s8449_s15 + $0x48] ss:$12 sps:$4 sm:$0xff]  }
 0x1a3   : > { %v1903_v25 = vpop.f32.mrf.mxu0  ;;  %2972 = vmatpush1.bf16.msra.mxu1 %v6740_v51  ;;  %v7996_v59 = vld [vmem:[%s8449_s15 + $0x64] ss:$12 sps:$4 sm:$0xff]   ;;  %v520_v60 = vld [vmem:[#allocation5 + $0x538] sm:$0xff] }
 0x1a4   : > { %11806 = vst [vmem:[#allocation27_spill] sm:$0xff] %v8937_v19  ;;  %v2095_v48 = vadd.f32 %v8836_v3, %v1902_v36  ;;  %v1904_v43 = vadd.f32 %v1903_v25, %v8779_v62  ;;  %v8941_v52 = vpop.f32.mrf.mxu1  ;;  %2973 = vmatprep.subr.bf16.mxu1 %v6733_v34  ;;  %v3444_v34 = vmax.f32 %v2093_v20, 0.0  ;;  %v6724_v36 = vcombine.low %v356_v55, %v360_v13  ;;  %v532_v20 = vld [vmem:[#allocation5 + $0x598] sm:$0xff] }
 0x1a5   : > { %v1907_v26 = vpop.f32.mrf.mxu0  ;;  %2565 = vmatmul.mubr.bf16.gmra.mxu0 %v8624_v63  ;;  %v6845_v63 = vcombine.high %v8943_v12, %v8945_v24 }
 0x1a6   : > { %v3451_v51 = vmax.f32 %v2095_v48, 0.0  ;;  %v2097_v17 = vadd.f32 %v8842_v38, %v1904_v43  ;;  %v1908_v3 = vadd.f32 %v1907_v26, %v8773_v54  ;;  %v8950_v16 = vpop.f32.mrf.mxu1  ;;  %2638 = vmatmul.mubr.bf16.gmra.mxu1 %v7995_v7  ;;  %2800 = vmatprep.mubr.bf16.mxu0 %v11640_v0  ;;  %v536_v7 = vld [vmem:[#allocation5 + $0x5b8] sm:$0xff] }
 0x1a7   : > { %v1909_v53 = vpop.f32.mrf.mxu0  ;;  %2647 = vmatprep.mubr.bf16.mxu1 %v7996_v59  ;;  %2974 = vmatpush1.bf16.msra.mxu1 %v6732_v29  ;;  %v468_v29 = vld [vmem:[#allocation5 + $0x398] sm:$0xff] }
 0x1a8   : > { %v8957_v6 = vpack.c.bf16 %v3451_v51, %v3443_v22  ;;  %v3452_v38 = vmax.f32 %v2097_v17, 0.0  ;;  %v2101_v25 = vadd.f32 %v8847_v1, %v1908_v3  ;;  %v1910_v48 = vadd.f32 %v1909_v53, %v8779_v62  ;;  %v8961_v43 = vpop.f32.mrf.mxu1  ;;  %2975 = vmatprep.subr.bf16.mxu1 %v6725_v5  ;;  %v472_v22 = vld [vmem:[#allocation5 + $0x3b8] sm:$0xff] }
 0x1a9   : > { %v1911_v26 = vpop.f32.mrf.mxu0  ;;  %v6901_v53 = vcombine.high %v532_v20, %v536_v7 }
 0x1aa   : > { %11807 = vst [vmem:[#allocation28_spill] sm:$0xff] %v8957_v6  ;;  %v2103_v59 = vadd.f32 %v8856_v30, %v1910_v48  ;;  %v1912_v13 = vadd.f32 %v1911_v26, %v8773_v54  ;;  %v8965_v55 = vpop.f32.mrf.mxu1  ;;  %v8967_v51 = vpack.c.bf16 %v3452_v38, %v3444_v34  ;;  %v6844_v30 = vcombine.low %v8943_v12, %v8945_v24  ;;  %v8975_v48 = vld [vmem:[#allocation5 + $0x558] sm:$0xff]  ;;  %v7997_v12 = vld [vmem:[%s8449_s15 + $0x60] ss:$12 sps:$4 sm:$0xff]  }
 0x1ab   : > { %v1913_v17 = vpop.f32.mrf.mxu0  ;;  %2976 = vmatpush1.bf16.msra.mxu1 %v6724_v36  ;;  %v8977_v26 = vld [vmem:[#allocation5 + $0x578] sm:$0xff]  ;;  %v6900_v36 = vcombine.low %v532_v20, %v536_v7  ;;  %v3459_v38 = vmax.f32 %v2101_v25, 0.0  ;;  %v11809_v24 = vcombine.low %v8692_v47, %v8694_v8  ;;  %v11810_v7 = vmov 0  }
 0x1ac   : > { %11808 = vst [vmem:[#allocation29_spill] sm:$0xff] %v8967_v51  ;;  %v2105_v1 = vadd.f32 %v8860_v11, %v1912_v13  ;;  %v1914_v3 = vadd.f32 %v1913_v17, %v8779_v62  ;;  %v8971_v5 = vpop.f32.mrf.mxu1  ;;  %2977 = vmatprep.subr.bf16.mxu1 %v6845_v63  ;;  %v6837_v11 = vcombine.high %v468_v29, %v472_v22  ;;  %v8988_v63 = vld [vmem:[#allocation5 + $0x358] sm:$0xff] }
 0x1ad   : > { %v1917_v34 = vpop.f32.mrf.mxu0  ;;  %2801 = vmatmul.mubr.bf16.vlgmr.msra.gmra.mxu0 %v8683_v10  ;;  %v8990_v51 = vld [vmem:[#allocation5 + $0x378] sm:$0xff]  ;;  %v3460_v10 = vmax.f32 %v2103_v59, 0.0 }
 0x1ae   : > { %v3467_v13 = vmax.f32 %v2105_v1, 0.0  ;;  %v2107_v17 = vadd.f32 %v8866_v49, %v1914_v3  ;;  %v1918_v0 = vadd.f32 %v1917_v34, %v8773_v54  ;;  %v8982_v6 = vpop.f32.mrf.mxu1  ;;  %2648 = vmatmul.mubr.bf16.gmra.mxu1 %v7997_v12  ;;  %3155 = vmatpush1.bf16.msra.mxu0 %v11809_v24  ;;  %v7998_v25 = vld [vmem:[%s8449_s15 + $0x7c] ss:$12 sps:$4 sm:$0xff]   ;;  %v6893_v49 = vcombine.high %v8975_v48, %v8977_v26 }
 0x1af   : > { %v1919_v20 = vpop.f32.mrf.mxu0  ;;  %2657 = vmatprep.mubr.bf16.mxu1 %v7998_v25  ;;  %2810 = vmatprep.mubr.bf16.mxu0 %v11810_v7  ;;  %v6836_v1 = vcombine.low %v468_v29, %v472_v22  ;;  %v6829_v24 = vcombine.high %v8988_v63, %v8990_v51  ;;  %v516_v25 = vld [vmem:[#allocation5 + $0x518] sm:$0xff] }
 0x1b0   : > { %v8996_v3 = vpack.c.bf16 %v3467_v13, %v3459_v38  ;;  %v3468_v34 = vmax.f32 %v2107_v17, 0.0  ;;  %v2111_v47 = vadd.f32 %v8871_v40, %v1918_v0  ;;  %v1920_v8 = vadd.f32 %v1919_v20, %v8779_v62  ;;  %v9000_v12 = vpop.f32.mrf.mxu1  ;;  %3156 = vmatprep.subr.bf16.mxu0 %v6901_v53  ;;  %2978 = vmatpush2.bf16.msra.mxu1 %v6844_v30  ;;  %v452_v0 = vld [vmem:[#allocation5 + $0x318] sm:$0xff] }
 0x1b1   : > { %v1921_v59 = vpop.f32.mrf.mxu0  ;;  %2979 = vmatprep.subr.bf16.mxu1 %v6837_v11  ;;  %v456_v40 = vld [vmem:[#allocation5 + $0x338] sm:$0xff]  ;;  %v6892_v30 = vcombine.low %v8975_v48, %v8977_v26  ;;  %v6885_v20 = vcombine.high %v516_v25, %v520_v60 }
 0x1b2   : > { %11811 = vst [vmem:[#allocation30_spill] sm:$0xff] %v8996_v3  ;;  %v2113_v29 = vadd.f32 %v8883_v9, %v1920_v8  ;;  %v1922_v22 = vadd.f32 %v1921_v59, %v8773_v54  ;;  %v9006_v38 = vpop.f32.mrf.mxu1  ;;  %3157 = vmatpush1.bf16.msra.mxu0 %v6900_v36  ;;  %v9008_v13 = vpack.c.bf16 %v3468_v34, %v3460_v10  ;;  %v9018_v8 = vld [vmem:[#allocation5 + $0x4d8] sm:$0xff]  ;;  %v3475_v48 = vmax.f32 %v2111_v47, 0.0 }
 0x1b3   : > { %v1923_v53 = vpop.f32.mrf.mxu0  ;;  %3158 = vmatprep.subr.bf16.mxu0 %v6893_v49  ;;  %v6828_v36 = vcombine.low %v8988_v63, %v8990_v51  ;;  %v9020_v10 = vld [vmem:[#allocation5 + $0x4f8] sm:$0xff]  ;;  %v6884_v47 = vcombine.low %v516_v25, %v520_v60 }
 0x1b4   : > { %11812 = vst [vmem:[#allocation31_spill] sm:$0xff] %v9008_v13  ;;  %v2115_v11 = vadd.f32 %v8887_v23, %v1922_v22  ;;  %v1924_v17 = vadd.f32 %v1923_v53, %v8779_v62  ;;  %v9014_v9 = vpop.f32.mrf.mxu1  ;;  %2980 = vmatpush2.bf16.msra.mxu1 %v6836_v1  ;;  %v6821_v23 = vcombine.high %v452_v0, %v456_v40  ;;  %v7999_v51 = vld [vmem:[%s8449_s15 + $0x78] ss:$12 sps:$4 sm:$0xff]   ;;  %v3476_v53 = vmax.f32 %v2113_v29, 0.0 }
 0x1b5   : > { %v1927_v34 = vpop.f32.mrf.mxu0  ;;  %2811 = vmatmul.mubr.bf16.gmra.mxu0 %v8699_v14  ;;  %2981 = vmatprep.subr.bf16.mxu1 %v6829_v24  ;;  %v9029_v63 = vld [vmem:[#allocation5 + $0x2d8] sm:$0xff]  ;;  %v8000_v24 = vld [vmem:[%s8449_s15 + $0x94] ss:$12 sps:$4 sm:$0xff]  }
 0x1b6   : > { %v3483_v26 = vmax.f32 %v2115_v11, 0.0  ;;  %v2117_v49 = vadd.f32 %v8893_v33, %v1924_v17  ;;  %v1928_v1 = vadd.f32 %v1927_v34, %v8773_v54  ;;  %v9025_v59 = vpop.f32.mrf.mxu1  ;;  %2658 = vmatmul.mubr.bf16.gmra.mxu1 %v7999_v51  ;;  %2820 = vmatprep.mubr.bf16.mxu0 %v11810_v7  ;;  %v9031_v22 = vld [vmem:[#allocation5 + $0x2f8] sm:$0xff]  ;;  %v6820_v11 = vcombine.low %v452_v0, %v456_v40 }
 0x1b7   : > { %v1929_v14 = vpop.f32.mrf.mxu0  ;;  %2667 = vmatprep.mubr.bf16.mxu1 %v8000_v24  ;;  %3159 = vmatpush1.bf16.msra.mxu0 %v6892_v30  ;;  %v6877_v33 = vcombine.high %v9018_v8, %v9020_v10  ;;  %v6813_v60 = vcombine.high %v9029_v63, %v9031_v22  ;;  %v500_v25 = vld [vmem:[#allocation5 + $0x498] sm:$0xff] }
 0x1b8   : > { %v9036_v17 = vpack.c.bf16 %v3483_v26, %v3475_v48  ;;  %v3484_v34 = vmax.f32 %v2117_v49, 0.0  ;;  %v2121_v51 = vadd.f32 %v8898_v37, %v1928_v1  ;;  %v1930_v3 = vadd.f32 %v1929_v14, %v8779_v62  ;;  %v9040_v13 = vpop.f32.mrf.mxu1  ;;  %3160 = vmatprep.subr.bf16.mxu0 %v6885_v20  ;;  %2982 = vmatpush2.bf16.msra.mxu1 %v6828_v36  ;;  %v504_v0 = vld [vmem:[#allocation5 + $0x4b8] sm:$0xff] }
 0x1b9   : > { %v1931_v29 = vpop.f32.mrf.mxu0  ;;  %2983 = vmatprep.subr.bf16.mxu1 %v6821_v23  ;;  %v436_v37 = vld [vmem:[#allocation5 + $0x298] sm:$0xff]  ;;  %v6812_v36 = vcombine.low %v9029_v63, %v9031_v22  ;;  %v6876_v20 = vcombine.low %v9018_v8, %v9020_v10  ;;  %v6869_v14 = vcombine.high %v500_v25, %v504_v0 }
 0x1ba   : > { %11813 = vst [vmem:[#allocation32_spill] sm:$0xff] %v9036_v17  ;;  %v2123_v40 = vadd.f32 %v8907_v50, %v1930_v3  ;;  %v1932_v30 = vadd.f32 %v1931_v29, %v8773_v54  ;;  %v9046_v48 = vpop.f32.mrf.mxu1  ;;  %v440_v26 = vld [vmem:[#allocation5 + $0x2b8] sm:$0xff]  ;;  %v9048_v49 = vpack.c.bf16 %v3484_v34, %v3476_v53  ;;  %v3491_v10 = vmax.f32 %v2121_v51, 0.0 }
 0x1bb   : > { %v1933_v1 = vpop.f32.mrf.mxu0  ;;  %3161 = vmatpush1.bf16.msra.mxu0 %v6884_v47  ;;  %v9058_v53 = vld [vmem:[#allocation5 + $0x458] sm:$0xff]  ;;  %v6805_v8 = vcombine.high %v436_v37, %v440_v26  ;;  %v6868_v51 = vcombine.low %v500_v25, %v504_v0 }
 0x1bc   : > { %11814 = vst [vmem:[#allocation33_spill] sm:$0xff] %v9048_v49  ;;  %v2125_v23 = vadd.f32 %v8911_v42, %v1932_v30  ;;  %v1934_v50 = vadd.f32 %v1933_v1, %v8779_v62  ;;  %v9056_v3 = vpop.f32.mrf.mxu1  ;;  %2984 = vmatpush2.bf16.msra.mxu1 %v6820_v11  ;;  %3162 = vmatprep.subr.bf16.mxu0 %v6877_v33  ;;  %v9060_v24 = vld [vmem:[#allocation5 + $0x478] sm:$0xff]  ;;  %v3492_v30 = vmax.f32 %v2123_v40, 0.0 }
 0x1bd   : > { %v1937_v47 = vpop.f32.mrf.mxu0  ;;  %2821 = vmatmul.mubr.bf16.gmra.mxu0 %v8706_v41  ;;  %2985 = vmatprep.subr.bf16.mxu1 %v6813_v60  ;;  %v8001_v11 = vld [vmem:[%s8449_s15 + $0x90] ss:$12 sps:$4 sm:$0xff]   ;;  %v8002_v17 = vld [vmem:[%s8449_s15 + $0xac] ss:$12 sps:$4 sm:$0xff]   ;;  %v6804_v41 = vcombine.low %v436_v37, %v440_v26 }
 0x1be   : > { %v3499_v42 = vmax.f32 %v2125_v23, 0.0  ;;  %v2127_v63 = vadd.f32 %v8917_v44, %v1934_v50  ;;  %v1938_v22 = vadd.f32 %v1937_v47, %v8773_v54  ;;  %v9065_v34 = vpop.f32.mrf.mxu1  ;;  %2668 = vmatmul.mubr.bf16.gmra.mxu1 %v8001_v11  ;;  %2830 = vmatprep.mubr.bf16.mxu0 %v11810_v7  ;;  %v428_v33 = vld [vmem:[#allocation5 + $0x258] sm:$0xff]  ;;  %v6861_v44 = vcombine.high %v9058_v53, %v9060_v24 }
 0x1bf   : > { %v432_v29 = vld [vmem:[#allocation5 + $0x278] sm:$0xff]  ;;  %v1939_v1 = vpop.f32.mrf.mxu0  ;;  %2677 = vmatprep.mubr.bf16.mxu1 %v8002_v17  ;;  %3163 = vmatpush1.bf16.msra.mxu0 %v6876_v20 }
 0x1c0   : > { %v9072_v60 = vpack.c.bf16 %v3499_v42, %v3491_v10  ;;  %v3500_v23 = vmax.f32 %v2127_v63, 0.0  ;;  %v2131_v50 = vadd.f32 %v8922_v57, %v1938_v22  ;;  %v1940_v47 = vadd.f32 %v1939_v1, %v8779_v62  ;;  %v9076_v11 = vpop.f32.mrf.mxu1  ;;  %2986 = vmatpush2.bf16.msra.mxu1 %v6812_v36  ;;  %3164 = vmatprep.subr.bf16.mxu0 %v6869_v14  ;;  %v484_v20 = vld [vmem:[#allocation5 + $0x418] sm:$0xff] }
 0x1c1   : > { %v1941_v40 = vpop.f32.mrf.mxu0  ;;  %2987 = vmatprep.subr.bf16.mxu1 %v6805_v8  ;;  %v6797_v17 = vcombine.high %v428_v33, %v432_v29  ;;  %v488_v37 = vld [vmem:[#allocation5 + $0x438] sm:$0xff]  ;;  %v6796_v22 = vcombine.low %v428_v33, %v432_v29  ;;  %v6860_v36 = vcombine.low %v9058_v53, %v9060_v24 }
 0x1c2   : > { %11815 = vst [vmem:[#allocation34_spill] sm:$0xff] %v9072_v60  ;;  %v2133_v25 = vadd.f32 %v8931_v31, %v1940_v47  ;;  %v1942_v0 = vadd.f32 %v1941_v40, %v8773_v54  ;;  %v9080_v26 = vpop.f32.mrf.mxu1  ;;  %v420_v10 = vld [vmem:[#allocation5 + $0x218] sm:$0xff]  ;;  %v9082_v57 = vpack.c.bf16 %v3500_v23, %v3492_v30  ;;  %v6853_v1 = vcombine.high %v484_v20, %v488_v37  ;;  %v8004_v23 = vld [vmem:[%s8449_s15 + $0xc4] ss:$12 sps:$4 sm:$0xff]  }
 0x1c3   : > { %v424_v42 = vld [vmem:[#allocation5 + $0x238] sm:$0xff]  ;;  %v1943_v63 = vpop.f32.mrf.mxu0  ;;  %3165 = vmatpush1.bf16.msra.mxu0 %v6868_v51  ;;  %v3507_v29 = vmax.f32 %v2131_v50, 0.0  ;;  %v8003_v51 = vld [vmem:[%s8449_s15 + $0xa8] ss:$12 sps:$4 sm:$0xff]  }
 0x1c4   : > { %11816 = vst [vmem:[#allocation35_spill] sm:$0xff] %v9082_v57  ;;  %v2135_v14 = vadd.f32 %v8935_v18, %v1942_v0  ;;  %v1944_v8 = vadd.f32 %v1943_v63, %v8779_v62  ;;  %v9088_v31 = vpop.f32.mrf.mxu1  ;;  %2988 = vmatpush2.bf16.msra.mxu1 %v6804_v41  ;;  %3166 = vmatprep.subr.bf16.mxu0 %v6861_v44  ;;  %v3508_v41 = vmax.f32 %v2133_v25, 0.0  ;;  %v7726_v25 = vld [vmem:[#allocation8 + $0xac] ss:$12 sps:$4 sm:$0xff]  }
 0x1c5   : > { %v1947_v47 = vpop.f32.mrf.mxu0  ;;  %2831 = vmatmul.mubr.bf16.gmra.mxu0 %v8713_v45  ;;  %2989 = vmatprep.subr.bf16.mxu1 %v6797_v17  ;;  %v6789_v33 = vcombine.high %v420_v10, %v424_v42  ;;  %v6788_v40 = vcombine.low %v420_v10, %v424_v42  ;;  %v6852_v45 = vcombine.low %v484_v20, %v488_v37 }
 0x1c6   : > { %v3515_v30 = vmax.f32 %v2135_v14, 0.0  ;;  %v2137_v53 = vadd.f32 %v8941_v52, %v1944_v8  ;;  %v1948_v24 = vadd.f32 %v1947_v47, %v8773_v54  ;;  %v9093_v18 = vpop.f32.mrf.mxu1  ;;  %2678 = vmatmul.mubr.bf16.gmra.mxu1 %v8003_v51  ;;  %2840 = vmatprep.mubr.bf16.mxu0 %v11810_v7  ;;  %v7741_v14 = vld [vmem:[#allocation8 + $0x22c] ss:$12 sps:$4 sm:$0xff]  }
 0x1c7   : > { %v1949_v44 = vpop.f32.mrf.mxu0  ;;  %2687 = vmatprep.mubr.bf16.mxu1 %v8004_v23  ;;  %3167 = vmatpush1.bf16.msra.mxu0 %v6860_v36 }
 0x1c8   : > { %v9098_v17 = vpack.c.bf16 %v3515_v30, %v3507_v29  ;;  %v3516_v50 = vmax.f32 %v2137_v53, 0.0  ;;  %v2141_v52 = vadd.f32 %v8950_v16, %v1948_v24  ;;  %v1950_v0 = vadd.f32 %v1949_v44, %v8779_v62  ;;  %v9102_v63 = vpop.f32.mrf.mxu1  ;;  %2990 = vmatpush2.bf16.msra.mxu1 %v6796_v22  ;;  %3168 = vmatprep.subr.bf16.mxu0 %v6853_v1 }
 0x1c9   : > { %v1951_v8 = vpop.f32.mrf.mxu0  ;;  %2991 = vmatprep.subr.bf16.mxu1 %v6789_v33 }
 0x1ca   : > { %11817 = vst [vmem:[#allocation36_spill] sm:$0xff] %v9098_v17  ;;  %v2143_v47 = vadd.f32 %v8961_v43, %v1950_v0  ;;  %v1952_v10 = vadd.f32 %v1951_v8, %v8773_v54  ;;  %v9106_v20 = vpop.f32.mrf.mxu1  ;;  %v9108_v37 = vpack.c.bf16 %v3516_v50, %v3508_v41  ;;  %v3523_v43 = vmax.f32 %v2141_v52, 0.0  ;;  %v8006_v41 = vld [vmem:[%s8449_s15 + $0xdc] ss:$12 sps:$4 sm:$0xff]  }
 0x1cb   : > { %v1953_v16 = vpop.f32.mrf.mxu0  ;;  %3169 = vmatpush1.bf16.msra.mxu0 %v6852_v45 }
 0x1cc   : > { %11818 = vst [vmem:[#allocation37_spill] sm:$0xff] %v9108_v37  ;;  %v2145_v42 = vadd.f32 %v8965_v55, %v1952_v10  ;;  %v1954_v22 = vadd.f32 %v1953_v16, %v8779_v62  ;;  %v9112_v36 = vpop.f32.mrf.mxu1  ;;  %2992 = vmatpush2.bf16.msra.mxu1 %v6788_v40  ;;  %5221 = vmatprep.subr.bf16.mxu0 %v7741_v14  ;;  %v8005_v55 = vld [vmem:[%s8449_s15 + $0xc0] ss:$12 sps:$4 sm:$0xff]   ;;  %v3524_v24 = vmax.f32 %v2143_v47, 0.0 }
 0x1cd   : > { %v1957_v1 = vpop.f32.mrf.mxu0  ;;  %2841 = vmatmul.mubr.bf16.gmra.mxu0 %v8724_v46  ;;  %5028 = vmatprep.subr.bf16.mxu1 %v7726_v25 }
 0x1ce   : > { %v3531_v33 = vmax.f32 %v2145_v42, 0.0  ;;  %v2147_v29 = vadd.f32 %v8971_v5, %v1954_v22  ;;  %v1958_v30 = vadd.f32 %v1957_v1, %v8773_v54  ;;  %v9117_v53 = vpop.f32.mrf.mxu1  ;;  %2688 = vmatmul.mubr.bf16.gmra.mxu1 %v8005_v55  ;;  %2850 = vmatprep.mubr.bf16.mxu0 %v11810_v7 }
 0x1cf   : > { %v1959_v51 = vpop.f32.mrf.mxu0  ;;  %2697 = vmatprep.mubr.bf16.mxu1 %v8006_v41 }
 0x1d0   : > { %v9122_v44 = vpack.c.bf16 %v3531_v33, %v3523_v43  ;;  %v3532_v46 = vmax.f32 %v2147_v29, 0.0  ;;  %v2151_v23 = vadd.f32 %v8982_v6, %v1958_v30  ;;  %v1960_v40 = vadd.f32 %v1959_v51, %v8779_v62  ;;  %v9126_v5 = vpop.f32.mrf.mxu1  ;;  %v8007_v43 = vld [vmem:[%s8449_s15 + $0xd8] ss:$12 sps:$4 sm:$0xff]   ;;  %v8008_v29 = vld [vmem:[%s8449_s15 + $0xf4] ss:$12 sps:$4 sm:$0xff]  }
 0x1d1   : > { %v1961_v45 = vpop.f32.mrf.mxu0 }
 0x1d2   : > { %11819 = vst [vmem:[#allocation38_spill] sm:$0xff] %v9122_v44  ;;  %v2153_v50 = vadd.f32 %v9000_v12, %v1960_v40  ;;  %v1962_v52 = vadd.f32 %v1961_v45, %v8773_v54  ;;  %v9130_v0 = vpop.f32.mrf.mxu1  ;;  %v9132_v14 = vpack.c.bf16 %v3532_v46, %v3524_v24  ;;  %v3539_v16 = vmax.f32 %v2151_v23, 0.0 }
 0x1d3   : > { %v1963_v8 = vpop.f32.mrf.mxu0 }
 0x1d4   : > { %11820 = vst [vmem:[#allocation39_spill] sm:$0xff] %v9132_v14  ;;  %v2155_v25 = vadd.f32 %v9006_v38, %v1962_v52  ;;  %v1964_v6 = vadd.f32 %v1963_v8, %v8779_v62  ;;  %v9136_v47 = vpop.f32.mrf.mxu1  ;;  %v3540_v38 = vmax.f32 %v2153_v50, 0.0 }
 0x1d5   : > { %v1967_v10 = vpop.f32.mrf.mxu0  ;;  %2851 = vmatmul.mubr.bf16.gmra.mxu0 %v8731_v39 }
 0x1d6   : > { %v3547_v42 = vmax.f32 %v2155_v25, 0.0  ;;  %v2157_v12 = vadd.f32 %v9014_v9, %v1964_v6  ;;  %v1968_v22 = vadd.f32 %v1967_v10, %v8773_v54  ;;  %v9141_v1 = vpop.f32.mrf.mxu1  ;;  %2698 = vmatmul.mubr.bf16.gmra.mxu1 %v8007_v43  ;;  %2860 = vmatprep.mubr.bf16.mxu0 %v11810_v7  ;;  %v8009_v25 = vld [vmem:[%s8449_s15 + $0x98] ss:$12 sps:$4 sm:$0xff]  }
 0x1d7   : > { %v1969_v33 = vpop.f32.mrf.mxu0  ;;  %2707 = vmatprep.mubr.bf16.mxu1 %v8008_v29  ;;  %v8011_v43 = vld [vmem:[%s8449_s15 + $0x10c] ss:$12 sps:$4 sm:$0xff]  }
 0x1d8   : > { %v9146_v30 = vpack.c.bf16 %v3547_v42, %v3539_v16  ;;  %v3548_v39 = vmax.f32 %v2157_v12, 0.0  ;;  %v2161_v55 = vadd.f32 %v9025_v59, %v1968_v22  ;;  %v1970_v9 = vadd.f32 %v1969_v33, %v8779_v62  ;;  %v9150_v24 = vpop.f32.mrf.mxu1  ;;  %v8010_v12 = vld [vmem:[%s8449_s15 + $0xf0] ss:$12 sps:$4 sm:$0xff]  }
 0x1d9   : > { %v1971_v51 = vpop.f32.mrf.mxu0 }
 0x1da   : > { %11821 = vst [vmem:[#allocation40_spill] sm:$0xff] %v9146_v30  ;;  %v2163_v41 = vadd.f32 %v9040_v13, %v1970_v9  ;;  %v1972_v46 = vadd.f32 %v1971_v51, %v8773_v54  ;;  %v9154_v23 = vpop.f32.mrf.mxu1  ;;  %v9156_v40 = vpack.c.bf16 %v3548_v39, %v3540_v38  ;;  %v3555_v6 = vmax.f32 %v2161_v55, 0.0 }
 0x1db   : > { %v1973_v45 = vpop.f32.mrf.mxu0 }
 0x1dc   : > { %11822 = vst [vmem:[#allocation41_spill] sm:$0xff] %v9156_v40  ;;  %v2165_v50 = vadd.f32 %v9046_v48, %v1972_v46  ;;  %v1974_v59 = vadd.f32 %v1973_v45, %v8779_v62  ;;  %v9160_v52 = vpop.f32.mrf.mxu1  ;;  %v3556_v48 = vmax.f32 %v2163_v41, 0.0  ;;  %v11648_v45 = vsub.s32 2, %v8755_v4 }
 0x1dd   : > { %v1977_v8 = vpop.f32.mrf.mxu0  ;;  %2861 = vmatmul.mubr.bf16.gmra.mxu0 %v8009_v25  ;;  %v561_v25 = vsub.s32 3, %v8755_v4 }
 0x1de   : > { %v3563_v13 = vmax.f32 %v2165_v50, 0.0  ;;  %v2167_v10 = vadd.f32 %v9056_v3, %v1974_v59  ;;  %v1978_v16 = vadd.f32 %v1977_v8, %v8773_v54  ;;  %v9165_v42 = vpop.f32.mrf.mxu1  ;;  %2708 = vmatmul.mubr.bf16.gmra.mxu1 %v8010_v12  ;;  %2870 = vmatprep.mubr.bf16.mxu0 %v11810_v7 }
 0x1df   : > { %v1979_v22 = vpop.f32.mrf.mxu0  ;;  %2717 = vmatprep.mubr.bf16.mxu1 %v8011_v43 }
 0x1e0   : > { %v9170_v38 = vpack.c.bf16 %v3563_v13, %v3555_v6  ;;  %v3564_v33 = vmax.f32 %v2167_v10, 0.0  ;;  %v2171_v29 = vadd.f32 %v9065_v34, %v1978_v16  ;;  %v1980_v3 = vadd.f32 %v1979_v22, %v8779_v62  ;;  %v9174_v39 = vpop.f32.mrf.mxu1  ;;  %v8012_v6 = vld [vmem:[%s8449_s15 + $0xb0] ss:$12 sps:$4 sm:$0xff]   ;;  %v8013_v22 = vld [vmem:[%s8449_s15 + $0x108] ss:$12 sps:$4 sm:$0xff]  }
 0x1e1   : > { %v1981_v55 = vpop.f32.mrf.mxu0 }
 0x1e2   : > { %11823 = vst [vmem:[#allocation42_spill] sm:$0xff] %v9170_v38  ;;  %v2173_v9 = vadd.f32 %v9076_v11, %v1980_v3  ;;  %v1982_v51 = vadd.f32 %v1981_v55, %v8773_v54  ;;  %v9178_v46 = vpop.f32.mrf.mxu1  ;;  %v9180_v41 = vpack.c.bf16 %v3564_v33, %v3556_v48  ;;  %v3571_v13 = vmax.f32 %v2171_v29, 0.0  ;;  %v8015_v55 = vld [vmem:[%s8449_s15 + $0x124] ss:$12 sps:$4 sm:$0xff]  }
 0x1e3   : > { %v1983_v50 = vpop.f32.mrf.mxu0 }
 0x1e4   : > { %11824 = vst [vmem:[#allocation43_spill] sm:$0xff] %v9180_v41  ;;  %v2175_v59 = vadd.f32 %v9080_v26, %v1982_v51  ;;  %v1984_v34 = vadd.f32 %v1983_v50, %v8779_v62  ;;  %v9185_v8 = vpop.f32.mrf.mxu1  ;;  %v8014_v26 = vld [vmem:[#allocation7] sm:$0xff]  ;;  %v3572_v33 = vmax.f32 %v2173_v9, 0.0 }
 0x1e5   : > { %v1987_v11 = vpop.f32.mrf.mxu0  ;;  %2871 = vmatmul.mubr.bf16.gmra.mxu0 %v8012_v6  ;;  %v9197_v43 = vrot.slane %v8014_v26, %v11648_v45 }
 0x1e6   : > { %v3579_v10 = vmax.f32 %v2175_v59, 0.0  ;;  %v2177_v16 = vadd.f32 %v9088_v31, %v1984_v34  ;;  %v1988_v12 = vadd.f32 %v1987_v11, %v8773_v54  ;;  %v9191_v48 = vpop.f32.mrf.mxu1  ;;  %2718 = vmatmul.mubr.bf16.gmra.mxu1 %v8013_v22  ;;  %2880 = vmatprep.mubr.bf16.mxu0 %v11810_v7  ;;  %v9206_v34 = vrot.slane %v8014_v26, %v561_v25  ;;  %v8016_v26 = vld [vmem:[%s8449_s15 + $0xc8] ss:$12 sps:$4 sm:$0xff]  }
 0x1e7   : > { %v1989_v3 = vpop.f32.mrf.mxu0  ;;  %2727 = vmatprep.mubr.bf16.mxu1 %v8015_v55 }
 0x1e8   : > { %v9200_v29 = vpack.c.bf16 %v3579_v10, %v3571_v13  ;;  %v3580_v31 = vmax.f32 %v2177_v16, 0.0  ;;  %v2181_v51 = vadd.f32 %v9093_v18, %v1988_v12  ;;  %v1990_v50 = vadd.f32 %v1989_v3, %v8779_v62  ;;  %v9204_v59 = vpop.f32.mrf.mxu1 }
 0x1e9   : > { %v1991_v11 = vpop.f32.mrf.mxu0  ;;  %v2224_v18 = vadd.f32 %v9117_v53, %v9197_v43 }
 0x1ea   : > { %11825 = vst [vmem:[#allocation44_spill] sm:$0xff] %v9200_v29  ;;  %v2183_v6 = vadd.f32 %v9102_v63, %v1990_v50  ;;  %v1992_v9 = vadd.f32 %v1991_v11, %v8773_v54  ;;  %v9210_v22 = vpop.f32.mrf.mxu1  ;;  %v9212_v13 = vpack.c.bf16 %v3580_v31, %v3572_v33  ;;  %v2226_v63 = vadd.f32 %v9126_v5, %v9206_v34  ;;  %v8017_v50 = vld [vmem:[%s8449_s15 + $0x120] ss:$12 sps:$4 sm:$0xff]   ;;  %v8018_v11 = vld [vmem:[%s8449_s15 + $0x13c] ss:$12 sps:$4 sm:$0xff]  }
 0x1eb   : > { %v1993_v10 = vpop.f32.mrf.mxu0  ;;  %v3587_v3 = vmax.f32 %v2181_v51, 0.0 }
 0x1ec   : > { %11826 = vst [vmem:[#allocation45_spill] sm:$0xff] %v9212_v13  ;;  %v2185_v16 = vadd.f32 %v9106_v20, %v1992_v9  ;;  %v1994_v12 = vadd.f32 %v1993_v10, %v8779_v62  ;;  %v9218_v25 = vpop.f32.mrf.mxu1  ;;  %v2228_v62 = vadd.f32 %v9130_v0, %v9197_v43  ;;  %v3588_v5 = vmax.f32 %v2183_v6, 0.0 }
 0x1ed   : > { %v2416_v54 = vpop.f32.mrf.mxu0  ;;  %2881 = vmatmul.mubr.bf16.gmra.mxu0 %v8016_v26  ;;  %v2234_v6 = vadd.f32 %v9141_v1, %v9197_v43  ;;  %v8020_v1 = vld [vmem:[%s8449_s15 + $0x138] ss:$12 sps:$4 sm:$0xff]  }
 0x1ee   : > { %v3595_v33 = vmax.f32 %v2185_v16, 0.0  ;;  %v2187_v55 = vadd.f32 %v9112_v36, %v1994_v12  ;;  %v9224_v31 = vpop.f32.mrf.mxu1  ;;  %v2417_v53 = vadd.f32 %v2416_v54, %v2224_v18  ;;  %2728 = vmatmul.mubr.bf16.gmra.mxu1 %v8017_v50  ;;  %2890 = vmatprep.mubr.bf16.mxu0 %v11810_v7  ;;  %v2230_v18 = vadd.f32 %v9136_v47, %v9206_v34 }
 0x1ef   : > { %v2418_v20 = vpop.f32.mrf.mxu0  ;;  %2737 = vmatprep.mubr.bf16.mxu1 %v8018_v11  ;;  %v2236_v50 = vadd.f32 %v9150_v24, %v9206_v34  ;;  %v2238_v24 = vadd.f32 %v9154_v23, %v9197_v43 }
 0x1f0   : > { %v9231_v9 = vpack.c.bf16 %v3595_v33, %v3587_v3  ;;  %v3596_v51 = vmax.f32 %v2187_v55, 0.0  ;;  %v9233_v10 = vpop.f32.mrf.mxu1  ;;  %v2419_v36 = vadd.f32 %v2418_v20, %v2226_v63  ;;  %v3349_v3 = vmax.f32 %v2417_v53, 0.0  ;;  %v8019_v20 = vld [vmem:[%s8449_s15 + $0xe0] ss:$12 sps:$4 sm:$0xff]  }
 0x1f1   : > { %v2420_v16 = vpop.f32.mrf.mxu0 }
 0x1f2   : > { %11827 = vst [vmem:[#allocation46_spill] sm:$0xff] %v9231_v9  ;;  %v9237_v12 = vpop.f32.mrf.mxu1  ;;  %v2421_v54 = vadd.f32 %v2420_v16, %v2228_v62  ;;  %v9239_v26 = vpack.c.bf16 %v3596_v51, %v3588_v5  ;;  %v3350_v62 = vmax.f32 %v2419_v36, 0.0 }
 0x1f3   : > { %v2422_v0 = vpop.f32.mrf.mxu0 }
 0x1f4   : > { %11828 = vst [vmem:[#allocation47_spill] sm:$0xff] %v9239_v26  ;;  %v3357_v33 = vmax.f32 %v2421_v54, 0.0  ;;  %v9243_v55 = vpop.f32.mrf.mxu1  ;;  %v2423_v63 = vadd.f32 %v2422_v0, %v2230_v18  ;;  %v8021_v54 = vld [vmem:[%s8449_s15 + $0x154] ss:$12 sps:$4 sm:$0xff]  }
 0x1f5   : > { %v2426_v47 = vpop.f32.mrf.mxu0  ;;  %2891 = vmatmul.mubr.bf16.gmra.mxu0 %v8019_v20  ;;  %v2244_v20 = vadd.f32 %v9165_v42, %v9197_v43  ;;  %v8023_v42 = vld [vmem:[%s8449_s15 + $0x150] ss:$12 sps:$4 sm:$0xff]  }
 0x1f6   : > { %v9248_v11 = vpack.c.bf16 %v3357_v33, %v3349_v3  ;;  %v3358_v5 = vmax.f32 %v2423_v63, 0.0  ;;  %v9250_v51 = vpop.f32.mrf.mxu1  ;;  %v2427_v16 = vadd.f32 %v2426_v47, %v2234_v6  ;;  %2738 = vmatmul.mubr.bf16.gmra.mxu1 %v8020_v1  ;;  %2900 = vmatprep.mubr.bf16.mxu0 %v11810_v7  ;;  %v2240_v6 = vadd.f32 %v9160_v52, %v9206_v34 }
 0x1f7   : > { %v2428_v53 = vpop.f32.mrf.mxu0  ;;  %2747 = vmatprep.mubr.bf16.mxu1 %v8021_v54 }
 0x1f8   : > { %11829 = vst [vmem:[#allocation48_spill] sm:$0xff] %v9248_v11  ;;  %v9257_v18 = vpop.f32.mrf.mxu1  ;;  %v2429_v36 = vadd.f32 %v2428_v53, %v2236_v50  ;;  %v9259_v0 = vpack.c.bf16 %v3358_v5, %v3350_v62  ;;  %v3365_v1 = vmax.f32 %v2427_v16, 0.0  ;;  %v2246_v62 = vadd.f32 %v9174_v39, %v9206_v34  ;;  %v8022_v53 = vld [vmem:[%s8449_s15 + $0xf8] ss:$12 sps:$4 sm:$0xff]  }
 0x1f9   : > { %v2430_v3 = vpop.f32.mrf.mxu0  ;;  %v2248_v39 = vadd.f32 %v9178_v46, %v9197_v43 }
 0x1fa   : > { %11830 = vst [vmem:[#allocation49_spill] sm:$0xff] %v9259_v0  ;;  %v9263_v33 = vpop.f32.mrf.mxu1  ;;  %v2431_v63 = vadd.f32 %v2430_v3, %v2238_v24  ;;  %v3366_v52 = vmax.f32 %v2429_v36, 0.0 }
 0x1fb   : > { %v2432_v47 = vpop.f32.mrf.mxu0 }
 0x1fc   : > { %v3373_v23 = vmax.f32 %v2431_v63, 0.0  ;;  %v9267_v54 = vpop.f32.mrf.mxu1  ;;  %v2433_v50 = vadd.f32 %v2432_v47, %v2240_v6  ;;  %v8024_v63 = vld [vmem:[%s8449_s15 + $0x16c] ss:$12 sps:$4 sm:$0xff]  }
 0x1fd   : > { %v2436_v5 = vpop.f32.mrf.mxu0  ;;  %2901 = vmatmul.mubr.bf16.gmra.mxu0 %v8022_v53  ;;  %v2254_v53 = vadd.f32 %v9191_v48, %v9197_v43  ;;  %v8026_v48 = vld [vmem:[%s8449_s15 + $0x168] ss:$12 sps:$4 sm:$0xff]  }
 0x1fe   : > { %v9272_v45 = vpack.c.bf16 %v3373_v23, %v3365_v1  ;;  %v3374_v24 = vmax.f32 %v2433_v50, 0.0  ;;  %v9274_v3 = vpop.f32.mrf.mxu1  ;;  %v2437_v9 = vadd.f32 %v2436_v5, %v2244_v20  ;;  %2748 = vmatmul.mubr.bf16.gmra.mxu1 %v8023_v42  ;;  %2910 = vmatprep.mubr.bf16.mxu0 %v11810_v7  ;;  %v2250_v20 = vadd.f32 %v9185_v8, %v9206_v34 }
 0x1ff   : > { %v2438_v16 = vpop.f32.mrf.mxu0  ;;  %2757 = vmatprep.mubr.bf16.mxu1 %v8024_v63 }
 0x200   : > { %11831 = vst [vmem:[#allocation50_spill] sm:$0xff] %v9272_v45  ;;  %v9281_v6 = vpop.f32.mrf.mxu1  ;;  %v2439_v36 = vadd.f32 %v2438_v16, %v2246_v62  ;;  %v9283_v47 = vpack.c.bf16 %v3374_v24, %v3366_v52  ;;  %v3381_v42 = vmax.f32 %v2437_v9, 0.0  ;;  %v2256_v52 = vadd.f32 %v9204_v59, %v9206_v34  ;;  %v8025_v16 = vld [vmem:[%s8449_s15 + $0x110] ss:$12 sps:$4 sm:$0xff]  }
 0x201   : > { %v2440_v1 = vpop.f32.mrf.mxu0  ;;  %v2258_v59 = vadd.f32 %v9210_v22, %v9197_v43 }
 0x202   : > { %11832 = vst [vmem:[#allocation51_spill] sm:$0xff] %v9283_v47  ;;  %v9287_v23 = vpop.f32.mrf.mxu1  ;;  %v2441_v50 = vadd.f32 %v2440_v1, %v2248_v39  ;;  %v3382_v8 = vmax.f32 %v2439_v36, 0.0 }
 0x203   : > { %v2442_v5 = vpop.f32.mrf.mxu0 }
 0x204   : > { %v3389_v46 = vmax.f32 %v2441_v50, 0.0  ;;  %v9291_v63 = vpop.f32.mrf.mxu1  ;;  %v2443_v62 = vadd.f32 %v2442_v5, %v2250_v20  ;;  %v8027_v50 = vld [vmem:[%s8449_s15 + $0x4] ss:$12 sps:$4 sm:$0xff]  }
 0x205   : > { %v2446_v24 = vpop.f32.mrf.mxu0  ;;  %2911 = vmatmul.mubr.bf16.gmra.mxu0 %v8025_v16  ;;  %v7724_v16 = vld [vmem:[#allocation8 + $0xa8] ss:$12 sps:$4 sm:$0xff]  }
 0x206   : > { %v9296_v26 = vpack.c.bf16 %v3389_v46, %v3381_v42  ;;  %v3390_v39 = vmax.f32 %v2443_v62, 0.0  ;;  %v9298_v1 = vpop.f32.mrf.mxu1  ;;  %v2447_v29 = vadd.f32 %v2446_v24, %v2254_v53  ;;  %2758 = vmatmul.mubr.bf16.gmra.mxu1 %v8026_v48  ;;  %2920 = vmatprep.mubr.bf16.mxu0 %v11810_v7  ;;  %v2260_v53 = vadd.f32 %v9218_v25, %v9206_v34 }
 0x207   : > { %v2448_v9 = vpop.f32.mrf.mxu0  ;;  %2993 = vmatprep.mubr.bf16.mxu1 %v8027_v50  ;;  %v2264_v48 = vadd.f32 %v9224_v31, %v9197_v43 }
 0x208   : > { %11833 = vst [vmem:[#allocation52_spill] sm:$0xff] %v9296_v26  ;;  %v9305_v20 = vpop.f32.mrf.mxu1  ;;  %v2449_v5 = vadd.f32 %v2448_v9, %v2256_v52  ;;  %v9307_v36 = vpack.c.bf16 %v3390_v39, %v3382_v8  ;;  %v3397_v22 = vmax.f32 %v2447_v29, 0.0  ;;  %v7729_v8 = vld [vmem:[#allocation8 + $0x94] ss:$12 sps:$4 sm:$0xff]   ;;  %v2266_v39 = vadd.f32 %v9233_v10, %v9206_v34  ;;  %v8029_v29 = vld [vmem:[%s8449_s15] ss:$12 sps:$4 sm:$0xff]  }
 0x209   : > { %v2450_v42 = vpop.f32.mrf.mxu0  ;;  %v8028_v9 = vld [vmem:[%s8449_s15 + $0x128] ss:$12 sps:$4 sm:$0xff]   ;;  %v2268_v10 = vadd.f32 %v9237_v12, %v9197_v43  ;;  %v2274_v12 = vadd.f32 %v9250_v51, %v9197_v43 }
 0x20a   : > { %11834 = vst [vmem:[#allocation53_spill] sm:$0xff] %v9307_v36  ;;  %v9311_v46 = vpop.f32.mrf.mxu1  ;;  %v2451_v62 = vadd.f32 %v2450_v42, %v2258_v59  ;;  %v3398_v59 = vmax.f32 %v2449_v5, 0.0 }
 0x20b   : > { %v2452_v24 = vpop.f32.mrf.mxu0 }
 0x20c   : > { %v3405_v50 = vmax.f32 %v2451_v62, 0.0  ;;  %v9315_v13 = vpop.f32.mrf.mxu1  ;;  %v2453_v52 = vadd.f32 %v2452_v24, %v2260_v53  ;;  %v8030_v62 = vld [vmem:[%s8449_s15 + $0x1c] ss:$12 sps:$4 sm:$0xff]   ;;  %v7727_v24 = vld [vmem:[#allocation8 + $0x90] ss:$12 sps:$4 sm:$0xff]  }
 0x20d   : > { %v2456_v25 = vpop.f32.mrf.mxu0  ;;  %2921 = vmatmul.mubr.bf16.gmra.mxu0 %v8028_v9 }
 0x20e   : > { %v9320_v42 = vpack.c.bf16 %v3405_v50, %v3397_v22  ;;  %v3406_v38 = vmax.f32 %v2453_v52, 0.0  ;;  %v9322_v41 = vpop.f32.mrf.mxu1  ;;  %v2457_v31 = vadd.f32 %v2456_v25, %v2264_v48  ;;  %2994 = vmatmul.mubr.bf16.vlgmr.msra.gmra.mxu1 %v8029_v29  ;;  %2930 = vmatprep.mubr.bf16.mxu0 %v11810_v7  ;;  %v7732_v22 = vld [vmem:[#allocation8 + $0x7c] ss:$12 sps:$4 sm:$0xff]   ;;  %v2270_v52 = vadd.f32 %v9243_v55, %v9206_v34 }
 0x20f   : > { %5029 = vmatpush1.bf16.msra.mxu1 %v7724_v16  ;;  %v2458_v53 = vpop.f32.mrf.mxu0  ;;  %3003 = vmatprep.mubr.bf16.mxu1 %v8030_v62  ;;  %v7730_v62 = vld [vmem:[#allocation8 + $0x78] ss:$12 sps:$4 sm:$0xff]   ;;  %v2276_v55 = vadd.f32 %v9257_v18, %v9206_v34  ;;  %v2278_v18 = vadd.f32 %v9263_v33, %v9197_v43  ;;  %v2284_v33 = vadd.f32 %v9274_v3, %v9197_v43 }
 0x210   : > { %11835 = vst [vmem:[#allocation54_spill] sm:$0xff] %v9320_v42  ;;  %v9329_v9 = vpop.f32.mrf.mxu1  ;;  %v2459_v5 = vadd.f32 %v2458_v53, %v2266_v39  ;;  %5030 = vmatprep.subr.bf16.mxu1 %v7729_v8  ;;  %v9331_v50 = vpack.c.bf16 %v3406_v38, %v3398_v59  ;;  %v3413_v39 = vmax.f32 %v2457_v31, 0.0  ;;  %v7735_v59 = vld [vmem:[#allocation8 + $0x64] ss:$12 sps:$4 sm:$0xff]  }
 0x211   : > { %v2460_v48 = vpop.f32.mrf.mxu0 }
 0x212   : > { %11836 = vst [vmem:[#allocation55_spill] sm:$0xff] %v9331_v50  ;;  %v9335_v16 = vpop.f32.mrf.mxu1  ;;  %v2461_v25 = vadd.f32 %v2460_v48, %v2268_v10  ;;  %v8031_v10 = vld [vmem:[%s8449_s15 + $0x140] ss:$12 sps:$4 sm:$0xff]  }
 0x213   : > { %v2462_v29 = vpop.f32.mrf.mxu0  ;;  %5031 = vmatpush1.bf16.msra.mxu1 %v7727_v24  ;;  %v3414_v24 = vmax.f32 %v2459_v5, 0.0 }
 0x214   : > { %v3421_v8 = vmax.f32 %v2461_v25, 0.0  ;;  %v9339_v53 = vpop.f32.mrf.mxu1  ;;  %v2463_v38 = vadd.f32 %v2462_v29, %v2270_v52  ;;  %5032 = vmatprep.subr.bf16.mxu1 %v7732_v22  ;;  %v8032_v25 = vld [vmem:[%s8449_s15 + $0x18] ss:$12 sps:$4 sm:$0xff]   ;;  %v8033_v22 = vld [vmem:[%s8449_s15 + $0x34] ss:$12 sps:$4 sm:$0xff]  }
 0x215   : > { %v2466_v30 = vpop.f32.mrf.mxu0  ;;  %2931 = vmatmul.mubr.bf16.gmra.mxu0 %v8031_v10  ;;  %v7733_v29 = vld [vmem:[#allocation8 + $0x60] ss:$12 sps:$4 sm:$0xff]  }
 0x216   : > { %v9344_v48 = vpack.c.bf16 %v3421_v8, %v3413_v39  ;;  %v3422_v40 = vmax.f32 %v2463_v38, 0.0  ;;  %v9346_v51 = vpop.f32.mrf.mxu1  ;;  %v2467_v31 = vadd.f32 %v2466_v30, %v2274_v12  ;;  %3004 = vmatmul.mubr.bf16.gmra.mxu1 %v8032_v25  ;;  %2940 = vmatprep.mubr.bf16.mxu0 %v11810_v7  ;;  %v7738_v39 = vld [vmem:[#allocation8 + $0x4c] ss:$12 sps:$4 sm:$0xff]   ;;  %v2280_v12 = vadd.f32 %v9267_v54, %v9206_v34 }
 0x217   : > { %v2468_v52 = vpop.f32.mrf.mxu0  ;;  %3013 = vmatprep.mubr.bf16.mxu1 %v8033_v22  ;;  %5033 = vmatpush1.bf16.msra.mxu1 %v7730_v62  ;;  %v7736_v22 = vld [vmem:[#allocation8 + $0x48] ss:$12 sps:$4 sm:$0xff]   ;;  %v2286_v54 = vadd.f32 %v9281_v6, %v9206_v34  ;;  %v2288_v6 = vadd.f32 %v9287_v23, %v9197_v43  ;;  %v2294_v23 = vadd.f32 %v9298_v1, %v9197_v43 }
 0x218   : > { %11837 = vst [vmem:[#allocation56_spill] sm:$0xff] %v9344_v48  ;;  %v9353_v10 = vpop.f32.mrf.mxu1  ;;  %v2469_v5 = vadd.f32 %v2468_v52, %v2276_v55  ;;  %5034 = vmatprep.subr.bf16.mxu1 %v7735_v59  ;;  %v9355_v8 = vpack.c.bf16 %v3422_v40, %v3414_v24  ;;  %v3429_v55 = vmax.f32 %v2467_v31, 0.0  ;;  %v7744_v24 = vld [vmem:[#allocation8 + $0x34] ss:$12 sps:$4 sm:$0xff]  }
 0x219   : > { %v2470_v30 = vpop.f32.mrf.mxu0 }
 0x21a   : > { %11838 = vst [vmem:[#allocation57_spill] sm:$0xff] %v9355_v8  ;;  %v9359_v38 = vpop.f32.mrf.mxu1  ;;  %v2471_v25 = vadd.f32 %v2470_v30, %v2278_v18  ;;  %v8034_v18 = vld [vmem:[%s8449_s15 + $0x158] ss:$12 sps:$4 sm:$0xff]  }
 0x21b   : > { %v2472_v62 = vpop.f32.mrf.mxu0  ;;  %5035 = vmatpush1.bf16.msra.mxu1 %v7733_v29  ;;  %v3430_v29 = vmax.f32 %v2469_v5, 0.0 }
 0x21c   : > { %v3437_v59 = vmax.f32 %v2471_v25, 0.0  ;;  %v9363_v52 = vpop.f32.mrf.mxu1  ;;  %v2473_v40 = vadd.f32 %v2472_v62, %v2280_v12  ;;  %5036 = vmatprep.subr.bf16.mxu1 %v7738_v39  ;;  %v8035_v25 = vld [vmem:[%s8449_s15 + $0x30] ss:$12 sps:$4 sm:$0xff]   ;;  %v8036_v39 = vld [vmem:[%s8449_s15 + $0x4c] ss:$12 sps:$4 sm:$0xff]  }
 0x21d   : > { %v2476_v44 = vpop.f32.mrf.mxu0  ;;  %2941 = vmatmul.mubr.bf16.gmra.mxu0 %v8034_v18  ;;  %v7742_v62 = vld [vmem:[#allocation8 + $0x30] ss:$12 sps:$4 sm:$0xff]  }
 0x21e   : > { %v9368_v30 = vpack.c.bf16 %v3437_v59, %v3429_v55  ;;  %v3438_v14 = vmax.f32 %v2473_v40, 0.0  ;;  %v9370_v3 = vpop.f32.mrf.mxu1  ;;  %v2477_v31 = vadd.f32 %v2476_v44, %v2284_v33  ;;  %3014 = vmatmul.mubr.bf16.gmra.mxu1 %v8035_v25  ;;  %2950 = vmatprep.mubr.bf16.mxu0 %v11810_v7  ;;  %v7750_v55 = vld [vmem:[#allocation8 + $0x1c] ss:$12 sps:$4 sm:$0xff]   ;;  %v2290_v33 = vadd.f32 %v9291_v63, %v9206_v34 }
 0x21f   : > { %v2478_v12 = vpop.f32.mrf.mxu0  ;;  %3023 = vmatprep.mubr.bf16.mxu1 %v8036_v39  ;;  %5037 = vmatpush1.bf16.msra.mxu1 %v7736_v22  ;;  %v7748_v39 = vld [vmem:[#allocation8 + $0x18] ss:$12 sps:$4 sm:$0xff]   ;;  %v2296_v63 = vadd.f32 %v9305_v20, %v9206_v34  ;;  %v2298_v20 = vadd.f32 %v9311_v46, %v9197_v43  ;;  %v2304_v46 = vadd.f32 %v9322_v41, %v9197_v43 }
 0x220   : > { %11839 = vst [vmem:[#allocation58_spill] sm:$0xff] %v9368_v30  ;;  %v9377_v18 = vpop.f32.mrf.mxu1  ;;  %v2479_v5 = vadd.f32 %v2478_v12, %v2286_v54  ;;  %5038 = vmatprep.subr.bf16.mxu1 %v7744_v24  ;;  %v9379_v59 = vpack.c.bf16 %v3438_v14, %v3430_v29  ;;  %v3445_v54 = vmax.f32 %v2477_v31, 0.0  ;;  %v7756_v29 = vld [vmem:[#allocation8 + $0x4] ss:$12 sps:$4 sm:$0xff]  }
 0x221   : > { %v2480_v44 = vpop.f32.mrf.mxu0  ;;  %v8041_v30 = vld [vmem:[%s8449_s15 + $0x60] ss:$12 sps:$4 sm:$0xff]  }
 0x222   : > { %11840 = vst [vmem:[#allocation59_spill] sm:$0xff] %v9379_v59  ;;  %v9383_v40 = vpop.f32.mrf.mxu1  ;;  %v2481_v25 = vadd.f32 %v2480_v44, %v2288_v6  ;;  %v8037_v6 = vld [vmem:[%s8449_s15 + $0x170] ss:$12 sps:$4 sm:$0xff]  }
 0x223   : > { %v2482_v22 = vpop.f32.mrf.mxu0  ;;  %5039 = vmatpush1.bf16.msra.mxu1 %v7742_v62  ;;  %v3446_v62 = vmax.f32 %v2479_v5, 0.0 }
 0x224   : > { %v3453_v24 = vmax.f32 %v2481_v25, 0.0  ;;  %v9387_v12 = vpop.f32.mrf.mxu1  ;;  %v2483_v14 = vadd.f32 %v2482_v22, %v2290_v33  ;;  %5040 = vmatprep.subr.bf16.mxu1 %v7750_v55  ;;  %v8038_v25 = vld [vmem:[%s8449_s15 + $0x48] ss:$12 sps:$4 sm:$0xff]   ;;  %v8039_v55 = vld [vmem:[%s8449_s15 + $0x64] ss:$12 sps:$4 sm:$0xff]  }
 0x225   : > { %v2486_v17 = vpop.f32.mrf.mxu0  ;;  %2951 = vmatmul.mubr.bf16.gmra.mxu0 %v8037_v6  ;;  %v7754_v22 = vld [vmem:[#allocation8] ss:$12 sps:$4 sm:$0xff]  }
 0x226   : > { %v9392_v44 = vpack.c.bf16 %v3453_v24, %v3445_v54  ;;  %v3454_v37 = vmax.f32 %v2483_v14, 0.0  ;;  %v9394_v1 = vpop.f32.mrf.mxu1  ;;  %v2487_v31 = vadd.f32 %v2486_v17, %v2294_v23  ;;  %3024 = vmatmul.mubr.bf16.gmra.mxu1 %v8038_v25  ;;  %3186 = vmatprep.mubr.bf16.mxu0 %v11810_v7  ;;  %v7762_v54 = vld [vmem:[#allocation8 + $0x16c] ss:$12 sps:$4 sm:$0xff]   ;;  %v2300_v23 = vadd.f32 %v9315_v13, %v9206_v34 }
 0x227   : > { %v2488_v33 = vpop.f32.mrf.mxu0  ;;  %3033 = vmatprep.mubr.bf16.mxu1 %v8039_v55  ;;  %5041 = vmatpush1.bf16.msra.mxu1 %v7748_v39  ;;  %v7739_v39 = vld [vmem:[#allocation8 + $0x228] ss:$12 sps:$4 sm:$0xff]   ;;  %v2306_v13 = vadd.f32 %v9329_v9, %v9206_v34 }
 0x228   : > { %11841 = vst [vmem:[#allocation60_spill] sm:$0xff] %v9392_v44  ;;  %v9401_v6 = vpop.f32.mrf.mxu1  ;;  %v2489_v5 = vadd.f32 %v2488_v33, %v2296_v63  ;;  %5042 = vmatprep.subr.bf16.mxu1 %v7756_v29  ;;  %v9403_v24 = vpack.c.bf16 %v3454_v37, %v3446_v62  ;;  %v3461_v44 = vmax.f32 %v2487_v31, 0.0  ;;  %v7747_v62 = vld [vmem:[#allocation8 + $0x214] ss:$12 sps:$4 sm:$0xff]   ;;  %v7753_v9 = vld [vmem:[#allocation8 + $0x1fc] ss:$12 sps:$4 sm:$0xff]  }
 0x229   : > { %v2490_v17 = vpop.f32.mrf.mxu0  ;;  %v7760_v33 = vld [vmem:[#allocation8 + $0x168] ss:$12 sps:$4 sm:$0xff]  }
 0x22a   : > { %11842 = vst [vmem:[#allocation61_spill] sm:$0xff] %v9403_v24  ;;  %v9407_v14 = vpop.f32.mrf.mxu1  ;;  %v2491_v25 = vadd.f32 %v2490_v17, %v2298_v20  ;;  %v8040_v17 = vld [vmem:[%s8449_s15 + $0x8] ss:$12 sps:$4 sm:$0xff]   ;;  %v3462_v24 = vmax.f32 %v2489_v5, 0.0 }
 0x22b   : > { %v2492_v55 = vpop.f32.mrf.mxu0  ;;  %5043 = vmatpush1.bf16.msra.mxu1 %v7754_v22  ;;  %v7768_v22 = vld [vmem:[#allocation8 + $0x154] ss:$12 sps:$4 sm:$0xff]  }
 0x22c   : > { %v3469_v63 = vmax.f32 %v2491_v25, 0.0  ;;  %v9411_v29 = vpop.f32.mrf.mxu1  ;;  %v2493_v37 = vadd.f32 %v2492_v55, %v2300_v23  ;;  %5044 = vmatprep.subr.bf16.mxu1 %v7762_v54  ;;  %v7745_v23 = vld [vmem:[#allocation8 + $0x210] ss:$12 sps:$4 sm:$0xff]   ;;  %v8042_v55 = vld [vmem:[%s8449_s15 + $0x7c] ss:$12 sps:$4 sm:$0xff]  }
 0x22d   : > { %v2496_v20 = vpop.f32.mrf.mxu0  ;;  %3187 = vmatmul.mubr.bf16.vlgmr.msra.gmra.mxu0 %v8040_v17  ;;  %v2308_v17 = vadd.f32 %v9335_v16, %v9197_v43 }
 0x22e   : > { %v9416_v60 = vpack.c.bf16 %v3469_v63, %v3461_v44  ;;  %v3470_v41 = vmax.f32 %v2493_v37, 0.0  ;;  %v9418_v31 = vpop.f32.mrf.mxu1  ;;  %v2497_v25 = vadd.f32 %v2496_v20, %v2304_v46  ;;  %3034 = vmatmul.mubr.bf16.gmra.mxu1 %v8041_v30  ;;  %5222 = vmatpush1.bf16.msra.mxu0 %v7739_v39  ;;  %v7766_v63 = vld [vmem:[#allocation8 + $0x150] ss:$12 sps:$4 sm:$0xff]   ;;  %v2310_v37 = vadd.f32 %v9339_v53, %v9206_v34  ;;  %v7772_v53 = vld [vmem:[#allocation8 + $0x138] ss:$12 sps:$4 sm:$0xff]  }
 0x22f   : > { %v2498_v54 = vpop.f32.mrf.mxu0  ;;  %3043 = vmatprep.mubr.bf16.mxu1 %v8042_v55  ;;  %3196 = vmatprep.mubr.bf16.mxu0 %v11810_v7  ;;  %v7774_v39 = vld [vmem:[#allocation8 + $0x13c] ss:$12 sps:$4 sm:$0xff]  }
 0x230   : > { %11843 = vst [vmem:[#allocation62_spill] sm:$0xff] %v9416_v60  ;;  %v9425_v5 = vpop.f32.mrf.mxu1  ;;  %v2499_v44 = vadd.f32 %v2498_v54, %v2306_v13  ;;  %5223 = vmatprep.subr.bf16.mxu0 %v7747_v62  ;;  %5045 = vmatpush2.bf16.msra.mxu1 %v7760_v33  ;;  %v9427_v46 = vpack.c.bf16 %v3470_v41, %v3462_v24  ;;  %v7751_v60 = vld [vmem:[#allocation8 + $0x1f8] ss:$12 sps:$4 sm:$0xff]   ;;  %v3477_v33 = vmax.f32 %v2497_v25, 0.0 }
 0x231   : > { %v2500_v30 = vpop.f32.mrf.mxu0  ;;  %5046 = vmatprep.subr.bf16.mxu1 %v7768_v22  ;;  %v2314_v62 = vadd.f32 %v9346_v51, %v9197_v43  ;;  %v7759_v41 = vld [vmem:[#allocation8 + $0x1e4] ss:$12 sps:$4 sm:$0xff]   ;;  %v2316_v54 = vadd.f32 %v9353_v10, %v9206_v34  ;;  %v7757_v10 = vld [vmem:[#allocation8 + $0x1e0] ss:$12 sps:$4 sm:$0xff]  }
 0x232   : > { %11844 = vst [vmem:[#allocation63_spill] sm:$0xff] %v9427_v46  ;;  %v9431_v20 = vpop.f32.mrf.mxu1  ;;  %v2501_v55 = vadd.f32 %v2500_v30, %v2308_v17  ;;  %5224 = vmatpush1.bf16.msra.mxu0 %v7745_v23  ;;  %v8043_v17 = vld [vmem:[%s8449_s15 + $0x20] ss:$12 sps:$4 sm:$0xff]   ;;  %v3478_v30 = vmax.f32 %v2499_v44, 0.0 }
 0x233   : > { %v2502_v16 = vpop.f32.mrf.mxu0  ;;  %5225 = vmatprep.subr.bf16.mxu0 %v7753_v9  ;;  %v7780_v9 = vld [vmem:[#allocation8 + $0x124] ss:$12 sps:$4 sm:$0xff]  }
 0x234   : > { %v3485_v24 = vmax.f32 %v2501_v55, 0.0  ;;  %v9435_v13 = vpop.f32.mrf.mxu1  ;;  %v2503_v22 = vadd.f32 %v2502_v16, %v2310_v37  ;;  %5047 = vmatpush2.bf16.msra.mxu1 %v7766_v63  ;;  %v8044_v37 = vld [vmem:[%s8449_s15 + $0x78] ss:$12 sps:$4 sm:$0xff]   ;;  %v8045_v16 = vld [vmem:[%s8449_s15 + $0x94] ss:$12 sps:$4 sm:$0xff]  }
 0x235   : > { %v2506_v23 = vpop.f32.mrf.mxu0  ;;  %3197 = vmatmul.mubr.bf16.gmra.mxu0 %v8043_v17  ;;  %5048 = vmatprep.subr.bf16.mxu1 %v7774_v39  ;;  %v2318_v39 = vadd.f32 %v9359_v38, %v9197_v43 }
 0x236   : > { %v9440_v51 = vpack.c.bf16 %v3485_v24, %v3477_v33  ;;  %v3486_v25 = vmax.f32 %v2503_v22, 0.0  ;;  %v9442_v55 = vpop.f32.mrf.mxu1  ;;  %v2507_v46 = vadd.f32 %v2506_v23, %v2314_v62  ;;  %3044 = vmatmul.mubr.bf16.gmra.mxu1 %v8044_v37  ;;  %3206 = vmatprep.mubr.bf16.mxu0 %v11810_v7  ;;  %v7765_v33 = vld [vmem:[#allocation8 + $0x1cc] ss:$12 sps:$4 sm:$0xff]   ;;  %v2320_v37 = vadd.f32 %v9363_v52, %v9206_v34  ;;  %v7784_v52 = vld [vmem:[#allocation8 + $0x108] ss:$12 sps:$4 sm:$0xff]  }
 0x237   : > { %v2508_v63 = vpop.f32.mrf.mxu0  ;;  %3053 = vmatprep.mubr.bf16.mxu1 %v8045_v16  ;;  %5226 = vmatpush1.bf16.msra.mxu0 %v7751_v60  ;;  %v7778_v24 = vld [vmem:[#allocation8 + $0x120] ss:$12 sps:$4 sm:$0xff]  }
 0x238   : > { %11845 = vst [vmem:[#allocation64_spill] sm:$0xff] %v9440_v51  ;;  %v9449_v17 = vpop.f32.mrf.mxu1  ;;  %v2509_v44 = vadd.f32 %v2508_v63, %v2316_v54  ;;  %5227 = vmatprep.subr.bf16.mxu0 %v7759_v41  ;;  %5049 = vmatpush2.bf16.msra.mxu1 %v7772_v53  ;;  %v9451_v62 = vpack.c.bf16 %v3486_v25, %v3478_v30  ;;  %v7786_v23 = vld [vmem:[#allocation8 + $0x10c] ss:$12 sps:$4 sm:$0xff]   ;;  %v7763_v51 = vld [vmem:[#allocation8 + $0x1c8] ss:$12 sps:$4 sm:$0xff]   ;;  %v3493_v53 = vmax.f32 %v2507_v46, 0.0 }
 0x239   : > { %v2510_v22 = vpop.f32.mrf.mxu0  ;;  %5050 = vmatprep.subr.bf16.mxu1 %v7780_v9  ;;  %v2324_v41 = vadd.f32 %v9370_v3, %v9197_v43  ;;  %v7771_v9 = vld [vmem:[#allocation8 + $0x1b4] ss:$12 sps:$4 sm:$0xff]   ;;  %v2326_v63 = vadd.f32 %v9377_v18, %v9206_v34  ;;  %v7769_v18 = vld [vmem:[#allocation8 + $0x1b0] ss:$12 sps:$4 sm:$0xff]  }
 0x23a   : > { %11846 = vst [vmem:[#allocation65_spill] sm:$0xff] %v9451_v62  ;;  %v9455_v60 = vpop.f32.mrf.mxu1  ;;  %v2511_v16 = vadd.f32 %v2510_v22, %v2318_v39  ;;  %v7792_v22 = vld [vmem:[#allocation8 + $0xf4] ss:$12 sps:$4 sm:$0xff]   ;;  %v3494_v3 = vmax.f32 %v2509_v44, 0.0 }
 0x23b   : > { %v2512_v38 = vpop.f32.mrf.mxu0  ;;  %5228 = vmatpush1.bf16.msra.mxu0 %v7757_v10  ;;  %v8046_v10 = vld [vmem:[%s8449_s15 + $0x38] ss:$12 sps:$4 sm:$0xff]  }
 0x23c   : > { %v3501_v54 = vmax.f32 %v2511_v16, 0.0  ;;  %v9459_v30 = vpop.f32.mrf.mxu1  ;;  %v2513_v25 = vadd.f32 %v2512_v38, %v2320_v37  ;;  %5229 = vmatprep.subr.bf16.mxu0 %v7765_v33  ;;  %5051 = vmatpush2.bf16.msra.mxu1 %v7778_v24  ;;  %v8047_v33 = vld [vmem:[%s8449_s15 + $0x90] ss:$12 sps:$4 sm:$0xff]   ;;  %v8048_v38 = vld [vmem:[%s8449_s15 + $0xac] ss:$12 sps:$4 sm:$0xff]  }
 0x23d   : > { %v2516_v39 = vpop.f32.mrf.mxu0  ;;  %3207 = vmatmul.mubr.bf16.gmra.mxu0 %v8046_v10  ;;  %5052 = vmatprep.subr.bf16.mxu1 %v7786_v23  ;;  %v2328_v23 = vadd.f32 %v9383_v40, %v9197_v43 }
 0x23e   : > { %v9464_v46 = vpack.c.bf16 %v3501_v54, %v3493_v53  ;;  %v3502_v16 = vmax.f32 %v2513_v25, 0.0  ;;  %v9466_v62 = vpop.f32.mrf.mxu1  ;;  %v2517_v37 = vadd.f32 %v2516_v39, %v2324_v41  ;;  %3054 = vmatmul.mubr.bf16.gmra.mxu1 %v8047_v33  ;;  %3216 = vmatprep.mubr.bf16.mxu0 %v11810_v7  ;;  %v7777_v53 = vld [vmem:[#allocation8 + $0x19c] ss:$12 sps:$4 sm:$0xff]   ;;  %v2330_v33 = vadd.f32 %v9387_v12, %v9206_v34  ;;  %v7796_v12 = vld [vmem:[#allocation8 + $0xd8] ss:$12 sps:$4 sm:$0xff]  }
 0x23f   : > { %v2518_v24 = vpop.f32.mrf.mxu0  ;;  %3063 = vmatprep.mubr.bf16.mxu1 %v8048_v38  ;;  %5230 = vmatpush1.bf16.msra.mxu0 %v7763_v51  ;;  %v7790_v54 = vld [vmem:[#allocation8 + $0xf0] ss:$12 sps:$4 sm:$0xff]  }
 0x240   : > { %11847 = vst [vmem:[#allocation66_spill] sm:$0xff] %v9464_v46  ;;  %v9473_v10 = vpop.f32.mrf.mxu1  ;;  %v2519_v44 = vadd.f32 %v2518_v24, %v2326_v63  ;;  %5231 = vmatprep.subr.bf16.mxu0 %v7771_v9  ;;  %5053 = vmatpush2.bf16.msra.mxu1 %v7784_v52  ;;  %v9475_v41 = vpack.c.bf16 %v3502_v16, %v3494_v3  ;;  %v7798_v39 = vld [vmem:[#allocation8 + $0xdc] ss:$12 sps:$4 sm:$0xff]   ;;  %v7775_v46 = vld [vmem:[#allocation8 + $0x198] ss:$12 sps:$4 sm:$0xff]   ;;  %v3509_v52 = vmax.f32 %v2517_v37, 0.0 }
 0x241   : > { %v2520_v25 = vpop.f32.mrf.mxu0  ;;  %5054 = vmatprep.subr.bf16.mxu1 %v7792_v22  ;;  %v2334_v9 = vadd.f32 %v9394_v1, %v9197_v43  ;;  %v7783_v22 = vld [vmem:[#allocation8 + $0x184] ss:$12 sps:$4 sm:$0xff]   ;;  %v2336_v24 = vadd.f32 %v9401_v6, %v9206_v34  ;;  %v7781_v6 = vld [vmem:[#allocation8 + $0x180] ss:$12 sps:$4 sm:$0xff]  }
 0x242   : > { %11848 = vst [vmem:[#allocation67_spill] sm:$0xff] %v9475_v41  ;;  %v9479_v51 = vpop.f32.mrf.mxu1  ;;  %v2521_v38 = vadd.f32 %v2520_v25, %v2328_v23  ;;  %v7804_v25 = vld [vmem:[#allocation8 + $0xc4] ss:$12 sps:$4 sm:$0xff]   ;;  %v3510_v1 = vmax.f32 %v2519_v44, 0.0 }
 0x243   : > { %v2522_v40 = vpop.f32.mrf.mxu0  ;;  %5232 = vmatpush1.bf16.msra.mxu0 %v7769_v18  ;;  %v8049_v18 = vld [vmem:[%s8449_s15 + $0x50] ss:$12 sps:$4 sm:$0xff]  }
 0x244   : > { %v3517_v63 = vmax.f32 %v2521_v38, 0.0  ;;  %v9483_v3 = vpop.f32.mrf.mxu1  ;;  %v2523_v16 = vadd.f32 %v2522_v40, %v2330_v33  ;;  %5233 = vmatprep.subr.bf16.mxu0 %v7777_v53  ;;  %5055 = vmatpush2.bf16.msra.mxu1 %v7790_v54  ;;  %v8050_v53 = vld [vmem:[%s8449_s15 + $0xa8] ss:$12 sps:$4 sm:$0xff]   ;;  %v8051_v40 = vld [vmem:[%s8449_s15 + $0xc4] ss:$12 sps:$4 sm:$0xff]  }
 0x245   : > { %v2526_v23 = vpop.f32.mrf.mxu0  ;;  %3217 = vmatmul.mubr.bf16.gmra.mxu0 %v8049_v18  ;;  %5056 = vmatprep.subr.bf16.mxu1 %v7798_v39  ;;  %v2338_v39 = vadd.f32 %v9407_v14, %v9197_v43 }
 0x246   : > { %v9488_v37 = vpack.c.bf16 %v3517_v63, %v3509_v52  ;;  %v3518_v38 = vmax.f32 %v2523_v16, 0.0  ;;  %v9490_v41 = vpop.f32.mrf.mxu1  ;;  %v2527_v33 = vadd.f32 %v2526_v23, %v2334_v9  ;;  %3064 = vmatmul.mubr.bf16.gmra.mxu1 %v8050_v53  ;;  %3226 = vmatprep.mubr.bf16.mxu0 %v11810_v7  ;;  %v7789_v52 = vld [vmem:[#allocation8 + $0x2ec] ss:$12 sps:$4 sm:$0xff]   ;;  %v2340_v53 = vadd.f32 %v9411_v29, %v9206_v34 }
 0x247   : > { %v2528_v54 = vpop.f32.mrf.mxu0  ;;  %3073 = vmatprep.mubr.bf16.mxu1 %v8051_v40  ;;  %5234 = vmatpush1.bf16.msra.mxu0 %v7775_v46  ;;  %v7802_v63 = vld [vmem:[#allocation8 + $0xc0] ss:$12 sps:$4 sm:$0xff]   ;;  %v2346_v29 = vadd.f32 %v9425_v5, %v9206_v34  ;;  %v7793_v5 = vld [vmem:[#allocation8 + $0x2d0] ss:$12 sps:$4 sm:$0xff]  }
 0x248   : > { %11849 = vst [vmem:[#allocation68_spill] sm:$0xff] %v9488_v37  ;;  %v9497_v18 = vpop.f32.mrf.mxu1  ;;  %v2529_v44 = vadd.f32 %v2528_v54, %v2336_v24  ;;  %5235 = vmatprep.subr.bf16.mxu0 %v7783_v22  ;;  %5057 = vmatpush2.bf16.msra.mxu1 %v7796_v12  ;;  %v9499_v9 = vpack.c.bf16 %v3518_v38, %v3510_v1  ;;  %v7813_v23 = vld [vmem:[#allocation8 + $0x3ac] ss:$12 sps:$4 sm:$0xff]   ;;  %v7787_v37 = vld [vmem:[#allocation8 + $0x2e8] ss:$12 sps:$4 sm:$0xff]   ;;  %v3525_v12 = vmax.f32 %v2527_v33, 0.0 }
 0x249   : > { %v2530_v16 = vpop.f32.mrf.mxu0  ;;  %5058 = vmatprep.subr.bf16.mxu1 %v7804_v25  ;;  %v2344_v22 = vadd.f32 %v9418_v31, %v9197_v43  ;;  %v7795_v38 = vld [vmem:[#allocation8 + $0x2d4] ss:$12 sps:$4 sm:$0xff]  }
 0x24a   : > { %11850 = vst [vmem:[#allocation69_spill] sm:$0xff] %v9499_v9  ;;  %v9503_v46 = vpop.f32.mrf.mxu1  ;;  %v2531_v40 = vadd.f32 %v2530_v16, %v2338_v39  ;;  %v8052_v39 = vld [vmem:[%s8449_s15 + $0x68] ss:$12 sps:$4 sm:$0xff]   ;;  %v8053_v9 = vld [vmem:[%s8449_s15 + $0xc0] ss:$12 sps:$4 sm:$0xff]  }
 0x24b   : > { %v2532_v14 = vpop.f32.mrf.mxu0  ;;  %5236 = vmatpush1.bf16.msra.mxu0 %v7781_v6  ;;  %v3526_v6 = vmax.f32 %v2529_v44, 0.0 }
 0x24c   : > { %v3533_v24 = vmax.f32 %v2531_v40, 0.0  ;;  %v9507_v1 = vpop.f32.mrf.mxu1  ;;  %v2533_v25 = vadd.f32 %v2532_v14, %v2340_v53  ;;  %5237 = vmatprep.subr.bf16.mxu0 %v7789_v52  ;;  %5059 = vmatpush2.bf16.msra.mxu1 %v7802_v63  ;;  %v8054_v63 = vld [vmem:[%s8449_s15 + $0xdc] ss:$12 sps:$4 sm:$0xff]   ;;  %v2348_v53 = vadd.f32 %v9431_v20, %v9197_v43  ;;  %v7801_v14 = vld [vmem:[#allocation8 + $0x2bc] ss:$12 sps:$4 sm:$0xff]   ;;  %v2354_v20 = vadd.f32 %v9442_v55, %v9197_v43 }
 0x24d   : > { %v2536_v54 = vpop.f32.mrf.mxu0  ;;  %3227 = vmatmul.mubr.bf16.gmra.mxu0 %v8052_v39  ;;  %5414 = vmatprep.subr.bf16.mxu1 %v7813_v23 }
 0x24e   : > { %v9512_v16 = vpack.c.bf16 %v3533_v24, %v3525_v12  ;;  %v3534_v31 = vmax.f32 %v2533_v25, 0.0  ;;  %v2537_v33 = vadd.f32 %v2536_v54, %v2344_v22  ;;  %v9514_v40 = vpop.f32.mrf.mxu1  ;;  %3074 = vmatmul.mubr.bf16.gmra.mxu1 %v8053_v9  ;;  %3236 = vmatprep.mubr.bf16.mxu0 %v11810_v7  ;;  %v2350_v9 = vadd.f32 %v9435_v13, %v9206_v34  ;;  %v7799_v54 = vld [vmem:[#allocation8 + $0x2b8] ss:$12 sps:$4 sm:$0xff]  }
 0x24f   : > { %v2538_v52 = vpop.f32.mrf.mxu0  ;;  %3083 = vmatprep.mubr.bf16.mxu1 %v8054_v63  ;;  %5238 = vmatpush2.bf16.msra.mxu0 %v7787_v37  ;;  %v2356_v13 = vadd.f32 %v9449_v17, %v9206_v34  ;;  %v8055_v63 = vld [vmem:[%s8449_s15 + $0x80] ss:$12 sps:$4 sm:$0xff]   ;;  %v2358_v17 = vadd.f32 %v9455_v60, %v9197_v43  ;;  %v2364_v60 = vadd.f32 %v9466_v62, %v9197_v43 }
 0x250   : > { %11851 = vst [vmem:[#allocation70_spill] sm:$0xff] %v9512_v16  ;;  %v2539_v23 = vadd.f32 %v2538_v52, %v2346_v29  ;;  %v9521_v44 = vpop.f32.mrf.mxu1  ;;  %5239 = vmatprep.subr.bf16.mxu0 %v7795_v38  ;;  %v9523_v22 = vpack.c.bf16 %v3534_v31, %v3526_v6  ;;  %v3541_v29 = vmax.f32 %v2537_v33, 0.0  ;;  %v7807_v31 = vld [vmem:[#allocation8 + $0x2a4] ss:$12 sps:$4 sm:$0xff]  }
 0x251   : > { %v2540_v12 = vpop.f32.mrf.mxu0  ;;  %v8056_v33 = vld [vmem:[%s8449_s15 + $0xd8] ss:$12 sps:$4 sm:$0xff]  }
 0x252   : > { %11852 = vst [vmem:[#allocation71_spill] sm:$0xff] %v9523_v22  ;;  %v2541_v24 = vadd.f32 %v2540_v12, %v2348_v53  ;;  %v9527_v25 = vpop.f32.mrf.mxu1  ;;  %v2378_v22 = vadd.f32 %v9503_v46, %v9197_v43 }
 0x253   : > { %v2542_v37 = vpop.f32.mrf.mxu0  ;;  %5240 = vmatpush2.bf16.msra.mxu0 %v7793_v5  ;;  %v3542_v5 = vmax.f32 %v2539_v23, 0.0 }
 0x254   : > { %v3549_v38 = vmax.f32 %v2541_v24, 0.0  ;;  %v2543_v39 = vadd.f32 %v2542_v37, %v2350_v9  ;;  %v9531_v6 = vpop.f32.mrf.mxu1  ;;  %5241 = vmatprep.subr.bf16.mxu0 %v7801_v14  ;;  %v8057_v14 = vld [vmem:[%s8449_s15 + $0xf4] ss:$12 sps:$4 sm:$0xff]  }
 0x255   : > { %v2546_v52 = vpop.f32.mrf.mxu0  ;;  %3237 = vmatmul.mubr.bf16.gmra.mxu0 %v8055_v63  ;;  %v7805_v24 = vld [vmem:[#allocation8 + $0x2a0] ss:$12 sps:$4 sm:$0xff]  }
 0x256   : > { %v9536_v53 = vpack.c.bf16 %v3549_v38, %v3541_v29  ;;  %v3550_v12 = vmax.f32 %v2543_v39, 0.0  ;;  %v2547_v55 = vadd.f32 %v2546_v52, %v2354_v20  ;;  %v9538_v16 = vpop.f32.mrf.mxu1  ;;  %3084 = vmatmul.mubr.bf16.gmra.mxu1 %v8056_v33  ;;  %3246 = vmatprep.mubr.bf16.mxu0 %v11810_v7  ;;  %v7810_v29 = vld [vmem:[#allocation8 + $0x28c] ss:$12 sps:$4 sm:$0xff]   ;;  %v2360_v39 = vadd.f32 %v9459_v30, %v9206_v34  ;;  %v7808_v33 = vld [vmem:[#allocation8 + $0x288] ss:$12 sps:$4 sm:$0xff]  }
 0x257   : > { %v2548_v9 = vpop.f32.mrf.mxu0  ;;  %3093 = vmatprep.mubr.bf16.mxu1 %v8057_v14  ;;  %5242 = vmatpush2.bf16.msra.mxu0 %v7799_v54  ;;  %v2366_v30 = vadd.f32 %v9473_v10, %v9206_v34  ;;  %v2368_v10 = vadd.f32 %v9479_v51, %v9197_v43  ;;  %v7820_v51 = vld [vmem:[#allocation8 + $0x258] ss:$12 sps:$4 sm:$0xff]  }
 0x258   : > { %11853 = vst [vmem:[#allocation72_spill] sm:$0xff] %v9536_v53  ;;  %v2549_v37 = vadd.f32 %v2548_v9, %v2356_v13  ;;  %v9545_v23 = vpop.f32.mrf.mxu1  ;;  %5243 = vmatprep.subr.bf16.mxu0 %v7807_v31  ;;  %v9547_v20 = vpack.c.bf16 %v3550_v12, %v3542_v5  ;;  %v3557_v13 = vmax.f32 %v2547_v55, 0.0  ;;  %v7816_v12 = vld [vmem:[#allocation8 + $0x274] ss:$12 sps:$4 sm:$0xff]  }
 0x259   : > { %v2550_v38 = vpop.f32.mrf.mxu0  ;;  %v8059_v55 = vld [vmem:[%s8449_s15 + $0xf0] ss:$12 sps:$4 sm:$0xff]  }
 0x25a   : > { %11854 = vst [vmem:[#allocation73_spill] sm:$0xff] %v9547_v20  ;;  %v2551_v52 = vadd.f32 %v2550_v38, %v2358_v17  ;;  %v9551_v63 = vpop.f32.mrf.mxu1  ;;  %v8058_v17 = vld [vmem:[%s8449_s15 + $0x98] ss:$12 sps:$4 sm:$0xff]  }
 0x25b   : > { %v2552_v54 = vpop.f32.mrf.mxu0  ;;  %5244 = vmatpush2.bf16.msra.mxu0 %v7805_v24  ;;  %v3558_v24 = vmax.f32 %v2549_v37, 0.0 }
 0x25c   : > { %v3565_v31 = vmax.f32 %v2551_v52, 0.0  ;;  %v2553_v9 = vadd.f32 %v2552_v54, %v2360_v39  ;;  %v9555_v5 = vpop.f32.mrf.mxu1  ;;  %5245 = vmatprep.subr.bf16.mxu0 %v7810_v29  ;;  %v8060_v29 = vld [vmem:[%s8449_s15 + $0x10c] ss:$12 sps:$4 sm:$0xff]  }
 0x25d   : > { %v2556_v14 = vpop.f32.mrf.mxu0  ;;  %3247 = vmatmul.mubr.bf16.gmra.mxu0 %v8058_v17  ;;  %v7814_v52 = vld [vmem:[#allocation8 + $0x270] ss:$12 sps:$4 sm:$0xff]  }
 0x25e   : > { %v9560_v38 = vpack.c.bf16 %v3565_v31, %v3557_v13  ;;  %v3566_v53 = vmax.f32 %v2553_v9, 0.0  ;;  %v2557_v62 = vadd.f32 %v2556_v14, %v2364_v60  ;;  %v9562_v20 = vpop.f32.mrf.mxu1  ;;  %3094 = vmatmul.mubr.bf16.gmra.mxu1 %v8059_v55  ;;  %3256 = vmatprep.mubr.bf16.mxu0 %v11810_v7  ;;  %v7822_v13 = vld [vmem:[#allocation8 + $0x25c] ss:$12 sps:$4 sm:$0xff]   ;;  %v2370_v9 = vadd.f32 %v9483_v3, %v9206_v34  ;;  %v7828_v3 = vld [vmem:[#allocation8 + $0x244] ss:$12 sps:$4 sm:$0xff]  }
 0x25f   : > { %v2558_v39 = vpop.f32.mrf.mxu0  ;;  %3103 = vmatprep.mubr.bf16.mxu1 %v8060_v29  ;;  %5246 = vmatpush2.bf16.msra.mxu0 %v7808_v33  ;;  %v565_v33 = vsub.s32 4, %v8755_v4  ;;  %v2376_v29 = vadd.f32 %v9497_v18, %v9206_v34  ;;  %v7826_v18 = vld [vmem:[#allocation8 + $0x240] ss:$12 sps:$4 sm:$0xff]  }
 0x260   : > { %11855 = vst [vmem:[#allocation74_spill] sm:$0xff] %v9560_v38  ;;  %v2559_v54 = vadd.f32 %v2558_v39, %v2366_v30  ;;  %v9569_v37 = vpop.f32.mrf.mxu1  ;;  %5247 = vmatprep.subr.bf16.mxu0 %v7816_v12  ;;  %v9571_v60 = vpack.c.bf16 %v3566_v53, %v3558_v24  ;;  %v2374_v30 = vadd.f32 %v9490_v41, %v9197_v43  ;;  %v3573_v12 = vmax.f32 %v2557_v62, 0.0 }
 0x261   : > { %v2560_v31 = vpop.f32.mrf.mxu0 }
 0x262   : > { %11856 = vst [vmem:[#allocation75_spill] sm:$0xff] %v9571_v60  ;;  %v2561_v14 = vadd.f32 %v2560_v31, %v2368_v10  ;;  %v9575_v17 = vpop.f32.mrf.mxu1  ;;  %v569_v10 = vsub.s32 5, %v8755_v4  ;;  %v3574_v38 = vmax.f32 %v2559_v54, 0.0 }
 0x263   : > { %v2562_v55 = vpop.f32.mrf.mxu0  ;;  %5248 = vmatpush2.bf16.msra.mxu0 %v7814_v52  ;;  %v8061_v52 = vld [vmem:[%s8449_s15 + $0xb0] ss:$12 sps:$4 sm:$0xff]  }
 0x264   : > { %v3581_v53 = vmax.f32 %v2561_v14, 0.0  ;;  %v2563_v24 = vadd.f32 %v2562_v55, %v2370_v9  ;;  %v9580_v39 = vpop.f32.mrf.mxu1  ;;  %5249 = vmatprep.subr.bf16.mxu0 %v7822_v13  ;;  %v8062_v9 = vld [vmem:[%s8449_s15 + $0x108] ss:$12 sps:$4 sm:$0xff]   ;;  %v8063_v55 = vld [vmem:[%s8449_s15 + $0x124] ss:$12 sps:$4 sm:$0xff]  }
 0x265   : > { %v2566_v31 = vpop.f32.mrf.mxu0  ;;  %3257 = vmatmul.mubr.bf16.gmra.mxu0 %v8061_v52  ;;  %v8064_v52 = vld [vmem:[#allocation7] sm:$0xff] }
 0x266   : > { %v9586_v60 = vpack.c.bf16 %v3581_v53, %v3573_v12  ;;  %v3582_v41 = vmax.f32 %v2563_v24, 0.0  ;;  %v2567_v62 = vadd.f32 %v2566_v31, %v2374_v30  ;;  %v9588_v14 = vpop.f32.mrf.mxu1  ;;  %3104 = vmatmul.mubr.bf16.gmra.mxu1 %v8062_v9  ;;  %3266 = vmatprep.mubr.bf16.mxu0 %v11810_v7  ;;  %v9595_v54 = vrot.slane %v8064_v52, %v565_v33  ;;  %v7837_v30 = vld [vmem:[#allocation8 + $0x52c] ss:$12 sps:$4 sm:$0xff]  }
 0x267   : > { %v2568_v13 = vpop.f32.mrf.mxu0  ;;  %3113 = vmatprep.mubr.bf16.mxu1 %v8063_v55  ;;  %5250 = vmatpush2.bf16.msra.mxu0 %v7820_v51  ;;  %v9601_v31 = vrot.slane %v8064_v52, %v569_v10  ;;  %v2380_v51 = vadd.f32 %v9507_v1, %v9206_v34  ;;  %v8065_v1 = vld [vmem:[%s8449_s15 + $0xc8] ss:$12 sps:$4 sm:$0xff]  }
 0x268   : > { %11857 = vst [vmem:[#allocation76_spill] sm:$0xff] %v9586_v60  ;;  %v2569_v12 = vadd.f32 %v2568_v13, %v2376_v29  ;;  %v9597_v53 = vpop.f32.mrf.mxu1  ;;  %5251 = vmatprep.subr.bf16.mxu0 %v7828_v3  ;;  %v9599_v24 = vpack.c.bf16 %v3582_v41, %v3574_v38  ;;  %v2610_v46 = vadd.f32 %v9514_v40, %v9595_v54  ;;  %v3589_v33 = vmax.f32 %v2567_v62, 0.0  ;;  %v8066_v62 = vld [vmem:[%s8449_s15 + $0x120] ss:$12 sps:$4 sm:$0xff]  }
 0x269   : > { %v2570_v9 = vpop.f32.mrf.mxu0  ;;  %v2612_v10 = vadd.f32 %v9521_v44, %v9601_v31  ;;  %v2614_v44 = vadd.f32 %v9527_v25, %v9595_v54 }
 0x26a   : > { %11858 = vst [vmem:[#allocation77_spill] sm:$0xff] %v9599_v24  ;;  %v2571_v55 = vadd.f32 %v2570_v9, %v2378_v22  ;;  %v9605_v60 = vpop.f32.mrf.mxu1  ;;  %v3590_v22 = vmax.f32 %v2569_v12, 0.0  ;;  %v8067_v9 = vld [vmem:[%s8449_s15 + $0x13c] ss:$12 sps:$4 sm:$0xff]  }
 0x26b   : > { %v2572_v43 = vpop.f32.mrf.mxu0  ;;  %5252 = vmatpush2.bf16.msra.mxu0 %v7826_v18 }
 0x26c   : > { %v3597_v3 = vmax.f32 %v2571_v55, 0.0  ;;  %v2573_v38 = vadd.f32 %v2572_v43, %v2380_v51  ;;  %v9609_v29 = vpop.f32.mrf.mxu1  ;;  %5607 = vmatprep.subr.bf16.mxu0 %v7837_v30  ;;  %v2616_v43 = vadd.f32 %v9531_v6, %v9601_v31 }
 0x26d   : > { %v2802_v34 = vpop.f32.mrf.mxu0  ;;  %3267 = vmatmul.mubr.bf16.gmra.mxu0 %v8065_v1 }
 0x26e   : > { %v9614_v41 = vpack.c.bf16 %v3597_v3, %v3589_v33  ;;  %v3598_v13 = vmax.f32 %v2573_v38, 0.0  ;;  %v9616_v18 = vpop.f32.mrf.mxu1  ;;  %v2803_v40 = vadd.f32 %v2802_v34, %v2610_v46  ;;  %3114 = vmatmul.mubr.bf16.gmra.mxu1 %v8066_v62  ;;  %3276 = vmatprep.mubr.bf16.mxu0 %v11810_v7  ;;  %v2620_v38 = vadd.f32 %v9538_v16, %v9595_v54  ;;  %v8068_v62 = vld [vmem:[%s8449_s15 + $0xe0] ss:$12 sps:$4 sm:$0xff]   ;;  %v8069_v16 = vld [vmem:[%s8449_s15 + $0x138] ss:$12 sps:$4 sm:$0xff]  }
 0x26f   : > { %v2804_v52 = vpop.f32.mrf.mxu0  ;;  %3123 = vmatprep.mubr.bf16.mxu1 %v8067_v9 }
 0x270   : > { %11859 = vst [vmem:[#allocation78_spill] sm:$0xff] %v9614_v41  ;;  %v9623_v30 = vpop.f32.mrf.mxu1  ;;  %v2805_v12 = vadd.f32 %v2804_v52, %v2612_v10  ;;  %v9625_v51 = vpack.c.bf16 %v3598_v13, %v3590_v22  ;;  %v3351_v34 = vmax.f32 %v2803_v40, 0.0  ;;  %v2622_v22 = vadd.f32 %v9545_v23, %v9601_v31 }
 0x271   : > { %v2806_v55 = vpop.f32.mrf.mxu0  ;;  %v2624_v23 = vadd.f32 %v9551_v63, %v9595_v54 }
 0x272   : > { %11860 = vst [vmem:[#allocation79_spill] sm:$0xff] %v9625_v51  ;;  %v9629_v46 = vpop.f32.mrf.mxu1  ;;  %v2807_v33 = vadd.f32 %v2806_v55, %v2614_v44  ;;  %v3352_v6 = vmax.f32 %v2805_v12, 0.0 }
 0x273   : > { %v2808_v3 = vpop.f32.mrf.mxu0 }
 0x274   : > { %v3359_v25 = vmax.f32 %v2807_v33, 0.0  ;;  %v9633_v1 = vpop.f32.mrf.mxu1  ;;  %v2809_v10 = vadd.f32 %v2808_v3, %v2616_v43  ;;  %v8070_v33 = vld [vmem:[%s8449_s15 + $0x154] ss:$12 sps:$4 sm:$0xff]  }
 0x275   : > { %v2812_v13 = vpop.f32.mrf.mxu0  ;;  %3277 = vmatmul.mubr.bf16.gmra.mxu0 %v8068_v62  ;;  %v2630_v62 = vadd.f32 %v9562_v20, %v9595_v54  ;;  %v8072_v20 = vld [vmem:[%s8449_s15 + $0x150] ss:$12 sps:$4 sm:$0xff]  }
 0x276   : > { %v9638_v52 = vpack.c.bf16 %v3359_v25, %v3351_v34  ;;  %v3360_v9 = vmax.f32 %v2809_v10, 0.0  ;;  %v9640_v44 = vpop.f32.mrf.mxu1  ;;  %v2813_v55 = vadd.f32 %v2812_v13, %v2620_v38  ;;  %3124 = vmatmul.mubr.bf16.gmra.mxu1 %v8069_v16  ;;  %3286 = vmatprep.mubr.bf16.mxu0 %v11810_v7  ;;  %v2626_v38 = vadd.f32 %v9555_v5, %v9601_v31 }
 0x277   : > { %v2814_v40 = vpop.f32.mrf.mxu0  ;;  %3133 = vmatprep.mubr.bf16.mxu1 %v8070_v33 }
 0x278   : > { %11861 = vst [vmem:[#allocation80_spill] sm:$0xff] %v9638_v52  ;;  %v9647_v43 = vpop.f32.mrf.mxu1  ;;  %v2815_v12 = vadd.f32 %v2814_v40, %v2622_v22  ;;  %v9649_v3 = vpack.c.bf16 %v3360_v9, %v3352_v6  ;;  %v3367_v16 = vmax.f32 %v2813_v55, 0.0  ;;  %v2632_v6 = vadd.f32 %v9569_v37, %v9601_v31  ;;  %v8071_v40 = vld [vmem:[%s8449_s15 + $0xf8] ss:$12 sps:$4 sm:$0xff]  }
 0x279   : > { %v2816_v34 = vpop.f32.mrf.mxu0  ;;  %v2634_v37 = vadd.f32 %v9575_v17, %v9595_v54 }
 0x27a   : > { %11862 = vst [vmem:[#allocation81_spill] sm:$0xff] %v9649_v3  ;;  %v9653_v25 = vpop.f32.mrf.mxu1  ;;  %v2817_v10 = vadd.f32 %v2816_v34, %v2624_v23  ;;  %v3368_v5 = vmax.f32 %v2815_v12, 0.0 }
 0x27b   : > { %v2818_v13 = vpop.f32.mrf.mxu0 }
 0x27c   : > { %v3375_v63 = vmax.f32 %v2817_v10, 0.0  ;;  %v9657_v33 = vpop.f32.mrf.mxu1  ;;  %v2819_v22 = vadd.f32 %v2818_v13, %v2626_v38  ;;  %v8073_v10 = vld [vmem:[%s8449_s15 + $0x16c] ss:$12 sps:$4 sm:$0xff]  }
 0x27d   : > { %v2822_v9 = vpop.f32.mrf.mxu0  ;;  %3287 = vmatmul.mubr.bf16.gmra.mxu0 %v8071_v40  ;;  %v2640_v40 = vadd.f32 %v9588_v14, %v9595_v54 }
 0x27e   : > { %v9662_v41 = vpack.c.bf16 %v3375_v63, %v3367_v16  ;;  %v3376_v23 = vmax.f32 %v2819_v22, 0.0  ;;  %v9664_v34 = vpop.f32.mrf.mxu1  ;;  %v2823_v51 = vadd.f32 %v2822_v9, %v2630_v62  ;;  %3134 = vmatmul.mubr.bf16.gmra.mxu1 %v8072_v20  ;;  %3296 = vmatprep.mubr.bf16.mxu0 %v11810_v7  ;;  %v2636_v62 = vadd.f32 %v9580_v39, %v9601_v31 }
 0x27f   : > { %v2824_v55 = vpop.f32.mrf.mxu0  ;;  %3143 = vmatprep.mubr.bf16.mxu1 %v8073_v10 }
 0x280   : > { %11863 = vst [vmem:[#allocation82_spill] sm:$0xff] %v9662_v41  ;;  %v9671_v38 = vpop.f32.mrf.mxu1  ;;  %v2825_v12 = vadd.f32 %v2824_v55, %v2632_v6  ;;  %v9673_v13 = vpack.c.bf16 %v3376_v23, %v3368_v5  ;;  %v3383_v20 = vmax.f32 %v2823_v51, 0.0  ;;  %v2642_v6 = vadd.f32 %v9597_v53, %v9601_v31  ;;  %v8074_v23 = vld [vmem:[%s8449_s15 + $0x110] ss:$12 sps:$4 sm:$0xff]  }
 0x281   : > { %v2826_v16 = vpop.f32.mrf.mxu0  ;;  %v2644_v53 = vadd.f32 %v9605_v60, %v9595_v54 }
 0x282   : > { %11864 = vst [vmem:[#allocation83_spill] sm:$0xff] %v9673_v13  ;;  %v9677_v63 = vpop.f32.mrf.mxu1  ;;  %v2827_v22 = vadd.f32 %v2826_v16, %v2634_v37  ;;  %v3384_v39 = vmax.f32 %v2825_v12, 0.0  ;;  %v8075_v13 = vld [vmem:[%s8449_s15 + $0x168] ss:$12 sps:$4 sm:$0xff]  }
 0x283   : > { %v2828_v9 = vpop.f32.mrf.mxu0 }
 0x284   : > { %v3391_v17 = vmax.f32 %v2827_v22, 0.0  ;;  %v9681_v10 = vpop.f32.mrf.mxu1  ;;  %v2829_v24 = vadd.f32 %v2828_v9, %v2636_v62  ;;  %v2646_v22 = vadd.f32 %v9609_v29, %v9601_v31 }
 0x285   : > { %v2832_v5 = vpop.f32.mrf.mxu0  ;;  %3297 = vmatmul.mubr.bf16.gmra.mxu0 %v8074_v23 }
 0x286   : > { %v9686_v55 = vpack.c.bf16 %v3391_v17, %v3383_v20  ;;  %v3392_v37 = vmax.f32 %v2829_v24, 0.0  ;;  %v9688_v16 = vpop.f32.mrf.mxu1  ;;  %v2833_v41 = vadd.f32 %v2832_v5, %v2640_v40  ;;  %3144 = vmatmul.mubr.bf16.gmra.mxu1 %v8075_v13  ;;  %3306 = vmatprep.mubr.bf16.mxu0 %v11810_v7  ;;  %v7811_v20 = vld [vmem:[#allocation8 + $0x3a8] ss:$12 sps:$4 sm:$0xff]   ;;  %v2650_v17 = vadd.f32 %v9616_v18, %v9595_v54  ;;  %v7817_v18 = vld [vmem:[#allocation8 + $0x390] ss:$12 sps:$4 sm:$0xff]  }
 0x287   : > { %5060 = vmatprep.mubr.bf16.mxu1 %v8814_v28  ;;  %v2834_v14 = vpop.f32.mrf.mxu0  ;;  %v8076_v28 = vld [vmem:[%s8449_s15 + $0x128] ss:$12 sps:$4 sm:$0xff]  }
 0x288   : > { %11865 = vst [vmem:[#allocation84_spill] sm:$0xff] %v9686_v55  ;;  %v9695_v51 = vpop.f32.mrf.mxu1  ;;  %v2835_v62 = vadd.f32 %v2834_v14, %v2642_v6  ;;  %v9697_v12 = vpack.c.bf16 %v3392_v37, %v3384_v39  ;;  %v3399_v5 = vmax.f32 %v2833_v41, 0.0  ;;  %v7819_v14 = vld [vmem:[#allocation8 + $0x394] ss:$12 sps:$4 sm:$0xff]   ;;  %v2652_v39 = vadd.f32 %v9623_v30, %v9601_v31 }
 0x289   : > { %v2836_v24 = vpop.f32.mrf.mxu0  ;;  %v2654_v30 = vadd.f32 %v9629_v46, %v9595_v54  ;;  %v2660_v46 = vadd.f32 %v9640_v44, %v9595_v54 }
 0x28a   : > { %11866 = vst [vmem:[#allocation85_spill] sm:$0xff] %v9697_v12  ;;  %v9701_v9 = vpop.f32.mrf.mxu1  ;;  %v2837_v13 = vadd.f32 %v2836_v24, %v2644_v53  ;;  %v3400_v29 = vmax.f32 %v2835_v62, 0.0 }
 0x28b   : > { %v2838_v40 = vpop.f32.mrf.mxu0 }
 0x28c   : > { %v3407_v60 = vmax.f32 %v2837_v13, 0.0  ;;  %v9705_v23 = vpop.f32.mrf.mxu1  ;;  %v2839_v6 = vadd.f32 %v2838_v40, %v2646_v22  ;;  %v7825_v22 = vld [vmem:[#allocation8 + $0x37c] ss:$12 sps:$4 sm:$0xff]  }
 0x28d   : > { %v2842_v37 = vpop.f32.mrf.mxu0  ;;  %3307 = vmatmul.mubr.bf16.gmra.mxu0 %v8076_v28 }
 0x28e   : > { %v9710_v55 = vpack.c.bf16 %v3407_v60, %v3399_v5  ;;  %v3408_v53 = vmax.f32 %v2839_v6, 0.0  ;;  %v9712_v24 = vpop.f32.mrf.mxu1  ;;  %v2843_v12 = vadd.f32 %v2842_v37, %v2650_v17  ;;  %5061 = vmatmul.mubr.bf16.vlgmr.msra.gmra.mxu1 %v8804_v21  ;;  %3316 = vmatprep.mubr.bf16.mxu0 %v11810_v7  ;;  %v2656_v17 = vadd.f32 %v9633_v1, %v9601_v31  ;;  %v7823_v6 = vld [vmem:[#allocation8 + $0x378] ss:$12 sps:$4 sm:$0xff]  }
 0x28f   : > { %5070 = vmatprep.mubr.bf16.mxu1 %v8838_v61  ;;  %5415 = vmatpush1.bf16.msra.mxu1 %v7811_v20  ;;  %v2844_v41 = vpop.f32.mrf.mxu0  ;;  %v8077_v61 = vld [vmem:[%s8449_s15 + $0x140] ss:$12 sps:$4 sm:$0xff]  }
 0x290   : > { %11867 = vst [vmem:[#allocation86_spill] sm:$0xff] %v9710_v55  ;;  %v9719_v28 = vpop.f32.mrf.mxu1  ;;  %v2845_v62 = vadd.f32 %v2844_v41, %v2652_v39  ;;  %5416 = vmatprep.subr.bf16.mxu1 %v7819_v14  ;;  %v9721_v13 = vpack.c.bf16 %v3408_v53, %v3400_v29  ;;  %v3415_v37 = vmax.f32 %v2843_v12, 0.0  ;;  %v7831_v53 = vld [vmem:[#allocation8 + $0x364] ss:$12 sps:$4 sm:$0xff]   ;;  %v2662_v41 = vadd.f32 %v9647_v43, %v9601_v31 }
 0x291   : > { %v2846_v40 = vpop.f32.mrf.mxu0  ;;  %v2664_v43 = vadd.f32 %v9653_v25, %v9595_v54  ;;  %v2670_v25 = vadd.f32 %v9664_v34, %v9595_v54 }
 0x292   : > { %11868 = vst [vmem:[#allocation87_spill] sm:$0xff] %v9721_v13  ;;  %v9725_v5 = vpop.f32.mrf.mxu1  ;;  %v2847_v20 = vadd.f32 %v2846_v40, %v2654_v30  ;;  %v3416_v30 = vmax.f32 %v2845_v62, 0.0 }
 0x293   : > { %v2848_v60 = vpop.f32.mrf.mxu0  ;;  %5417 = vmatpush1.bf16.msra.mxu1 %v7817_v18 }
 0x294   : > { %v3423_v39 = vmax.f32 %v2847_v20, 0.0  ;;  %v9729_v14 = vpop.f32.mrf.mxu1  ;;  %v2849_v29 = vadd.f32 %v2848_v60, %v2656_v17  ;;  %5418 = vmatprep.subr.bf16.mxu1 %v7825_v22  ;;  %v7829_v22 = vld [vmem:[#allocation8 + $0x360] ss:$12 sps:$4 sm:$0xff]  }
 0x295   : > { %v2852_v1 = vpop.f32.mrf.mxu0  ;;  %3317 = vmatmul.mubr.bf16.gmra.mxu0 %v8077_v61  ;;  %v7834_v17 = vld [vmem:[#allocation8 + $0x34c] ss:$12 sps:$4 sm:$0xff]  }
 0x296   : > { %v9734_v40 = vpack.c.bf16 %v3423_v39, %v3415_v37  ;;  %v3424_v18 = vmax.f32 %v2849_v29, 0.0  ;;  %v9736_v21 = vpop.f32.mrf.mxu1  ;;  %v2853_v44 = vadd.f32 %v2852_v1, %v2660_v46  ;;  %5071 = vmatmul.mubr.bf16.gmra.mxu1 %v8828_v27  ;;  %3326 = vmatprep.mubr.bf16.mxu0 %v11810_v7  ;;  %v2666_v46 = vadd.f32 %v9657_v33, %v9601_v31  ;;  %v7832_v29 = vld [vmem:[#allocation8 + $0x348] ss:$12 sps:$4 sm:$0xff]  }
 0x297   : > { %5080 = vmatprep.mubr.bf16.mxu1 %v8862_v2  ;;  %v2854_v12 = vpop.f32.mrf.mxu0  ;;  %5419 = vmatpush1.bf16.msra.mxu1 %v7823_v6  ;;  %v8078_v2 = vld [vmem:[%s8449_s15 + $0x158] ss:$12 sps:$4 sm:$0xff]  }
 0x298   : > { %11869 = vst [vmem:[#allocation88_spill] sm:$0xff] %v9734_v40  ;;  %v9743_v61 = vpop.f32.mrf.mxu1  ;;  %v2855_v62 = vadd.f32 %v2854_v12, %v2662_v41  ;;  %5420 = vmatprep.subr.bf16.mxu1 %v7831_v53  ;;  %v9745_v20 = vpack.c.bf16 %v3424_v18, %v3416_v30  ;;  %v3431_v1 = vmax.f32 %v2853_v44, 0.0  ;;  %v7840_v18 = vld [vmem:[#allocation8 + $0x334] ss:$12 sps:$4 sm:$0xff]   ;;  %v2672_v12 = vadd.f32 %v9671_v38, %v9601_v31 }
 0x299   : > { %v2856_v60 = vpop.f32.mrf.mxu0  ;;  %v2674_v38 = vadd.f32 %v9677_v63, %v9595_v54  ;;  %v2680_v63 = vadd.f32 %v9688_v16, %v9595_v54 }
 0x29a   : > { %11870 = vst [vmem:[#allocation89_spill] sm:$0xff] %v9745_v20  ;;  %v9749_v37 = vpop.f32.mrf.mxu1  ;;  %v2857_v39 = vadd.f32 %v2856_v60, %v2664_v43  ;;  %v3432_v43 = vmax.f32 %v2855_v62, 0.0 }
 0x29b   : > { %v2858_v6 = vpop.f32.mrf.mxu0  ;;  %5421 = vmatpush1.bf16.msra.mxu1 %v7829_v22 }
 0x29c   : > { %v3439_v41 = vmax.f32 %v2857_v39, 0.0  ;;  %v9753_v53 = vpop.f32.mrf.mxu1  ;;  %v2859_v30 = vadd.f32 %v2858_v6, %v2666_v46  ;;  %5422 = vmatprep.subr.bf16.mxu1 %v7834_v17  ;;  %v7838_v17 = vld [vmem:[#allocation8 + $0x330] ss:$12 sps:$4 sm:$0xff]  }
 0x29d   : > { %v2862_v33 = vpop.f32.mrf.mxu0  ;;  %3327 = vmatmul.mubr.bf16.gmra.mxu0 %v8078_v2  ;;  %v7846_v46 = vld [vmem:[#allocation8 + $0x31c] ss:$12 sps:$4 sm:$0xff]  }
 0x29e   : > { %v9758_v60 = vpack.c.bf16 %v3439_v41, %v3431_v1  ;;  %v3440_v22 = vmax.f32 %v2859_v30, 0.0  ;;  %v9760_v27 = vpop.f32.mrf.mxu1  ;;  %v2863_v34 = vadd.f32 %v2862_v33, %v2670_v25  ;;  %5081 = vmatmul.mubr.bf16.gmra.mxu1 %v8852_v15  ;;  %3336 = vmatprep.mubr.bf16.mxu0 %v11810_v7  ;;  %v2676_v7 = vadd.f32 %v9681_v10, %v9601_v31  ;;  %v7844_v41 = vld [vmem:[#allocation8 + $0x318] ss:$12 sps:$4 sm:$0xff]  }
 0x29f   : > { %5090 = vmatprep.mubr.bf16.mxu1 %v8889_v32  ;;  %v2864_v44 = vpop.f32.mrf.mxu0  ;;  %5423 = vmatpush1.bf16.msra.mxu1 %v7832_v29 }
 0x2a0   : > { %11871 = vst [vmem:[#allocation90_spill] sm:$0xff] %v9758_v60  ;;  %v9767_v2 = vpop.f32.mrf.mxu1  ;;  %v2865_v62 = vadd.f32 %v2864_v44, %v2672_v12  ;;  %5424 = vmatprep.subr.bf16.mxu1 %v7840_v18  ;;  %v9769_v39 = vpack.c.bf16 %v3440_v22, %v3432_v43  ;;  %v3447_v30 = vmax.f32 %v2863_v34, 0.0  ;;  %v7852_v43 = vld [vmem:[#allocation8 + $0x304] ss:$12 sps:$4 sm:$0xff]   ;;  %v2682_v22 = vadd.f32 %v9695_v51, %v9601_v31  ;;  %v8079_v44 = vld [vmem:[%s8449_s15 + $0x170] ss:$12 sps:$4 sm:$0xff]  }
 0x2a1   : > { %v2866_v6 = vpop.f32.mrf.mxu0  ;;  %v2684_v51 = vadd.f32 %v9701_v9, %v9595_v54  ;;  %v2690_v9 = vadd.f32 %v9712_v24, %v9595_v54  ;;  %s8194_s15 = scalar_lea.vmem %s8193_s12, 24576 }
 0x2a2   : > { %11872 = vst [vmem:[#allocation91_spill] sm:$0xff] %v9769_v39  ;;  %v9773_v25 = vpop.f32.mrf.mxu1  ;;  %v2867_v1 = vadd.f32 %v2866_v6, %v2674_v38  ;;  %v3448_v38 = vmax.f32 %v2865_v62, 0.0  ;;  %p8196_p3 = scmp.lt.s32.totalorder %s8194_s15, %s8188_s23 }
 0x2a3   : > { %v2868_v29 = vpop.f32.mrf.mxu0  ;;  %5425 = vmatpush1.bf16.msra.mxu1 %v7838_v17 }
 0x2a4   : > { %v3455_v12 = vmax.f32 %v2867_v1, 0.0  ;;  %v9777_v18 = vpop.f32.mrf.mxu1  ;;  %v2869_v33 = vadd.f32 %v2868_v29, %v2676_v7  ;;  %5426 = vmatprep.subr.bf16.mxu1 %v7846_v46  ;;  %v7850_v46 = vld [vmem:[#allocation8 + $0x300] ss:$12 sps:$4 sm:$0xff]   ;;  %p8197_p7 = por %p8196_p3, %p8195_p5 }
 0x2a5   : > { %v2872_v10 = vpop.f32.mrf.mxu0  ;;  %3337 = vmatmul.mubr.bf16.gmra.mxu0 %v8079_v44  ;;  %v7858_v1 = vld [vmem:[#allocation8 + $0x46c] ss:$12 sps:$4 sm:$0xff]  }
 0x2a6   : > { %v9782_v6 = vpack.c.bf16 %v3455_v12, %v3447_v30  ;;  %v3456_v17 = vmax.f32 %v2869_v33, 0.0  ;;  %v9784_v32 = vpop.f32.mrf.mxu1  ;;  %v2873_v16 = vadd.f32 %v2872_v10, %v2680_v63  ;;  %5091 = vmatmul.mubr.bf16.gmra.mxu1 %v8879_v35  ;;  %5253 = vmatprep.mubr.bf16.mxu0 %v9259_v0  ;;  %v2686_v30 = vadd.f32 %v9705_v23, %v9601_v31  ;;  %p8198_p9 = pnand %p8197_p7, %p8191_p0 }
 0x2a7   : > { %5100 = vmatprep.mubr.bf16.mxu1 %v8913_v58  ;;  %v2874_v34 = vpop.f32.mrf.mxu0  ;;  %5427 = vmatpush1.bf16.msra.mxu1 %v7844_v41  ;;  %v7835_v41 = vld [vmem:[#allocation8 + $0x528] ss:$12 sps:$4 sm:$0xff]   ;;  %v2692_v23 = vadd.f32 %v9719_v28, %v9601_v31  ;;  %v7841_v28 = vld [vmem:[#allocation8 + $0x510] ss:$12 sps:$4 sm:$0xff]  }
 0x2a8   : > { %11873 = vst [vmem:[#allocation92_spill] sm:$0xff] %v9782_v6  ;;  %v9791_v7 = vpop.f32.mrf.mxu1  ;;  %v2875_v62 = vadd.f32 %v2874_v34, %v2682_v22  ;;  %5428 = vmatprep.subr.bf16.mxu1 %v7852_v43  ;;  %v9793_v29 = vpack.c.bf16 %v3456_v17, %v3448_v38  ;;  %v3463_v44 = vmax.f32 %v2873_v16, 0.0  ;;  %v7843_v38 = vld [vmem:[#allocation8 + $0x514] ss:$12 sps:$4 sm:$0xff]  }
 0x2a9   : > { %v2876_v63 = vpop.f32.mrf.mxu0  ;;  %v7856_v17 = vld [vmem:[#allocation8 + $0x468] ss:$12 sps:$4 sm:$0xff]  }
 0x2aa   : > { %11874 = vst [vmem:[#allocation93_spill] sm:$0xff] %v9793_v29  ;;  %v9797_v12 = vpop.f32.mrf.mxu1  ;;  %v2877_v33 = vadd.f32 %v2876_v63, %v2684_v51  ;;  %v7864_v51 = vld [vmem:[#allocation8 + $0x454] ss:$12 sps:$4 sm:$0xff]   ;;  %v3464_v63 = vmax.f32 %v2875_v62, 0.0  ;;  %v7849_v62 = vld [vmem:[#allocation8 + $0x4fc] ss:$12 sps:$4 sm:$0xff]  }
 0x2ab   : > { %v2878_v10 = vpop.f32.mrf.mxu0  ;;  %5429 = vmatpush1.bf16.msra.mxu1 %v7850_v46 }
 0x2ac   : > { %v3471_v58 = vmax.f32 %v2877_v33, 0.0  ;;  %v9801_v22 = vpop.f32.mrf.mxu1  ;;  %v2879_v43 = vadd.f32 %v2878_v10, %v2686_v30  ;;  %5430 = vmatprep.subr.bf16.mxu1 %v7858_v1  ;;  %v2694_v30 = vadd.f32 %v9725_v5, %v9595_v54  ;;  %v7862_v10 = vld [vmem:[#allocation8 + $0x450] ss:$12 sps:$4 sm:$0xff]   ;;  %v7847_v5 = vld [vmem:[#allocation8 + $0x4f8] ss:$12 sps:$4 sm:$0xff]  }
 0x2ad   : > { %v2882_v34 = vpop.f32.mrf.mxu0  ;;  %5254 = vmatmul.mubr.bf16.vlgmr.msra.gmra.mxu0 %v9248_v11 }
 0x2ae   : > { %v9806_v46 = vpack.c.bf16 %v3471_v58, %v3463_v44  ;;  %v3472_v0 = vmax.f32 %v2879_v43, 0.0  ;;  %v9808_v24 = vpop.f32.mrf.mxu1  ;;  %v2883_v16 = vadd.f32 %v2882_v34, %v2690_v9  ;;  %5101 = vmatmul.mubr.bf16.gmra.mxu1 %v8903_v56  ;;  %5263 = vmatprep.mubr.bf16.mxu0 %v9283_v47  ;;  %v7870_v43 = vld [vmem:[#allocation8 + $0x43c] ss:$12 sps:$4 sm:$0xff]  }
 0x2af   : > { %5110 = vmatprep.mubr.bf16.mxu1 %v8937_v19  ;;  %5608 = vmatpush1.bf16.msra.mxu0 %v7835_v41  ;;  %v2884_v1 = vpop.f32.mrf.mxu0  ;;  %v2696_v41 = vadd.f32 %v9729_v14, %v9601_v31  ;;  %v2702_v14 = vadd.f32 %v9743_v61, %v9601_v31  ;;  %v7853_v61 = vld [vmem:[#allocation8 + $0x4e0] ss:$12 sps:$4 sm:$0xff]  }
 0x2b0   : > { %11875 = vst [vmem:[#allocation94_spill] sm:$0xff] %v9806_v46  ;;  %v9815_v33 = vpop.f32.mrf.mxu1  ;;  %v2885_v58 = vadd.f32 %v2884_v1, %v2692_v23  ;;  %5609 = vmatprep.subr.bf16.mxu0 %v7843_v38  ;;  %5431 = vmatpush2.bf16.msra.mxu1 %v7856_v17  ;;  %v9817_v9 = vpack.c.bf16 %v3472_v0, %v3464_v63  ;;  %v3479_v23 = vmax.f32 %v2883_v16, 0.0  ;;  %v7868_v63 = vld [vmem:[#allocation8 + $0x438] ss:$12 sps:$4 sm:$0xff]  }
 0x2b1   : > { %v2886_v44 = vpop.f32.mrf.mxu0  ;;  %5432 = vmatprep.subr.bf16.mxu1 %v7864_v51  ;;  %v2700_v38 = vadd.f32 %v9736_v21, %v9595_v54  ;;  %v7855_v51 = vld [vmem:[#allocation8 + $0x4e4] ss:$12 sps:$4 sm:$0xff]  }
 0x2b2   : > { %11876 = vst [vmem:[#allocation95_spill] sm:$0xff] %v9817_v9  ;;  %v9821_v34 = vpop.f32.mrf.mxu1  ;;  %v2887_v19 = vadd.f32 %v2886_v44, %v2694_v30  ;;  %v3480_v30 = vmax.f32 %v2885_v58, 0.0 }
 0x2b3   : > { %v2888_v47 = vpop.f32.mrf.mxu0  ;;  %5610 = vmatpush1.bf16.msra.mxu0 %v7841_v28  ;;  %v7876_v28 = vld [vmem:[#allocation8 + $0x424] ss:$12 sps:$4 sm:$0xff]  }
 0x2b4   : > { %v3487_v17 = vmax.f32 %v2887_v19, 0.0  ;;  %v9825_v1 = vpop.f32.mrf.mxu1  ;;  %v2889_v0 = vadd.f32 %v2888_v47, %v2696_v41  ;;  %5611 = vmatprep.subr.bf16.mxu0 %v7849_v62  ;;  %5433 = vmatpush2.bf16.msra.mxu1 %v7862_v10  ;;  %v11878_v47 = vld [vmem:[#allocation26_spill] sm:$0xff]  ;;  %v11879_v62 = vld [vmem:[#allocation29_spill] sm:$0xff] }
 0x2b5   : > { %v2892_v56 = vpop.f32.mrf.mxu0  ;;  %5264 = vmatmul.mubr.bf16.gmra.mxu0 %v9272_v45  ;;  %5434 = vmatprep.subr.bf16.mxu1 %v7870_v43  ;;  %v2704_v43 = vadd.f32 %v9749_v37, %v9595_v54  ;;  %v7859_v37 = vld [vmem:[#allocation8 + $0x4c8] ss:$12 sps:$4 sm:$0xff]  }
 0x2b6   : > { %v9830_v44 = vpack.c.bf16 %v3487_v17, %v3479_v23  ;;  %v3488_v21 = vmax.f32 %v2889_v0, 0.0  ;;  %v9832_v19 = vpop.f32.mrf.mxu1  ;;  %v2893_v16 = vadd.f32 %v2892_v56, %v2700_v38  ;;  %5111 = vmatmul.mubr.bf16.gmra.mxu1 %v11878_v47  ;;  %5273 = vmatprep.mubr.bf16.mxu0 %v9307_v36  ;;  %v7861_v23 = vld [vmem:[#allocation8 + $0x4cc] ss:$12 sps:$4 sm:$0xff]  }
 0x2b7   : > { %5120 = vmatprep.mubr.bf16.mxu1 %v11879_v62  ;;  %v2894_v10 = vpop.f32.mrf.mxu0  ;;  %5612 = vmatpush1.bf16.msra.mxu0 %v7847_v5  ;;  %v7874_v17 = vld [vmem:[#allocation8 + $0x420] ss:$12 sps:$4 sm:$0xff]   ;;  %v2706_v62 = vadd.f32 %v9753_v53, %v9601_v31  ;;  %v2712_v53 = vadd.f32 %v9767_v2, %v9601_v31  ;;  %v7865_v2 = vld [vmem:[#allocation8 + $0x4b0] ss:$12 sps:$4 sm:$0xff]  }
 0x2b8   : > { %11877 = vst [vmem:[#allocation96_spill] sm:$0xff] %v9830_v44  ;;  %v9839_v41 = vpop.f32.mrf.mxu1  ;;  %v2895_v58 = vadd.f32 %v2894_v10, %v2702_v14  ;;  %5613 = vmatprep.subr.bf16.mxu0 %v7855_v51  ;;  %5435 = vmatpush2.bf16.msra.mxu1 %v7868_v63  ;;  %v9841_v56 = vpack.c.bf16 %v3488_v21, %v3480_v30  ;;  %v7882_v0 = vld [vmem:[#allocation8 + $0x40c] ss:$12 sps:$4 sm:$0xff]   ;;  %v3495_v14 = vmax.f32 %v2893_v16, 0.0  ;;  %v7880_v21 = vld [vmem:[#allocation8 + $0x408] ss:$12 sps:$4 sm:$0xff]  }
 0x2b9   : > { %v2896_v38 = vpop.f32.mrf.mxu0  ;;  %5436 = vmatprep.subr.bf16.mxu1 %v7876_v28  ;;  %v2710_v51 = vadd.f32 %v9760_v27, %v9595_v54  ;;  %v7867_v28 = vld [vmem:[#allocation8 + $0x4b4] ss:$12 sps:$4 sm:$0xff]  }
 0x2ba   : > { %11880 = vst [vmem:[#allocation97_spill] sm:$0xff] %v9841_v56  ;;  %v9845_v5 = vpop.f32.mrf.mxu1  ;;  %v2897_v36 = vadd.f32 %v2896_v38, %v2704_v43  ;;  %v3496_v43 = vmax.f32 %v2895_v58, 0.0 }
 0x2bb   : > { %v2898_v47 = vpop.f32.mrf.mxu0  ;;  %5614 = vmatpush1.bf16.msra.mxu0 %v7853_v61  ;;  %v7888_v61 = vld [vmem:[#allocation8 + $0x3f4] ss:$12 sps:$4 sm:$0xff]  }
 0x2bc   : > { %v3503_v63 = vmax.f32 %v2897_v36, 0.0  ;;  %v9849_v10 = vpop.f32.mrf.mxu1  ;;  %v2899_v30 = vadd.f32 %v2898_v47, %v2706_v62  ;;  %5615 = vmatprep.subr.bf16.mxu0 %v7861_v23  ;;  %5437 = vmatpush2.bf16.msra.mxu1 %v7874_v17  ;;  %v11882_v47 = vld [vmem:[#allocation28_spill] sm:$0xff]  ;;  %v11883_v62 = vld [vmem:[#allocation31_spill] sm:$0xff]  ;;  %v2714_v17 = vadd.f32 %v9773_v25, %v9595_v54 }
 0x2bd   : > { %v2902_v45 = vpop.f32.mrf.mxu0  ;;  %5274 = vmatmul.mubr.bf16.gmra.mxu0 %v9296_v26  ;;  %5438 = vmatprep.subr.bf16.mxu1 %v7882_v0  ;;  %v7871_v25 = vld [vmem:[#allocation8 + $0x498] ss:$12 sps:$4 sm:$0xff]  }
 0x2be   : > { %v9854_v38 = vpack.c.bf16 %v3503_v63, %v3495_v14  ;;  %v3504_v27 = vmax.f32 %v2899_v30, 0.0  ;;  %v9856_v36 = vpop.f32.mrf.mxu1  ;;  %v2903_v16 = vadd.f32 %v2902_v45, %v2710_v51  ;;  %5121 = vmatmul.mubr.bf16.gmra.mxu1 %v11882_v47  ;;  %5283 = vmatprep.mubr.bf16.mxu0 %v9331_v50  ;;  %v7873_v14 = vld [vmem:[#allocation8 + $0x49c] ss:$12 sps:$4 sm:$0xff]  }
 0x2bf   : > { %5130 = vmatprep.mubr.bf16.mxu1 %v11883_v62  ;;  %v2904_v23 = vpop.f32.mrf.mxu0  ;;  %5616 = vmatpush1.bf16.msra.mxu0 %v7859_v37  ;;  %v7886_v63 = vld [vmem:[#allocation8 + $0x3f0] ss:$12 sps:$4 sm:$0xff]   ;;  %v2716_v62 = vadd.f32 %v9777_v18, %v9601_v31  ;;  %v2722_v18 = vadd.f32 %v9791_v7, %v9601_v31  ;;  %v7877_v7 = vld [vmem:[#allocation8 + $0x480] ss:$12 sps:$4 sm:$0xff]  }
 0x2c0   : > { %11881 = vst [vmem:[#allocation98_spill] sm:$0xff] %v9854_v38  ;;  %v9863_v0 = vpop.f32.mrf.mxu1  ;;  %v2905_v58 = vadd.f32 %v2904_v23, %v2712_v53  ;;  %5617 = vmatprep.subr.bf16.mxu0 %v7867_v28  ;;  %5439 = vmatpush2.bf16.msra.mxu1 %v7880_v21  ;;  %v9865_v45 = vpack.c.bf16 %v3504_v27, %v3496_v43  ;;  %v7894_v30 = vld [vmem:[#allocation8 + $0x3dc] ss:$12 sps:$4 sm:$0xff]   ;;  %v3511_v53 = vmax.f32 %v2903_v16, 0.0  ;;  %v7892_v27 = vld [vmem:[#allocation8 + $0x3d8] ss:$12 sps:$4 sm:$0xff]  }
 0x2c1   : > { %v2906_v51 = vpop.f32.mrf.mxu0  ;;  %5440 = vmatprep.subr.bf16.mxu1 %v7888_v61  ;;  %v2720_v28 = vadd.f32 %v9784_v32, %v9595_v54  ;;  %v7879_v61 = vld [vmem:[#allocation8 + $0x484] ss:$12 sps:$4 sm:$0xff]  }
 0x2c2   : > { %11884 = vst [vmem:[#allocation99_spill] sm:$0xff] %v9865_v45  ;;  %v9869_v37 = vpop.f32.mrf.mxu1  ;;  %v2907_v50 = vadd.f32 %v2906_v51, %v2714_v17  ;;  %v3512_v17 = vmax.f32 %v2905_v58, 0.0 }
 0x2c3   : > { %v2908_v47 = vpop.f32.mrf.mxu0  ;;  %5618 = vmatpush1.bf16.msra.mxu0 %v7865_v2  ;;  %v7900_v2 = vld [vmem:[#allocation8 + $0x3c4] ss:$12 sps:$4 sm:$0xff]  }
 0x2c4   : > { %v3519_v21 = vmax.f32 %v2907_v50, 0.0  ;;  %v9873_v23 = vpop.f32.mrf.mxu1  ;;  %v2909_v43 = vadd.f32 %v2908_v47, %v2716_v62  ;;  %5619 = vmatprep.subr.bf16.mxu0 %v7873_v14  ;;  %5441 = vmatpush2.bf16.msra.mxu1 %v7886_v63  ;;  %v11886_v47 = vld [vmem:[#allocation30_spill] sm:$0xff]  ;;  %v2724_v14 = vadd.f32 %v9797_v12, %v9595_v54  ;;  %v7883_v12 = vld [vmem:[#allocation8 + $0x5e8] ss:$12 sps:$4 sm:$0xff]  }
 0x2c5   : > { %v2912_v26 = vpop.f32.mrf.mxu0  ;;  %5284 = vmatmul.mubr.bf16.gmra.mxu0 %v9320_v42  ;;  %5442 = vmatprep.subr.bf16.mxu1 %v7894_v30  ;;  %v7885_v30 = vld [vmem:[#allocation8 + $0x5ec] ss:$12 sps:$4 sm:$0xff]  }
 0x2c6   : > { %v9878_v51 = vpack.c.bf16 %v3519_v21, %v3511_v53  ;;  %v3520_v32 = vmax.f32 %v2909_v43, 0.0  ;;  %v9880_v50 = vpop.f32.mrf.mxu1  ;;  %v2913_v16 = vadd.f32 %v2912_v26, %v2720_v28  ;;  %5131 = vmatmul.mubr.bf16.gmra.mxu1 %v11886_v47  ;;  %5293 = vmatprep.mubr.bf16.mxu0 %v9355_v8  ;;  %v7898_v53 = vld [vmem:[#allocation8 + $0x3c0] ss:$12 sps:$4 sm:$0xff]   ;;  %v7907_v21 = vld [vmem:[#allocation8 + $0x170] ss:$12 sps:$4 sm:$0xff]   ;;  %v2726_v43 = vadd.f32 %v9801_v22, %v9601_v31 }
 0x2c7   : > { %5140 = vmatprep.mubr.bf16.mxu1 %v9048_v49  ;;  %v2914_v62 = vpop.f32.mrf.mxu0  ;;  %5620 = vmatpush1.bf16.msra.mxu0 %v7871_v25  ;;  %v2732_v22 = vadd.f32 %v9815_v33, %v9601_v31  ;;  %v7889_v33 = vld [vmem:[#allocation8 + $0x5d0] ss:$12 sps:$4 sm:$0xff]  }
 0x2c8   : > { %11885 = vst [vmem:[#allocation100_spill] sm:$0xff] %v9878_v51  ;;  %v9887_v63 = vpop.f32.mrf.mxu1  ;;  %v2915_v58 = vadd.f32 %v2914_v62, %v2722_v18  ;;  %5621 = vmatprep.subr.bf16.mxu0 %v7879_v61  ;;  %5443 = vmatpush2.bf16.msra.mxu1 %v7892_v27  ;;  %v9889_v26 = vpack.c.bf16 %v3520_v32, %v3512_v17  ;;  %v3527_v18 = vmax.f32 %v2913_v16, 0.0 }
 0x2c9   : > { %v2916_v28 = vpop.f32.mrf.mxu0  ;;  %5444 = vmatprep.subr.bf16.mxu1 %v7900_v2  ;;  %v2730_v61 = vadd.f32 %v9808_v24, %v9595_v54  ;;  %v7891_v2 = vld [vmem:[#allocation8 + $0x5d4] ss:$12 sps:$4 sm:$0xff]  }
 0x2ca   : > { %11887 = vst [vmem:[#allocation101_spill] sm:$0xff] %v9889_v26  ;;  %v9893_v25 = vpop.f32.mrf.mxu1  ;;  %v2917_v49 = vadd.f32 %v2916_v28, %v2724_v14 }
 0x2cb   : > { %v2918_v8 = vpop.f32.mrf.mxu0  ;;  %5622 = vmatpush1.bf16.msra.mxu0 %v7877_v7  ;;  %v3528_v7 = vmax.f32 %v2915_v58, 0.0  ;;  %v2764_v35 = vadd.f32 %v9893_v25, %v9595_v54 }
 0x2cc   : > { %v3535_v27 = vmax.f32 %v2917_v49, 0.0  ;;  %v9897_v62 = vpop.f32.mrf.mxu1  ;;  %v2919_v17 = vadd.f32 %v2918_v8, %v2726_v43  ;;  %5623 = vmatprep.subr.bf16.mxu0 %v7885_v30  ;;  %5445 = vmatpush2.bf16.msra.mxu1 %v7898_v53  ;;  %v11889_v49 = vld [vmem:[#allocation32_spill] sm:$0xff]  ;;  %v2734_v30 = vadd.f32 %v9821_v34, %v9595_v54  ;;  %v2740_v34 = vadd.f32 %v9832_v19, %v9595_v54  ;;  %v11893_v19 = vld [vmem:[#allocation34_spill] sm:$0xff] }
 0x2cd   : > { %v2922_v32 = vpop.f32.mrf.mxu0  ;;  %5294 = vmatmul.mubr.bf16.gmra.mxu0 %v9344_v48  ;;  %7107 = vmatprep.subr.bf16.mxu1 %v7907_v21  ;;  %v7897_v21 = vld [vmem:[#allocation8 + $0x5bc] ss:$12 sps:$4 sm:$0xff]  }
 0x2ce   : > { %v9902_v14 = vpack.c.bf16 %v3535_v27, %v3527_v18  ;;  %v3536_v28 = vmax.f32 %v2919_v17, 0.0  ;;  %v2923_v24 = vadd.f32 %v2922_v32, %v2730_v61  ;;  %v9904_v16 = vpop.f32.mrf.mxu1  ;;  %5141 = vmatmul.mubr.bf16.gmra.mxu1 %v11889_v49  ;;  %5303 = vmatprep.mubr.bf16.mxu0 %v9379_v59  ;;  %v2736_v18 = vadd.f32 %v9825_v1, %v9601_v31 }
 0x2cf   : > { %5150 = vmatprep.mubr.bf16.mxu1 %v9082_v57  ;;  %v2924_v8 = vpop.f32.mrf.mxu0  ;;  %5624 = vmatpush2.bf16.msra.mxu0 %v7883_v12  ;;  %v7895_v12 = vld [vmem:[#allocation8 + $0x5b8] ss:$12 sps:$4 sm:$0xff]  }
 0x2d0   : > { %11888 = vst [vmem:[#allocation102_spill] sm:$0xff] %v9902_v14  ;;  %v2925_v53 = vadd.f32 %v2924_v8, %v2732_v22  ;;  %v9911_v58 = vpop.f32.mrf.mxu1  ;;  %5625 = vmatprep.subr.bf16.mxu0 %v7891_v2  ;;  %v9913_v43 = vpack.c.bf16 %v3536_v28, %v3528_v7  ;;  %v3543_v22 = vmax.f32 %v2923_v24, 0.0  ;;  %v7903_v7 = vld [vmem:[#allocation8 + $0x5a4] ss:$12 sps:$4 sm:$0xff]   ;;  %v2742_v28 = vadd.f32 %v9839_v41, %v9601_v31 }
 0x2d1   : > { %v2926_v61 = vpop.f32.mrf.mxu0  ;;  %v11894_v24 = vld [vmem:[#allocation61_spill] sm:$0xff]  ;;  %v2744_v41 = vadd.f32 %v9845_v5, %v9595_v54  ;;  %v2750_v5 = vadd.f32 %v9856_v36, %v9595_v54  ;;  %v11899_v36 = vld [vmem:[#allocation36_spill] sm:$0xff] }
 0x2d2   : > { %11890 = vst [vmem:[#allocation103_spill] sm:$0xff] %v9913_v43  ;;  %v2927_v27 = vadd.f32 %v2926_v61, %v2734_v30  ;;  %v9917_v17 = vpop.f32.mrf.mxu1  ;;  %v11891_v30 = vld [vmem:[#allocation58_spill] sm:$0xff]  ;;  %v3544_v61 = vmax.f32 %v2925_v53, 0.0 }
 0x2d3   : > { %v2928_v32 = vpop.f32.mrf.mxu0  ;;  %5626 = vmatpush2.bf16.msra.mxu0 %v7889_v33 }
 0x2d4   : > { %v3551_v8 = vmax.f32 %v2927_v27, 0.0  ;;  %v2929_v57 = vadd.f32 %v2928_v32, %v2736_v18  ;;  %v9921_v2 = vpop.f32.mrf.mxu1  ;;  %5627 = vmatprep.subr.bf16.mxu0 %v7897_v21  ;;  %v11895_v18 = vld [vmem:[#allocation37_spill] sm:$0xff]  ;;  %v7901_v27 = vld [vmem:[#allocation8 + $0x5a0] ss:$12 sps:$4 sm:$0xff]  }
 0x2d5   : > { %v2932_v1 = vpop.f32.mrf.mxu0  ;;  %5304 = vmatmul.mubr.bf16.gmra.mxu0 %v11891_v30 }
 0x2d6   : > { %v9926_v59 = vpack.c.bf16 %v3551_v8, %v3543_v22  ;;  %v3552_v33 = vmax.f32 %v2929_v57, 0.0  ;;  %v2933_v49 = vadd.f32 %v2932_v1, %v2740_v34  ;;  %v9928_v48 = vpop.f32.mrf.mxu1  ;;  %5151 = vmatmul.mubr.bf16.gmra.mxu1 %v11893_v19  ;;  %5313 = vmatprep.mubr.bf16.mxu0 %v11894_v24  ;;  %v7906_v57 = vld [vmem:[#allocation8 + $0x58c] ss:$12 sps:$4 sm:$0xff]   ;;  %v2746_v8 = vadd.f32 %v9849_v10, %v9601_v31 }
 0x2d7   : > { %5160 = vmatprep.mubr.bf16.mxu1 %v11895_v18  ;;  %v2934_v21 = vpop.f32.mrf.mxu0  ;;  %5628 = vmatpush2.bf16.msra.mxu0 %v7895_v12  ;;  %v7904_v12 = vld [vmem:[#allocation8 + $0x588] ss:$12 sps:$4 sm:$0xff]  }
 0x2d8   : > { %11892 = vst [vmem:[#allocation104_spill] sm:$0xff] %v9926_v59  ;;  %v2935_v32 = vadd.f32 %v2934_v21, %v2742_v28  ;;  %v9935_v53 = vpop.f32.mrf.mxu1  ;;  %5629 = vmatprep.subr.bf16.mxu0 %v7903_v7  ;;  %v9937_v34 = vpack.c.bf16 %v3552_v33, %v3544_v61  ;;  %v3559_v28 = vmax.f32 %v2933_v49, 0.0  ;;  %v7911_v61 = vld [vmem:[#allocation8 + $0x574] ss:$12 sps:$4 sm:$0xff]   ;;  %v2752_v33 = vadd.f32 %v9863_v0, %v9601_v31  ;;  %v11932_v59 = vld [vmem:[#allocation72_spill] sm:$0xff] }
 0x2d9   : > { %v2936_v22 = vpop.f32.mrf.mxu0  ;;  %v11900_v49 = vld [vmem:[#allocation63_spill] sm:$0xff]  ;;  %v2754_v0 = vadd.f32 %v9869_v37, %v9595_v54  ;;  %v2760_v37 = vadd.f32 %v9880_v50, %v9595_v54 }
 0x2da   : > { %11896 = vst [vmem:[#allocation105_spill] sm:$0xff] %v9937_v34  ;;  %v2937_v1 = vadd.f32 %v2936_v22, %v2744_v41  ;;  %v9941_v24 = vpop.f32.mrf.mxu1  ;;  %v11897_v41 = vld [vmem:[#allocation60_spill] sm:$0xff]  ;;  %v3560_v22 = vmax.f32 %v2935_v32, 0.0 }
 0x2db   : > { %v2938_v18 = vpop.f32.mrf.mxu0  ;;  %5630 = vmatpush2.bf16.msra.mxu0 %v7901_v27 }
 0x2dc   : > { %v3567_v21 = vmax.f32 %v2937_v1, 0.0  ;;  %v2939_v19 = vadd.f32 %v2938_v18, %v2746_v8  ;;  %v9945_v7 = vpop.f32.mrf.mxu1  ;;  %5631 = vmatprep.subr.bf16.mxu0 %v7906_v57  ;;  %v11901_v18 = vld [vmem:[#allocation39_spill] sm:$0xff]  ;;  %v7909_v8 = vld [vmem:[#allocation8 + $0x570] ss:$12 sps:$4 sm:$0xff]  }
 0x2dd   : > { %v2942_v10 = vpop.f32.mrf.mxu0  ;;  %5314 = vmatmul.mubr.bf16.gmra.mxu0 %v11897_v41 }
 0x2de   : > { %v9950_v30 = vpack.c.bf16 %v3567_v21, %v3559_v28  ;;  %v3568_v27 = vmax.f32 %v2939_v19, 0.0  ;;  %v2943_v47 = vadd.f32 %v2942_v10, %v2750_v5  ;;  %v9952_v42 = vpop.f32.mrf.mxu1  ;;  %5161 = vmatmul.mubr.bf16.gmra.mxu1 %v11899_v36  ;;  %5323 = vmatprep.mubr.bf16.mxu0 %v11900_v49  ;;  %v7914_v19 = vld [vmem:[#allocation8 + $0x55c] ss:$12 sps:$4 sm:$0xff]   ;;  %v2756_v21 = vadd.f32 %v9873_v23, %v9601_v31 }
 0x2df   : > { %5170 = vmatprep.mubr.bf16.mxu1 %v11901_v18  ;;  %v2944_v57 = vpop.f32.mrf.mxu0  ;;  %5632 = vmatpush2.bf16.msra.mxu0 %v7904_v12  ;;  %v7912_v12 = vld [vmem:[#allocation8 + $0x558] ss:$12 sps:$4 sm:$0xff]   ;;  %v573_v23 = vsub.s32 6, %v8755_v4 }
 0x2e0   : > { %11898 = vst [vmem:[#allocation106_spill] sm:$0xff] %v9950_v30  ;;  %v2945_v1 = vadd.f32 %v2944_v57, %v2752_v33  ;;  %v9959_v32 = vpop.f32.mrf.mxu1  ;;  %5633 = vmatprep.subr.bf16.mxu0 %v7911_v61  ;;  %v9961_v5 = vpack.c.bf16 %v3568_v27, %v3560_v22  ;;  %v3575_v33 = vmax.f32 %v2943_v47, 0.0  ;;  %v7919_v22 = vld [vmem:[#allocation8 + $0x544] ss:$12 sps:$4 sm:$0xff]   ;;  %v2762_v27 = vadd.f32 %v9887_v63, %v9601_v31  ;;  %v7917_v63 = vld [vmem:[#allocation8 + $0x540] ss:$12 sps:$4 sm:$0xff]  }
 0x2e1   : > { %v2946_v28 = vpop.f32.mrf.mxu0 }
 0x2e2   : > { %11902 = vst [vmem:[#allocation107_spill] sm:$0xff] %v9961_v5  ;;  %v2947_v10 = vadd.f32 %v2946_v28, %v2754_v0  ;;  %v9965_v49 = vpop.f32.mrf.mxu1  ;;  %v11903_v28 = vld [vmem:[#allocation62_spill] sm:$0xff] }
 0x2e3   : > { %v2948_v18 = vpop.f32.mrf.mxu0  ;;  %5634 = vmatpush2.bf16.msra.mxu0 %v7909_v8  ;;  %v3576_v8 = vmax.f32 %v2945_v1, 0.0  ;;  %v577_v1 = vsub.s32 7, %v8755_v4 }
 0x2e4   : > { %v3583_v57 = vmax.f32 %v2947_v10, 0.0  ;;  %v2949_v36 = vadd.f32 %v2948_v18, %v2756_v21  ;;  %v9969_v61 = vpop.f32.mrf.mxu1  ;;  %5635 = vmatprep.subr.bf16.mxu0 %v7914_v19  ;;  %v11905_v18 = vld [vmem:[#allocation38_spill] sm:$0xff]  ;;  %v11906_v21 = vld [vmem:[#allocation65_spill] sm:$0xff] }
 0x2e5   : > { %v2952_v0 = vpop.f32.mrf.mxu0  ;;  %5324 = vmatmul.mubr.bf16.gmra.mxu0 %v11903_v28  ;;  %v11907_v19 = vld [vmem:[#allocation41_spill] sm:$0xff] }
 0x2e6   : > { %v9975_v41 = vpack.c.bf16 %v3583_v57, %v3575_v33  ;;  %v3584_v11 = vmax.f32 %v2949_v36, 0.0  ;;  %v2953_v50 = vadd.f32 %v2952_v0, %v2760_v37  ;;  %v9977_v47 = vpop.f32.mrf.mxu1  ;;  %5171 = vmatmul.mubr.bf16.gmra.mxu1 %v11905_v18  ;;  %5333 = vmatprep.mubr.bf16.mxu0 %v11906_v21  ;;  %v7921_v36 = vld [vmem:[#allocation8 + $0x2f0] ss:$12 sps:$4 sm:$0xff]   ;;  %v2766_v21 = vadd.f32 %v9897_v62, %v9601_v31 }
 0x2e7   : > { %5180 = vmatprep.mubr.bf16.mxu1 %v11907_v19  ;;  %v2954_v10 = vpop.f32.mrf.mxu0  ;;  %5636 = vmatpush2.bf16.msra.mxu0 %v7912_v12  ;;  %v8080_v19 = vld [vmem:[#allocation7] sm:$0xff] }
 0x2e8   : > { %11904 = vst [vmem:[#allocation108_spill] sm:$0xff] %v9975_v41  ;;  %v2955_v33 = vadd.f32 %v2954_v10, %v2762_v27  ;;  %v9985_v57 = vpop.f32.mrf.mxu1  ;;  %5637 = vmatprep.subr.bf16.mxu0 %v7919_v22  ;;  %v9987_v37 = vpack.c.bf16 %v3584_v11, %v3576_v8  ;;  %v9991_v18 = vrot.slane %v8080_v19, %v573_v23  ;;  %v3591_v27 = vmax.f32 %v2953_v50, 0.0  ;;  %v11909_v8 = vld [vmem:[#allocation64_spill] sm:$0xff]  ;;  %v11912_v50 = vld [vmem:[#allocation67_spill] sm:$0xff] }
 0x2e9   : > { %v2956_v0 = vpop.f32.mrf.mxu0  ;;  %v9995_v25 = vrot.slane %v8080_v19, %v577_v1  ;;  %v11911_v19 = vld [vmem:[#allocation40_spill] sm:$0xff] }
 0x2ea   : > { %11908 = vst [vmem:[#allocation109_spill] sm:$0xff] %v9987_v37  ;;  %v2957_v12 = vadd.f32 %v2956_v0, %v2764_v35  ;;  %v9993_v28 = vpop.f32.mrf.mxu1  ;;  %v2996_v31 = vadd.f32 %v9904_v16, %v9991_v18  ;;  %v3592_v62 = vmax.f32 %v2955_v33, 0.0 }
 0x2eb   : > { %v2958_v54 = vpop.f32.mrf.mxu0  ;;  %5638 = vmatpush2.bf16.msra.mxu0 %v7917_v63  ;;  %v2998_v1 = vadd.f32 %v9911_v58, %v9995_v25 }
 0x2ec   : > { %v3599_v10 = vmax.f32 %v2957_v12, 0.0  ;;  %v2959_v22 = vadd.f32 %v2958_v54, %v2766_v21  ;;  %v9997_v15 = vpop.f32.mrf.mxu1  ;;  %7219 = vmatprep.subr.bf16.mxu0 %v7921_v36  ;;  %v11913_v21 = vld [vmem:[#allocation43_spill] sm:$0xff]  ;;  %v3000_v36 = vadd.f32 %v9917_v17, %v9991_v18 }
 0x2ed   : > { %v3188_v11 = vpop.f32.mrf.mxu0  ;;  %5334 = vmatmul.mubr.bf16.gmra.mxu0 %v11909_v8 }
 0x2ee   : > { %v10002_v35 = vpack.c.bf16 %v3599_v10, %v3591_v27  ;;  %v3600_v23 = vmax.f32 %v2959_v22, 0.0  ;;  %v10004_v0 = vpop.f32.mrf.mxu1  ;;  %5181 = vmatmul.mubr.bf16.gmra.mxu1 %v11911_v19  ;;  %5343 = vmatprep.mubr.bf16.mxu0 %v11912_v50  ;;  %v3189_v16 = vadd.f32 %v3188_v11, %v2996_v31  ;;  %v3002_v27 = vadd.f32 %v9921_v2, %v9995_v25  ;;  %v11915_v11 = vld [vmem:[#allocation66_spill] sm:$0xff] }
 0x2ef   : > { %5190 = vmatprep.mubr.bf16.mxu1 %v11913_v21  ;;  %v3190_v63 = vpop.f32.mrf.mxu0  ;;  %v3006_v31 = vadd.f32 %v9928_v48, %v9991_v18 }
 0x2f0   : > { %11910 = vst [vmem:[#allocation110_spill] sm:$0xff] %v10002_v35  ;;  %v10013_v33 = vpop.f32.mrf.mxu1  ;;  %v10015_v12 = vpack.c.bf16 %v3600_v23, %v3592_v62  ;;  %v3191_v10 = vadd.f32 %v3190_v63, %v2998_v1  ;;  %v3353_v19 = vmax.f32 %v3189_v16, 0.0  ;;  %v11917_v1 = vld [vmem:[#allocation42_spill] sm:$0xff] }
 0x2f1   : > { %v3192_v54 = vpop.f32.mrf.mxu0 }
 0x2f2   : > { %11914 = vst [vmem:[#allocation111_spill] sm:$0xff] %v10015_v12  ;;  %v10019_v22 = vpop.f32.mrf.mxu1  ;;  %v3193_v21 = vadd.f32 %v3192_v54, %v3000_v36  ;;  %v3354_v62 = vmax.f32 %v3191_v10, 0.0  ;;  %v11918_v36 = vld [vmem:[#allocation69_spill] sm:$0xff]  ;;  %v3010_v54 = vadd.f32 %v9941_v24, %v9991_v18 }
 0x2f3   : > { %v3194_v50 = vpop.f32.mrf.mxu0 }
 0x2f4   : > { %v3361_v8 = vmax.f32 %v3193_v21, 0.0  ;;  %v10021_v58 = vpop.f32.mrf.mxu1  ;;  %v3195_v35 = vadd.f32 %v3194_v50, %v3002_v27  ;;  %v11919_v21 = vld [vmem:[#allocation45_spill] sm:$0xff]  ;;  %v3008_v50 = vadd.f32 %v9935_v53, %v9995_v25 }
 0x2f5   : > { %v3198_v17 = vpop.f32.mrf.mxu0  ;;  %5344 = vmatmul.mubr.bf16.gmra.mxu0 %v11915_v11 }
 0x2f6   : > { %v10026_v23 = vpack.c.bf16 %v3361_v8, %v3353_v19  ;;  %v3362_v2 = vmax.f32 %v3195_v35, 0.0  ;;  %v10028_v63 = vpop.f32.mrf.mxu1  ;;  %5191 = vmatmul.mubr.bf16.gmra.mxu1 %v11917_v1  ;;  %5353 = vmatprep.mubr.bf16.mxu0 %v11918_v36  ;;  %v3199_v48 = vadd.f32 %v3198_v17, %v3006_v31  ;;  %v3012_v19 = vadd.f32 %v9945_v7, %v9995_v25  ;;  %v11921_v17 = vld [vmem:[#allocation68_spill] sm:$0xff] }
 0x2f7   : > { %5200 = vmatprep.mubr.bf16.mxu1 %v11919_v21  ;;  %v3200_v16 = vpop.f32.mrf.mxu0  ;;  %v3016_v31 = vadd.f32 %v9952_v42, %v9991_v18 }
 0x2f8   : > { %11916 = vst [vmem:[#allocation112_spill] sm:$0xff] %v10026_v23  ;;  %v10037_v27 = vpop.f32.mrf.mxu1  ;;  %v10039_v8 = vpack.c.bf16 %v3362_v2, %v3354_v62  ;;  %v3201_v10 = vadd.f32 %v3200_v16, %v3008_v50  ;;  %v3369_v11 = vmax.f32 %v3199_v48, 0.0  ;;  %v11923_v50 = vld [vmem:[#allocation44_spill] sm:$0xff] }
 0x2f9   : > { %v3202_v35 = vpop.f32.mrf.mxu0 }
 0x2fa   : > { %11920 = vst [vmem:[#allocation113_spill] sm:$0xff] %v10039_v8  ;;  %v10043_v36 = vpop.f32.mrf.mxu1  ;;  %v3203_v21 = vadd.f32 %v3202_v35, %v3010_v54  ;;  %v3370_v62 = vmax.f32 %v3201_v10, 0.0  ;;  %v11924_v54 = vld [vmem:[#allocation71_spill] sm:$0xff]  ;;  %v3020_v35 = vadd.f32 %v9965_v49, %v9991_v18 }
 0x2fb   : > { %v3204_v1 = vpop.f32.mrf.mxu0 }
 0x2fc   : > { %v3377_v12 = vmax.f32 %v3203_v21, 0.0  ;;  %v10045_v53 = vpop.f32.mrf.mxu1  ;;  %v3205_v41 = vadd.f32 %v3204_v1, %v3012_v19  ;;  %v11925_v21 = vld [vmem:[#allocation47_spill] sm:$0xff]  ;;  %v3018_v1 = vadd.f32 %v9959_v32, %v9995_v25 }
 0x2fd   : > { %v3208_v24 = vpop.f32.mrf.mxu0  ;;  %5354 = vmatmul.mubr.bf16.gmra.mxu0 %v11921_v17 }
 0x2fe   : > { %v10050_v2 = vpack.c.bf16 %v3377_v12, %v3369_v11  ;;  %v3378_v7 = vmax.f32 %v3205_v41, 0.0  ;;  %v10052_v16 = vpop.f32.mrf.mxu1  ;;  %5201 = vmatmul.mubr.bf16.gmra.mxu1 %v11923_v50  ;;  %5363 = vmatprep.mubr.bf16.mxu0 %v11924_v54  ;;  %v3209_v42 = vadd.f32 %v3208_v24, %v3016_v31  ;;  %v3022_v11 = vadd.f32 %v9969_v61, %v9995_v25  ;;  %v11927_v24 = vld [vmem:[#allocation70_spill] sm:$0xff] }
 0x2ff   : > { %5210 = vmatprep.mubr.bf16.mxu1 %v11925_v21  ;;  %v3210_v48 = vpop.f32.mrf.mxu0  ;;  %v3026_v31 = vadd.f32 %v9977_v47, %v9991_v18 }
 0x300   : > { %11922 = vst [vmem:[#allocation114_spill] sm:$0xff] %v10050_v2  ;;  %v10061_v19 = vpop.f32.mrf.mxu1  ;;  %v10063_v12 = vpack.c.bf16 %v3378_v7, %v3370_v62  ;;  %v3211_v10 = vadd.f32 %v3210_v48, %v3018_v1  ;;  %v3385_v17 = vmax.f32 %v3209_v42, 0.0  ;;  %v11929_v1 = vld [vmem:[#allocation46_spill] sm:$0xff]  ;;  %v3030_v42 = vadd.f32 %v9993_v28, %v9991_v18 }
 0x301   : > { %v3212_v41 = vpop.f32.mrf.mxu0 }
 0x302   : > { %11926 = vst [vmem:[#allocation115_spill] sm:$0xff] %v10063_v12  ;;  %v10067_v54 = vpop.f32.mrf.mxu1  ;;  %v3213_v21 = vadd.f32 %v3212_v41, %v3020_v35  ;;  %v3386_v62 = vmax.f32 %v3211_v10, 0.0  ;;  %v11930_v35 = vld [vmem:[#allocation73_spill] sm:$0xff] }
 0x303   : > { %v3214_v50 = vpop.f32.mrf.mxu0 }
 0x304   : > { %v3393_v37 = vmax.f32 %v3213_v21, 0.0  ;;  %v10069_v32 = vpop.f32.mrf.mxu1  ;;  %v3215_v30 = vadd.f32 %v3214_v50, %v3022_v11  ;;  %v3028_v50 = vadd.f32 %v9985_v57, %v9995_v25 }
 0x305   : > { %v3218_v49 = vpop.f32.mrf.mxu0  ;;  %5364 = vmatmul.mubr.bf16.gmra.mxu0 %v11927_v24 }
 0x306   : > { %v10074_v7 = vpack.c.bf16 %v3393_v37, %v3385_v17  ;;  %v3394_v61 = vmax.f32 %v3215_v30, 0.0  ;;  %v10076_v48 = vpop.f32.mrf.mxu1  ;;  %5211 = vmatmul.mubr.bf16.gmra.mxu1 %v11929_v1  ;;  %5373 = vmatprep.mubr.bf16.mxu0 %v11930_v35  ;;  %v3219_v47 = vadd.f32 %v3218_v49, %v3026_v31  ;;  %v3032_v17 = vadd.f32 %v9997_v15, %v9995_v25  ;;  %v7908_v1 = vld [vmem:[#allocation8 + $0xb0] ss:$12 sps:$4 sm:$0xff]   ;;  %v7915_v49 = vld [vmem:[#allocation8 + $0x158] ss:$12 sps:$4 sm:$0xff]  }
 0x307   : > { %5446 = vmatprep.mubr.bf16.mxu1 %v9649_v3  ;;  %v3220_v21 = vpop.f32.mrf.mxu0 }
 0x308   : > { %11928 = vst [vmem:[#allocation116_spill] sm:$0xff] %v10074_v7  ;;  %v10085_v41 = vpop.f32.mrf.mxu1  ;;  %v10087_v37 = vpack.c.bf16 %v3394_v61, %v3386_v62  ;;  %v3221_v11 = vadd.f32 %v3220_v21, %v3028_v50  ;;  %v3401_v24 = vmax.f32 %v3219_v47, 0.0  ;;  %v3036_v62 = vadd.f32 %v10004_v0, %v9991_v18  ;;  %v7916_v47 = vld [vmem:[#allocation8 + $0x98] ss:$12 sps:$4 sm:$0xff]  }
 0x309   : > { %v3222_v30 = vpop.f32.mrf.mxu0  ;;  %v3040_v0 = vadd.f32 %v10019_v22, %v9991_v18 }
 0x30a   : > { %11931 = vst [vmem:[#allocation117_spill] sm:$0xff] %v10087_v37  ;;  %v10091_v10 = vpop.f32.mrf.mxu1  ;;  %v3223_v3 = vadd.f32 %v3222_v30, %v3030_v42  ;;  %v3402_v61 = vmax.f32 %v3221_v11, 0.0  ;;  %v11934_v42 = vld [vmem:[#allocation75_spill] sm:$0xff]  ;;  %v3038_v30 = vadd.f32 %v10013_v33, %v9995_v25 }
 0x30b   : > { %v3224_v35 = vpop.f32.mrf.mxu0  ;;  %v7920_v11 = vld [vmem:[#allocation8 + $0x140] ss:$12 sps:$4 sm:$0xff]  }
 0x30c   : > { %v3409_v57 = vmax.f32 %v3223_v3, 0.0  ;;  %v10093_v5 = vpop.f32.mrf.mxu1  ;;  %v3225_v28 = vadd.f32 %v3224_v35, %v3032_v17  ;;  %v11935_v3 = vld [vmem:[#allocation83_spill] sm:$0xff] }
 0x30d   : > { %v3228_v31 = vpop.f32.mrf.mxu0  ;;  %5374 = vmatmul.mubr.bf16.gmra.mxu0 %v11932_v59  ;;  %v7922_v33 = vld [vmem:[#allocation8 + $0x80] ss:$12 sps:$4 sm:$0xff]  }
 0x30e   : > { %v10098_v15 = vpack.c.bf16 %v3409_v57, %v3401_v24  ;;  %v3410_v21 = vmax.f32 %v3225_v28, 0.0  ;;  %v10100_v50 = vpop.f32.mrf.mxu1  ;;  %5447 = vmatmul.mubr.bf16.vlgmr.msra.gmra.mxu1 %v9638_v52  ;;  %5383 = vmatprep.mubr.bf16.mxu0 %v11934_v42  ;;  %v3229_v24 = vadd.f32 %v3228_v31, %v3036_v62 }
 0x30f   : > { %5456 = vmatprep.mubr.bf16.mxu1 %v11935_v3  ;;  %7108 = vmatpush3.bf16.msra.mxu1 %v7908_v1  ;;  %v3230_v35 = vpop.f32.mrf.mxu0  ;;  %v3042_v3 = vadd.f32 %v10021_v58, %v9995_v25  ;;  %v3046_v58 = vadd.f32 %v10028_v63, %v9991_v18  ;;  %v3050_v63 = vadd.f32 %v10043_v36, %v9991_v18 }
 0x310   : > { %11933 = vst [vmem:[#allocation118_spill] sm:$0xff] %v10098_v15  ;;  %v10109_v17 = vpop.f32.mrf.mxu1  ;;  %7109 = vmatprep.subr.bf16.mxu1 %v7915_v49  ;;  %v10111_v57 = vpack.c.bf16 %v3410_v21, %v3402_v61  ;;  %v3231_v1 = vadd.f32 %v3230_v35, %v3038_v30  ;;  %v3417_v34 = vmax.f32 %v3229_v24, 0.0  ;;  %v7924_v49 = vld [vmem:[#allocation8 + $0x128] ss:$12 sps:$4 sm:$0xff]   ;;  %v11937_v21 = vld [vmem:[#allocation74_spill] sm:$0xff] }
 0x311   : > { %v3232_v28 = vpop.f32.mrf.mxu0  ;;  %v11941_v24 = vld [vmem:[#allocation85_spill] sm:$0xff] }
 0x312   : > { %11936 = vst [vmem:[#allocation119_spill] sm:$0xff] %v10111_v57  ;;  %v10115_v42 = vpop.f32.mrf.mxu1  ;;  %v3233_v52 = vadd.f32 %v3232_v28, %v3040_v0  ;;  %v3418_v35 = vmax.f32 %v3231_v1, 0.0 }
 0x313   : > { %v3234_v59 = vpop.f32.mrf.mxu0  ;;  %7110 = vmatpush3.bf16.msra.mxu1 %v7916_v47  ;;  %v11939_v47 = vld [vmem:[#allocation82_spill] sm:$0xff] }
 0x314   : > { %v3425_v22 = vmax.f32 %v3233_v52, 0.0  ;;  %v10117_v31 = vpop.f32.mrf.mxu1  ;;  %v3235_v62 = vadd.f32 %v3234_v59, %v3042_v3  ;;  %7111 = vmatprep.subr.bf16.mxu1 %v7920_v11  ;;  %v11940_v52 = vld [vmem:[#allocation77_spill] sm:$0xff]  ;;  %v3048_v11 = vadd.f32 %v10037_v27, %v9995_v25 }
 0x315   : > { %v3238_v61 = vpop.f32.mrf.mxu0  ;;  %5384 = vmatmul.mubr.bf16.gmra.mxu0 %v11937_v21  ;;  %v7926_v3 = vld [vmem:[#allocation8 + $0x68] ss:$12 sps:$4 sm:$0xff]   ;;  %v7930_v27 = vld [vmem:[#allocation8 + $0x50] ss:$12 sps:$4 sm:$0xff]  }
 0x316   : > { %v10122_v30 = vpack.c.bf16 %v3425_v22, %v3417_v34  ;;  %v3426_v0 = vmax.f32 %v3235_v62, 0.0  ;;  %v10124_v28 = vpop.f32.mrf.mxu1  ;;  %5457 = vmatmul.mubr.bf16.gmra.mxu1 %v11939_v47  ;;  %5393 = vmatprep.mubr.bf16.mxu0 %v11940_v52  ;;  %v3239_v34 = vadd.f32 %v3238_v61, %v3046_v58  ;;  %v7928_v62 = vld [vmem:[#allocation8 + $0x110] ss:$12 sps:$4 sm:$0xff]  }
 0x317   : > { %5466 = vmatprep.mubr.bf16.mxu1 %v11941_v24  ;;  %v3240_v59 = vpop.f32.mrf.mxu0  ;;  %7112 = vmatpush3.bf16.msra.mxu1 %v7922_v33  ;;  %v3052_v24 = vadd.f32 %v10045_v53, %v9995_v25  ;;  %v3056_v53 = vadd.f32 %v10052_v16, %v9991_v18  ;;  %v3060_v16 = vadd.f32 %v10067_v54, %v9991_v18 }
 0x318   : > { %11938 = vst [vmem:[#allocation120_spill] sm:$0xff] %v10122_v30  ;;  %v10133_v1 = vpop.f32.mrf.mxu1  ;;  %7113 = vmatprep.subr.bf16.mxu1 %v7924_v49  ;;  %v10135_v22 = vpack.c.bf16 %v3426_v0, %v3418_v35  ;;  %v3241_v52 = vadd.f32 %v3240_v59, %v3048_v11  ;;  %v3433_v14 = vmax.f32 %v3239_v34, 0.0  ;;  %v7932_v49 = vld [vmem:[#allocation8 + $0xf8] ss:$12 sps:$4 sm:$0xff]   ;;  %v11943_v0 = vld [vmem:[#allocation76_spill] sm:$0xff]  ;;  %v3058_v34 = vadd.f32 %v10061_v19, %v9995_v25 }
 0x319   : > { %v3242_v47 = vpop.f32.mrf.mxu0  ;;  %v7938_v19 = vld [vmem:[#allocation8 + $0x20] ss:$12 sps:$4 sm:$0xff]  }
 0x31a   : > { %11942 = vst [vmem:[#allocation121_spill] sm:$0xff] %v10135_v22  ;;  %v10139_v33 = vpop.f32.mrf.mxu1  ;;  %v3243_v21 = vadd.f32 %v3242_v47, %v3050_v63  ;;  %v3434_v59 = vmax.f32 %v3241_v52, 0.0 }
 0x31b   : > { %v3244_v4 = vpop.f32.mrf.mxu0  ;;  %7114 = vmatpush3.bf16.msra.mxu1 %v7926_v3  ;;  %v11945_v3 = vld [vmem:[#allocation84_spill] sm:$0xff] }
 0x31c   : > { %v3441_v36 = vmax.f32 %v3243_v21, 0.0  ;;  %v10141_v61 = vpop.f32.mrf.mxu1  ;;  %v3245_v58 = vadd.f32 %v3244_v4, %v3052_v24  ;;  %7115 = vmatprep.subr.bf16.mxu1 %v7928_v62  ;;  %v11946_v21 = vld [vmem:[#allocation79_spill] sm:$0xff] }
 0x31d   : > { %v3248_v35 = vpop.f32.mrf.mxu0  ;;  %5394 = vmatmul.mubr.bf16.gmra.mxu0 %v11943_v0  ;;  %v7934_v24 = vld [vmem:[#allocation8 + $0x38] ss:$12 sps:$4 sm:$0xff]  }
 0x31e   : > { %v10146_v11 = vpack.c.bf16 %v3441_v36, %v3433_v14  ;;  %v3442_v47 = vmax.f32 %v3245_v58, 0.0  ;;  %v10148_v63 = vpop.f32.mrf.mxu1  ;;  %5467 = vmatmul.mubr.bf16.gmra.mxu1 %v11945_v3  ;;  %5403 = vmatprep.mubr.bf16.mxu0 %v11946_v21  ;;  %v3249_v14 = vadd.f32 %v3248_v35, %v3056_v53  ;;  %v7936_v36 = vld [vmem:[#allocation8 + $0xe0] ss:$12 sps:$4 sm:$0xff]  }
 0x31f   : > { %5476 = vmatprep.mubr.bf16.mxu1 %v9721_v13  ;;  %v3250_v4 = vpop.f32.mrf.mxu0  ;;  %7116 = vmatpush3.bf16.msra.mxu1 %v7930_v27  ;;  %v3062_v13 = vadd.f32 %v10069_v32, %v9995_v25  ;;  %v3066_v32 = vadd.f32 %v10076_v48, %v9991_v18  ;;  %v3070_v48 = vadd.f32 %v10091_v10, %v9991_v18 }
 0x320   : > { %11944 = vst [vmem:[#allocation122_spill] sm:$0xff] %v10146_v11  ;;  %v10157_v52 = vpop.f32.mrf.mxu1  ;;  %v10159_v62 = vpack.c.bf16 %v3442_v47, %v3434_v59  ;;  %7117 = vmatprep.subr.bf16.mxu1 %v7932_v49  ;;  %v3251_v21 = vadd.f32 %v3250_v4, %v3058_v34  ;;  %v3449_v43 = vmax.f32 %v3249_v14, 0.0  ;;  %v7940_v59 = vld [vmem:[#allocation8 + $0xc8] ss:$12 sps:$4 sm:$0xff]   ;;  %v11948_v47 = vld [vmem:[#allocation78_spill] sm:$0xff] }
 0x321   : > { %v3252_v58 = vpop.f32.mrf.mxu0  ;;  %v7945_v14 = vld [vmem:[#allocation8 + $0x470] ss:$12 sps:$4 sm:$0xff]  }
 0x322   : > { %11947 = vst [vmem:[#allocation123_spill] sm:$0xff] %v10159_v62  ;;  %v10163_v27 = vpop.f32.mrf.mxu1  ;;  %v3253_v3 = vadd.f32 %v3252_v58, %v3060_v16  ;;  %v3450_v4 = vmax.f32 %v3251_v21, 0.0 }
 0x323   : > { %v3254_v0 = vpop.f32.mrf.mxu0  ;;  %7118 = vmatpush3.bf16.msra.mxu1 %v7934_v24 }
 0x324   : > { %v3457_v54 = vmax.f32 %v3253_v3, 0.0  ;;  %v10165_v35 = vpop.f32.mrf.mxu1  ;;  %v3255_v53 = vadd.f32 %v3254_v0, %v3062_v13  ;;  %7119 = vmatprep.subr.bf16.mxu1 %v7936_v36  ;;  %v7942_v0 = vld [vmem:[#allocation8 + $0x8] ss:$12 sps:$4 sm:$0xff]   ;;  %v3068_v3 = vadd.f32 %v10085_v41, %v9995_v25  ;;  %v7923_v41 = vld [vmem:[#allocation8 + $0x230] ss:$12 sps:$4 sm:$0xff]  }
 0x325   : > { %v3258_v49 = vpop.f32.mrf.mxu0  ;;  %5404 = vmatmul.mubr.bf16.gmra.mxu0 %v11948_v47 }
 0x326   : > { %v10170_v34 = vpack.c.bf16 %v3457_v54, %v3449_v43  ;;  %v3458_v16 = vmax.f32 %v3255_v53, 0.0  ;;  %v10172_v58 = vpop.f32.mrf.mxu1  ;;  %5477 = vmatmul.mubr.bf16.gmra.mxu1 %v9710_v55  ;;  %5639 = vmatprep.mubr.bf16.mxu0 %v10039_v8  ;;  %v3259_v43 = vadd.f32 %v3258_v49, %v3066_v32  ;;  %v3072_v54 = vadd.f32 %v10093_v5, %v9995_v25 }
 0x327   : > { %5486 = vmatprep.mubr.bf16.mxu1 %v9745_v20  ;;  %v3260_v13 = vpop.f32.mrf.mxu0  ;;  %7120 = vmatpush3.bf16.msra.mxu1 %v7938_v19  ;;  %v3076_v5 = vadd.f32 %v10100_v50, %v9991_v18  ;;  %v3080_v50 = vadd.f32 %v10115_v42, %v9991_v18 }
 0x328   : > { %11949 = vst [vmem:[#allocation124_spill] sm:$0xff] %v10170_v34  ;;  %v10181_v21 = vpop.f32.mrf.mxu1  ;;  %v10183_v24 = vpack.c.bf16 %v3458_v16, %v3450_v4  ;;  %7121 = vmatprep.subr.bf16.mxu1 %v7940_v59  ;;  %v3261_v53 = vadd.f32 %v3260_v13, %v3068_v3  ;;  %v3465_v55 = vmax.f32 %v3259_v43, 0.0  ;;  %v7925_v4 = vld [vmem:[#allocation8 + $0x2d8] ss:$12 sps:$4 sm:$0xff]  }
 0x329   : > { %v3262_v36 = vpop.f32.mrf.mxu0 }
 0x32a   : > { %11950 = vst [vmem:[#allocation125_spill] sm:$0xff] %v10183_v24  ;;  %v10187_v19 = vpop.f32.mrf.mxu1  ;;  %v3263_v20 = vadd.f32 %v3262_v36, %v3070_v48  ;;  %v3466_v16 = vmax.f32 %v3261_v53, 0.0  ;;  %v3082_v53 = vadd.f32 %v10117_v31, %v9995_v25  ;;  %v3086_v31 = vadd.f32 %v10124_v28, %v9991_v18 }
 0x32b   : > { %v3264_v8 = vpop.f32.mrf.mxu0  ;;  %7122 = vmatpush3.bf16.msra.mxu1 %v7942_v0  ;;  %v3078_v0 = vadd.f32 %v10109_v17, %v9995_v25  ;;  %v7931_v17 = vld [vmem:[#allocation8 + $0x200] ss:$12 sps:$4 sm:$0xff]   ;;  %v3090_v28 = vadd.f32 %v10139_v33, %v9991_v18 }
 0x32c   : > { %v3473_v10 = vmax.f32 %v3263_v20, 0.0  ;;  %v10189_v49 = vpop.f32.mrf.mxu1  ;;  %v3265_v32 = vadd.f32 %v3264_v8, %v3072_v54  ;;  %7331 = vmatprep.subr.bf16.mxu1 %v7945_v14  ;;  %v7927_v8 = vld [vmem:[#allocation8 + $0x218] ss:$12 sps:$4 sm:$0xff]   ;;  %v7929_v14 = vld [vmem:[#allocation8 + $0x2c0] ss:$12 sps:$4 sm:$0xff]  }
 0x32d   : > { %v3268_v59 = vpop.f32.mrf.mxu0  ;;  %5640 = vmatmul.mubr.bf16.vlgmr.msra.gmra.mxu0 %v10026_v23 }
 0x32e   : > { %v10194_v13 = vpack.c.bf16 %v3473_v10, %v3465_v55  ;;  %v3474_v3 = vmax.f32 %v3265_v32, 0.0  ;;  %v10196_v48 = vpop.f32.mrf.mxu1  ;;  %5487 = vmatmul.mubr.bf16.gmra.mxu1 %v9734_v40  ;;  %5649 = vmatprep.mubr.bf16.mxu0 %v10063_v12  ;;  %v3269_v55 = vadd.f32 %v3268_v59, %v3076_v5  ;;  %v12001_v40 = vld [vmem:[#allocation24_spill] sm:$0xff] }
 0x32f   : > { %5496 = vmatprep.mubr.bf16.mxu1 %v9769_v39  ;;  %7220 = vmatpush3.bf16.msra.mxu0 %v7923_v41  ;;  %v3270_v20 = vpop.f32.mrf.mxu0 }
 0x330   : > { %11951 = vst [vmem:[#allocation126_spill] sm:$0xff] %v10194_v13  ;;  %v10205_v43 = vpop.f32.mrf.mxu1  ;;  %7221 = vmatprep.subr.bf16.mxu0 %v7925_v4  ;;  %v10207_v36 = vpack.c.bf16 %v3474_v3, %v3466_v16  ;;  %v3271_v41 = vadd.f32 %v3270_v20, %v3078_v0  ;;  %v3481_v12 = vmax.f32 %v3269_v55, 0.0  ;;  %v7933_v4 = vld [vmem:[#allocation8 + $0x2a8] ss:$12 sps:$4 sm:$0xff]   ;;  %v3088_v55 = vadd.f32 %v10133_v1, %v9995_v25  ;;  %v7939_v1 = vld [vmem:[#allocation8 + $0x1d0] ss:$12 sps:$4 sm:$0xff]  }
 0x331   : > { %v3272_v54 = vpop.f32.mrf.mxu0 }
 0x332   : > { %11952 = vst [vmem:[#allocation127_spill] sm:$0xff] %v10207_v36  ;;  %v10211_v10 = vpop.f32.mrf.mxu1  ;;  %v3273_v32 = vadd.f32 %v3272_v54, %v3080_v50  ;;  %v3482_v3 = vmax.f32 %v3271_v41, 0.0 }
 0x333   : > { %v3274_v39 = vpop.f32.mrf.mxu0  ;;  %7222 = vmatpush3.bf16.msra.mxu0 %v7927_v8  ;;  %v7935_v8 = vld [vmem:[#allocation8 + $0x1e8] ss:$12 sps:$4 sm:$0xff]  }
 0x334   : > { %v3489_v42 = vmax.f32 %v3273_v32, 0.0  ;;  %v10213_v59 = vpop.f32.mrf.mxu1  ;;  %v3275_v5 = vadd.f32 %v3274_v39, %v3082_v53  ;;  %7223 = vmatprep.subr.bf16.mxu0 %v7929_v14  ;;  %v7937_v53 = vld [vmem:[#allocation8 + $0x290] ss:$12 sps:$4 sm:$0xff]   ;;  %v3092_v32 = vadd.f32 %v10141_v61, %v9995_v25  ;;  %v3096_v61 = vadd.f32 %v10148_v63, %v9991_v18 }
 0x335   : > { %v3278_v16 = vpop.f32.mrf.mxu0  ;;  %5650 = vmatmul.mubr.bf16.gmra.mxu0 %v10050_v2  ;;  %v3100_v63 = vadd.f32 %v10163_v27, %v9991_v18 }
 0x336   : > { %v10218_v20 = vpack.c.bf16 %v3489_v42, %v3481_v12  ;;  %v3490_v0 = vmax.f32 %v3275_v5, 0.0  ;;  %v10220_v50 = vpop.f32.mrf.mxu1  ;;  %5497 = vmatmul.mubr.bf16.gmra.mxu1 %v9758_v60  ;;  %5659 = vmatprep.mubr.bf16.mxu0 %v10087_v37  ;;  %v3279_v12 = vadd.f32 %v3278_v16, %v3086_v31  ;;  %v11994_v60 = vld [vmem:[#allocation49_spill] sm:$0xff] }
 0x337   : > { %5506 = vmatprep.mubr.bf16.mxu1 %v9793_v29  ;;  %v3280_v39 = vpop.f32.mrf.mxu0  ;;  %7224 = vmatpush3.bf16.msra.mxu0 %v7931_v17 }
 0x338   : > { %11953 = vst [vmem:[#allocation128_spill] sm:$0xff] %v10218_v20  ;;  %v10229_v14 = vpop.f32.mrf.mxu1  ;;  %7225 = vmatprep.subr.bf16.mxu0 %v7933_v4  ;;  %v10231_v54 = vpack.c.bf16 %v3490_v0, %v3482_v3  ;;  %v3281_v42 = vadd.f32 %v3280_v39, %v3088_v55  ;;  %v3497_v37 = vmax.f32 %v3279_v12, 0.0  ;;  %v7941_v4 = vld [vmem:[#allocation8 + $0x278] ss:$12 sps:$4 sm:$0xff]   ;;  %v3098_v12 = vadd.f32 %v10157_v52, %v9995_v25  ;;  %v7946_v52 = vld [vmem:[#allocation8 + $0x1a0] ss:$12 sps:$4 sm:$0xff]  }
 0x339   : > { %v3282_v41 = vpop.f32.mrf.mxu0 }
 0x33a   : > { %11954 = vst [vmem:[#allocation129_spill] sm:$0xff] %v10231_v54  ;;  %v10235_v17 = vpop.f32.mrf.mxu1  ;;  %v3283_v5 = vadd.f32 %v3282_v41, %v3090_v28  ;;  %v3498_v0 = vmax.f32 %v3281_v42, 0.0 }
 0x33b   : > { %v3284_v29 = vpop.f32.mrf.mxu0  ;;  %7226 = vmatpush3.bf16.msra.mxu0 %v7935_v8  ;;  %v7943_v8 = vld [vmem:[#allocation8 + $0x1b8] ss:$12 sps:$4 sm:$0xff]  }
 0x33c   : > { %v3505_v33 = vmax.f32 %v3283_v5, 0.0  ;;  %v10237_v16 = vpop.f32.mrf.mxu1  ;;  %v3285_v31 = vadd.f32 %v3284_v29, %v3092_v32  ;;  %7227 = vmatprep.subr.bf16.mxu0 %v7937_v53  ;;  %v7944_v32 = vld [vmem:[#allocation8 + $0x260] ss:$12 sps:$4 sm:$0xff]   ;;  %v3102_v5 = vadd.f32 %v10165_v35, %v9995_v25  ;;  %v3106_v35 = vadd.f32 %v10172_v58, %v9991_v18 }
 0x33d   : > { %v3288_v3 = vpop.f32.mrf.mxu0  ;;  %5660 = vmatmul.mubr.bf16.gmra.mxu0 %v10074_v7  ;;  %v3110_v58 = vadd.f32 %v10187_v19, %v9991_v18 }
 0x33e   : > { %v10242_v39 = vpack.c.bf16 %v3505_v33, %v3497_v37  ;;  %v3506_v55 = vmax.f32 %v3285_v31, 0.0  ;;  %v10244_v28 = vpop.f32.mrf.mxu1  ;;  %5507 = vmatmul.mubr.bf16.gmra.mxu1 %v9782_v6  ;;  %5669 = vmatprep.mubr.bf16.mxu0 %v10111_v57  ;;  %v3289_v37 = vadd.f32 %v3288_v3, %v3096_v61 }
 0x33f   : > { %5516 = vmatprep.mubr.bf16.mxu1 %v9817_v9  ;;  %v3290_v29 = vpop.f32.mrf.mxu0  ;;  %7228 = vmatpush3.bf16.msra.mxu0 %v7939_v1 }
 0x340   : > { %11955 = vst [vmem:[#allocation130_spill] sm:$0xff] %v10242_v39  ;;  %v10253_v53 = vpop.f32.mrf.mxu1  ;;  %v10255_v41 = vpack.c.bf16 %v3506_v55, %v3498_v0  ;;  %7229 = vmatprep.subr.bf16.mxu0 %v7941_v4  ;;  %v3291_v33 = vadd.f32 %v3290_v29, %v3098_v12  ;;  %v3513_v57 = vmax.f32 %v3289_v37, 0.0  ;;  %v7948_v0 = vld [vmem:[#allocation8 + $0x248] ss:$12 sps:$4 sm:$0xff]   ;;  %v3108_v37 = vadd.f32 %v10181_v21, %v9995_v25 }
 0x341   : > { %v3292_v42 = vpop.f32.mrf.mxu0 }
 0x342   : > { %11956 = vst [vmem:[#allocation131_spill] sm:$0xff] %v10255_v41  ;;  %v10259_v1 = vpop.f32.mrf.mxu1  ;;  %v3293_v31 = vadd.f32 %v3292_v42, %v3100_v63  ;;  %v3514_v55 = vmax.f32 %v3291_v33, 0.0 }
 0x343   : > { %v3294_v9 = vpop.f32.mrf.mxu0  ;;  %7230 = vmatpush3.bf16.msra.mxu0 %v7943_v8  ;;  %v7950_v8 = vld [vmem:[#allocation8 + $0x188] ss:$12 sps:$4 sm:$0xff]  }
 0x344   : > { %v3521_v27 = vmax.f32 %v3293_v31, 0.0  ;;  %v10261_v3 = vpop.f32.mrf.mxu1  ;;  %v3295_v61 = vadd.f32 %v3294_v9, %v3102_v5  ;;  %7231 = vmatprep.subr.bf16.mxu0 %v7944_v32  ;;  %v10281_v5 = vld [vmem:[#allocation8 + $0x5f0] ss:$12 sps:$4 sm:$0xff]   ;;  %v3112_v31 = vadd.f32 %v10189_v49, %v9995_v25 }
 0x345   : > { %v3298_v4 = vpop.f32.mrf.mxu0  ;;  %5670 = vmatmul.mubr.bf16.gmra.mxu0 %v10098_v15 }
 0x346   : > { %v10266_v29 = vpack.c.bf16 %v3521_v27, %v3513_v57  ;;  %v3522_v12 = vmax.f32 %v3295_v61, 0.0  ;;  %v10268_v63 = vpop.f32.mrf.mxu1  ;;  %5517 = vmatmul.mubr.bf16.gmra.mxu1 %v9806_v46  ;;  %5679 = vmatprep.mubr.bf16.mxu0 %v10135_v22  ;;  %v3299_v57 = vadd.f32 %v3298_v4, %v3106_v35 }
 0x347   : > { %5526 = vmatprep.mubr.bf16.mxu1 %v9841_v56  ;;  %v3300_v9 = vpop.f32.mrf.mxu0  ;;  %7232 = vmatpush3.bf16.msra.mxu0 %v7946_v52 }
 0x348   : > { %11957 = vst [vmem:[#allocation132_spill] sm:$0xff] %v10266_v29  ;;  %v10277_v32 = vpop.f32.mrf.mxu1  ;;  %v10279_v42 = vpack.c.bf16 %v3522_v12, %v3514_v55  ;;  %7233 = vmatprep.subr.bf16.mxu0 %v7948_v0  ;;  %v3301_v52 = vadd.f32 %v3300_v9, %v3108_v37  ;;  %v3529_v56 = vmax.f32 %v3299_v57, 0.0  ;;  %v3116_v55 = vadd.f32 %v10196_v48, %v9991_v18 }
 0x349   : > { %v3302_v33 = vpop.f32.mrf.mxu0  ;;  %v3120_v57 = vadd.f32 %v10211_v10, %v9991_v18 }
 0x34a   : > { %11958 = vst [vmem:[#allocation133_spill] sm:$0xff] %v10279_v42  ;;  %v10285_v27 = vpop.f32.mrf.mxu1  ;;  %v3303_v61 = vadd.f32 %v3302_v33, %v3110_v58  ;;  %v3530_v49 = vmax.f32 %v3301_v52, 0.0  ;;  %v3118_v58 = vadd.f32 %v10205_v43, %v9995_v25  ;;  %v3122_v52 = vadd.f32 %v10213_v59, %v9995_v25 }
 0x34b   : > { %v3304_v21 = vpop.f32.mrf.mxu0  ;;  %7234 = vmatpush3.bf16.msra.mxu0 %v7950_v8 }
 0x34c   : > { %v3537_v19 = vmax.f32 %v3303_v61, 0.0  ;;  %v10287_v4 = vpop.f32.mrf.mxu1  ;;  %v3305_v35 = vadd.f32 %v3304_v21, %v3112_v31  ;;  %7443 = vmatprep.subr.bf16.mxu0 %v10281_v5 }
 0x34d   : > { %v3308_v0 = vpop.f32.mrf.mxu0  ;;  %5680 = vmatmul.mubr.bf16.gmra.mxu0 %v10122_v30 }
 0x34e   : > { %v10293_v12 = vpack.c.bf16 %v3537_v19, %v3529_v56  ;;  %v3538_v9 = vmax.f32 %v3305_v35, 0.0  ;;  %v10295_v37 = vpop.f32.mrf.mxu1  ;;  %5527 = vmatmul.mubr.bf16.gmra.mxu1 %v9830_v44  ;;  %5689 = vmatprep.mubr.bf16.mxu0 %v10159_v62  ;;  %v3309_v48 = vadd.f32 %v3308_v0, %v3116_v55  ;;  %v3126_v0 = vadd.f32 %v10220_v50, %v9991_v18 }
 0x34f   : > { %5536 = vmatprep.mubr.bf16.mxu1 %v9865_v45  ;;  %v3310_v8 = vpop.f32.mrf.mxu0 }
 0x350   : > { %11959 = vst [vmem:[#allocation134_spill] sm:$0xff] %v10293_v12  ;;  %v10304_v33 = vpop.f32.mrf.mxu1  ;;  %v10306_v56 = vpack.c.bf16 %v3538_v9, %v3530_v49  ;;  %v3311_v61 = vadd.f32 %v3310_v8, %v3118_v58  ;;  %v3545_v45 = vmax.f32 %v3309_v48, 0.0  ;;  %v3128_v58 = vadd.f32 %v10229_v14, %v9995_v25 }
 0x351   : > { %v3312_v31 = vpop.f32.mrf.mxu0 }
 0x352   : > { %11960 = vst [vmem:[#allocation135_spill] sm:$0xff] %v10306_v56  ;;  %v3313_v21 = vadd.f32 %v3312_v31, %v3120_v57  ;;  %v10310_v19 = vpop.f32.mrf.mxu1  ;;  %v3546_v55 = vmax.f32 %v3311_v61, 0.0  ;;  %v3130_v57 = vadd.f32 %v10235_v17, %v9991_v18  ;;  %v3132_v31 = vadd.f32 %v10237_v16, %v9995_v25 }
 0x353   : > { %v3314_v35 = vpop.f32.mrf.mxu0 }
 0x354   : > { %v3553_v62 = vmax.f32 %v3313_v21, 0.0  ;;  %v3315_v43 = vadd.f32 %v3314_v35, %v3122_v52  ;;  %v10312_v44 = vpop.f32.mrf.mxu1 }
 0x355   : > { %v3318_v10 = vpop.f32.mrf.mxu0  ;;  %5690 = vmatmul.mubr.bf16.gmra.mxu0 %v10146_v11 }
 0x356   : > { %v10317_v49 = vpack.c.bf16 %v3553_v62, %v3545_v45  ;;  %v3554_v59 = vmax.f32 %v3315_v43, 0.0  ;;  %v10319_v9 = vpop.f32.mrf.mxu1  ;;  %5537 = vmatmul.mubr.bf16.gmra.mxu1 %v9854_v38  ;;  %5699 = vmatprep.mubr.bf16.mxu0 %v10183_v24  ;;  %v3319_v50 = vadd.f32 %v3318_v10, %v3126_v0  ;;  %v3136_v10 = vadd.f32 %v10244_v28, %v9991_v18  ;;  %v7949_v38 = vld [vmem:[#allocation8 + $0x458] ss:$12 sps:$4 sm:$0xff]  }
 0x357   : > { %5546 = vmatprep.mubr.bf16.mxu1 %v9889_v26  ;;  %v3320_v8 = vpop.f32.mrf.mxu0 }
 0x358   : > { %11961 = vst [vmem:[#allocation136_spill] sm:$0xff] %v10317_v49  ;;  %v10328_v48 = vpop.f32.mrf.mxu1  ;;  %v10330_v45 = vpack.c.bf16 %v3554_v59, %v3546_v55  ;;  %v3321_v52 = vadd.f32 %v3320_v8, %v3128_v58  ;;  %v3561_v43 = vmax.f32 %v3319_v50, 0.0  ;;  %v11964_v8 = vld [vmem:[#allocation103_spill] sm:$0xff]  ;;  %v3140_v50 = vadd.f32 %v10259_v1, %v9991_v18 }
 0x359   : > { %v3322_v62 = vpop.f32.mrf.mxu0 }
 0x35a   : > { %11962 = vst [vmem:[#allocation137_spill] sm:$0xff] %v10330_v45  ;;  %v3323_v61 = vadd.f32 %v3322_v62, %v3130_v57  ;;  %v10334_v21 = vpop.f32.mrf.mxu1  ;;  %v3562_v0 = vmax.f32 %v3321_v52, 0.0  ;;  %v3138_v57 = vadd.f32 %v10253_v53, %v9995_v25  ;;  %v3142_v52 = vadd.f32 %v10261_v3, %v9995_v25  ;;  %v3987_v53 = vld [vmem:[%s11631_s4] sm:$0x7] }
 0x35b   : > { %v3324_v35 = vpop.f32.mrf.mxu0  ;;  %v3146_v3 = vadd.f32 %v10268_v63, %v9991_v18  ;;  %v3148_v63 = vadd.f32 %v10277_v32, %v9995_v25 }
 0x35c   : > { %v3569_v26 = vmax.f32 %v3323_v61, 0.0  ;;  %v3325_v14 = vadd.f32 %v3324_v35, %v3132_v31  ;;  %v10336_v24 = vpop.f32.mrf.mxu1 }
 0x35d   : > { %v3328_v17 = vpop.f32.mrf.mxu0  ;;  %5700 = vmatmul.mubr.bf16.gmra.mxu0 %v10170_v34 }
 0x35e   : > { %v10341_v55 = vpack.c.bf16 %v3569_v26, %v3561_v43  ;;  %v3570_v16 = vmax.f32 %v3325_v14, 0.0  ;;  %v10343_v59 = vpop.f32.mrf.mxu1  ;;  %5547 = vmatmul.mubr.bf16.gmra.mxu1 %v9878_v51  ;;  %5709 = vmatprep.mubr.bf16.mxu0 %v10207_v36  ;;  %v3329_v28 = vadd.f32 %v3328_v17, %v3136_v10 }
 0x35f   : > { %5556 = vmatprep.mubr.bf16.mxu1 %v11964_v8  ;;  %v3330_v58 = vpop.f32.mrf.mxu0 }
 0x360   : > { %11963 = vst [vmem:[#allocation138_spill] sm:$0xff] %v10341_v55  ;;  %v10352_v62 = vpop.f32.mrf.mxu1  ;;  %v10354_v26 = vpack.c.bf16 %v3570_v16, %v3562_v0  ;;  %v3331_v61 = vadd.f32 %v3330_v58, %v3138_v57  ;;  %v3577_v8 = vmax.f32 %v3329_v28, 0.0  ;;  %v11968_v28 = vld [vmem:[#allocation15_spill] sm:$0xff] }
 0x361   : > { %v3332_v31 = vpop.f32.mrf.mxu0 }
 0x362   : > { %11965 = vst [vmem:[#allocation139_spill] sm:$0xff] %v10354_v26  ;;  %v3333_v35 = vadd.f32 %v3332_v31, %v3140_v50  ;;  %v10358_v43 = vpop.f32.mrf.mxu1  ;;  %v3578_v16 = vmax.f32 %v3331_v61, 0.0  ;;  %v11967_v31 = vld [vmem:[#allocation102_spill] sm:$0xff] }
 0x363   : > { %v3334_v14 = vpop.f32.mrf.mxu0 }
 0x364   : > { %v3585_v1 = vmax.f32 %v3333_v35, 0.0  ;;  %v3335_v17 = vadd.f32 %v3334_v14, %v3142_v52  ;;  %v10363_v10 = vpop.f32.mrf.mxu1  ;;  %v11969_v52 = vsub.s32 0, %v11968_v28  ;;  %v11970_v14 = vld [vmem:[#allocation105_spill] sm:$0xff] }
 0x365   : > { %v3338_v0 = vpop.f32.mrf.mxu0  ;;  %5710 = vmatmul.mubr.bf16.gmra.mxu0 %v10194_v13 }
 0x366   : > { %v10368_v58 = vpack.c.bf16 %v3585_v1, %v3577_v8  ;;  %v3586_v57 = vmax.f32 %v3335_v17, 0.0  ;;  %v10370_v50 = vpop.f32.mrf.mxu1  ;;  %5557 = vmatmul.mubr.bf16.gmra.mxu1 %v11967_v31  ;;  %5719 = vmatprep.mubr.bf16.mxu0 %v10231_v54  ;;  %v10376_v35 = vrot.slane %v3987_v53, %v11969_v52  ;;  %v3150_v8 = vadd.f32 %v10285_v27, %v9991_v18 }
 0x367   : > { %5566 = vmatprep.mubr.bf16.mxu1 %v11970_v14  ;;  %v3340_v13 = vpop.f32.mrf.mxu0  ;;  %v3339_v61 = vadd.f32 %v3338_v0, %v3146_v3  ;;  %v11972_v54 = vsub.s32 1, %v11968_v28  ;;  %v3152_v14 = vadd.f32 %v10287_v4, %v9995_v25 }
 0x368   : > { %11966 = vst [vmem:[#allocation140_spill] sm:$0xff] %v10368_v58  ;;  %v10383_v1 = vpop.f32.mrf.mxu1  ;;  %v10385_v17 = vpack.c.bf16 %v3586_v57, %v3578_v16  ;;  %v3341_v36 = vadd.f32 %v3340_v13, %v3148_v63  ;;  %v5063_v18 = vadd.f32 %v10295_v37, %v10376_v35  ;;  %v11974_v37 = vld [vmem:[#allocation104_spill] sm:$0xff] }
 0x369   : > { %v10389_v31 = vrot.slane %v3987_v53, %v11972_v54  ;;  %v3342_v52 = vpop.f32.mrf.mxu0  ;;  %v3593_v27 = vmax.f32 %v3339_v61, 0.0 }
 0x36a   : > { %11971 = vst [vmem:[#allocation141_spill] sm:$0xff] %v10385_v17  ;;  %v3343_v51 = vadd.f32 %v3342_v52, %v3150_v8  ;;  %v10393_v34 = vpop.f32.mrf.mxu1  ;;  %v3594_v25 = vmax.f32 %v3341_v36, 0.0 }
 0x36b   : > { %v3344_v32 = vpop.f32.mrf.mxu0  ;;  %v5065_v54 = vadd.f32 %v10304_v33, %v10389_v31  ;;  %v5067_v33 = vadd.f32 %v10310_v19, %v10376_v35 }
 0x36c   : > { %v3601_v0 = vmax.f32 %v3343_v51, 0.0  ;;  %v3345_v3 = vadd.f32 %v3344_v32, %v3152_v14  ;;  %v10397_v16 = vpop.f32.mrf.mxu1  ;;  %v11975_v51 = vld [vmem:[#allocation107_spill] sm:$0xff]  ;;  %v5069_v32 = vadd.f32 %v10312_v44, %v10389_v31 }
 0x36d   : > { %v5255_v53 = vpop.f32.mrf.mxu0  ;;  %5720 = vmatmul.mubr.bf16.gmra.mxu0 %v10218_v20 }
 0x36e   : > { %v10402_v13 = vpack.c.bf16 %v3601_v0, %v3593_v27  ;;  %v3602_v4 = vmax.f32 %v3345_v3, 0.0  ;;  %v10404_v57 = vpop.f32.mrf.mxu1  ;;  %v10406_v63 = vadd.f32 %v5255_v53, %v5063_v18  ;;  %5567 = vmatmul.mubr.bf16.gmra.mxu1 %v11974_v37  ;;  %5729 = vmatprep.mubr.bf16.mxu0 %v10255_v41  ;;  %v5073_v3 = vadd.f32 %v10319_v9, %v10376_v35 }
 0x36f   : > { %5576 = vmatprep.mubr.bf16.mxu1 %v11975_v51  ;;  %v5257_v14 = vpop.f32.mrf.mxu0 }
 0x370   : > { %11973 = vst [vmem:[#allocation142_spill] sm:$0xff] %v10402_v13  ;;  %v10413_v8 = vpop.f32.mrf.mxu1  ;;  %v10415_v36 = vadd.f32 %v5257_v14, %v5065_v54  ;;  %v10417_v61 = vpack.c.bf16 %v3602_v4, %v3594_v25  ;;  %v5075_v25 = vadd.f32 %v10328_v48, %v10389_v31  ;;  %v11977_v14 = vld [vmem:[#allocation106_spill] sm:$0xff]  ;;  %v5079_v48 = vadd.f32 %v10336_v24, %v10389_v31 }
 0x371   : > { %v5259_v52 = vpop.f32.mrf.mxu0 }
 0x372   : > { %11976 = vst [vmem:[#allocation143_spill] sm:$0xff] %v10417_v61  ;;  %v10421_v18 = vpop.f32.mrf.mxu1  ;;  %v10423_v27 = vadd.f32 %v5259_v52, %v5067_v33  ;;  %v11978_v33 = vld [vmem:[#allocation109_spill] sm:$0xff]  ;;  %v5077_v52 = vadd.f32 %v10334_v21, %v10376_v35 }
 0x373   : > { %v5261_v0 = vpop.f32.mrf.mxu0  ;;  %v5107_v11 = vadd.f32 %v10421_v18, %v10376_v35 }
 0x374   : > { %v10427_v53 = vpop.f32.mrf.mxu1  ;;  %v10429_v19 = vadd.f32 %v5261_v0, %v5069_v32 }
 0x375   : > { %v5265_v54 = vpop.f32.mrf.mxu0  ;;  %5730 = vmatmul.mubr.bf16.gmra.mxu0 %v10242_v39 }
 0x376   : > { %v10434_v4 = vpop.f32.mrf.mxu1  ;;  %v10436_v44 = vadd.f32 %v5265_v54, %v5073_v3  ;;  %5577 = vmatmul.mubr.bf16.gmra.mxu1 %v11977_v14  ;;  %5739 = vmatprep.mubr.bf16.mxu0 %v10279_v42 }
 0x377   : > { %5586 = vmatprep.mubr.bf16.mxu1 %v11978_v33  ;;  %v5267_v9 = vpop.f32.mrf.mxu0  ;;  %v5083_v33 = vadd.f32 %v10343_v59, %v10376_v35  ;;  %v5113_v18 = vadd.f32 %v10434_v4, %v10376_v35  ;;  %v11986_v4 = vld [vmem:[#allocation21_spill] sm:$0xff] }
 0x378   : > { %v10443_v32 = vpop.f32.mrf.mxu1  ;;  %v10445_v0 = vadd.f32 %v5267_v9, %v5075_v25  ;;  %v5085_v25 = vadd.f32 %v10352_v62, %v10389_v31  ;;  %v5089_v62 = vadd.f32 %v10363_v10, %v10389_v31 }
 0x379   : > { %v5269_v39 = vpop.f32.mrf.mxu0 }
 0x37a   : > { %v10449_v3 = vpop.f32.mrf.mxu1  ;;  %v10451_v54 = vadd.f32 %v5269_v39, %v5077_v52  ;;  %v11979_v39 = vld [vmem:[#allocation108_spill] sm:$0xff]  ;;  %v11980_v52 = vld [vmem:[#allocation111_spill] sm:$0xff] }
 0x37b   : > { %v5271_v14 = vpop.f32.mrf.mxu0 }
 0x37c   : > { %v10455_v42 = vpop.f32.mrf.mxu1  ;;  %v10457_v51 = vadd.f32 %v5271_v14, %v5079_v48  ;;  %v5087_v14 = vadd.f32 %v10358_v43, %v10376_v35 }
 0x37d   : > { %v5275_v21 = vpop.f32.mrf.mxu0  ;;  %5740 = vmatmul.mubr.bf16.gmra.mxu0 %v10266_v29 }
 0x37e   : > { %v10462_v9 = vpop.f32.mrf.mxu1  ;;  %v10464_v24 = vadd.f32 %v5275_v21, %v5083_v33  ;;  %5587 = vmatmul.mubr.bf16.gmra.mxu1 %v11979_v39  ;;  %5749 = vmatprep.mubr.bf16.mxu0 %v10306_v56 }
 0x37f   : > { %5596 = vmatprep.mubr.bf16.mxu1 %v11980_v52  ;;  %v5277_v59 = vpop.f32.mrf.mxu0  ;;  %v5093_v52 = vadd.f32 %v10370_v50, %v10376_v35 }
 0x380   : > { %v10471_v48 = vpop.f32.mrf.mxu1  ;;  %v10473_v29 = vadd.f32 %v5277_v59, %v5085_v25  ;;  %v5095_v25 = vadd.f32 %v10383_v1, %v10389_v31  ;;  %v5099_v1 = vadd.f32 %v10397_v16, %v10389_v31  ;;  %v5105_v16 = vadd.f32 %v10413_v8, %v10389_v31  ;;  %v7952_v8 = vld [vmem:[#allocation8 + $0x440] ss:$12 sps:$4 sm:$0xff]  }
 0x381   : > { %v5279_v41 = vpop.f32.mrf.mxu0 }
 0x382   : > { %v10477_v33 = vpop.f32.mrf.mxu1  ;;  %v10479_v21 = vadd.f32 %v5279_v41, %v5087_v14  ;;  %v11981_v41 = vld [vmem:[#allocation110_spill] sm:$0xff]  ;;  %v11982_v14 = vld [vmem:[#allocation17_spill] sm:$0xff] }
 0x383   : > { %v5281_v39 = vpop.f32.mrf.mxu0 }
 0x384   : > { %v10483_v56 = vpop.f32.mrf.mxu1  ;;  %v10485_v37 = vadd.f32 %v5281_v39, %v5089_v62  ;;  %v5097_v39 = vadd.f32 %v10393_v34, %v10376_v35 }
 0x385   : > { %v5285_v43 = vpop.f32.mrf.mxu0  ;;  %5750 = vmatmul.mubr.bf16.gmra.mxu0 %v10293_v12 }
 0x386   : > { %v10490_v59 = vpop.f32.mrf.mxu1  ;;  %v10492_v10 = vadd.f32 %v5285_v43, %v5093_v52  ;;  %5597 = vmatmul.mubr.bf16.gmra.mxu1 %v11981_v41  ;;  %5759 = vmatprep.mubr.bf16.mxu0 %v10330_v45  ;;  %v7947_v45 = vld [vmem:[#allocation8 + $0x3b0] ss:$12 sps:$4 sm:$0xff]  }
 0x387   : > { %5832 = vmatprep.mubr.bf16.mxu1 %v11982_v14  ;;  %v5287_v50 = vpop.f32.mrf.mxu0  ;;  %v5103_v14 = vadd.f32 %v10404_v57, %v10376_v35  ;;  %v11984_v57 = vld [vmem:[#allocation19_spill] sm:$0xff] }
 0x388   : > { %v10499_v62 = vpop.f32.mrf.mxu1  ;;  %v10501_v12 = vadd.f32 %v5287_v50, %v5095_v25 }
 0x389   : > { %v5289_v20 = vpop.f32.mrf.mxu0 }
 0x38a   : > { %v10505_v52 = vpop.f32.mrf.mxu1  ;;  %v10507_v43 = vadd.f32 %v5289_v20, %v5097_v39  ;;  %v11983_v39 = vld [vmem:[#allocation16_spill] sm:$0xff] }
 0x38b   : > { %v5291_v41 = vpop.f32.mrf.mxu0 }
 0x38c   : > { %v10511_v28 = vpop.f32.mrf.mxu1  ;;  %v10513_v34 = vadd.f32 %v5291_v41, %v5099_v1  ;;  %v7951_v1 = vld [vmem:[#allocation8 + $0x398] ss:$12 sps:$4 sm:$0xff]  }
 0x38d   : > { %v5295_v25 = vpop.f32.mrf.mxu0  ;;  %5760 = vmatmul.mubr.bf16.gmra.mxu0 %v10317_v49 }
 0x38e   : > { %v10518_v50 = vpop.f32.mrf.mxu1  ;;  %v10520_v20 = vadd.f32 %v5295_v25, %v5103_v14  ;;  %5833 = vmatmul.mubr.bf16.vlgmr.msra.gmra.mxu1 %v11983_v39  ;;  %5769 = vmatprep.mubr.bf16.mxu0 %v10354_v26  ;;  %v5109_v25 = vadd.f32 %v10427_v53, %v10389_v31  ;;  %v5115_v53 = vadd.f32 %v10443_v32, %v10389_v31  ;;  %v7960_v32 = vld [vmem:[#allocation8 + $0x410] ss:$12 sps:$4 sm:$0xff]  }
 0x38f   : > { %5840 = vmatprep.mubr.bf16.mxu1 %v11984_v57  ;;  %7332 = vmatpush3.bf16.msra.mxu1 %v7947_v45  ;;  %v5297_v41 = vpop.f32.mrf.mxu0  ;;  %v7954_v57 = vld [vmem:[#allocation8 + $0x380] ss:$12 sps:$4 sm:$0xff]  }
 0x390   : > { %v10527_v49 = vpop.f32.mrf.mxu1  ;;  %v10529_v30 = vadd.f32 %v5297_v41, %v5105_v16  ;;  %7333 = vmatprep.subr.bf16.mxu1 %v7949_v38  ;;  %v7956_v38 = vld [vmem:[#allocation8 + $0x428] ss:$12 sps:$4 sm:$0xff]  }
 0x391   : > { %v5299_v14 = vpop.f32.mrf.mxu0 }
 0x392   : > { %v10533_v39 = vpop.f32.mrf.mxu1  ;;  %v10535_v26 = vadd.f32 %v5299_v14, %v5107_v11 }
 0x393   : > { %v5301_v45 = vpop.f32.mrf.mxu0  ;;  %7334 = vmatpush3.bf16.msra.mxu1 %v7951_v1  ;;  %v11985_v1 = vld [vmem:[#allocation18_spill] sm:$0xff] }
 0x394   : > { %v10539_v22 = vpop.f32.mrf.mxu1  ;;  %v10541_v16 = vadd.f32 %v5301_v45, %v5109_v25  ;;  %7335 = vmatprep.subr.bf16.mxu1 %v7952_v8  ;;  %v7958_v8 = vld [vmem:[#allocation8 + $0x368] ss:$12 sps:$4 sm:$0xff]   ;;  %v5117_v45 = vadd.f32 %v10449_v3, %v10376_v35  ;;  %v5123_v3 = vadd.f32 %v10462_v9, %v10376_v35  ;;  %v11988_v9 = vld [vmem:[#allocation23_spill] sm:$0xff] }
 0x395   : > { %v5305_v41 = vpop.f32.mrf.mxu0  ;;  %5770 = vmatmul.mubr.bf16.gmra.mxu0 %v10341_v55 }
 0x396   : > { %v10546_v11 = vpop.f32.mrf.mxu1  ;;  %v10548_v14 = vadd.f32 %v5305_v41, %v5113_v18  ;;  %5841 = vmatmul.mubr.bf16.gmra.mxu1 %v11985_v1  ;;  %5779 = vmatprep.mubr.bf16.mxu0 %v10385_v17  ;;  %v5119_v41 = vadd.f32 %v10455_v42, %v10389_v31  ;;  %v5125_v42 = vadd.f32 %v10471_v48, %v10389_v31  ;;  %v7968_v48 = vld [vmem:[#allocation8 + $0x3e0] ss:$12 sps:$4 sm:$0xff]  }
 0x397   : > { %5848 = vmatprep.mubr.bf16.mxu1 %v11986_v4  ;;  %v5307_v25 = vpop.f32.mrf.mxu0  ;;  %7336 = vmatpush3.bf16.msra.mxu1 %v7954_v57  ;;  %v7962_v57 = vld [vmem:[#allocation8 + $0x350] ss:$12 sps:$4 sm:$0xff]  }
 0x398   : > { %v10555_v55 = vpop.f32.mrf.mxu1  ;;  %v10557_v46 = vadd.f32 %v5307_v25, %v5115_v53  ;;  %7337 = vmatprep.subr.bf16.mxu1 %v7956_v38  ;;  %v7964_v38 = vld [vmem:[#allocation8 + $0x3f8] ss:$12 sps:$4 sm:$0xff]  }
 0x399   : > { %v5309_v18 = vpop.f32.mrf.mxu0 }
 0x39a   : > { %v10561_v1 = vpop.f32.mrf.mxu1  ;;  %v10563_v17 = vadd.f32 %v5309_v18, %v5117_v45 }
 0x39b   : > { %v5311_v4 = vpop.f32.mrf.mxu0  ;;  %7338 = vmatpush3.bf16.msra.mxu1 %v7958_v8  ;;  %v11987_v8 = vld [vmem:[#allocation20_spill] sm:$0xff] }
 0x39c   : > { %v10567_v15 = vpop.f32.mrf.mxu1  ;;  %v10569_v53 = vadd.f32 %v5311_v4, %v5119_v41  ;;  %7339 = vmatprep.subr.bf16.mxu1 %v7960_v32  ;;  %v7966_v32 = vld [vmem:[#allocation8 + $0x338] ss:$12 sps:$4 sm:$0xff]   ;;  %v5127_v4 = vadd.f32 %v10477_v33, %v10376_v35  ;;  %v5133_v33 = vadd.f32 %v10490_v59, %v10376_v35  ;;  %v11995_v59 = vld [vmem:[#allocation25_spill] sm:$0xff] }
 0x39d   : > { %v5315_v25 = vpop.f32.mrf.mxu0  ;;  %5780 = vmatmul.mubr.bf16.gmra.mxu0 %v10368_v58 }
 0x39e   : > { %v10574_v45 = vpop.f32.mrf.mxu1  ;;  %v10576_v18 = vadd.f32 %v5315_v25, %v5123_v3  ;;  %5849 = vmatmul.mubr.bf16.gmra.mxu1 %v11987_v8  ;;  %5789 = vmatprep.mubr.bf16.mxu0 %v10417_v61  ;;  %v5129_v25 = vadd.f32 %v10483_v56, %v10389_v31  ;;  %v5135_v56 = vadd.f32 %v10499_v62, %v10389_v31 }
 0x39f   : > { %5856 = vmatprep.mubr.bf16.mxu1 %v11988_v9  ;;  %v5317_v41 = vpop.f32.mrf.mxu0  ;;  %7340 = vmatpush3.bf16.msra.mxu1 %v7962_v57  ;;  %v7970_v57 = vld [vmem:[#allocation8 + $0x320] ss:$12 sps:$4 sm:$0xff]  }
 0x3a0   : > { %v10583_v58 = vpop.f32.mrf.mxu1  ;;  %v10585_v6 = vadd.f32 %v5317_v41, %v5125_v42  ;;  %7341 = vmatprep.subr.bf16.mxu1 %v7964_v38  ;;  %v7972_v38 = vld [vmem:[#allocation8 + $0x3c8] ss:$12 sps:$4 sm:$0xff]  }
 0x3a1   : > { %v5319_v3 = vpop.f32.mrf.mxu0 }
 0x3a2   : > { %11989 = vst [vmem:[#allocation17_spill] sm:$0xff] %v10585_v6  ;;  %v10589_v8 = vpop.f32.mrf.mxu1  ;;  %v10591_v61 = vadd.f32 %v5319_v3, %v5127_v4 }
 0x3a3   : > { %v5321_v9 = vpop.f32.mrf.mxu0  ;;  %7342 = vmatpush3.bf16.msra.mxu1 %v7966_v32  ;;  %v11993_v32 = vld [vmem:[#allocation22_spill] sm:$0xff] }
 0x3a4   : > { %11990 = vst [vmem:[#allocation16_spill] sm:$0xff] %v10591_v61  ;;  %v10595_v7 = vpop.f32.mrf.mxu1  ;;  %v10597_v42 = vadd.f32 %v5321_v9, %v5129_v25  ;;  %7343 = vmatprep.subr.bf16.mxu1 %v7968_v48  ;;  %v7974_v48 = vld [vmem:[#allocation8 + $0x308] ss:$12 sps:$4 sm:$0xff]   ;;  %v5137_v9 = vadd.f32 %v10505_v52, %v10376_v35  ;;  %v5143_v52 = vadd.f32 %v10518_v50, %v10376_v35  ;;  %v12002_v50 = vld [vmem:[#allocation51_spill] sm:$0xff] }
 0x3a5   : > { %v5325_v41 = vpop.f32.mrf.mxu0  ;;  %5790 = vmatmul.mubr.bf16.gmra.mxu0 %v10402_v13  ;;  %v12019_v61 = vld [vmem:[#allocation28_spill] sm:$0xff] }
 0x3a6   : > { %11991 = vst [vmem:[#allocation19_spill] sm:$0xff] %v10597_v42  ;;  %v10602_v4 = vpop.f32.mrf.mxu1  ;;  %v10604_v3 = vadd.f32 %v5325_v41, %v5133_v33  ;;  %5857 = vmatmul.mubr.bf16.gmra.mxu1 %v11993_v32  ;;  %5993 = vmatprep.mubr.bf16.mxu0 %v11994_v60  ;;  %v5139_v33 = vadd.f32 %v10511_v28, %v10389_v31  ;;  %v12017_v42 = vld [vmem:[#allocation52_spill] sm:$0xff] }
 0x3a7   : > { %5864 = vmatprep.mubr.bf16.mxu1 %v11995_v59  ;;  %v5327_v25 = vpop.f32.mrf.mxu0  ;;  %7344 = vmatpush3.bf16.msra.mxu1 %v7970_v57  ;;  %v10621_v59 = vld [vmem:[#allocation8 + $0x530] ss:$12 sps:$4 sm:$0xff]  }
 0x3a8   : > { %11992 = vst [vmem:[#allocation18_spill] sm:$0xff] %v10604_v3  ;;  %v10611_v13 = vpop.f32.mrf.mxu1  ;;  %v10613_v2 = vadd.f32 %v5327_v25, %v5135_v56  ;;  %7345 = vmatprep.subr.bf16.mxu1 %v7972_v38  ;;  %v10629_v38 = vld [vmem:[#allocation8 + $0x5d8] ss:$12 sps:$4 sm:$0xff]   ;;  %v11999_v25 = vld [vmem:[#allocation48_spill] sm:$0xff] }
 0x3a9   : > { %v5329_v62 = vpop.f32.mrf.mxu0  ;;  %v10710_v3 = vld [vmem:[#allocation8 + $0x578] ss:$12 sps:$4 sm:$0xff]  }
 0x3aa   : > { %11996 = vst [vmem:[#allocation21_spill] sm:$0xff] %v10613_v2  ;;  %v10617_v41 = vpop.f32.mrf.mxu1  ;;  %v10619_v60 = vadd.f32 %v5329_v62, %v5137_v9  ;;  %v5145_v9 = vadd.f32 %v10527_v49, %v10389_v31  ;;  %v12009_v2 = vld [vmem:[#allocation26_spill] sm:$0xff] }
 0x3ab   : > { %v5331_v32 = vpop.f32.mrf.mxu0  ;;  %7346 = vmatpush3.bf16.msra.mxu1 %v7974_v48 }
 0x3ac   : > { %11997 = vst [vmem:[#allocation20_spill] sm:$0xff] %v10619_v60  ;;  %v10625_v57 = vpop.f32.mrf.mxu1  ;;  %v10627_v56 = vadd.f32 %v5331_v32, %v5139_v33  ;;  %7555 = vmatprep.subr.bf16.mxu1 %v10281_v5  ;;  %v12003_v33 = vld [vmem:[#allocation27_spill] sm:$0xff]  ;;  %v12007_v60 = vld [vmem:[#allocation50_spill] sm:$0xff] }
 0x3ad   : > { %v5335_v28 = vpop.f32.mrf.mxu0  ;;  %5994 = vmatmul.mubr.bf16.vlgmr.msra.gmra.mxu0 %v11999_v25  ;;  %v10643_v5 = vld [vmem:[#allocation8 + $0x518] ss:$12 sps:$4 sm:$0xff]   ;;  %v5147_v25 = vadd.f32 %v10533_v39, %v10376_v35  ;;  %v10661_v39 = vld [vmem:[#allocation8 + $0x500] ss:$12 sps:$4 sm:$0xff]  }
 0x3ae   : > { %11998 = vst [vmem:[#allocation23_spill] sm:$0xff] %v10627_v56  ;;  %v10635_v62 = vpop.f32.mrf.mxu1  ;;  %v10637_v48 = vadd.f32 %v5335_v28, %v5143_v52  ;;  %5865 = vmatmul.mubr.bf16.gmra.mxu1 %v12001_v40  ;;  %6001 = vmatprep.mubr.bf16.mxu0 %v12002_v50  ;;  %v10652_v52 = vld [vmem:[#allocation8 + $0x5c0] ss:$12 sps:$4 sm:$0xff]   ;;  %v5149_v28 = vadd.f32 %v10539_v22, %v10389_v31  ;;  %v10670_v56 = vld [vmem:[#allocation8 + $0x5a8] ss:$12 sps:$4 sm:$0xff]  }
 0x3af   : > { %5872 = vmatprep.mubr.bf16.mxu1 %v12003_v33  ;;  %7444 = vmatpush3.bf16.msra.mxu0 %v10621_v59  ;;  %v5337_v32 = vpop.f32.mrf.mxu0 }
 0x3b0   : > { %12000 = vst [vmem:[#allocation22_spill] sm:$0xff] %v10637_v48  ;;  %v10647_v23 = vpop.f32.mrf.mxu1  ;;  %v10649_v49 = vadd.f32 %v5337_v32, %v5145_v9  ;;  %7445 = vmatprep.subr.bf16.mxu0 %v10629_v38  ;;  %v5153_v9 = vadd.f32 %v10546_v11, %v10376_v35  ;;  %v12010_v11 = vld [vmem:[#allocation53_spill] sm:$0xff] }
 0x3b1   : > { %v5339_v40 = vpop.f32.mrf.mxu0  ;;  %12016 = vst [vmem:[#allocation53_spill] sm:$0xff] %v10710_v3 }
 0x3b2   : > { %12004 = vst [vmem:[#allocation49_spill] sm:$0xff] %v10649_v49  ;;  %v10656_v50 = vpop.f32.mrf.mxu1  ;;  %v10658_v33 = vadd.f32 %v5339_v40, %v5147_v25  ;;  %v5155_v25 = vadd.f32 %v10555_v55, %v10389_v31 }
 0x3b3   : > { %v5341_v48 = vpop.f32.mrf.mxu0  ;;  %7446 = vmatpush3.bf16.msra.mxu0 %v10643_v5 }
 0x3b4   : > { %12005 = vst [vmem:[#allocation25_spill] sm:$0xff] %v10658_v33  ;;  %v10665_v32 = vpop.f32.mrf.mxu1  ;;  %v10667_v49 = vadd.f32 %v5341_v48, %v5149_v28  ;;  %7447 = vmatprep.subr.bf16.mxu0 %v10652_v52  ;;  %v12011_v48 = vld [vmem:[#allocation29_spill] sm:$0xff] }
 0x3b5   : > { %v5345_v22 = vpop.f32.mrf.mxu0  ;;  %6002 = vmatmul.mubr.bf16.gmra.mxu0 %v12007_v60  ;;  %v5157_v60 = vadd.f32 %v10561_v1, %v10376_v35  ;;  %v10701_v1 = vld [vmem:[#allocation8 + $0x4d0] ss:$12 sps:$4 sm:$0xff]  }
 0x3b6   : > { %12006 = vst [vmem:[#allocation48_spill] sm:$0xff] %v10667_v49  ;;  %v10675_v40 = vpop.f32.mrf.mxu1  ;;  %v10677_v33 = vadd.f32 %v5345_v22, %v5153_v9  ;;  %5873 = vmatmul.mubr.bf16.gmra.mxu1 %v12009_v2  ;;  %6009 = vmatprep.mubr.bf16.mxu0 %v12010_v11  ;;  %v10683_v49 = vld [vmem:[#allocation8 + $0x4e8] ss:$12 sps:$4 sm:$0xff]   ;;  %v10692_v9 = vld [vmem:[#allocation8 + $0x590] ss:$12 sps:$4 sm:$0xff]   ;;  %v5159_v22 = vadd.f32 %v10567_v15, %v10389_v31  ;;  %12014 = vst [vmem:[#allocation50_spill] sm:$0xff] %v10701_v1 }
 0x3b7   : > { %5880 = vmatprep.mubr.bf16.mxu1 %v12011_v48  ;;  %v5347_v28 = vpop.f32.mrf.mxu0  ;;  %7448 = vmatpush3.bf16.msra.mxu0 %v10661_v39 }
 0x3b8   : > { %12008 = vst [vmem:[#allocation24_spill] sm:$0xff] %v10677_v33  ;;  %v10687_v47 = vpop.f32.mrf.mxu1  ;;  %v10689_v55 = vadd.f32 %v5347_v28, %v5155_v25  ;;  %7449 = vmatprep.subr.bf16.mxu0 %v10670_v56  ;;  %v5163_v25 = vadd.f32 %v10574_v45, %v10376_v35  ;;  %v12020_v45 = vld [vmem:[#allocation55_spill] sm:$0xff] }
 0x3b9   : > { %v5349_v2 = vpop.f32.mrf.mxu0 }
 0x3ba   : > { %12012 = vst [vmem:[#allocation51_spill] sm:$0xff] %v10689_v55  ;;  %v10696_v11 = vpop.f32.mrf.mxu1  ;;  %v10698_v48 = vadd.f32 %v5349_v2, %v5157_v60  ;;  %v5165_v60 = vadd.f32 %v10583_v58, %v10389_v31 }
 0x3bb   : > { %v5351_v33 = vpop.f32.mrf.mxu0  ;;  %7450 = vmatpush3.bf16.msra.mxu0 %v10683_v49 }
 0x3bc   : > { %12013 = vst [vmem:[#allocation27_spill] sm:$0xff] %v10698_v48  ;;  %v10705_v28 = vpop.f32.mrf.mxu1  ;;  %v10707_v55 = vadd.f32 %v5351_v33, %v5159_v22  ;;  %7451 = vmatprep.subr.bf16.mxu0 %v10692_v9  ;;  %v12021_v33 = vld [vmem:[#allocation31_spill] sm:$0xff] }
 0x3bd   : > { %v5355_v15 = vpop.f32.mrf.mxu0  ;;  %6010 = vmatmul.mubr.bf16.gmra.mxu0 %v12017_v42  ;;  %v5167_v42 = vadd.f32 %v10589_v8, %v10376_v35  ;;  %v10741_v8 = vld [vmem:[#allocation8 + $0x4a0] ss:$12 sps:$4 sm:$0xff]  }
 0x3be   : > { %12015 = vst [vmem:[#allocation26_spill] sm:$0xff] %v10707_v55  ;;  %v10715_v2 = vpop.f32.mrf.mxu1  ;;  %v10717_v48 = vadd.f32 %v5355_v15, %v5163_v25  ;;  %5881 = vmatmul.mubr.bf16.gmra.mxu1 %v12019_v61  ;;  %6017 = vmatprep.mubr.bf16.mxu0 %v12020_v45  ;;  %v10723_v55 = vld [vmem:[#allocation8 + $0x4b8] ss:$12 sps:$4 sm:$0xff]   ;;  %v10732_v25 = vld [vmem:[#allocation8 + $0x560] ss:$12 sps:$4 sm:$0xff]   ;;  %v5169_v15 = vadd.f32 %v10595_v7, %v10389_v31 }
 0x3bf   : > { %5888 = vmatprep.mubr.bf16.mxu1 %v12021_v33  ;;  %v5357_v22 = vpop.f32.mrf.mxu0  ;;  %7452 = vmatpush3.bf16.msra.mxu0 %v10701_v1  ;;  %12022 = vst [vmem:[#allocation52_spill] sm:$0xff] %v10723_v55  ;;  %12024 = vst [vmem:[#allocation55_spill] sm:$0xff] %v10732_v25  ;;  %v12028_v1 = vld [vmem:[#allocation54_spill] sm:$0xff] }
 0x3c0   : > { %12018 = vst [vmem:[#allocation29_spill] sm:$0xff] %v10717_v48  ;;  %v10727_v6 = vpop.f32.mrf.mxu1  ;;  %v10729_v58 = vadd.f32 %v5357_v22, %v5165_v60  ;;  %7453 = vmatprep.subr.bf16.mxu0 %v10710_v3  ;;  %v5173_v60 = vadd.f32 %v10602_v4, %v10376_v35  ;;  %v10750_v3 = vld [vmem:[#allocation8 + $0x548] ss:$12 sps:$4 sm:$0xff]  }
 0x3c1   : > { %v5359_v61 = vpop.f32.mrf.mxu0  ;;  %12027 = vst [vmem:[#allocation145_spill] sm:$0xff] %v10750_v3  ;;  %v12031_v4 = vld [vmem:[#allocation57_spill] sm:$0xff] }
 0x3c2   : > { %12023 = vst [vmem:[#allocation28_spill] sm:$0xff] %v10729_v58  ;;  %v10736_v45 = vpop.f32.mrf.mxu1  ;;  %v10738_v33 = vadd.f32 %v5359_v61, %v5167_v42  ;;  %v5175_v42 = vadd.f32 %v10611_v13, %v10389_v31 }
 0x3c3   : > { %v5361_v48 = vpop.f32.mrf.mxu0  ;;  %7454 = vmatpush3.bf16.msra.mxu0 %v10723_v55  ;;  %v12030_v55 = vld [vmem:[#allocation30_spill] sm:$0xff] }
 0x3c4   : > { %12025 = vst [vmem:[#allocation31_spill] sm:$0xff] %v10738_v33  ;;  %v10745_v22 = vpop.f32.mrf.mxu1  ;;  %v10747_v58 = vadd.f32 %v5361_v48, %v5169_v15  ;;  %7455 = vmatprep.subr.bf16.mxu0 %v10732_v25  ;;  %v12032_v48 = vld [vmem:[#allocation33_spill] sm:$0xff] }
 0x3c5   : > { %v5365_v7 = vpop.f32.mrf.mxu0  ;;  %6018 = vmatmul.mubr.bf16.gmra.mxu0 %v12028_v1  ;;  %v5177_v1 = vadd.f32 %v10617_v41, %v10376_v35  ;;  %v5183_v41 = vadd.f32 %v10635_v62, %v10376_v35 }
 0x3c6   : > { %12026 = vst [vmem:[#allocation144_spill] sm:$0xff] %v10747_v58  ;;  %v10755_v61 = vpop.f32.mrf.mxu1  ;;  %v10757_v33 = vadd.f32 %v5365_v7, %v5173_v60  ;;  %5889 = vmatmul.mubr.bf16.gmra.mxu1 %v12030_v55  ;;  %6025 = vmatprep.mubr.bf16.mxu0 %v12031_v4  ;;  %v10763_v58 = vld [vmem:[#allocation8 + $0x488] ss:$12 sps:$4 sm:$0xff]   ;;  %v5179_v55 = vadd.f32 %v10625_v57, %v10389_v31 }
 0x3c7   : > { %5896 = vmatprep.mubr.bf16.mxu1 %v12032_v48  ;;  %v5367_v15 = vpop.f32.mrf.mxu0  ;;  %7456 = vmatpush3.bf16.msra.mxu0 %v10741_v8  ;;  %12033 = vst [vmem:[#allocation30_spill] sm:$0xff] %v10763_v58  ;;  %v5185_v57 = vadd.f32 %v10647_v23, %v10389_v31  ;;  %v5189_v23 = vadd.f32 %v10665_v32, %v10389_v31 }
 0x3c8   : > { %12029 = vst [vmem:[#allocation54_spill] sm:$0xff] %v10757_v33  ;;  %v10767_v25 = vpop.f32.mrf.mxu1  ;;  %v10769_v13 = vadd.f32 %v5367_v15, %v5175_v42  ;;  %7457 = vmatprep.subr.bf16.mxu0 %v10750_v3 }
 0x3c9   : > { %v5369_v60 = vpop.f32.mrf.mxu0 }
 0x3ca   : > { %12034 = vst [vmem:[#allocation57_spill] sm:$0xff] %v10769_v13  ;;  %v10774_v7 = vpop.f32.mrf.mxu1  ;;  %v10776_v4 = vadd.f32 %v5369_v60, %v5177_v1  ;;  %v12037_v13 = vld [vmem:[#allocation56_spill] sm:$0xff] }
 0x3cb   : > { %v5371_v48 = vpop.f32.mrf.mxu0  ;;  %7458 = vmatpush3.bf16.msra.mxu0 %v10763_v58  ;;  %v12039_v60 = vld [vmem:[#allocation32_spill] sm:$0xff]  ;;  %v12041_v58 = vld [vmem:[#allocation35_spill] sm:$0xff] }
 0x3cc   : > { %12035 = vst [vmem:[#allocation33_spill] sm:$0xff] %v10776_v4  ;;  %v10781_v33 = vpop.f32.mrf.mxu1  ;;  %v10783_v42 = vadd.f32 %v5371_v48, %v5179_v55  ;;  %v12040_v4 = vld [vmem:[#allocation59_spill] sm:$0xff]  ;;  %v5187_v55 = vadd.f32 %v10656_v50, %v10376_v35 }
 0x3cd   : > { %v5375_v15 = vpop.f32.mrf.mxu0  ;;  %6026 = vmatmul.mubr.bf16.gmra.mxu0 %v12037_v13 }
 0x3ce   : > { %12036 = vst [vmem:[#allocation146_spill] sm:$0xff] %v10783_v42  ;;  %v10788_v3 = vadd.f32 %v5375_v15, %v5183_v41  ;;  %v10790_v1 = vpop.f32.mrf.mxu1  ;;  %5897 = vmatmul.mubr.bf16.gmra.mxu1 %v12039_v60  ;;  %6033 = vmatprep.mubr.bf16.mxu0 %v12040_v4 }
 0x3cf   : > { %5904 = vmatprep.mubr.bf16.mxu1 %v12041_v58  ;;  %v5377_v62 = vpop.f32.mrf.mxu0  ;;  %v5193_v58 = vadd.f32 %v10675_v40, %v10376_v35 }
 0x3d0   : > { %12038 = vst [vmem:[#allocation56_spill] sm:$0xff] %v10788_v3  ;;  %v10797_v48 = vadd.f32 %v5377_v62, %v5185_v57  ;;  %v10799_v13 = vpop.f32.mrf.mxu1  ;;  %v12045_v57 = vld [vmem:[#allocation58_spill] sm:$0xff]  ;;  %v5195_v62 = vadd.f32 %v10687_v47, %v10389_v31  ;;  %v5199_v47 = vadd.f32 %v10705_v28, %v10389_v31 }
 0x3d1   : > { %v5379_v42 = vpop.f32.mrf.mxu0 }
 0x3d2   : > { %12042 = vst [vmem:[#allocation32_spill] sm:$0xff] %v10797_v48  ;;  %v10803_v41 = vadd.f32 %v5379_v42, %v5187_v55  ;;  %v10805_v15 = vpop.f32.mrf.mxu1  ;;  %v12047_v42 = vld [vmem:[#allocation34_spill] sm:$0xff]  ;;  %v12048_v55 = vld [vmem:[#allocation61_spill] sm:$0xff] }
 0x3d3   : > { %v5381_v60 = vpop.f32.mrf.mxu0 }
 0x3d4   : > { %12043 = vst [vmem:[#allocation59_spill] sm:$0xff] %v10803_v41  ;;  %v10809_v4 = vadd.f32 %v5381_v60, %v5189_v23  ;;  %v10811_v3 = vpop.f32.mrf.mxu1  ;;  %v12049_v41 = vld [vmem:[#allocation37_spill] sm:$0xff]  ;;  %v5197_v23 = vadd.f32 %v10696_v11, %v10376_v35 }
 0x3d5   : > { %v5385_v50 = vpop.f32.mrf.mxu0  ;;  %6034 = vmatmul.mubr.bf16.gmra.mxu0 %v12045_v57 }
 0x3d6   : > { %12044 = vst [vmem:[#allocation35_spill] sm:$0xff] %v10809_v4  ;;  %v10816_v48 = vadd.f32 %v5385_v50, %v5193_v58  ;;  %v10818_v32 = vpop.f32.mrf.mxu1  ;;  %5905 = vmatmul.mubr.bf16.gmra.mxu1 %v12047_v42  ;;  %6041 = vmatprep.mubr.bf16.mxu0 %v12048_v55 }
 0x3d7   : > { %5912 = vmatprep.mubr.bf16.mxu1 %v12049_v41  ;;  %v5387_v40 = vpop.f32.mrf.mxu0  ;;  %v5203_v41 = vadd.f32 %v10715_v2, %v10376_v35 }
 0x3d8   : > { %12046 = vst [vmem:[#allocation58_spill] sm:$0xff] %v10816_v48  ;;  %v10825_v60 = vadd.f32 %v5387_v40, %v5195_v62  ;;  %v10827_v57 = vpop.f32.mrf.mxu1  ;;  %v12053_v62 = vld [vmem:[#allocation60_spill] sm:$0xff]  ;;  %v5205_v40 = vadd.f32 %v10727_v6, %v10389_v31  ;;  %v5209_v6 = vadd.f32 %v10745_v22, %v10389_v31 }
 0x3d9   : > { %v5389_v4 = vpop.f32.mrf.mxu0 }
 0x3da   : > { %12050 = vst [vmem:[#allocation34_spill] sm:$0xff] %v10825_v60  ;;  %v10831_v58 = vadd.f32 %v5389_v4, %v5197_v23  ;;  %v10833_v50 = vpop.f32.mrf.mxu1  ;;  %v12055_v4 = vld [vmem:[#allocation36_spill] sm:$0xff]  ;;  %v12056_v23 = vld [vmem:[#allocation63_spill] sm:$0xff] }
 0x3db   : > { %v5391_v42 = vpop.f32.mrf.mxu0 }
 0x3dc   : > { %12051 = vst [vmem:[#allocation61_spill] sm:$0xff] %v10831_v58  ;;  %v10837_v55 = vadd.f32 %v5391_v42, %v5199_v47  ;;  %v10839_v48 = vpop.f32.mrf.mxu1  ;;  %v12057_v58 = vld [vmem:[#allocation39_spill] sm:$0xff]  ;;  %v5207_v47 = vadd.f32 %v10736_v45, %v10376_v35 }
 0x3dd   : > { %v5395_v11 = vpop.f32.mrf.mxu0  ;;  %6042 = vmatmul.mubr.bf16.gmra.mxu0 %v12053_v62 }
 0x3de   : > { %12052 = vst [vmem:[#allocation37_spill] sm:$0xff] %v10837_v55  ;;  %v10844_v60 = vadd.f32 %v5395_v11, %v5203_v41  ;;  %v10846_v28 = vpop.f32.mrf.mxu1  ;;  %5913 = vmatmul.mubr.bf16.gmra.mxu1 %v12055_v4  ;;  %6049 = vmatprep.mubr.bf16.mxu0 %v12056_v23 }
 0x3df   : > { %5920 = vmatprep.mubr.bf16.mxu1 %v12057_v58  ;;  %v5397_v2 = vpop.f32.mrf.mxu0  ;;  %v5213_v58 = vadd.f32 %v10755_v61, %v10376_v35  ;;  %v12064_v61 = vld [vmem:[#allocation41_spill] sm:$0xff] }
 0x3e0   : > { %12054 = vst [vmem:[#allocation60_spill] sm:$0xff] %v10844_v60  ;;  %v10853_v42 = vadd.f32 %v5397_v2, %v5205_v40  ;;  %v10855_v62 = vpop.f32.mrf.mxu1  ;;  %v12061_v2 = vld [vmem:[#allocation62_spill] sm:$0xff] }
 0x3e1   : > { %v5399_v55 = vpop.f32.mrf.mxu0 }
 0x3e2   : > { %12058 = vst [vmem:[#allocation36_spill] sm:$0xff] %v10853_v42  ;;  %v10859_v41 = vadd.f32 %v5399_v55, %v5207_v47  ;;  %v10861_v11 = vpop.f32.mrf.mxu1  ;;  %v5215_v42 = vadd.f32 %v10767_v25, %v10389_v31  ;;  %v12062_v47 = vld [vmem:[#allocation38_spill] sm:$0xff]  ;;  %v5219_v25 = vadd.f32 %v10781_v33, %v10389_v31  ;;  %v12067_v33 = vld [vmem:[#allocation40_spill] sm:$0xff] }
 0x3e3   : > { %v5401_v4 = vpop.f32.mrf.mxu0 }
 0x3e4   : > { %12059 = vst [vmem:[#allocation63_spill] sm:$0xff] %v10859_v41  ;;  %v10865_v23 = vadd.f32 %v5401_v4, %v5209_v6  ;;  %v10867_v45 = vpop.f32.mrf.mxu1  ;;  %v12063_v41 = vld [vmem:[#allocation65_spill] sm:$0xff]  ;;  %v5217_v4 = vadd.f32 %v10774_v7, %v10376_v35 }
 0x3e5   : > { %v5405_v40 = vpop.f32.mrf.mxu0  ;;  %6050 = vmatmul.mubr.bf16.gmra.mxu0 %v12061_v2 }
 0x3e6   : > { %12060 = vst [vmem:[#allocation39_spill] sm:$0xff] %v10865_v23  ;;  %v10872_v22 = vadd.f32 %v5405_v40, %v5213_v58  ;;  %v10874_v55 = vpop.f32.mrf.mxu1  ;;  %5921 = vmatmul.mubr.bf16.gmra.mxu1 %v12062_v47  ;;  %6057 = vmatprep.mubr.bf16.mxu0 %v12063_v41  ;;  %v5449_v47 = vadd.f32 %v10790_v1, %v10406_v63 }
 0x3e7   : > { %5928 = vmatprep.mubr.bf16.mxu1 %v12064_v61  ;;  %v5407_v6 = vpop.f32.mrf.mxu0  ;;  %v5453_v1 = vadd.f32 %v10805_v15, %v10423_v27  ;;  %v5459_v27 = vadd.f32 %v10818_v32, %v10436_v44  ;;  %v12073_v44 = vld [vmem:[#allocation45_spill] sm:$0xff] }
 0x3e8   : > { %v10881_v23 = vadd.f32 %v5407_v6, %v5215_v42  ;;  %v10883_v2 = vpop.f32.mrf.mxu1  ;;  %v12066_v42 = vld [vmem:[#allocation64_spill] sm:$0xff]  ;;  %v5451_v6 = vadd.f32 %v10799_v13, %v10415_v36 }
 0x3e9   : > { %v5409_v60 = vpop.f32.mrf.mxu0 }
 0x3ea   : > { %12065 = vst [vmem:[#allocation62_spill] sm:$0xff] %v10881_v23  ;;  %v10888_v58 = vadd.f32 %v5409_v60, %v5217_v4  ;;  %v10890_v40 = vpop.f32.mrf.mxu1  ;;  %v12068_v60 = vld [vmem:[#allocation67_spill] sm:$0xff] }
 0x3eb   : > { %v5411_v41 = vpop.f32.mrf.mxu0  ;;  %v12069_v4 = vld [vmem:[#allocation43_spill] sm:$0xff] }
 0x3ec   : > { %v10894_v61 = vadd.f32 %v5411_v41, %v5219_v25  ;;  %v10896_v35 = vpop.f32.mrf.mxu1  ;;  %v5455_v41 = vadd.f32 %v10811_v3, %v10429_v19  ;;  %v5461_v19 = vadd.f32 %v10827_v57, %v10445_v0 }
 0x3ed   : > { %v5641_v7 = vpop.f32.mrf.mxu0  ;;  %6058 = vmatmul.mubr.bf16.gmra.mxu0 %v12066_v42 }
 0x3ee   : > { %v10901_v23 = vpop.f32.mrf.mxu1  ;;  %v5642_v31 = vadd.f32 %v5641_v7, %v5449_v47  ;;  %5929 = vmatmul.mubr.bf16.gmra.mxu1 %v12067_v33  ;;  %6065 = vmatprep.mubr.bf16.mxu0 %v12068_v60  ;;  %v12070_v60 = vld [vmem:[#allocation66_spill] sm:$0xff] }
 0x3ef   : > { %5936 = vmatprep.mubr.bf16.mxu1 %v12069_v4  ;;  %v5643_v63 = vpop.f32.mrf.mxu0  ;;  %v12071_v4 = vld [vmem:[#allocation42_spill] sm:$0xff] }
 0x3f0   : > { %6444 = vst [vmem:[%s10908_s13] sm:$0xff] %v5642_v31  ;;  %v10911_v36 = vpop.f32.mrf.mxu1  ;;  %v5644_v13 = vadd.f32 %v5643_v63, %v5451_v6  ;;  %v12072_v63 = vld [vmem:[#allocation69_spill] sm:$0xff] }
 0x3f1   : > { %v5645_v25 = vpop.f32.mrf.mxu0 }
 0x3f2   : > { %6445 = vst [vmem:[%s10908_s13 + $0x8] sm:$0xff] %v5644_v13  ;;  %v10916_v47 = vpop.f32.mrf.mxu1  ;;  %v5646_v7 = vadd.f32 %v5645_v25, %v5453_v1  ;;  %v5463_v1 = vadd.f32 %v10833_v50, %v10451_v54  ;;  %v5465_v25 = vadd.f32 %v10839_v48, %v10457_v51  ;;  %v5471_v51 = vadd.f32 %v10855_v62, %v10473_v29 }
 0x3f3   : > { %v5647_v42 = vpop.f32.mrf.mxu0 }
 0x3f4   : > { %6447 = vst [vmem:[%s10908_s13 + $0x18] sm:$0xff] %v5646_v7  ;;  %v10921_v15 = vpop.f32.mrf.mxu1  ;;  %v5648_v31 = vadd.f32 %v5647_v42, %v5455_v41 }
 0x3f5   : > { %v5651_v33 = vpop.f32.mrf.mxu0  ;;  %6066 = vmatmul.mubr.bf16.gmra.mxu0 %v12070_v60 }
 0x3f6   : > { %6448 = vst [vmem:[%s10908_s13 + $0x20] sm:$0xff] %v5648_v31  ;;  %v10927_v3 = vpop.f32.mrf.mxu1  ;;  %v5652_v6 = vadd.f32 %v5651_v33, %v5459_v27  ;;  %5937 = vmatmul.mubr.bf16.gmra.mxu1 %v12071_v4  ;;  %6073 = vmatprep.mubr.bf16.mxu0 %v12072_v63  ;;  %v5469_v27 = vadd.f32 %v10846_v28, %v10464_v24  ;;  %v12074_v33 = vld [vmem:[#allocation68_spill] sm:$0xff]  ;;  %v12077_v24 = vld [vmem:[#allocation47_spill] sm:$0xff] }
 0x3f7   : > { %5944 = vmatprep.mubr.bf16.mxu1 %v12073_v44  ;;  %v5653_v32 = vpop.f32.mrf.mxu0  ;;  %v5473_v4 = vadd.f32 %v10861_v11, %v10479_v21  ;;  %v5475_v44 = vadd.f32 %v10867_v45, %v10485_v37  ;;  %v5481_v37 = vadd.f32 %v10883_v2, %v10501_v12 }
 0x3f8   : > { %6450 = vst [vmem:[%s10908_s13 + $0x30] sm:$0xff] %v5652_v6  ;;  %v10935_v13 = vpop.f32.mrf.mxu1  ;;  %v5654_v0 = vadd.f32 %v5653_v32, %v5461_v19  ;;  %v12075_v19 = vld [vmem:[#allocation44_spill] sm:$0xff]  ;;  %v12076_v6 = vld [vmem:[#allocation71_spill] sm:$0xff] }
 0x3f9   : > { %v5655_v57 = vpop.f32.mrf.mxu0 }
 0x3fa   : > { %6451 = vst [vmem:[%s10908_s13 + $0x38] sm:$0xff] %v5654_v0  ;;  %v10940_v41 = vpop.f32.mrf.mxu1  ;;  %v5656_v7 = vadd.f32 %v5655_v57, %v5463_v1  ;;  %v5479_v57 = vadd.f32 %v10874_v55, %v10492_v10  ;;  %v12081_v10 = vld [vmem:[#allocation81_spill] sm:$0xff] }
 0x3fb   : > { %v5657_v42 = vpop.f32.mrf.mxu0 }
 0x3fc   : > { %6453 = vst [vmem:[%s10908_s13 + $0x48] sm:$0xff] %v5656_v7  ;;  %v10945_v54 = vpop.f32.mrf.mxu1  ;;  %v5658_v50 = vadd.f32 %v5657_v42, %v5465_v25  ;;  %v12078_v7 = vld [vmem:[#allocation70_spill] sm:$0xff] }
 0x3fd   : > { %v5661_v31 = vpop.f32.mrf.mxu0  ;;  %6074 = vmatmul.mubr.bf16.gmra.mxu0 %v12074_v33 }
 0x3fe   : > { %6454 = vst [vmem:[%s10908_s13 + $0x50] sm:$0xff] %v5658_v50  ;;  %v10951_v48 = vpop.f32.mrf.mxu1  ;;  %v5662_v60 = vadd.f32 %v5661_v31, %v5469_v27  ;;  %5945 = vmatmul.mubr.bf16.gmra.mxu1 %v12075_v19  ;;  %6081 = vmatprep.mubr.bf16.mxu0 %v12076_v6  ;;  %v12079_v27 = vld [vmem:[#allocation46_spill] sm:$0xff]  ;;  %v12080_v50 = vld [vmem:[#allocation73_spill] sm:$0xff]  ;;  %v5483_v31 = vadd.f32 %v10890_v40, %v10507_v43 }
 0x3ff   : > { %5952 = vmatprep.mubr.bf16.mxu1 %v12077_v24  ;;  %v5663_v28 = vpop.f32.mrf.mxu0  ;;  %v5489_v24 = vadd.f32 %v10901_v23, %v10520_v20  ;;  %v12085_v20 = vld [vmem:[#allocation83_spill] sm:$0xff] }
 0x400   : > { %6456 = vst [vmem:[%s10908_s13 + $0x60] sm:$0xff] %v5662_v60  ;;  %v10959_v63 = vpop.f32.mrf.mxu1  ;;  %v5664_v29 = vadd.f32 %v5663_v28, %v5471_v51  ;;  %v5485_v51 = vadd.f32 %v10896_v35, %v10513_v34 }
 0x401   : > { %v5665_v62 = vpop.f32.mrf.mxu0 }
 0x402   : > { %6457 = vst [vmem:[%s10908_s13 + $0x68] sm:$0xff] %v5664_v29  ;;  %v10964_v32 = vpop.f32.mrf.mxu1  ;;  %v5666_v1 = vadd.f32 %v5665_v62, %v5473_v4  ;;  %v12082_v4 = vld [vmem:[#allocation72_spill] sm:$0xff]  ;;  %v5491_v29 = vadd.f32 %v10911_v36, %v10529_v30 }
 0x403   : > { %v5667_v0 = vpop.f32.mrf.mxu0  ;;  %v12083_v62 = vld [vmem:[#allocation80_spill] sm:$0xff] }
 0x404   : > { %6459 = vst [vmem:[%s10908_s13 + $0x78] sm:$0xff] %v5666_v1  ;;  %v10969_v21 = vpop.f32.mrf.mxu1  ;;  %v5668_v11 = vadd.f32 %v5667_v0, %v5475_v44  ;;  %v12084_v44 = vld [vmem:[#allocation75_spill] sm:$0xff]  ;;  %v5493_v1 = vadd.f32 %v10916_v47, %v10535_v26  ;;  %v5499_v26 = vadd.f32 %v10927_v3, %v10548_v14  ;;  %v12088_v14 = vld [vmem:[#allocation77_spill] sm:$0xff] }
 0x405   : > { %v5671_v25 = vpop.f32.mrf.mxu0  ;;  %6082 = vmatmul.mubr.bf16.gmra.mxu0 %v12078_v7  ;;  %v12089_v3 = vld [vmem:[#allocation85_spill] sm:$0xff] }
 0x406   : > { %6460 = vst [vmem:[%s10908_s13 + $0x80] sm:$0xff] %v5668_v11  ;;  %v10975_v45 = vpop.f32.mrf.mxu1  ;;  %v5672_v42 = vadd.f32 %v5671_v25, %v5479_v57  ;;  %5953 = vmatmul.mubr.bf16.gmra.mxu1 %v12079_v27  ;;  %6089 = vmatprep.mubr.bf16.mxu0 %v12080_v50  ;;  %v5495_v57 = vadd.f32 %v10921_v15, %v10541_v16 }
 0x407   : > { %6154 = vmatprep.mubr.bf16.mxu1 %v12081_v10  ;;  %v5673_v55 = vpop.f32.mrf.mxu0  ;;  %v5501_v16 = vadd.f32 %v10935_v13, %v10557_v46  ;;  %v5505_v10 = vadd.f32 %v10945_v54, %v10569_v53  ;;  %v12091_v53 = vld [vmem:[#allocation17_spill] sm:$0xff] }
 0x408   : > { %6462 = vst [vmem:[%s10908_s13 + $0x90] sm:$0xff] %v5672_v42  ;;  %v10983_v33 = vpop.f32.mrf.mxu1  ;;  %v5674_v12 = vadd.f32 %v5673_v55, %v5481_v37  ;;  %v12086_v37 = vld [vmem:[#allocation74_spill] sm:$0xff]  ;;  %v5511_v54 = vadd.f32 %v10959_v63, %v12091_v53 }
 0x409   : > { %v5675_v2 = vpop.f32.mrf.mxu0  ;;  %v12087_v42 = vld [vmem:[#allocation82_spill] sm:$0xff] }
 0x40a   : > { %6463 = vst [vmem:[%s10908_s13 + $0x98] sm:$0xff] %v5674_v12  ;;  %v10988_v60 = vpop.f32.mrf.mxu1  ;;  %v5676_v19 = vadd.f32 %v5675_v2, %v5483_v31  ;;  %v12090_v2 = vld [vmem:[#allocation76_spill] sm:$0xff] }
 0x40b   : > { %v5677_v6 = vpop.f32.mrf.mxu0 }
 0x40c   : > { %6465 = vst [vmem:[%s10908_s13 + $0xa8] sm:$0xff] %v5676_v19  ;;  %v10993_v43 = vpop.f32.mrf.mxu1  ;;  %v5678_v40 = vadd.f32 %v5677_v6, %v5485_v51  ;;  %v12092_v19 = vld [vmem:[#allocation84_spill] sm:$0xff] }
 0x40d   : > { %v5681_v28 = vpop.f32.mrf.mxu0  ;;  %6090 = vmatmul.mubr.bf16.gmra.mxu0 %v12082_v4  ;;  %v12097_v4 = vld [vmem:[#allocation53_spill] sm:$0xff] }
 0x40e   : > { %6466 = vst [vmem:[%s10908_s13 + $0xb0] sm:$0xff] %v5678_v40  ;;  %v10999_v34 = vpop.f32.mrf.mxu1  ;;  %v5682_v35 = vadd.f32 %v5681_v28, %v5489_v24  ;;  %6155 = vmatmul.mubr.bf16.vlgmr.msra.gmra.mxu1 %v12083_v62  ;;  %6097 = vmatprep.mubr.bf16.mxu0 %v12084_v44  ;;  %v12096_v24 = vld [vmem:[#allocation16_spill] sm:$0xff] }
 0x40f   : > { %6162 = vmatprep.mubr.bf16.mxu1 %v12085_v20  ;;  %7563 = vmatpush3.bf16.msra.mxu1 %v10621_v59  ;;  %v5683_v23 = vpop.f32.mrf.mxu0  ;;  %v5513_v40 = vadd.f32 %v10964_v32, %v12096_v24  ;;  %v12117_v24 = vld [vmem:[#allocation25_spill] sm:$0xff] }
 0x410   : > { %6468 = vst [vmem:[%s10908_s13 + $0xc0] sm:$0xff] %v5682_v35  ;;  %v11008_v30 = vpop.f32.mrf.mxu1  ;;  %v5684_v36 = vadd.f32 %v5683_v23, %v5491_v29  ;;  %7556 = vmatprep.subr.bf16.mxu1 %v10629_v38  ;;  %v12098_v35 = vld [vmem:[#allocation19_spill] sm:$0xff] }
 0x411   : > { %v5685_v0 = vpop.f32.mrf.mxu0  ;;  %v5515_v62 = vadd.f32 %v10969_v21, %v12098_v35  ;;  %v12103_v21 = vld [vmem:[#allocation21_spill] sm:$0xff] }
 0x412   : > { %6469 = vst [vmem:[%s10908_s13 + $0xc8] sm:$0xff] %v5684_v36  ;;  %v11014_v11 = vpop.f32.mrf.mxu1  ;;  %v5686_v25 = vadd.f32 %v5685_v0, %v5493_v1  ;;  %v12099_v1 = vld [vmem:[#allocation52_spill] sm:$0xff]  ;;  %v12100_v36 = vld [vmem:[#allocation18_spill] sm:$0xff] }
 0x413   : > { %v5687_v59 = vpop.f32.mrf.mxu0  ;;  %7564 = vmatpush3.bf16.msra.mxu1 %v10643_v5  ;;  %v5519_v32 = vadd.f32 %v10975_v45, %v12100_v36  ;;  %v12105_v45 = vld [vmem:[#allocation113_spill] sm:$0xff] }
 0x414   : > { %6471 = vst [vmem:[%s10908_s13 + $0xd8] sm:$0xff] %v5686_v25  ;;  %v11020_v47 = vpop.f32.mrf.mxu1  ;;  %v5688_v38 = vadd.f32 %v5687_v59, %v5495_v57  ;;  %7557 = vmatprep.subr.bf16.mxu1 %v10652_v52  ;;  %v5503_v52 = vadd.f32 %v10940_v41, %v10563_v17  ;;  %v5509_v17 = vadd.f32 %v10951_v48, %v10576_v18  ;;  %v12093_v18 = vld [vmem:[#allocation79_spill] sm:$0xff] }
 0x415   : > { %v5691_v7 = vpop.f32.mrf.mxu0  ;;  %6098 = vmatmul.mubr.bf16.gmra.mxu0 %v12086_v37  ;;  %v12094_v48 = vld [vmem:[#allocation87_spill] sm:$0xff] }
 0x416   : > { %6472 = vst [vmem:[%s10908_s13 + $0xe0] sm:$0xff] %v5688_v38  ;;  %v11027_v15 = vpop.f32.mrf.mxu1  ;;  %v5692_v5 = vadd.f32 %v5691_v7, %v5499_v26  ;;  %6163 = vmatmul.mubr.bf16.gmra.mxu1 %v12087_v42  ;;  %6105 = vmatprep.mubr.bf16.mxu0 %v12088_v14  ;;  %v12101_v25 = vld [vmem:[#allocation55_spill] sm:$0xff]  ;;  %v12102_v26 = vld [vmem:[#allocation78_spill] sm:$0xff]  ;;  %v5521_v38 = vadd.f32 %v10983_v33, %v12103_v21  ;;  %v12107_v14 = vld [vmem:[#allocation20_spill] sm:$0xff] }
 0x417   : > { %6170 = vmatprep.mubr.bf16.mxu1 %v12089_v3  ;;  %v5693_v27 = vpop.f32.mrf.mxu0  ;;  %7565 = vmatpush3.bf16.msra.mxu1 %v10661_v39  ;;  %v5523_v3 = vadd.f32 %v10988_v60, %v12107_v14 }
 0x418   : > { %6474 = vst [vmem:[%s10908_s13 + $0xf0] sm:$0xff] %v5692_v5  ;;  %v11036_v46 = vpop.f32.mrf.mxu1  ;;  %v5694_v13 = vadd.f32 %v5693_v27, %v5501_v16  ;;  %7558 = vmatprep.subr.bf16.mxu1 %v10670_v56  ;;  %v12104_v16 = vld [vmem:[#allocation86_spill] sm:$0xff]  ;;  %v12106_v5 = vld [vmem:[#allocation89_spill] sm:$0xff] }
 0x419   : > { %v5695_v50 = vpop.f32.mrf.mxu0 }
 0x41a   : > { %6475 = vst [vmem:[%s10908_s13 + $0xf8] sm:$0xff] %v5694_v13  ;;  %v11042_v55 = vpop.f32.mrf.mxu1  ;;  %v5696_v31 = vadd.f32 %v5695_v50, %v5503_v52  ;;  %v12108_v52 = vld [vmem:[#allocation145_spill] sm:$0xff]  ;;  %v12109_v50 = vld [vmem:[#allocation23_spill] sm:$0xff] }
 0x41b   : > { %v5697_v12 = vpop.f32.mrf.mxu0  ;;  %7566 = vmatpush3.bf16.msra.mxu1 %v10683_v49 }
 0x41c   : > { %6477 = vst [vmem:[%s10908_s13 + $0x108] sm:$0xff] %v5696_v31  ;;  %v11048_v39 = vpop.f32.mrf.mxu1  ;;  %v5698_v56 = vadd.f32 %v5697_v12, %v5505_v10  ;;  %7559 = vmatprep.subr.bf16.mxu1 %v10692_v9  ;;  %v12095_v9 = vld [vmem:[#allocation50_spill] sm:$0xff]  ;;  %v5525_v10 = vadd.f32 %v10993_v43, %v12109_v50  ;;  %v12113_v43 = vld [vmem:[#allocation49_spill] sm:$0xff] }
 0x41d   : > { %v5701_v41 = vpop.f32.mrf.mxu0  ;;  %6106 = vmatmul.mubr.bf16.gmra.mxu0 %v12090_v2 }
 0x41e   : > { %6478 = vst [vmem:[%s10908_s13 + $0x110] sm:$0xff] %v5698_v56  ;;  %v11055_v51 = vpop.f32.mrf.mxu1  ;;  %v5702_v49 = vadd.f32 %v5701_v41, %v5509_v17  ;;  %6171 = vmatmul.mubr.bf16.gmra.mxu1 %v12092_v19  ;;  %6113 = vmatprep.mubr.bf16.mxu0 %v12093_v18  ;;  %v12111_v56 = vld [vmem:[#allocation22_spill] sm:$0xff] }
 0x41f   : > { %6178 = vmatprep.mubr.bf16.mxu1 %v12094_v48  ;;  %v5703_v6 = vpop.f32.mrf.mxu0  ;;  %7567 = vmatpush3.bf16.msra.mxu1 %v12095_v9  ;;  %v5529_v60 = vadd.f32 %v10999_v34, %v12111_v56  ;;  %v12114_v48 = vld [vmem:[#allocation88_spill] sm:$0xff]  ;;  %v12116_v34 = vld [vmem:[#allocation91_spill] sm:$0xff] }
 0x420   : > { %6480 = vst [vmem:[%s10908_s13 + $0x120] sm:$0xff] %v5702_v49  ;;  %v11064_v63 = vpop.f32.mrf.mxu1  ;;  %v5704_v28 = vadd.f32 %v5703_v6, %v5511_v54  ;;  %7560 = vmatprep.subr.bf16.mxu1 %v12097_v4  ;;  %v12112_v54 = vld [vmem:[#allocation112_spill] sm:$0xff]  ;;  %v5531_v49 = vadd.f32 %v11008_v30, %v12113_v43  ;;  %v12115_v6 = vld [vmem:[#allocation115_spill] sm:$0xff] }
 0x421   : > { %v5705_v29 = vpop.f32.mrf.mxu0  ;;  %v12128_v56 = vld [vmem:[#allocation116_spill] sm:$0xff]  ;;  %v12131_v43 = vld [vmem:[#allocation119_spill] sm:$0xff] }
 0x422   : > { %6481 = vst [vmem:[%s10908_s13 + $0x128] sm:$0xff] %v5704_v28  ;;  %v11070_v44 = vpop.f32.mrf.mxu1  ;;  %v5706_v20 = vadd.f32 %v5705_v29, %v5513_v40  ;;  %v5533_v40 = vadd.f32 %v11014_v11, %v12117_v24  ;;  %v12118_v29 = vld [vmem:[#allocation48_spill] sm:$0xff] }
 0x423   : > { %v5707_v23 = vpop.f32.mrf.mxu0  ;;  %7568 = vmatpush3.bf16.msra.mxu1 %v12099_v1  ;;  %v5535_v35 = vadd.f32 %v11020_v47, %v12118_v29  ;;  %v12119_v1 = vld [vmem:[#allocation24_spill] sm:$0xff]  ;;  %v12135_v29 = vld [vmem:[#allocation54_spill] sm:$0xff] }
 0x424   : > { %6483 = vst [vmem:[%s10908_s13 + $0x138] sm:$0xff] %v5706_v20  ;;  %v11076_v0 = vpop.f32.mrf.mxu1  ;;  %v5708_v57 = vadd.f32 %v5707_v23, %v5515_v62  ;;  %7561 = vmatprep.subr.bf16.mxu1 %v12101_v25  ;;  %v5539_v36 = vadd.f32 %v11027_v15, %v12119_v1  ;;  %v12120_v25 = vld [vmem:[#allocation114_spill] sm:$0xff]  ;;  %v12124_v15 = vld [vmem:[#allocation93_spill] sm:$0xff] }
 0x425   : > { %v5711_v59 = vpop.f32.mrf.mxu0  ;;  %6114 = vmatmul.mubr.bf16.gmra.mxu0 %v12102_v26  ;;  %v12136_v1 = vld [vmem:[#allocation118_spill] sm:$0xff] }
 0x426   : > { %6484 = vst [vmem:[%s10908_s13 + $0x140] sm:$0xff] %v5708_v57  ;;  %v11083_v7 = vpop.f32.mrf.mxu1  ;;  %v5712_v37 = vadd.f32 %v5711_v59, %v5519_v32  ;;  %6179 = vmatmul.mubr.bf16.gmra.mxu1 %v12104_v16  ;;  %6315 = vmatprep.mubr.bf16.mxu0 %v12105_v45  ;;  %v12121_v59 = vld [vmem:[#allocation51_spill] sm:$0xff] }
 0x427   : > { %6186 = vmatprep.mubr.bf16.mxu1 %v12106_v5  ;;  %v5713_v42 = vpop.f32.mrf.mxu0  ;;  %7569 = vmatpush3.bf16.msra.mxu1 %v10741_v8  ;;  %v12110_v8 = vld [vmem:[#allocation30_spill] sm:$0xff]  ;;  %v5541_v47 = vadd.f32 %v11036_v46, %v12121_v59  ;;  %v12125_v45 = vld [vmem:[#allocation27_spill] sm:$0xff]  ;;  %v12139_v59 = vld [vmem:[#allocation121_spill] sm:$0xff] }
 0x428   : > { %6486 = vst [vmem:[%s10908_s13 + $0x150] sm:$0xff] %v5712_v37  ;;  %v11092_v33 = vpop.f32.mrf.mxu1  ;;  %v5714_v27 = vadd.f32 %v5713_v42, %v5521_v38  ;;  %7562 = vmatprep.subr.bf16.mxu1 %v12108_v52  ;;  %v12122_v38 = vld [vmem:[#allocation90_spill] sm:$0xff]  ;;  %v12123_v37 = vld [vmem:[#allocation117_spill] sm:$0xff]  ;;  %v5543_v5 = vadd.f32 %v11042_v55, %v12125_v45 }
 0x429   : > { %v5715_v13 = vpop.f32.mrf.mxu0 }
 0x42a   : > { %6487 = vst [vmem:[%s10908_s13 + $0x158] sm:$0xff] %v5714_v27  ;;  %v11098_v31 = vpop.f32.mrf.mxu1  ;;  %v5716_v12 = vadd.f32 %v5715_v13, %v5523_v3  ;;  %v12126_v3 = vld [vmem:[#allocation26_spill] sm:$0xff] }
 0x42b   : > { %v5717_v17 = vpop.f32.mrf.mxu0  ;;  %7570 = vmatpush3.bf16.msra.mxu1 %v12110_v8  ;;  %v5545_v27 = vadd.f32 %v11048_v39, %v12126_v3  ;;  %v12143_v3 = vld [vmem:[#allocation56_spill] sm:$0xff] }
 0x42c   : > { %6489 = vst [vmem:[%s10908_s13 + $0x168] sm:$0xff] %v5716_v12  ;;  %v11104_v41 = vpop.f32.mrf.mxu1  ;;  %v5718_v2 = vadd.f32 %v5717_v17, %v5525_v10  ;;  %v12127_v10 = vld [vmem:[#allocation29_spill] sm:$0xff] }
 0x42d   : > { %v5721_v53 = vpop.f32.mrf.mxu0  ;;  %6316 = vmatmul.mubr.bf16.vlgmr.msra.gmra.mxu0 %v12112_v54  ;;  %v5549_v12 = vadd.f32 %v11055_v51, %v12127_v10  ;;  %v12130_v54 = vld [vmem:[#allocation92_spill] sm:$0xff]  ;;  %v12132_v51 = vld [vmem:[#allocation95_spill] sm:$0xff] }
 0x42e   : > { %6490 = vst [vmem:[%s10908_s13 + $0x170] sm:$0xff] %v5718_v2  ;;  %v11110_v19 = vpop.f32.mrf.mxu1  ;;  %v5722_v18 = vadd.f32 %v5721_v53, %v5529_v60  ;;  %6187 = vmatmul.mubr.bf16.gmra.mxu1 %v12114_v48  ;;  %6323 = vmatprep.mubr.bf16.mxu0 %v12115_v6  ;;  %v12129_v60 = vld [vmem:[#allocation28_spill] sm:$0xff] }
 0x42f   : > { %6194 = vmatprep.mubr.bf16.mxu1 %v12116_v34  ;;  %v5723_v9 = vpop.f32.mrf.mxu0  ;;  %v5551_v39 = vadd.f32 %v11064_v63, %v12129_v60  ;;  %v12144_v10 = vld [vmem:[#allocation120_spill] sm:$0xff]  ;;  %v12147_v60 = vld [vmem:[#allocation123_spill] sm:$0xff] }
 0x430   : > { %6492 = vst [vmem:[%s10908_s13 + $0x180] sm:$0xff] %v5722_v18  ;;  %v11118_v28 = vpop.f32.mrf.mxu1  ;;  %v5724_v30 = vadd.f32 %v5723_v9, %v5531_v49  ;;  %v12133_v18 = vld [vmem:[#allocation31_spill] sm:$0xff]  ;;  %v12134_v9 = vld [vmem:[#allocation144_spill] sm:$0xff] }
 0x431   : > { %v5725_v4 = vpop.f32.mrf.mxu0  ;;  %v5553_v48 = vadd.f32 %v11070_v44, %v12133_v18  ;;  %v5555_v24 = vadd.f32 %v11076_v0, %v12134_v9  ;;  %v12150_v18 = vld [vmem:[#allocation35_spill] sm:$0xff] }
 0x432   : > { %6493 = vst [vmem:[%s10908_s13 + $0x188] sm:$0xff] %v5724_v30  ;;  %v11123_v62 = vpop.f32.mrf.mxu1  ;;  %v5726_v20 = vadd.f32 %v5725_v4, %v5533_v40 }
 0x433   : > { %v5727_v23 = vpop.f32.mrf.mxu0 }
 0x434   : > { %6495 = vst [vmem:[%s10908_s13 + $0x198] sm:$0xff] %v5726_v20  ;;  %v11128_v11 = vpop.f32.mrf.mxu1  ;;  %v5728_v32 = vadd.f32 %v5727_v23, %v5535_v35  ;;  %v5559_v35 = vadd.f32 %v11083_v7, %v12135_v29  ;;  %v12140_v7 = vld [vmem:[#allocation97_spill] sm:$0xff] }
 0x435   : > { %v5731_v57 = vpop.f32.mrf.mxu0  ;;  %6324 = vmatmul.mubr.bf16.gmra.mxu0 %v12120_v25  ;;  %v12138_v25 = vld [vmem:[#allocation94_spill] sm:$0xff] }
 0x436   : > { %6496 = vst [vmem:[%s10908_s13 + $0x1a0] sm:$0xff] %v5728_v32  ;;  %v11134_v26 = vpop.f32.mrf.mxu1  ;;  %v5732_v21 = vadd.f32 %v5731_v57, %v5539_v36  ;;  %6195 = vmatmul.mubr.bf16.gmra.mxu1 %v12122_v38  ;;  %6331 = vmatprep.mubr.bf16.mxu0 %v12123_v37  ;;  %v12137_v36 = vld [vmem:[#allocation57_spill] sm:$0xff] }
 0x437   : > { %6202 = vmatprep.mubr.bf16.mxu1 %v12124_v15  ;;  %v5733_v16 = vpop.f32.mrf.mxu0  ;;  %v5561_v0 = vadd.f32 %v11092_v33, %v12137_v36 }
 0x438   : > { %6498 = vst [vmem:[%s10908_s13 + $0x1b0] sm:$0xff] %v5732_v21  ;;  %v11142_v42 = vpop.f32.mrf.mxu1  ;;  %v5734_v46 = vadd.f32 %v5733_v16, %v5541_v47  ;;  %v12141_v21 = vld [vmem:[#allocation33_spill] sm:$0xff]  ;;  %v12142_v16 = vld [vmem:[#allocation146_spill] sm:$0xff] }
 0x439   : > { %v5735_v14 = vpop.f32.mrf.mxu0  ;;  %v5563_v38 = vadd.f32 %v11098_v31, %v12141_v21  ;;  %v5565_v45 = vadd.f32 %v11104_v41, %v12142_v16 }
 0x43a   : > { %6499 = vst [vmem:[%s10908_s13 + $0x1b8] sm:$0xff] %v5734_v46  ;;  %v11147_v52 = vpop.f32.mrf.mxu1  ;;  %v5736_v13 = vadd.f32 %v5735_v14, %v5543_v5 }
 0x43b   : > { %v5737_v50 = vpop.f32.mrf.mxu0 }
 0x43c   : > { %6501 = vst [vmem:[%s10908_s13 + $0x1c8] sm:$0xff] %v5736_v13  ;;  %v11152_v55 = vpop.f32.mrf.mxu1  ;;  %v5738_v17 = vadd.f32 %v5737_v50, %v5545_v27  ;;  %v5569_v27 = vadd.f32 %v11110_v19, %v12143_v3  ;;  %v12148_v19 = vld [vmem:[#allocation99_spill] sm:$0xff] }
 0x43d   : > { %v5741_v8 = vpop.f32.mrf.mxu0  ;;  %6332 = vmatmul.mubr.bf16.gmra.mxu0 %v12128_v56  ;;  %v12146_v56 = vld [vmem:[#allocation96_spill] sm:$0xff] }
 0x43e   : > { %6502 = vst [vmem:[%s10908_s13 + $0x1d0] sm:$0xff] %v5738_v17  ;;  %v11158_v2 = vpop.f32.mrf.mxu1  ;;  %v5742_v53 = vadd.f32 %v5741_v8, %v5549_v12  ;;  %6203 = vmatmul.mubr.bf16.gmra.mxu1 %v12130_v54  ;;  %6339 = vmatprep.mubr.bf16.mxu0 %v12131_v43  ;;  %v12145_v12 = vld [vmem:[#allocation32_spill] sm:$0xff] }
 0x43f   : > { %6210 = vmatprep.mubr.bf16.mxu1 %v12132_v51  ;;  %v5743_v49 = vpop.f32.mrf.mxu0  ;;  %v5571_v41 = vadd.f32 %v11118_v28, %v12145_v12  ;;  %v12161_v12 = vld [vmem:[#allocation36_spill] sm:$0xff] }
 0x440   : > { %6504 = vst [vmem:[%s10908_s13 + $0x1e0] sm:$0xff] %v5742_v53  ;;  %v11166_v6 = vpop.f32.mrf.mxu1  ;;  %v5744_v63 = vadd.f32 %v5743_v49, %v5551_v39  ;;  %v12149_v53 = vld [vmem:[#allocation59_spill] sm:$0xff] }
 0x441   : > { %v5745_v34 = vpop.f32.mrf.mxu0  ;;  %v5573_v54 = vadd.f32 %v11123_v62, %v12149_v53 }
 0x442   : > { %6505 = vst [vmem:[%s10908_s13 + $0x1e8] sm:$0xff] %v5744_v63  ;;  %v11171_v40 = vpop.f32.mrf.mxu1  ;;  %v5746_v30 = vadd.f32 %v5745_v34, %v5553_v48  ;;  %v5575_v48 = vadd.f32 %v11128_v11, %v12150_v18 }
 0x443   : > { %v5747_v4 = vpop.f32.mrf.mxu0 }
 0x444   : > { %6507 = vst [vmem:[%s10908_s13 + $0x1f8] sm:$0xff] %v5746_v30  ;;  %v11176_v44 = vpop.f32.mrf.mxu1  ;;  %v5748_v20 = vadd.f32 %v5747_v4, %v5555_v24  ;;  %v12151_v24 = vld [vmem:[#allocation58_spill] sm:$0xff] }
 0x445   : > { %v5751_v23 = vpop.f32.mrf.mxu0  ;;  %6340 = vmatmul.mubr.bf16.gmra.mxu0 %v12136_v1  ;;  %v5579_v30 = vadd.f32 %v11134_v26, %v12151_v24  ;;  %v12156_v26 = vld [vmem:[#allocation101_spill] sm:$0xff] }
 0x446   : > { %6508 = vst [vmem:[%s10908_s13 + $0x200] sm:$0xff] %v5748_v20  ;;  %v11182_v32 = vpop.f32.mrf.mxu1  ;;  %v5752_v57 = vadd.f32 %v5751_v23, %v5559_v35  ;;  %6211 = vmatmul.mubr.bf16.gmra.mxu1 %v12138_v25  ;;  %6347 = vmatprep.mubr.bf16.mxu0 %v12139_v59  ;;  %v12152_v20 = vld [vmem:[#allocation122_spill] sm:$0xff]  ;;  %v12157_v59 = vld [vmem:[#allocation61_spill] sm:$0xff] }
 0x447   : > { %6218 = vmatprep.mubr.bf16.mxu1 %v12140_v7  ;;  %v5753_v47 = vpop.f32.mrf.mxu0  ;;  %v12153_v23 = vld [vmem:[#allocation34_spill] sm:$0xff]  ;;  %v5583_v7 = vadd.f32 %v11147_v52, %v12157_v59 }
 0x448   : > { %6510 = vst [vmem:[%s10908_s13 + $0x210] sm:$0xff] %v5752_v57  ;;  %v11190_v37 = vpop.f32.mrf.mxu1  ;;  %v5754_v33 = vadd.f32 %v5753_v47, %v5561_v0  ;;  %v5581_v11 = vadd.f32 %v11142_v42, %v12153_v23  ;;  %v12154_v0 = vld [vmem:[#allocation98_spill] sm:$0xff]  ;;  %v12155_v57 = vld [vmem:[#allocation125_spill] sm:$0xff] }
 0x449   : > { %v5755_v15 = vpop.f32.mrf.mxu0  ;;  %v12169_v23 = vld [vmem:[#allocation102_spill] sm:$0xff] }
 0x44a   : > { %6511 = vst [vmem:[%s10908_s13 + $0x218] sm:$0xff] %v5754_v33  ;;  %v11195_v5 = vpop.f32.mrf.mxu1  ;;  %v5756_v46 = vadd.f32 %v5755_v15, %v5563_v38  ;;  %v12158_v33 = vld [vmem:[#allocation37_spill] sm:$0xff] }
 0x44b   : > { %v5757_v14 = vpop.f32.mrf.mxu0  ;;  %v5585_v15 = vadd.f32 %v11152_v55, %v12158_v33  ;;  %v5591_v55 = vadd.f32 %v11166_v6, %v12161_v12 }
 0x44c   : > { %6513 = vst [vmem:[%s10908_s13 + $0x228] sm:$0xff] %v5756_v46  ;;  %v11200_v31 = vpop.f32.mrf.mxu1  ;;  %v5758_v13 = vadd.f32 %v5757_v14, %v5565_v45  ;;  %v12159_v14 = vld [vmem:[#allocation60_spill] sm:$0xff] }
 0x44d   : > { %v5761_v50 = vpop.f32.mrf.mxu0  ;;  %6348 = vmatmul.mubr.bf16.gmra.mxu0 %v12144_v10  ;;  %v5589_v3 = vadd.f32 %v11158_v2, %v12159_v14  ;;  %v12160_v10 = vld [vmem:[#allocation124_spill] sm:$0xff]  ;;  %v12164_v2 = vld [vmem:[#allocation103_spill] sm:$0xff] }
 0x44e   : > { %6514 = vst [vmem:[%s10908_s13 + $0x230] sm:$0xff] %v5758_v13  ;;  %v5762_v17 = vadd.f32 %v5761_v50, %v5569_v27  ;;  %v7123_v8 = vpop.f32.mrf.mxu1  ;;  %6219 = vmatmul.mubr.bf16.gmra.mxu1 %v12146_v56  ;;  %6355 = vmatprep.mubr.bf16.mxu0 %v12147_v60  ;;  %v12163_v56 = vld [vmem:[#allocation127_spill] sm:$0xff] }
 0x44f   : > { %6226 = vmatprep.mubr.bf16.mxu1 %v12148_v19  ;;  %v5763_v39 = vpop.f32.mrf.mxu0  ;;  %v12165_v19 = vld [vmem:[#allocation63_spill] sm:$0xff] }
 0x450   : > { %6516 = vst [vmem:[%s10908_s13 + $0x240] sm:$0xff] %v5762_v17  ;;  %v5764_v43 = vadd.f32 %v5763_v39, %v5571_v41  ;;  %v7124_v51 = vpop.f32.mrf.mxu1  ;;  %v5593_v39 = vadd.f32 %v11171_v40, %v12165_v19  ;;  %v12177_v14 = vld [vmem:[#allocation107_spill] sm:$0xff] }
 0x451   : > { %v11212_v49 = vadd.f32 %v7124_v51, %v7123_v8  ;;  %v5765_v28 = vpop.f32.mrf.mxu0  ;;  %v12162_v8 = vld [vmem:[#allocation100_spill] sm:$0xff]  ;;  %v12166_v51 = vld [vmem:[#allocation39_spill] sm:$0xff] }
 0x452   : > { %6517 = vst [vmem:[%s10908_s13 + $0x248] sm:$0xff] %v5764_v43  ;;  %v5766_v63 = vadd.f32 %v5765_v28, %v5573_v54  ;;  %v7126_v34 = vpop.f32.mrf.mxu1  ;;  %v5595_v28 = vadd.f32 %v11176_v44, %v12166_v51  ;;  %v12181_v51 = vld [vmem:[#allocation109_spill] sm:$0xff] }
 0x453   : > { %v5767_v9 = vpop.f32.mrf.mxu0 }
 0x454   : > { %6519 = vst [vmem:[%s10908_s13 + $0x258] sm:$0xff] %v5766_v63  ;;  %v5768_v62 = vadd.f32 %v5767_v9, %v5575_v48  ;;  %v7127_v4 = vpop.f32.mrf.mxu1 }
 0x455   : > { %v11220_v29 = vadd.f32 %v7127_v4, %v7126_v34  ;;  %v5771_v35 = vpop.f32.mrf.mxu0  ;;  %6356 = vmatmul.mubr.bf16.gmra.mxu0 %v12152_v20  ;;  %v5599_v34 = vadd.f32 %v11182_v32, %v10872_v22  ;;  %v12168_v4 = vld [vmem:[#allocation62_spill] sm:$0xff]  ;;  %v12171_v22 = vld [vmem:[#allocation105_spill] sm:$0xff] }
 0x456   : > { %6520 = vst [vmem:[%s10908_s13 + $0x260] sm:$0xff] %v5768_v62  ;;  %v5772_v1 = vadd.f32 %v5771_v35, %v5579_v30  ;;  %v7129_v36 = vpop.f32.mrf.mxu1  ;;  %6227 = vmatmul.mubr.bf16.gmra.mxu1 %v12154_v0  ;;  %6363 = vmatprep.mubr.bf16.mxu0 %v12155_v57  ;;  %v12167_v62 = vld [vmem:[#allocation126_spill] sm:$0xff]  ;;  %v5601_v44 = vadd.f32 %v11190_v37, %v12168_v4 }
 0x457   : > { %6234 = vmatprep.mubr.bf16.mxu1 %v12156_v26  ;;  %v5773_v25 = vpop.f32.mrf.mxu0  ;;  %v5605_v26 = vadd.f32 %v11200_v31, %v10894_v61  ;;  %v12175_v31 = vld [vmem:[#allocation104_spill] sm:$0xff] }
 0x458   : > { %6522 = vst [vmem:[%s10908_s13 + $0x270] sm:$0xff] %v5772_v1  ;;  %v5774_v47 = vadd.f32 %v5773_v25, %v5581_v11  ;;  %v7130_v21 = vpop.f32.mrf.mxu1  ;;  %v12170_v11 = vld [vmem:[#allocation129_spill] sm:$0xff]  ;;  %v5603_v1 = vadd.f32 %v11195_v5, %v10888_v58 }
 0x459   : > { %v11232_v38 = vadd.f32 %v7130_v21, %v7129_v36  ;;  %v5775_v42 = vpop.f32.mrf.mxu0  ;;  %v12172_v21 = vld [vmem:[#allocation15_spill] sm:$0xff] }
 0x45a   : > { %6523 = vst [vmem:[%s10908_s13 + $0x278] sm:$0xff] %v5774_v47  ;;  %v5776_v16 = vadd.f32 %v5775_v42, %v5583_v7  ;;  %v7132_v45 = vpop.f32.mrf.mxu1  ;;  %v8081_v47 = vld [vmem:[%s11631_s4] sm:$0x7]  ;;  %v12173_v58 = vsub.s32 2, %v12172_v21 }
 0x45b   : > { %v5777_v46 = vpop.f32.mrf.mxu0 }
 0x45c   : > { %6525 = vst [vmem:[%s10908_s13 + $0x288] sm:$0xff] %v5776_v16  ;;  %v5778_v52 = vadd.f32 %v5777_v46, %v5585_v15  ;;  %v7133_v27 = vpop.f32.mrf.mxu1  ;;  %v11282_v5 = vrot.slane %v8081_v47, %v12173_v58  ;;  %v12176_v46 = vld [vmem:[#allocation131_spill] sm:$0xff] }
 0x45d   : > { %v11240_v13 = vadd.f32 %v7133_v27, %v7132_v45  ;;  %v5781_v50 = vpop.f32.mrf.mxu0  ;;  %6364 = vmatmul.mubr.bf16.gmra.mxu0 %v12160_v10  ;;  %v12174_v45 = vld [vmem:[#allocation128_spill] sm:$0xff] }
 0x45e   : > { %6526 = vst [vmem:[%s10908_s13 + $0x290] sm:$0xff] %v5778_v52  ;;  %v5782_v41 = vadd.f32 %v5781_v50, %v5589_v3  ;;  %v7135_v17 = vpop.f32.mrf.mxu1  ;;  %6235 = vmatmul.mubr.bf16.gmra.mxu1 %v12162_v8  ;;  %6371 = vmatprep.mubr.bf16.mxu0 %v12163_v56  ;;  %v5835_v52 = vadd.f32 %v11212_v49, %v11282_v5 }
 0x45f   : > { %6242 = vmatprep.mubr.bf16.mxu1 %v12164_v2  ;;  %v5783_v60 = vpop.f32.mrf.mxu0  ;;  %v5838_v8 = vadd.f32 %v11220_v29, %v11282_v5  ;;  %v5843_v29 = vadd.f32 %v11232_v38, %v11282_v5 }
 0x460   : > { %6528 = vst [vmem:[%s10908_s13 + $0x2a0] sm:$0xff] %v5782_v41  ;;  %v5784_v53 = vadd.f32 %v5783_v60, %v5591_v55  ;;  %v7136_v54 = vpop.f32.mrf.mxu1 }
 0x461   : > { %v11252_v43 = vadd.f32 %v7136_v54, %v7135_v17  ;;  %v5785_v6 = vpop.f32.mrf.mxu0  ;;  %v12179_v54 = vld [vmem:[#allocation106_spill] sm:$0xff] }
 0x462   : > { %6529 = vst [vmem:[%s10908_s13 + $0x2a8] sm:$0xff] %v5784_v53  ;;  %v5786_v18 = vadd.f32 %v5785_v6, %v5593_v39  ;;  %v7138_v48 = vpop.f32.mrf.mxu1  ;;  %v12178_v39 = vld [vmem:[#allocation130_spill] sm:$0xff]  ;;  %v12180_v6 = vld [vmem:[#allocation133_spill] sm:$0xff] }
 0x463   : > { %v5787_v63 = vpop.f32.mrf.mxu0 }
 0x464   : > { %6531 = vst [vmem:[%s10908_s13 + $0x2b8] sm:$0xff] %v5786_v18  ;;  %v5788_v40 = vadd.f32 %v5787_v63, %v5595_v28  ;;  %v7139_v9 = vpop.f32.mrf.mxu1 }
 0x465   : > { %v11260_v24 = vadd.f32 %v7139_v9, %v7138_v48  ;;  %v5791_v30 = vpop.f32.mrf.mxu0  ;;  %6372 = vmatmul.mubr.bf16.gmra.mxu0 %v12167_v62  ;;  %v5846_v62 = vadd.f32 %v11240_v13, %v11282_v5  ;;  %v5851_v13 = vadd.f32 %v11252_v43, %v11282_v5 }
 0x466   : > { %6532 = vst [vmem:[%s10908_s13 + $0x2c0] sm:$0xff] %v5788_v40  ;;  %v5792_v35 = vadd.f32 %v5791_v30, %v5599_v34  ;;  %v7141_v20 = vpop.f32.mrf.mxu1  ;;  %6243 = vmatmul.mubr.bf16.gmra.mxu1 %v12169_v23  ;;  %6379 = vmatprep.mubr.bf16.mxu0 %v12170_v11  ;;  %v12182_v23 = vld [vmem:[#allocation132_spill] sm:$0xff] }
 0x467   : > { %6250 = vmatprep.mubr.bf16.mxu1 %v12171_v22  ;;  %v5793_v32 = vpop.f32.mrf.mxu0  ;;  %v12183_v22 = vld [vmem:[#allocation108_spill] sm:$0xff]  ;;  %v5854_v21 = vadd.f32 %v11260_v24, %v11282_v5 }
 0x468   : > { %6534 = vst [vmem:[%s10908_s13 + $0x2d0] sm:$0xff] %v5792_v35  ;;  %v5794_v36 = vadd.f32 %v5793_v32, %v5601_v44  ;;  %v7142_v0 = vpop.f32.mrf.mxu1  ;;  %v12184_v32 = vld [vmem:[#allocation135_spill] sm:$0xff] }
 0x469   : > { %v11272_v57 = vadd.f32 %v7142_v0, %v7141_v20  ;;  %v5795_v37 = vpop.f32.mrf.mxu0 }
 0x46a   : > { %6535 = vst [vmem:[%s10908_s13 + $0x2d8] sm:$0xff] %v5794_v36  ;;  %v5796_v25 = vadd.f32 %v5795_v37, %v5603_v1  ;;  %v7144_v59 = vpop.f32.mrf.mxu1  ;;  %v12185_v1 = vld [vmem:[#allocation111_spill] sm:$0xff] }
 0x46b   : > { %v5797_v7 = vpop.f32.mrf.mxu0  ;;  %v5859_v24 = vadd.f32 %v11272_v57, %v11282_v5 }
 0x46c   : > { %6537 = vst [vmem:[%s10908_s13 + $0x2e8] sm:$0xff] %v5796_v25  ;;  %v5798_v42 = vadd.f32 %v5797_v7, %v5605_v26  ;;  %v7145_v33 = vpop.f32.mrf.mxu1 }
 0x46d   : > { %v11285_v15 = vadd.f32 %v7145_v33, %v7144_v59  ;;  %v7235_v16 = vpop.f32.mrf.mxu0  ;;  %6380 = vmatmul.mubr.bf16.gmra.mxu0 %v12174_v45  ;;  %v12186_v45 = vld [vmem:[#allocation134_spill] sm:$0xff] }
 0x46e   : > { %6538 = vst [vmem:[%s10908_s13 + $0x2f0] sm:$0xff] %v5798_v42  ;;  %v7147_v61 = vpop.f32.mrf.mxu1  ;;  %6251 = vmatmul.mubr.bf16.gmra.mxu1 %v12175_v31  ;;  %6387 = vmatprep.mubr.bf16.mxu0 %v12176_v46  ;;  %v12187_v31 = vld [vmem:[#allocation110_spill] sm:$0xff]  ;;  %v12188_v46 = vld [vmem:[#allocation137_spill] sm:$0xff] }
 0x46f   : > { %6258 = vmatprep.mubr.bf16.mxu1 %v12177_v14  ;;  %v7236_v3 = vpop.f32.mrf.mxu0  ;;  %v12189_v14 = vld [vmem:[#allocation141_spill] sm:$0xff] }
 0x470   : > { %v7148_v27 = vpop.f32.mrf.mxu1  ;;  %v7237_v50 = vadd.f32 %v7236_v3, %v7235_v16 }
 0x471   : > { %v11294_v10 = vadd.f32 %v7148_v27, %v7147_v61  ;;  %v7238_v12 = vpop.f32.mrf.mxu0 }
 0x472   : > { %v11296_v55 = vadd.f32 %v7237_v50, %v5835_v52  ;;  %v7150_v41 = vpop.f32.mrf.mxu1 }
 0x473   : > { %v7239_v17 = vpop.f32.mrf.mxu0 }
 0x474   : > { %v7151_v56 = vpop.f32.mrf.mxu1  ;;  %v7240_v2 = vadd.f32 %v7239_v17, %v7238_v12 }
 0x475   : > { %v11300_v60 = vadd.f32 %v7151_v56, %v7150_v41  ;;  %v7241_v19 = vpop.f32.mrf.mxu0  ;;  %6388 = vmatmul.mubr.bf16.gmra.mxu0 %v12178_v39  ;;  %v5862_v56 = vadd.f32 %v11285_v15, %v11282_v5  ;;  %v5867_v15 = vadd.f32 %v11294_v10, %v11282_v5 }
 0x476   : > { %v11303_v49 = vadd.f32 %v7240_v2, %v5838_v8  ;;  %v7153_v53 = vpop.f32.mrf.mxu1  ;;  %6259 = vmatmul.mubr.bf16.gmra.mxu1 %v12179_v54  ;;  %6395 = vmatprep.mubr.bf16.mxu0 %v12180_v6  ;;  %v12190_v54 = vld [vmem:[#allocation136_spill] sm:$0xff] }
 0x477   : > { %6266 = vmatprep.mubr.bf16.mxu1 %v12181_v51  ;;  %v7242_v28 = vpop.f32.mrf.mxu0  ;;  %v12191_v51 = vld [vmem:[#allocation140_spill] sm:$0xff] }
 0x478   : > { %v7154_v18 = vpop.f32.mrf.mxu1  ;;  %v7243_v48 = vadd.f32 %v7242_v28, %v7241_v19  ;;  %v12192_v28 = vld [vmem:[#allocation139_spill] sm:$0xff] }
 0x479   : > { %v11310_v63 = vadd.f32 %v7154_v18, %v7153_v53  ;;  %v7244_v34 = vpop.f32.mrf.mxu0 }
 0x47a   : > { %v11312_v40 = vadd.f32 %v7243_v48, %v5843_v29  ;;  %v7156_v9 = vpop.f32.mrf.mxu1  ;;  %v12193_v29 = vld [vmem:[#allocation143_spill] sm:$0xff] }
 0x47b   : > { %v7245_v30 = vpop.f32.mrf.mxu0 }
 0x47c   : > { %v7157_v4 = vpop.f32.mrf.mxu1  ;;  %v7246_v44 = vadd.f32 %v7245_v30, %v7244_v34 }
 0x47d   : > { %v11316_v35 = vadd.f32 %v7157_v4, %v7156_v9  ;;  %v7247_v20 = vpop.f32.mrf.mxu0  ;;  %6396 = vmatmul.mubr.bf16.gmra.mxu0 %v12182_v23 }
 0x47e   : > { %v11319_v38 = vadd.f32 %v7246_v44, %v5846_v62  ;;  %v7159_v11 = vpop.f32.mrf.mxu1  ;;  %6267 = vmatmul.mubr.bf16.gmra.mxu1 %v12183_v22  ;;  %6403 = vmatprep.mubr.bf16.mxu0 %v12184_v32 }
 0x47f   : > { %6274 = vmatprep.mubr.bf16.mxu1 %v12185_v1  ;;  %v7248_v36 = vpop.f32.mrf.mxu0  ;;  %v12194_v1 = vld [vmem:[#allocation138_spill] sm:$0xff] }
 0x480   : > { %v7160_v0 = vpop.f32.mrf.mxu1  ;;  %v7249_v37 = vadd.f32 %v7248_v36, %v7247_v20  ;;  %v5870_v20 = vadd.f32 %v11300_v60, %v11282_v5 }
 0x481   : > { %v11326_v26 = vadd.f32 %v7160_v0, %v7159_v11  ;;  %v7250_v25 = vpop.f32.mrf.mxu0 }
 0x482   : > { %v11328_v59 = vadd.f32 %v7249_v37, %v5851_v13  ;;  %v7162_v7 = vpop.f32.mrf.mxu1  ;;  %v12195_v13 = vld [vmem:[#allocation142_spill] sm:$0xff]  ;;  %v5875_v37 = vadd.f32 %v11310_v63, %v11282_v5 }
 0x483   : > { %v7251_v47 = vpop.f32.mrf.mxu0  ;;  %v5883_v63 = vadd.f32 %v11326_v26, %v11282_v5 }
 0x484   : > { %v7163_v58 = vpop.f32.mrf.mxu1  ;;  %v7252_v42 = vadd.f32 %v7251_v47, %v7250_v25 }
 0x485   : > { %v11332_v33 = vadd.f32 %v7163_v58, %v7162_v7  ;;  %v7253_v16 = vpop.f32.mrf.mxu0  ;;  %6404 = vmatmul.mubr.bf16.gmra.mxu0 %v12186_v45 }
 0x486   : > { %v11335_v43 = vadd.f32 %v7252_v42, %v5854_v21  ;;  %v7165_v61 = vpop.f32.mrf.mxu1  ;;  %6275 = vmatmul.mubr.bf16.gmra.mxu1 %v12187_v31  ;;  %6411 = vmatprep.mubr.bf16.mxu0 %v12188_v46 }
 0x487   : > { %6427 = vmatprep.mubr.bf16.mxu1 %v12189_v14  ;;  %v7254_v3 = vpop.f32.mrf.mxu0 }
 0x488   : > { %v7166_v52 = vpop.f32.mrf.mxu1  ;;  %v7255_v27 = vadd.f32 %v7254_v3, %v7253_v16  ;;  %v5878_v16 = vadd.f32 %v11316_v35, %v11282_v5  ;;  %v5886_v35 = vadd.f32 %v11332_v33, %v11282_v5 }
 0x489   : > { %v11342_v50 = vadd.f32 %v7166_v52, %v7165_v61  ;;  %v7256_v12 = vpop.f32.mrf.mxu0 }
 0x48a   : > { %v11344_v41 = vadd.f32 %v7255_v27, %v5859_v24  ;;  %v7168_v17 = vpop.f32.mrf.mxu1 }
 0x48b   : > { %v7257_v8 = vpop.f32.mrf.mxu0  ;;  %v5891_v26 = vadd.f32 %v11342_v50, %v11282_v5 }
 0x48c   : > { %v7169_v2 = vpop.f32.mrf.mxu1  ;;  %v7258_v19 = vadd.f32 %v7257_v8, %v7256_v12 }
 0x48d   : > { %v11348_v39 = vadd.f32 %v7169_v2, %v7168_v17  ;;  %v7259_v53 = vpop.f32.mrf.mxu0  ;;  %6412 = vmatmul.mubr.bf16.gmra.mxu0 %v12190_v54 }
 0x48e   : > { %v11351_v57 = vadd.f32 %v7258_v19, %v5862_v56  ;;  %v7171_v6 = vpop.f32.mrf.mxu1  ;;  %6428 = vmatmul.mubr.bf16.vlgmr.msra.gmra.mxu1 %v12191_v51  ;;  %6419 = vmatprep.mubr.bf16.mxu0 %v12192_v28 }
 0x48f   : > { %6435 = vmatprep.mubr.bf16.mxu1 %v12193_v29  ;;  %v7260_v18 = vpop.f32.mrf.mxu0  ;;  %v5894_v33 = vadd.f32 %v11348_v39, %v11282_v5 }
 0x490   : > { %v7172_v48 = vpop.f32.mrf.mxu1  ;;  %v7261_v34 = vadd.f32 %v7260_v18, %v7259_v53 }
 0x491   : > { %v11358_v9 = vadd.f32 %v7172_v48, %v7171_v6  ;;  %v7262_v30 = vpop.f32.mrf.mxu0 }
 0x492   : > { %v11360_v62 = vadd.f32 %v7261_v34, %v5867_v15  ;;  %v7174_v4 = vpop.f32.mrf.mxu1 }
 0x493   : > { %v7263_v44 = vpop.f32.mrf.mxu0  ;;  %v5899_v50 = vadd.f32 %v11358_v9, %v11282_v5 }
 0x494   : > { %v7175_v23 = vpop.f32.mrf.mxu1  ;;  %v7264_v11 = vadd.f32 %v7263_v44, %v7262_v30 }
 0x495   : > { %v11364_v22 = vadd.f32 %v7175_v23, %v7174_v4  ;;  %v7265_v32 = vpop.f32.mrf.mxu0  ;;  %6420 = vmatmul.mubr.bf16.gmra.mxu0 %v12194_v1 }
 0x496   : > { %v11367_v10 = vadd.f32 %v7264_v11, %v5870_v20  ;;  %v7177_v36 = vpop.f32.mrf.mxu1  ;;  %6436 = vmatmul.mubr.bf16.gmra.mxu1 %v12195_v13 }
 0x497   : > { %v7266_v0 = vpop.f32.mrf.mxu0  ;;  %v5902_v39 = vadd.f32 %v11364_v22, %v11282_v5 }
 0x498   : > { %v7178_v25 = vpop.f32.mrf.mxu1  ;;  %v7267_v7 = vadd.f32 %v7266_v0, %v7265_v32 }
 0x499   : > { %v7179_v47 = vadd.f32 %v7178_v25, %v7177_v36  ;;  %v7268_v60 = vpop.f32.mrf.mxu0 }
 0x49a   : > { %v11372_v21 = vadd.f32 %v7267_v7, %v5875_v37  ;;  %v7180_v58 = vpop.f32.mrf.mxu1 }
 0x49b   : > { %v7269_v42 = vpop.f32.mrf.mxu0  ;;  %v5907_v9 = vadd.f32 %v7179_v47, %v11282_v5 }
 0x49c   : > { %v7181_v45 = vpop.f32.mrf.mxu1  ;;  %v7270_v61 = vadd.f32 %v7269_v42, %v7268_v60 }
 0x49d   : > { %v7182_v31 = vadd.f32 %v7181_v45, %v7180_v58  ;;  %v7271_v46 = vpop.f32.mrf.mxu0 }
 0x49e   : > { %v11376_v14 = vadd.f32 %v7270_v61, %v5878_v16  ;;  %v7183_v3 = vpop.f32.mrf.mxu1 }
 0x49f   : > { %v7272_v24 = vpop.f32.mrf.mxu0  ;;  %v5910_v22 = vadd.f32 %v7182_v31, %v11282_v5 }
 0x4a0   : > { %v7184_v52 = vpop.f32.mrf.mxu1  ;;  %v7273_v27 = vadd.f32 %v7272_v24, %v7271_v46 }
 0x4a1   : > { %v7185_v12 = vadd.f32 %v7184_v52, %v7183_v3  ;;  %v7274_v17 = vpop.f32.mrf.mxu0 }
 0x4a2   : > { %v11380_v8 = vadd.f32 %v7273_v27, %v5883_v63  ;;  %v7186_v56 = vpop.f32.mrf.mxu1 }
 0x4a3   : > { %v7275_v2 = vpop.f32.mrf.mxu0  ;;  %v5915_v47 = vadd.f32 %v7185_v12, %v11282_v5 }
 0x4a4   : > { %v7187_v19 = vpop.f32.mrf.mxu1  ;;  %v7276_v53 = vadd.f32 %v7275_v2, %v7274_v17 }
 0x4a5   : > { %v7188_v54 = vadd.f32 %v7187_v19, %v7186_v56  ;;  %v7277_v6 = vpop.f32.mrf.mxu0 }
 0x4a6   : > { %v11384_v51 = vadd.f32 %v7276_v53, %v5886_v35  ;;  %v7189_v28 = vpop.f32.mrf.mxu1 }
 0x4a7   : > { %v7278_v29 = vpop.f32.mrf.mxu0  ;;  %v5918_v31 = vadd.f32 %v7188_v54, %v11282_v5 }
 0x4a8   : > { %v7190_v18 = vpop.f32.mrf.mxu1  ;;  %v7279_v15 = vadd.f32 %v7278_v29, %v7277_v6 }
 0x4a9   : > { %v7191_v48 = vadd.f32 %v7190_v18, %v7189_v28  ;;  %v7280_v34 = vpop.f32.mrf.mxu0 }
 0x4aa   : > { %v11388_v30 = vadd.f32 %v7279_v15, %v5891_v26  ;;  %v7192_v4 = vpop.f32.mrf.mxu1 }
 0x4ab   : > { %v7281_v44 = vpop.f32.mrf.mxu0  ;;  %v5923_v12 = vadd.f32 %v7191_v48, %v11282_v5 }
 0x4ac   : > { %v7193_v20 = vpop.f32.mrf.mxu1  ;;  %v7282_v23 = vadd.f32 %v7281_v44, %v7280_v34 }
 0x4ad   : > { %v7194_v11 = vadd.f32 %v7193_v20, %v7192_v4  ;;  %v7283_v32 = vpop.f32.mrf.mxu0 }
 0x4ae   : > { %v11392_v1 = vadd.f32 %v7282_v23, %v5894_v33  ;;  %v7195_v36 = vpop.f32.mrf.mxu1 }
 0x4af   : > { %v7284_v13 = vpop.f32.mrf.mxu0  ;;  %v5926_v54 = vadd.f32 %v7194_v11, %v11282_v5 }
 0x4b0   : > { %v7196_v0 = vpop.f32.mrf.mxu1  ;;  %v7285_v37 = vadd.f32 %v7284_v13, %v7283_v32 }
 0x4b1   : > { %v7197_v25 = vadd.f32 %v7196_v0, %v7195_v36  ;;  %v7286_v7 = vpop.f32.mrf.mxu0 }
 0x4b2   : > { %v11396_v60 = vadd.f32 %v7285_v37, %v5899_v50  ;;  %v7198_v58 = vpop.f32.mrf.mxu1 }
 0x4b3   : > { %v7287_v42 = vpop.f32.mrf.mxu0  ;;  %v5931_v48 = vadd.f32 %v7197_v25, %v11282_v5 }
 0x4b4   : > { %v7199_v16 = vpop.f32.mrf.mxu1  ;;  %v7288_v45 = vadd.f32 %v7287_v42, %v7286_v7 }
 0x4b5   : > { %v7200_v61 = vadd.f32 %v7199_v16, %v7198_v58  ;;  %v7289_v46 = vpop.f32.mrf.mxu0 }
 0x4b6   : > { %v11400_v3 = vadd.f32 %v7288_v45, %v5902_v39  ;;  %v7201_v24 = vpop.f32.mrf.mxu1 }
 0x4b7   : > { %v7290_v63 = vpop.f32.mrf.mxu0 }
 0x4b8   : > { %v7202_v52 = vpop.f32.mrf.mxu1  ;;  %v7291_v27 = vadd.f32 %v7290_v63, %v7289_v46 }
 0x4b9   : > { %v7203_v17 = vadd.f32 %v7202_v52, %v7201_v24  ;;  %v7292_v56 = vpop.f32.mrf.mxu0 }
 0x4ba   : > { %v11403_v2 = vadd.f32 %v7291_v27, %v5907_v9  ;;  %v7204_v35 = vpop.f32.mrf.mxu1 }
 0x4bb   : > { %v7293_v19 = vpop.f32.mrf.mxu0 }
 0x4bc   : > { %v7205_v53 = vpop.f32.mrf.mxu1  ;;  %v7294_v6 = vadd.f32 %v7293_v19, %v7292_v56 }
 0x4bd   : > { %v7206_v28 = vadd.f32 %v7205_v53, %v7204_v35  ;;  %v7295_v29 = vpop.f32.mrf.mxu0 }
 0x4be   : > { %v11406_v26 = vadd.f32 %v7294_v6, %v5910_v22  ;;  %v7207_v18 = vpop.f32.mrf.mxu1 }
 0x4bf   : > { %v7296_v15 = vpop.f32.mrf.mxu0 }
 0x4c0   : > { %v7208_v34 = vpop.f32.mrf.mxu1  ;;  %v7297_v4 = vadd.f32 %v7296_v15, %v7295_v29 }
 0x4c1   : > { %v7209_v44 = vadd.f32 %v7208_v34, %v7207_v18  ;;  %v7298_v33 = vpop.f32.mrf.mxu0  ;;  %v5934_v34 = vadd.f32 %v7200_v61, %v11282_v5 }
 0x4c2   : > { %v11409_v20 = vadd.f32 %v7297_v4, %v5915_v47  ;;  %v7210_v23 = vpop.f32.mrf.mxu1 }
 0x4c3   : > { %v7299_v32 = vpop.f32.mrf.mxu0 }
 0x4c4   : > { %v7211_v36 = vpop.f32.mrf.mxu1  ;;  %v7300_v13 = vadd.f32 %v7299_v32, %v7298_v33 }
 0x4c5   : > { %v7212_v50 = vadd.f32 %v7211_v36, %v7210_v23  ;;  %v7301_v0 = vpop.f32.mrf.mxu0  ;;  %v5939_v36 = vadd.f32 %v7203_v17, %v11282_v5 }
 0x4c6   : > { %v11412_v37 = vadd.f32 %v7300_v13, %v5918_v31  ;;  %v7213_v7 = vpop.f32.mrf.mxu1 }
 0x4c7   : > { %v7302_v58 = vpop.f32.mrf.mxu0 }
 0x4c8   : > { %v7214_v42 = vpop.f32.mrf.mxu1  ;;  %v7303_v39 = vadd.f32 %v7302_v58, %v7301_v0 }
 0x4c9   : > { %v7215_v16 = vadd.f32 %v7214_v42, %v7213_v7  ;;  %v7304_v45 = vpop.f32.mrf.mxu0  ;;  %v5942_v42 = vadd.f32 %v7206_v28, %v11282_v5 }
 0x4ca   : > { %v11415_v46 = vadd.f32 %v7303_v39, %v5923_v12  ;;  %v7216_v24 = vpop.f32.mrf.mxu1 }
 0x4cb   : > { %v7305_v63 = vpop.f32.mrf.mxu0 }
 0x4cc   : > { %v7217_v9 = vpop.f32.mrf.mxu1  ;;  %v7306_v52 = vadd.f32 %v7305_v63, %v7304_v45 }
 0x4cd   : > { %v7218_v27 = vadd.f32 %v7217_v9, %v7216_v24  ;;  %v7307_v56 = vpop.f32.mrf.mxu0  ;;  %v5947_v9 = vadd.f32 %v7209_v44, %v11282_v5 }
 0x4ce   : > { %v11418_v35 = vadd.f32 %v7306_v52, %v5926_v54  ;;  %v7347_v19 = vpop.f32.mrf.mxu1 }
 0x4cf   : > { %v7308_v22 = vpop.f32.mrf.mxu0 }
 0x4d0   : > { %v7309_v53 = vadd.f32 %v7308_v22, %v7307_v56  ;;  %v7348_v6 = vpop.f32.mrf.mxu1 }
 0x4d1   : > { %v7310_v29 = vpop.f32.mrf.mxu0 }
 0x4d2   : > { %v11421_v18 = vadd.f32 %v7309_v53, %v5931_v48  ;;  %v7350_v15 = vpop.f32.mrf.mxu1 }
 0x4d3   : > { %v7311_v47 = vpop.f32.mrf.mxu0 }
 0x4d4   : > { %v7312_v11 = vadd.f32 %v7311_v47, %v7310_v29  ;;  %v7351_v4 = vpop.f32.mrf.mxu1  ;;  %v5950_v29 = vadd.f32 %v7212_v50, %v11282_v5  ;;  %v7349_v50 = vadd.f32 %v7348_v6, %v7347_v19 }
 0x4d5   : > { %v7313_v33 = vpop.f32.mrf.mxu0 }
 0x4d6   : > { %v11424_v23 = vadd.f32 %v7312_v11, %v5934_v34  ;;  %v7353_v32 = vpop.f32.mrf.mxu1 }
 0x4d7   : > { %v7314_v31 = vpop.f32.mrf.mxu0 }
 0x4d8   : > { %v7315_v13 = vadd.f32 %v7314_v31, %v7313_v33  ;;  %v7354_v25 = vpop.f32.mrf.mxu1 }
 0x4d9   : > { %v7316_v0 = vpop.f32.mrf.mxu0  ;;  %v7355_v19 = vadd.f32 %v7354_v25, %v7353_v32 }
 0x4da   : > { %v11427_v7 = vadd.f32 %v7315_v13, %v5939_v36  ;;  %v7356_v58 = vpop.f32.mrf.mxu1  ;;  %v5955_v36 = vadd.f32 %v7215_v16, %v11282_v5 }
 0x4db   : > { %v7317_v12 = vpop.f32.mrf.mxu0 }
 0x4dc   : > { %v7318_v39 = vadd.f32 %v7317_v12, %v7316_v0  ;;  %v7357_v61 = vpop.f32.mrf.mxu1 }
 0x4dd   : > { %v7319_v45 = vpop.f32.mrf.mxu0 }
 0x4de   : > { %v11430_v24 = vadd.f32 %v7318_v39, %v5942_v42  ;;  %v7359_v63 = vpop.f32.mrf.mxu1 }
 0x4df   : > { %v7320_v54 = vpop.f32.mrf.mxu0 }
 0x4e0   : > { %12196 = vst [vmem:[#allocation38_spill] sm:$0xff] %v11430_v24  ;;  %v7321_v52 = vadd.f32 %v7320_v54, %v7319_v45  ;;  %v7360_v17 = vpop.f32.mrf.mxu1  ;;  %v5958_v45 = vadd.f32 %v7218_v27, %v11282_v5 }
 0x4e1   : > { %v7322_v56 = vpop.f32.mrf.mxu0 }
 0x4e2   : > { %v11433_v22 = vadd.f32 %v7321_v52, %v5947_v9  ;;  %v7362_v48 = vpop.f32.mrf.mxu1 }
 0x4e3   : > { %v7323_v53 = vpop.f32.mrf.mxu0 }
 0x4e4   : > { %v7324_v47 = vadd.f32 %v7323_v53, %v7322_v56  ;;  %v7363_v28 = vpop.f32.mrf.mxu1 }
 0x4e5   : > { %v7325_v34 = vpop.f32.mrf.mxu0 }
 0x4e6   : > { %v11436_v11 = vadd.f32 %v7324_v47, %v5950_v29  ;;  %v7365_v33 = vpop.f32.mrf.mxu1  ;;  %v6157_v29 = vadd.f32 %v7349_v50, %v11296_v55  ;;  %v7352_v47 = vadd.f32 %v7351_v4, %v7350_v15  ;;  %v6165_v15 = vadd.f32 %v7355_v19, %v11312_v40 }
 0x4e7   : > { %v7326_v31 = vpop.f32.mrf.mxu0  ;;  %v7358_v4 = vadd.f32 %v7357_v61, %v7356_v58 }
 0x4e8   : > { %v7327_v13 = vadd.f32 %v7326_v31, %v7325_v34  ;;  %v7366_v44 = vpop.f32.mrf.mxu1  ;;  %v6160_v27 = vadd.f32 %v7352_v47, %v11303_v49  ;;  %v7361_v47 = vadd.f32 %v7360_v17, %v7359_v63 }
 0x4e9   : > { %v7328_v0 = vpop.f32.mrf.mxu0  ;;  %v6168_v25 = vadd.f32 %v7358_v4, %v11319_v38 }
 0x4ea   : > { %v11439_v12 = vadd.f32 %v7327_v13, %v5955_v36  ;;  %v11441_v42 = vpop.f32.mrf.mxu1  ;;  %v6173_v61 = vadd.f32 %v7361_v47, %v11328_v59 }
 0x4eb   : > { %v7329_v39 = vpop.f32.mrf.mxu0 }
 0x4ec   : > { %v7330_v54 = vadd.f32 %v7329_v39, %v7328_v0  ;;  %v7369_v9 = vpop.f32.mrf.mxu1 }
 0x4ed   : > { %v7459_v52 = vpop.f32.mrf.mxu0 }
 0x4ee   : > { %v11444_v56 = vadd.f32 %v7330_v54, %v5958_v45  ;;  %v11446_v53 = vpop.f32.mrf.mxu1 }
 0x4ef   : > { %v7460_v16 = vpop.f32.mrf.mxu0 }
 0x4f0   : > { %v7372_v34 = vpop.f32.mrf.mxu1  ;;  %v7461_v31 = vadd.f32 %v7460_v16, %v7459_v52 }
 0x4f1   : > { %v7462_v36 = vpop.f32.mrf.mxu0 }
 0x4f2   : > { %v6318_v13 = vadd.f32 %v7461_v31, %v6157_v29  ;;  %v11449_v24 = vpop.f32.mrf.mxu1 }
 0x4f3   : > { %v7463_v5 = vpop.f32.mrf.mxu0 }
 0x4f4   : > { %6446 = vst [vmem:[%s10908_s13 + $0x10] sm:$0xff] %v6318_v13  ;;  %v7375_v6 = vpop.f32.mrf.mxu1  ;;  %v7464_v0 = vadd.f32 %v7463_v5, %v7462_v36 }
 0x4f5   : > { %v7465_v39 = vpop.f32.mrf.mxu0 }
 0x4f6   : > { %v6321_v45 = vadd.f32 %v7464_v0, %v6160_v27  ;;  %v11453_v54 = vpop.f32.mrf.mxu1  ;;  %v7364_v27 = vadd.f32 %v7363_v28, %v7362_v48 }
 0x4f7   : > { %v7466_v55 = vpop.f32.mrf.mxu0 }
 0x4f8   : > { %6449 = vst [vmem:[%s10908_s13 + $0x28] sm:$0xff] %v6321_v45  ;;  %v7378_v50 = vpop.f32.mrf.mxu1  ;;  %v7467_v52 = vadd.f32 %v7466_v55, %v7465_v39  ;;  %v6176_v17 = vadd.f32 %v7364_v27, %v11335_v43  ;;  %v7367_v55 = vadd.f32 %v7366_v44, %v7365_v33 }
 0x4f9   : > { %v7468_v16 = vpop.f32.mrf.mxu0 }
 0x4fa   : > { %v6326_v29 = vadd.f32 %v7467_v52, %v6165_v15  ;;  %v11457_v49 = vpop.f32.mrf.mxu1  ;;  %v6181_v28 = vadd.f32 %v7367_v55, %v11344_v41  ;;  %v7379_v55 = vadd.f32 %v7378_v50, %v11453_v54 }
 0x4fb   : > { %v7469_v32 = vpop.f32.mrf.mxu0 }
 0x4fc   : > { %6452 = vst [vmem:[%s10908_s13 + $0x40] sm:$0xff] %v6326_v29  ;;  %v7381_v31 = vpop.f32.mrf.mxu1  ;;  %v7470_v36 = vadd.f32 %v7469_v32, %v7468_v16  ;;  %v7370_v29 = vadd.f32 %v7369_v9, %v11441_v42 }
 0x4fd   : > { %v7471_v13 = vpop.f32.mrf.mxu0 }
 0x4fe   : > { %v6329_v5 = vadd.f32 %v7470_v36, %v6168_v25  ;;  %v11461_v40 = vpop.f32.mrf.mxu1  ;;  %v6184_v36 = vadd.f32 %v7370_v29, %v11351_v57 }
 0x4ff   : > { %v7472_v58 = vpop.f32.mrf.mxu0 }
 0x500   : > { %6455 = vst [vmem:[%s10908_s13 + $0x58] sm:$0xff] %v6329_v5  ;;  %v7384_v19 = vpop.f32.mrf.mxu1  ;;  %v7473_v0 = vadd.f32 %v7472_v58, %v7471_v13  ;;  %v7373_v13 = vadd.f32 %v7372_v34, %v11446_v53 }
 0x501   : > { %v7474_v39 = vpop.f32.mrf.mxu0 }
 0x502   : > { %v6334_v45 = vadd.f32 %v7473_v0, %v6173_v61  ;;  %v11465_v38 = vpop.f32.mrf.mxu1  ;;  %v6189_v27 = vadd.f32 %v7373_v13, %v11360_v62  ;;  %v7376_v0 = vadd.f32 %v7375_v6, %v11449_v24 }
 0x503   : > { %v7475_v63 = vpop.f32.mrf.mxu0 }
 0x504   : > { %6458 = vst [vmem:[%s10908_s13 + $0x70] sm:$0xff] %v6334_v45  ;;  %v7387_v15 = vpop.f32.mrf.mxu1  ;;  %v7476_v4 = vadd.f32 %v7475_v63, %v7474_v39 }
 0x505   : > { %v7477_v52 = vpop.f32.mrf.mxu0 }
 0x506   : > { %v6337_v16 = vadd.f32 %v7476_v4, %v6176_v17  ;;  %v11469_v59 = vpop.f32.mrf.mxu1  ;;  %v6192_v17 = vadd.f32 %v7376_v0, %v11367_v10 }
 0x507   : > { %v7478_v48 = vpop.f32.mrf.mxu0 }
 0x508   : > { %6461 = vst [vmem:[%s10908_s13 + $0x88] sm:$0xff] %v6337_v16  ;;  %v7390_v32 = vpop.f32.mrf.mxu1  ;;  %v7479_v25 = vadd.f32 %v7478_v48, %v7477_v52  ;;  %v6197_v48 = vadd.f32 %v7379_v55, %v11372_v21 }
 0x509   : > { %v7480_v47 = vpop.f32.mrf.mxu0 }
 0x50a   : > { %v6342_v43 = vadd.f32 %v7479_v25, %v6181_v28  ;;  %v11474_v33 = vpop.f32.mrf.mxu1  ;;  %v7382_v28 = vadd.f32 %v7381_v31, %v11457_v49 }
 0x50b   : > { %v7481_v44 = vpop.f32.mrf.mxu0 }
 0x50c   : > { %6464 = vst [vmem:[%s10908_s13 + $0xa0] sm:$0xff] %v6342_v43  ;;  %v7393_v5 = vpop.f32.mrf.mxu1  ;;  %v7482_v58 = vadd.f32 %v7481_v44, %v7480_v47  ;;  %v6200_v43 = vadd.f32 %v7382_v28, %v11376_v14  ;;  %v7385_v44 = vadd.f32 %v7384_v19, %v11461_v40 }
 0x50d   : > { %v7483_v41 = vpop.f32.mrf.mxu0 }
 0x50e   : > { %v6345_v61 = vadd.f32 %v7482_v58, %v6184_v36  ;;  %v11479_v42 = vpop.f32.mrf.mxu1 }
 0x50f   : > { %v7484_v9 = vpop.f32.mrf.mxu0 }
 0x510   : > { %6467 = vst [vmem:[%s10908_s13 + $0xb8] sm:$0xff] %v6345_v61  ;;  %v7396_v39 = vpop.f32.mrf.mxu1  ;;  %v7485_v45 = vadd.f32 %v7484_v9, %v7483_v41  ;;  %v6205_v41 = vadd.f32 %v7385_v44, %v11380_v8  ;;  %v7388_v61 = vadd.f32 %v7387_v15, %v11465_v38 }
 0x511   : > { %v7486_v57 = vpop.f32.mrf.mxu0  ;;  %v7397_v28 = vadd.f32 %v7396_v39, %v11479_v42 }
 0x512   : > { %v6350_v63 = vadd.f32 %v7485_v45, %v6189_v27  ;;  %v11484_v53 = vpop.f32.mrf.mxu1  ;;  %v6208_v45 = vadd.f32 %v7388_v61, %v11384_v51 }
 0x513   : > { %v7487_v34 = vpop.f32.mrf.mxu0 }
 0x514   : > { %6470 = vst [vmem:[%s10908_s13 + $0xd0] sm:$0xff] %v6350_v63  ;;  %v7399_v4 = vpop.f32.mrf.mxu1  ;;  %v7488_v52 = vadd.f32 %v7487_v34, %v7486_v57  ;;  %v7391_v57 = vadd.f32 %v7390_v32, %v11469_v59 }
 0x515   : > { %v7489_v62 = vpop.f32.mrf.mxu0 }
 0x516   : > { %v6353_v16 = vadd.f32 %v7488_v52, %v6192_v17  ;;  %v11489_v24 = vpop.f32.mrf.mxu1  ;;  %v6213_v55 = vadd.f32 %v7391_v57, %v11388_v30  ;;  %v7394_v52 = vadd.f32 %v7393_v5, %v11474_v33 }
 0x517   : > { %v7490_v6 = vpop.f32.mrf.mxu0 }
 0x518   : > { %6473 = vst [vmem:[%s10908_s13 + $0xe8] sm:$0xff] %v6353_v16  ;;  %v7402_v29 = vpop.f32.mrf.mxu1  ;;  %v7491_v25 = vadd.f32 %v7490_v6, %v7489_v62 }
 0x519   : > { %v7492_v10 = vpop.f32.mrf.mxu0 }
 0x51a   : > { %v6358_v47 = vadd.f32 %v7491_v25, %v6197_v48  ;;  %v11494_v54 = vpop.f32.mrf.mxu1  ;;  %v6216_v48 = vadd.f32 %v7394_v52, %v11392_v1 }
 0x51b   : > { %v7493_v50 = vpop.f32.mrf.mxu0 }
 0x51c   : > { %6476 = vst [vmem:[%s10908_s13 + $0x100] sm:$0xff] %v6358_v47  ;;  %v7405_v36 = vpop.f32.mrf.mxu1  ;;  %v7494_v13 = vadd.f32 %v7493_v50, %v7492_v10  ;;  %v6221_v50 = vadd.f32 %v7397_v28, %v11396_v60 }
 0x51d   : > { %v7495_v21 = vpop.f32.mrf.mxu0 }
 0x51e   : > { %v6361_v58 = vadd.f32 %v7494_v13, %v6200_v43  ;;  %v11499_v49 = vpop.f32.mrf.mxu1  ;;  %v7400_v43 = vadd.f32 %v7399_v4, %v11484_v53 }
 0x51f   : > { %v7496_v31 = vpop.f32.mrf.mxu0 }
 0x520   : > { %6479 = vst [vmem:[%s10908_s13 + $0x118] sm:$0xff] %v6361_v58  ;;  %v7408_v9 = vpop.f32.mrf.mxu1  ;;  %v7497_v27 = vadd.f32 %v7496_v31, %v7495_v21  ;;  %v6224_v58 = vadd.f32 %v7400_v43, %v11400_v3  ;;  %v7403_v31 = vadd.f32 %v7402_v29, %v11489_v24 }
 0x521   : > { %v7498_v14 = vpop.f32.mrf.mxu0 }
 0x522   : > { %v6366_v0 = vadd.f32 %v7497_v27, %v6205_v41  ;;  %v11504_v40 = vpop.f32.mrf.mxu1 }
 0x523   : > { %v7499_v19 = vpop.f32.mrf.mxu0 }
 0x524   : > { %6482 = vst [vmem:[%s10908_s13 + $0x130] sm:$0xff] %v6366_v0  ;;  %v7411_v63 = vpop.f32.mrf.mxu1  ;;  %v7500_v34 = vadd.f32 %v7499_v19, %v7498_v14  ;;  %v6229_v14 = vadd.f32 %v7403_v31, %v11403_v2  ;;  %v7406_v0 = vadd.f32 %v7405_v36, %v11494_v54 }
 0x525   : > { %v7501_v8 = vpop.f32.mrf.mxu0 }
 0x526   : > { %v6369_v17 = vadd.f32 %v7500_v34, %v6208_v45  ;;  %v11509_v38 = vpop.f32.mrf.mxu1  ;;  %v6232_v34 = vadd.f32 %v7406_v0, %v11406_v26 }
 0x527   : > { %v7502_v15 = vpop.f32.mrf.mxu0 }
 0x528   : > { %6485 = vst [vmem:[%s10908_s13 + $0x148] sm:$0xff] %v6369_v17  ;;  %v7414_v62 = vpop.f32.mrf.mxu1  ;;  %v7503_v16 = vadd.f32 %v7502_v15, %v7501_v8  ;;  %v7409_v8 = vadd.f32 %v7408_v9, %v11499_v49 }
 0x529   : > { %v7504_v51 = vpop.f32.mrf.mxu0  ;;  %v7415_v28 = vadd.f32 %v7414_v62, %v11509_v38 }
 0x52a   : > { %v6374_v6 = vadd.f32 %v7503_v16, %v6213_v55  ;;  %v11514_v59 = vpop.f32.mrf.mxu1  ;;  %v6237_v52 = vadd.f32 %v7409_v8, %v11409_v20  ;;  %v7412_v16 = vadd.f32 %v7411_v63, %v11504_v40 }
 0x52b   : > { %v7505_v32 = vpop.f32.mrf.mxu0  ;;  %v6245_v63 = vadd.f32 %v7415_v28, %v11415_v46 }
 0x52c   : > { %6488 = vst [vmem:[%s10908_s13 + $0x160] sm:$0xff] %v6374_v6  ;;  %v7417_v25 = vpop.f32.mrf.mxu1  ;;  %v7506_v10 = vadd.f32 %v7505_v32, %v7504_v51 }
 0x52d   : > { %v7507_v30 = vpop.f32.mrf.mxu0 }
 0x52e   : > { %v6377_v47 = vadd.f32 %v7506_v10, %v6216_v48  ;;  %v11519_v33 = vpop.f32.mrf.mxu1  ;;  %v6240_v48 = vadd.f32 %v7412_v16, %v11412_v37 }
 0x52f   : > { %v7508_v5 = vpop.f32.mrf.mxu0 }
 0x530   : > { %6491 = vst [vmem:[%s10908_s13 + $0x178] sm:$0xff] %v6377_v47  ;;  %v7420_v44 = vpop.f32.mrf.mxu1  ;;  %v7509_v13 = vadd.f32 %v7508_v5, %v7507_v30 }
 0x531   : > { %v7510_v1 = vpop.f32.mrf.mxu0 }
 0x532   : > { %v6382_v21 = vadd.f32 %v7509_v13, %v6221_v50  ;;  %v11524_v42 = vpop.f32.mrf.mxu1  ;;  %v7418_v50 = vadd.f32 %v7417_v25, %v11514_v59 }
 0x533   : > { %v7511_v39 = vpop.f32.mrf.mxu0 }
 0x534   : > { %6494 = vst [vmem:[%s10908_s13 + $0x190] sm:$0xff] %v6382_v21  ;;  %v7423_v41 = vpop.f32.mrf.mxu1  ;;  %v7512_v61 = vadd.f32 %v7511_v39, %v7510_v1  ;;  %v6248_v62 = vadd.f32 %v7418_v50, %v11418_v35  ;;  %v7421_v39 = vadd.f32 %v7420_v44, %v11519_v33 }
 0x535   : > { %v7513_v60 = vpop.f32.mrf.mxu0 }
 0x536   : > { %v6385_v27 = vadd.f32 %v7512_v61, %v6224_v58  ;;  %v11529_v53 = vpop.f32.mrf.mxu1  ;;  %v6253_v25 = vadd.f32 %v7421_v39, %v11421_v18 }
 0x537   : > { %v7514_v4 = vpop.f32.mrf.mxu0 }
 0x538   : > { %6497 = vst [vmem:[%s10908_s13 + $0x1a8] sm:$0xff] %v6385_v27  ;;  %v11534_v19 = vpop.f32.mrf.mxu1  ;;  %v7515_v45 = vadd.f32 %v7514_v4, %v7513_v60  ;;  %v7424_v4 = vadd.f32 %v7423_v41, %v11524_v42 }
 0x539   : > { %v7516_v3 = vpop.f32.mrf.mxu0  ;;  %v7427_v18 = vadd.f32 %v11534_v19, %v11529_v53 }
 0x53a   : > { %v6390_v24 = vadd.f32 %v7515_v45, %v6229_v14  ;;  %v11536_v29 = vpop.f32.mrf.mxu1  ;;  %v6256_v8 = vadd.f32 %v7424_v4, %v11424_v23 }
 0x53b   : > { %v7517_v57 = vpop.f32.mrf.mxu0  ;;  %v6261_v23 = vadd.f32 %v7427_v18, %v11427_v7 }
 0x53c   : > { %6500 = vst [vmem:[%s10908_s13 + $0x1c0] sm:$0xff] %v6390_v24  ;;  %v11541_v17 = vpop.f32.mrf.mxu1  ;;  %v7518_v2 = vadd.f32 %v7517_v57, %v7516_v3 }
 0x53d   : > { %v7519_v54 = vpop.f32.mrf.mxu0  ;;  %v7430_v53 = vadd.f32 %v11541_v17, %v11536_v29  ;;  %v12197_v29 = vld [vmem:[#allocation38_spill] sm:$0xff] }
 0x53e   : > { %v6393_v36 = vadd.f32 %v7518_v2, %v6232_v34  ;;  %v7431_v15 = vpop.f32.mrf.mxu1 }
 0x53f   : > { %v7520_v55 = vpop.f32.mrf.mxu0  ;;  %v6264_v17 = vadd.f32 %v7430_v53, %v12197_v29 }
 0x540   : > { %6503 = vst [vmem:[%s10908_s13 + $0x1d8] sm:$0xff] %v6393_v36  ;;  %v7432_v51 = vpop.f32.mrf.mxu1  ;;  %v7521_v6 = vadd.f32 %v7520_v55, %v7519_v54 }
 0x541   : > { %v7522_v26 = vpop.f32.mrf.mxu0  ;;  %v7433_v61 = vadd.f32 %v7432_v51, %v7431_v15 }
 0x542   : > { %v6398_v32 = vadd.f32 %v7521_v6, %v6237_v52  ;;  %v7434_v49 = vpop.f32.mrf.mxu1 }
 0x543   : > { %v7523_v9 = vpop.f32.mrf.mxu0  ;;  %v6269_v35 = vadd.f32 %v7433_v61, %v11433_v22 }
 0x544   : > { %6506 = vst [vmem:[%s10908_s13 + $0x1f0] sm:$0xff] %v6398_v32  ;;  %v7435_v10 = vpop.f32.mrf.mxu1  ;;  %v7524_v30 = vadd.f32 %v7523_v9, %v7522_v26 }
 0x545   : > { %v7525_v47 = vpop.f32.mrf.mxu0  ;;  %v7436_v33 = vadd.f32 %v7435_v10, %v7434_v49 }
 0x546   : > { %v6401_v20 = vadd.f32 %v7524_v30, %v6240_v48  ;;  %v7437_v5 = vpop.f32.mrf.mxu1 }
 0x547   : > { %v7526_v40 = vpop.f32.mrf.mxu0  ;;  %v6272_v2 = vadd.f32 %v7436_v33, %v11436_v11 }
 0x548   : > { %6509 = vst [vmem:[%s10908_s13 + $0x208] sm:$0xff] %v6401_v20  ;;  %v7438_v43 = vpop.f32.mrf.mxu1  ;;  %v7527_v13 = vadd.f32 %v7526_v40, %v7525_v47 }
 0x549   : > { %v7528_v1 = vpop.f32.mrf.mxu0  ;;  %v7439_v22 = vadd.f32 %v7438_v43, %v7437_v5 }
 0x54a   : > { %v6406_v37 = vadd.f32 %v7527_v13, %v6245_v63  ;;  %v7440_v21 = vpop.f32.mrf.mxu1 }
 0x54b   : > { %v7529_v38 = vpop.f32.mrf.mxu0  ;;  %v6277_v51 = vadd.f32 %v7439_v22, %v11439_v12 }
 0x54c   : > { %6512 = vst [vmem:[%s10908_s13 + $0x220] sm:$0xff] %v6406_v37  ;;  %v7441_v58 = vpop.f32.mrf.mxu1  ;;  %v7530_v31 = vadd.f32 %v7529_v38, %v7528_v1 }
 0x54d   : > { %v7531_v60 = vpop.f32.mrf.mxu0  ;;  %v7442_v6 = vadd.f32 %v7441_v58, %v7440_v21 }
 0x54e   : > { %v6409_v46 = vadd.f32 %v7530_v31, %v6248_v62  ;;  %v7543_v27 = vpop.f32.mrf.mxu1 }
 0x54f   : > { %v7532_v59 = vpop.f32.mrf.mxu0  ;;  %v6280_v10 = vadd.f32 %v7442_v6, %v11444_v56 }
 0x550   : > { %6515 = vst [vmem:[%s10908_s13 + $0x238] sm:$0xff] %v6409_v46  ;;  %v7533_v14 = vadd.f32 %v7532_v59, %v7531_v60  ;;  %v7544_v0 = vpop.f32.mrf.mxu1 }
 0x551   : > { %v7545_v44 = vadd.f32 %v7544_v0, %v7543_v27  ;;  %v7534_v45 = vpop.f32.mrf.mxu0 }
 0x552   : > { %v6414_v3 = vadd.f32 %v7533_v14, %v6253_v25  ;;  %v7546_v24 = vpop.f32.mrf.mxu1 }
 0x553   : > { %v6430_v57 = vadd.f32 %v7545_v44, %v6269_v35  ;;  %v7535_v34 = vpop.f32.mrf.mxu0 }
 0x554   : > { %6518 = vst [vmem:[%s10908_s13 + $0x250] sm:$0xff] %v6414_v3  ;;  %v7536_v42 = vadd.f32 %v7535_v34, %v7534_v45  ;;  %v7547_v41 = vpop.f32.mrf.mxu1 }
 0x555   : > { %6530 = vst [vmem:[%s10908_s13 + $0x2b0] sm:$0xff] %v6430_v57  ;;  %v7548_v54 = vadd.f32 %v7547_v41, %v7546_v24  ;;  %v7537_v36 = vpop.f32.mrf.mxu0 }
 0x556   : > { %v6417_v15 = vadd.f32 %v7536_v42, %v6256_v8  ;;  %v7549_v55 = vpop.f32.mrf.mxu1 }
 0x557   : > { %v6433_v52 = vadd.f32 %v7548_v54, %v6272_v2  ;;  %v7538_v16 = vpop.f32.mrf.mxu0 }
 0x558   : > { %6521 = vst [vmem:[%s10908_s13 + $0x268] sm:$0xff] %v6417_v15  ;;  %v7539_v19 = vadd.f32 %v7538_v16, %v7537_v36  ;;  %v7550_v11 = vpop.f32.mrf.mxu1 }
 0x559   : > { %6533 = vst [vmem:[%s10908_s13 + $0x2c8] sm:$0xff] %v6433_v52  ;;  %v7551_v26 = vadd.f32 %v7550_v11, %v7549_v55  ;;  %v7540_v32 = vpop.f32.mrf.mxu0 }
 0x55a   : > { %v6422_v49 = vadd.f32 %v7539_v19, %v6261_v23  ;;  %v7552_v9 = vpop.f32.mrf.mxu1 }
 0x55b   : > { %v6438_v7 = vadd.f32 %v7551_v26, %v6277_v51  ;;  %v7541_v48 = vpop.f32.mrf.mxu0 }
 0x55c   : > { %6524 = vst [vmem:[%s10908_s13 + $0x280] sm:$0xff] %v6422_v49  ;;  %v7542_v28 = vadd.f32 %v7541_v48, %v7540_v32  ;;  %v7553_v12 = vpop.f32.mrf.mxu1 }
 0x55d   : > { %6536 = vst [vmem:[%s10908_s13 + $0x2e0] sm:$0xff] %v6438_v7  ;;  %v7554_v30 = vadd.f32 %v7553_v12, %v7552_v9 }
 0x55e   : > { %v6425_v47 = vadd.f32 %v7542_v28, %v6264_v17 }
 0x55f   : > { %v6441_v20 = vadd.f32 %v7554_v30, %v6280_v10 }
 0x560   : > { %6527 = vst [vmem:[%s10908_s13 + $0x298] sm:$0xff] %v6425_v47 }
 0x561   : > { %6539 = vst [vmem:[%s10908_s13 + $0x2f8] sm:$0xff] %v6441_v20 }
 0x562   : > { %8201 = shalt.err (!%p8198_p9)
}
 0x563   : > { %s8202_s24 = scalar_lea.hbm %s11580_s22, 12288  ;;  %s8206_s13 = scalar_lea.hbm %s11632_s5, 24576 }
 0x564   : > { %p8203_p1 = scmp.ne.s32.totalorder %s11580_s22, %s8202_s24  ;;  %p8207_p11 = scmp.lt.s32.totalorder %s11580_s22, %s11632_s5 }
 0x565   : > { %p8208_p13 = scmp.lt.s32.totalorder %s8206_s13, %s8202_s24 }
 0x566   : > { %p8204_p8 = pnand %p8203_p1, %p12198_p6 }
 0x567   : > { %p8209_p2 = por %p8208_p13, %p8207_p11 }
 0x568   : > { %p8205_p10 = pneg %p8204_p8 }
 0x56a   : > { %p8210_p4 = pnand %p8209_p2, %p8205_p10 }
 0x56c   : > { %8213 = shalt.err (!%p8210_p4)
}
 0x56d   : > { %s8272_s30 = smov 384   ;;  %s8273_s8 = smov 24  }
 0x56e   : > { %7590 = dma.vmem_to_hbm [thread:$0]  (%p12198_p6), %s11582_s11, 12288, %s11580_s22, %s6541_s9, %s8272_s30, %s8272_s30, %s8273_s8  }
 0x56f PF: > { %s6570_s17 = sand.u32 1, %s8248_s18   ;;  %p12199_p12 = scmp.ne.s32.totalorder %s11781_s25, 0 }
 0x570   : > { %p12200_p0 = scmp.ge.s32.totalorder %s8260_s21, 2  ;;  %s6571_s23 = scalar_lea.sflag [#allocation4], %s6570_s17 }
 0x572   : > { %p7607_p5 = pnand %p12200_p0, %p12199_p12 }
 0x574   : > { %p7608_p3 = pneg %p7607_p5 }
 0x576   : > { %8243 = dma.done.wait (%p7608_p3), %s6571_s23, 12288  }
 0x577   : > { %8245 = vsyncadd (%p7608_p3), %s6571_s23, 4294955008  ;;  %p20_p7 = scmp.ge.s32.totalorder %s8387_s6, 4   ;;  %s12201_s18 = smov %s8252_s19 }
 0x578   : > { %s12202_s19 = smov %s8256_s20  ;;  %s12203_s20 = smov %s8397_s10 }
 0x579   : > { %s12204_s21 = smov %s8387_s6  ;;  %22 = sbr.rel (!%p20_p7) target bundleno = 7 (0x7), region = 97 }
 0x57e   :  { %6576 = vsyncpa [#allocation3], 1 }
 0x57f   :  { %6578 = vsyncpa [#allocation3 + $0x1], 1 }
 0x580   :  { %6579 = vsyncpa [#allocation6], 1 }
 0x581   :  { %6580 = vsyncpa [#allocation9], 1 }
 0x582   :  { %6581 = vsyncpa [#allocation4], 1 }
 0x583   :  { %6583 = vsyncpa [#allocation4 + $0x1], 1 }

</bundles_post_ra>
